<compile_context>
chip_gen: v7x
topology: tpu7x:2x2x1
jax: 0.10.0
libtpu: 0.0.40
codegen_flags: <defaults>
</compile_context>

<pallas_src>
import functools

import jax
import jax.numpy as jnp
from jax import lax
from jax.experimental import pallas as pl
from jax.experimental.pallas import tpu as pltpu

EPS = 1e-5
NEG_SLOPE = 0.1


# ----------------------------------------------------------------------------
# Parameter preparation — run ONCE at parameter-load time (not per forward).
# ----------------------------------------------------------------------------
def prepare_weights(w1, b1, w2, b2):
    """Pre-fuse ConvT(5x5,p=2) and ConvT(2x2,s=2) into one matmul weight.

    w1: (Cin, Cout, 5, 5) torch ConvTranspose2d weight, w2: (Cout, Cout, 2, 2).
    Returns:
      w12: (5, 5, Cin, 4*Cout) f32  fused conv weight (rows ordered dy,dx,cin)
      b12: (1, 4*Cout)         f32  fused bias  (b1 pushed through w2, + b2)

    Fusing is the right call when 4*Cout fits a single MXU pass
    (<=128 on v5e, <=256 on v6e/v7x), which holds for WNet channel counts.
    # TODO(synk): for very large Cout keep the two matmuls separate in-kernel.
    """
    Cin, Cout = w1.shape[0], w1.shape[1]
    NL = 4 * Cout
    # ConvT(5, s=1, p=2) == 'same' correlation with the spatially flipped kernel.
    w1_col = jnp.flip(w1, axis=(2, 3)).transpose(2, 3, 0, 1).reshape(25 * Cin, Cout)
    # ConvT(2, s=2): stride == kernel -> per-pixel matmul, columns ordered (a, b, cout).
    w2_col = w2.transpose(0, 2, 3, 1).reshape(Cout, NL)
    w12 = (w1_col.astype(jnp.float32) @ w2_col.astype(jnp.float32)).reshape(5, 5, Cin, NL)
    b12 = (b1.reshape(1, Cout).astype(jnp.float32) @ w2_col.astype(jnp.float32)
           + jnp.tile(b2, 4).reshape(1, NL).astype(jnp.float32))
    return w12, b12


# ----------------------------------------------------------------------------
# Row-tile picker with an explicit VMEM budget (kept well inside v7x's 64 MiB).
# ----------------------------------------------------------------------------
def _pick_row_tile(H, W, Ca, NL, max_rows=2048, vmem_budget=36 << 20):
    def est(th):
        slab = (th + 4) * (W + 4) * Ca * 2            # bf16 input block
        outb = th * W * NL * 4                        # f32 output block
        tmp = (th + 4) * (W + 4) * Ca * 4             # f32 upcast of the slab
        tmp += th * W * 25 * Ca * 6                   # in-VMEM im2col (f32 + bf16)
        tmp += th * W * NL * 8                        # matmul result + activation
        wts = 25 * Ca * NL * 2 + NL * 4
        return 2 * (slab + outb) + 2 * wts + tmp + (2 << 20)

    cands = [t for t in range(1, H + 1) if H % t == 0 and (t * W) % 8 == 0]
    ok = [t for t in cands if t * W <= max_rows and est(t) <= vmem_budget]
    th = max(ok) if ok else (min(cands) if cands else H)
    return th, est(th)


# ----------------------------------------------------------------------------
# Forward pass
# ----------------------------------------------------------------------------
@functools.partial(jax.jit, static_argnames=("max_tile_rows",))
def deconv_block_apply(x_nchw, gamma, beta, w12, b12, *, max_tile_rows=2048):
    f32 = jnp.float32
    N, Cin, H, W = x_nchw.shape
    NL = b12.shape[-1]
    Cout = NL // 4
    Ca = Cin + 1                       # +1 border-indicator channel (carries BN shift)
    M = N * H * W

    x_nhwc = jnp.transpose(x_nchw, (0, 2, 3, 1)).astype(f32)   # channels -> lanes

    # ---- stage 1: BatchNorm2d batch statistics (tiled Pallas reduction) -----
    x_flat = x_nhwc.reshape(M, Cin)
    tmb = min(1024, ((M + 7) // 8) * 8)
    Mp = pl.cdiv(M, tmb) * tmb
    if Mp != M:                        # zero rows change neither sum nor sum(x^2)
        x_flat = jnp.pad(x_flat, ((0, Mp - M), (0, 0)))

    def _bn_stats_kernel(x_ref, g_ref, b_ref, stats_ref, s_ref, ss_ref):
        @pl.when(pl.program_id(0) == 0)
        def _():
            s_ref[...] = jnp.zeros_like(s_ref)
            ss_ref[...] = jnp.zeros_like(ss_ref)

        x = x_ref[...]
        s_ref[...] += jnp.sum(x, axis=0, keepdims=True)
        ss_ref[...] += jnp.sum(x * x, axis=0, keepdims=True)

        @pl.when(pl.program_id(0) == pl.num_programs(0) - 1)
        def _():
            inv_m = 1.0 / M
            mean = s_ref[...] * inv_m
            var = ss_ref[...] * inv_m - mean * mean          # biased variance
            scale = g_ref[...] * lax.rsqrt(var + EPS)
            stats_ref[0:1, :] = scale
            stats_ref[1:2, :] = b_ref[...] - mean * scale

    stats = pl.pallas_call(
        _bn_stats_kernel,
        out_shape=jax.ShapeDtypeStruct((2, Cin), f32),
        grid=(Mp // tmb,),
        in_specs=[
            pl.BlockSpec((tmb, Cin), lambda i: (i, 0)),
            pl.BlockSpec((1, Cin), lambda i: (0, 0)),
            pl.BlockSpec((1, Cin), lambda i: (0, 0)),
        ],
        out_specs=pl.BlockSpec((2, Cin), lambda i: (0, 0)),
        scratch_shapes=[pltpu.VMEM((1, Cin), f32), pltpu.VMEM((1, Cin), f32)],
        compiler_params=pltpu.CompilerParams(dimension_semantics=("arbitrary",)),
    )(x_flat, gamma.reshape(1, Cin).astype(f32), beta.reshape(1, Cin).astype(f32))

    # ---- fold BN affine into the pre-fused conv weight (tiny, per call) ------
    scale = stats[0]                                      # (Cin,)
    shift = stats[1]                                      # (Cin,)
    w_x = w12 * scale[None, None, :, None]                # multiplicative part
    w_i = jnp.einsum("ijcn,c->ijn", w12, shift)[:, :, None, :]   # additive part
    w_eff = jnp.concatenate([w_x, w_i], axis=2).reshape(25 * Ca, NL)
    w_eff = w_eff.astype(jnp.bfloat16)
    b_eff = b12.astype(f32)

    # ---- stage 2 input: bf16 halo slabs (raw x channels + 0/1 indicator) -----
    th, vmem_est = _pick_row_tile(H, W, Ca, NL, max_rows=max_tile_rows)
    assert H % th == 0 and (th * W) % 8 == 0, (H, W, th)
    RB = H // th

    ones = jnp.ones((N, H, W, 1), f32)
    x_aug = jnp.concatenate([x_nhwc, ones], axis=-1)                  # (N,H,W,Ca)
    x_pad = jnp.pad(x_aug, ((0, 0), (2, 2), (2, 2), (0, 0)))          # zero ring
    slabs = jnp.stack(
        [x_pad[:, r * th: r * th + th + 4] for r in range(RB)], axis=1
    ).astype(jnp.bfloat16)                                            # (N,RB,th+4,W+4,Ca)

    # ---- stage 2: fused (BN ∘ ConvT5x5 ∘ ConvT2x2s2 ∘ LeakyReLU) kernel ------
    def _deconv_kernel(slab_ref, w_ref, b_ref, o_ref):
        xs = slab_ref[...].astype(f32)                    # (th+4, W+4, Ca)
        # in-VMEM im2col: 25 shifted taps, lanes ordered (dy, dx, channel)
        taps = [xs[dy:dy + th, dx:dx + W, :]
                for dy in range(5) for dx in range(5)]
        patches = jnp.concatenate(taps, axis=-1)          # (th, W, 25*Ca)
        patches = patches.reshape(th * W, 25 * Ca).astype(jnp.bfloat16)
        z = jnp.dot(patches, w_ref[...],
                    preferred_element_type=jnp.float32) + b_ref[...]
        o_ref[...] = jnp.where(z > 0, z, NEG_SLOPE * z)   # LeakyReLU(0.1)

    out2d = pl.pallas_call(
        _deconv_kernel,
        out_shape=jax.ShapeDtypeStruct((M, NL), f32),
        grid=(N, RB),
        in_specs=[
            pl.BlockSpec((None, None, th + 4, W + 4, Ca),
                         lambda n, r: (n, r, 0, 0, 0)),
            pl.BlockSpec((25 * Ca, NL), lambda n, r: (0, 0)),
            pl.BlockSpec((1, NL), lambda n, r: (0, 0)),
        ],
        out_specs=pl.BlockSpec((th * W, NL), lambda n, r: (n * RB + r, 0)),
        compiler_params=pltpu.CompilerParams(
            dimension_semantics=("parallel", "parallel"),
            vmem_limit_bytes=int(min(max(2 * vmem_est, 32 << 20), 56 << 20)),
        ),
    )(slabs, w_eff, b_eff)

    # ---- single transpose: (n,h,w,a,b,c) -> NCHW at 2x resolution ------------
    out = out2d.reshape(N, H, W, 2, 2, Cout)
    out = out.transpose(0, 5, 1, 3, 2, 4).reshape(N, Cout, 2 * H, 2 * W)
    return out


# ----------------------------------------------------------------------------
# Pure-JAX reference (PyTorch semantics), for a self-check.
# ----------------------------------------------------------------------------
def reference(x, gamma, beta, w1, b1, w2, b2):
    mean = x.mean(axis=(0, 2, 3), keepdims=True)
    var = ((x - mean) ** 2).mean(axis=(0, 2, 3), keepdims=True)
    xn = (x - mean) / jnp.sqrt(var + EPS) * gamma.reshape(1, -1, 1, 1) \
        + beta.reshape(1, -1, 1, 1)

    def convT(a, w, b, k, stride, pad):
        rhs = jnp.flip(w, axis=(2, 3)).transpose(1, 0, 2, 3)   # OIHW, flipped
        y = lax.conv_general_dilated(
            a, rhs, window_strides=(1, 1),
            padding=[(k - 1 - pad, k - 1 - pad)] * 2,
            lhs_dilation=(stride, stride),
            dimension_numbers=("NCHW", "OIHW", "NCHW"),
            precision=lax.Precision.HIGHEST)
        return y + b.reshape(1, -1, 1, 1)

    y = convT(xn, w1, b1, 5, 1, 2)
    y = convT(y, w2, b2, 2, 2, 0)
    return jnp.where(y > 0, y, NEG_SLOPE * y)


if __name__ == "__main__":
    Cin, Cout, N, H, W = 4, 8, 2, 16, 16
    key = jax.random.PRNGKey(0)
    ks = jax.random.split(key, 7)
    gamma = 1.0 + 0.1 * jax.random.normal(ks[0], (Cin,), jnp.float32)
    beta = 0.1 * jax.random.normal(ks[1], (Cin,), jnp.float32)
    w1 = 0.1 * jax.random.normal(ks[2], (Cin, Cout, 5, 5), jnp.float32)
    b1 = 0.1 * jax.random.normal(ks[3], (Cout,), jnp.float32)
    w2 = 0.1 * jax.random.normal(ks[4], (Cout, Cout, 2, 2), jnp.float32)
    b2 = 0.1 * jax.random.normal(ks[5], (Cout,), jnp.float32)
    x = jax.random.normal(ks[6], (N, Cin, H, W), jnp.float32)

    # weight re-layout / two-conv fusion happens once, at parameter-load time
    w12, b12 = prepare_weights(w1, b1, w2, b2)

    out = deconv_block_apply(x, gamma, beta, w12, b12)
    out = jax.block_until_ready(out)
    assert out.shape == (N, Cout, 2 * H, 2 * W), out.shape

    ref = reference(x, gamma, beta, w1, b1, w2, b2)
    err = float(jnp.max(jnp.abs(out - ref)))
    if err > 5e-2:
        raise AssertionError(f"mismatch vs reference, max abs err = {err}")
    print("KERNEL_OK")
</pallas_src>

<mosaic_0001>
module attributes {stable_mosaic.version = 11 : i64} {
  func.func @_bn_stats_kernel(%arg0: i32, %arg1: memref<512x4xf32, #tpu.memory_space<vmem>>, %arg2: memref<1x4xf32, #tpu.memory_space<vmem>>, %arg3: memref<1x4xf32, #tpu.memory_space<vmem>>, %arg4: memref<2x4xf32, #tpu.memory_space<vmem>>, %arg5: memref<1x4xf32, #tpu.memory_space<vmem>>, %arg6: memref<1x4xf32, #tpu.memory_space<vmem>>) attributes {dimension_semantics = [#tpu.dimension_semantics<arbitrary>], iteration_bounds = array<i64: 1>, scalar_prefetch = 0 : i64, scratch_operands = 2 : i64, tpu.core_type = #tpu.core_type<tc>, window_params = [{transform_indices = @transform_0, window_bounds = array<i64: 512, 4>}, {pipeline_mode = #tpu.pipeline_mode<synchronous>, transform_indices = @transform_1, window_bounds = array<i64: 1, 4>}, {pipeline_mode = #tpu.pipeline_mode<synchronous>, transform_indices = @transform_2, window_bounds = array<i64: 1, 4>}, {pipeline_mode = #tpu.pipeline_mode<synchronous>, transform_indices = @transform_3, window_bounds = array<i64: 2, 4>}]} {
    %c0_i32 = arith.constant 0 : i32
    %0 = arith.cmpi eq, %arg0, %c0_i32 : i32
    %1 = arith.extui %0 : i1 to i32
    %c0_i32_0 = arith.constant 0 : i32
    %2 = arith.cmpi ne, %1, %c0_i32_0 : i32
    scf.if %2 {
      %cst_13 = arith.constant 0.000000e+00 : f32
      %18 = vector.broadcast %cst_13 : f32 to vector<1x4xf32>
      %c0_14 = arith.constant 0 : index
      %c0_15 = arith.constant 0 : index
      %19 = vector.load %arg5[%c0_14, %c0_15] : memref<1x4xf32, #tpu.memory_space<vmem>>, vector<1x4xf32>
      tpu.vector_store %arg5[%c0_14, %c0_15], %18 {strides = array<i32>} : memref<1x4xf32, #tpu.memory_space<vmem>>, vector<1x4xf32>,
      %cst_16 = arith.constant 0.000000e+00 : f32
      %20 = vector.broadcast %cst_16 : f32 to vector<1x4xf32>
      %c0_17 = arith.constant 0 : index
      %c0_18 = arith.constant 0 : index
      %21 = vector.load %arg6[%c0_17, %c0_18] : memref<1x4xf32, #tpu.memory_space<vmem>>, vector<1x4xf32>
      tpu.vector_store %arg6[%c0_17, %c0_18], %20 {strides = array<i32>} : memref<1x4xf32, #tpu.memory_space<vmem>>, vector<1x4xf32>,
    } else {
    }
    %c0 = arith.constant 0 : index
    %c0_1 = arith.constant 0 : index
    %3 = vector.load %arg1[%c0, %c0_1] : memref<512x4xf32, #tpu.memory_space<vmem>>, vector<512x4xf32>
    %c0_2 = arith.constant 0 : index
    %c0_3 = arith.constant 0 : index
    %4 = vector.load %arg5[%c0_2, %c0_3] : memref<1x4xf32, #tpu.memory_space<vmem>>, vector<1x4xf32>
    %cst = arith.constant dense<0.000000e+00> : vector<4xf32>
    %5 = vector.multi_reduction <add>, %3, %cst [0] : vector<512x4xf32> to vector<4xf32>
    %6 = vector.shape_cast %5 : vector<4xf32> to vector<1x4xf32>
    %7 = arith.addf %4, %6 : vector<1x4xf32>
    %c0_4 = arith.constant 0 : index
    %c0_5 = arith.constant 0 : index
    %8 = vector.load %arg5[%c0_4, %c0_5] : memref<1x4xf32, #tpu.memory_space<vmem>>, vector<1x4xf32>
    tpu.vector_store %arg5[%c0_4, %c0_5], %7 {strides = array<i32>} : memref<1x4xf32, #tpu.memory_space<vmem>>, vector<1x4xf32>,
    %c0_6 = arith.constant 0 : index
    %c0_7 = arith.constant 0 : index
    %9 = vector.load %arg6[%c0_6, %c0_7] : memref<1x4xf32, #tpu.memory_space<vmem>>, vector<1x4xf32>
    %10 = arith.mulf %3, %3 : vector<512x4xf32>
    %cst_8 = arith.constant dense<0.000000e+00> : vector<4xf32>
    %11 = vector.multi_reduction <add>, %10, %cst_8 [0] : vector<512x4xf32> to vector<4xf32>
    %12 = vector.shape_cast %11 : vector<4xf32> to vector<1x4xf32>
    %13 = arith.addf %9, %12 : vector<1x4xf32>
    %c0_9 = arith.constant 0 : index
    %c0_10 = arith.constant 0 : index
    %14 = vector.load %arg6[%c0_9, %c0_10] : memref<1x4xf32, #tpu.memory_space<vmem>>, vector<1x4xf32>
    tpu.vector_store %arg6[%c0_9, %c0_10], %13 {strides = array<i32>} : memref<1x4xf32, #tpu.memory_space<vmem>>, vector<1x4xf32>,
    %c0_i32_11 = arith.constant 0 : i32
    %15 = arith.cmpi eq, %arg0, %c0_i32_11 : i32
    %16 = arith.extui %15 : i1 to i32
    %c0_i32_12 = arith.constant 0 : i32
    %17 = arith.cmpi ne, %16, %c0_i32_12 : i32
    scf.if %17 {
      %c0_13 = arith.constant 0 : index
      %c0_14 = arith.constant 0 : index
      %18 = vector.load %arg5[%c0_13, %c0_14] : memref<1x4xf32, #tpu.memory_space<vmem>>, vector<1x4xf32>
      %cst_15 = arith.constant 0.001953125 : f32
      %19 = vector.broadcast %cst_15 : f32 to vector<1x4xf32>
      %20 = arith.mulf %18, %19 : vector<1x4xf32>
      %c0_16 = arith.constant 0 : index
      %c0_17 = arith.constant 0 : index
      %21 = vector.load %arg6[%c0_16, %c0_17] : memref<1x4xf32, #tpu.memory_space<vmem>>, vector<1x4xf32>
      %cst_18 = arith.constant 0.001953125 : f32
      %22 = vector.broadcast %cst_18 : f32 to vector<1x4xf32>
      %23 = arith.mulf %21, %22 : vector<1x4xf32>
      %24 = arith.mulf %20, %20 : vector<1x4xf32>
      %25 = arith.subf %23, %24 : vector<1x4xf32>
      %c0_19 = arith.constant 0 : index
      %c0_20 = arith.constant 0 : index
      %26 = vector.load %arg2[%c0_19, %c0_20] : memref<1x4xf32, #tpu.memory_space<vmem>>, vector<1x4xf32>
      %cst_21 = arith.constant 9.99999974E-6 : f32
      %27 = vector.broadcast %cst_21 : f32 to vector<1x4xf32>
      %28 = arith.addf %25, %27 : vector<1x4xf32>
      %29 = math.rsqrt %28 : vector<1x4xf32>
      %30 = arith.mulf %26, %29 : vector<1x4xf32>
      %c0_22 = arith.constant 0 : index
      %c0_23 = arith.constant 0 : index
      %31 = vector.load %arg4[%c0_22, %c0_23] : memref<2x4xf32, #tpu.memory_space<vmem>>, vector<1x4xf32>
      tpu.vector_store %arg4[%c0_22, %c0_23], %30 {strides = array<i32>} : memref<2x4xf32, #tpu.memory_space<vmem>>, vector<1x4xf32>,
      %c0_24 = arith.constant 0 : index
      %c0_25 = arith.constant 0 : index
      %32 = vector.load %arg3[%c0_24, %c0_25] : memref<1x4xf32, #tpu.memory_space<vmem>>, vector<1x4xf32>
      %33 = arith.mulf %20, %30 : vector<1x4xf32>
      %34 = arith.subf %32, %33 : vector<1x4xf32>
      %c1 = arith.constant 1 : index
      %c0_26 = arith.constant 0 : index
      %35 = vector.load %arg4[%c1, %c0_26] : memref<2x4xf32, #tpu.memory_space<vmem>>, vector<1x4xf32>
      tpu.vector_store %arg4[%c1, %c0_26], %34 {strides = array<i32>} : memref<2x4xf32, #tpu.memory_space<vmem>>, vector<1x4xf32>,
    } else {
    }
    return
  }
  func.func @transform_0(%arg0: i32) -> (i32, i32) {
    %c0_i32 = arith.constant 0 : i32
    %c0_i32_0 = arith.constant 0 : i32
    return %arg0, %c0_i32 : i32, i32
  }
  func.func @transform_1(%arg0: i32) -> (i32, i32) {
    %c0_i32 = arith.constant 0 : i32
    %c0_i32_0 = arith.constant 0 : i32
    %c0_i32_1 = arith.constant 0 : i32
    return %c0_i32, %c0_i32_0 : i32, i32
  }
  func.func @transform_2(%arg0: i32) -> (i32, i32) {
    %c0_i32 = arith.constant 0 : i32
    %c0_i32_0 = arith.constant 0 : i32
    %c0_i32_1 = arith.constant 0 : i32
    return %c0_i32, %c0_i32_0 : i32, i32
  }
  func.func @transform_3(%arg0: i32) -> (i32, i32) {
    %c0_i32 = arith.constant 0 : i32
    %c0_i32_0 = arith.constant 0 : i32
    %c0_i32_1 = arith.constant 0 : i32
    return %c0_i32, %c0_i32_0 : i32, i32
  }
}

module attributes {stable_mosaic.version = 11 : i64} {
  func.func @_deconv_kernel(%arg0: i32, %arg1: i32, %arg2: memref<1x1x20x20x5xbf16, #tpu.memory_space<vmem>>, %arg3: memref<125x32xbf16, #tpu.memory_space<vmem>>, %arg4: memref<1x32xf32, #tpu.memory_space<vmem>>, %arg5: memref<256x32xf32, #tpu.memory_space<vmem>>) attributes {dimension_semantics = [#tpu.dimension_semantics<parallel>, #tpu.dimension_semantics<parallel>], iteration_bounds = array<i64: 2, 1>, scalar_prefetch = 0 : i64, scratch_operands = 0 : i64, tpu.core_type = #tpu.core_type<tc>, window_params = [{transform_indices = @transform_0, window_bounds = array<i64: 1, 1, 20, 20, 5>}, {pipeline_mode = #tpu.pipeline_mode<synchronous>, transform_indices = @transform_1, window_bounds = array<i64: 125, 32>}, {pipeline_mode = #tpu.pipeline_mode<synchronous>, transform_indices = @transform_2, window_bounds = array<i64: 1, 32>}, {transform_indices = @transform_3, window_bounds = array<i64: 256, 32>}]} {
    %c0 = arith.constant 0 : index
    %c0_0 = arith.constant 0 : index
    %c0_1 = arith.constant 0 : index
    %c0_2 = arith.constant 0 : index
    %c0_3 = arith.constant 0 : index
    %0 = vector.load %arg2[%c0, %c0_0, %c0_1, %c0_2, %c0_3] : memref<1x1x20x20x5xbf16, #tpu.memory_space<vmem>>, vector<1x1x20x20x5xbf16>
    %1 = vector.shape_cast %0 : vector<1x1x20x20x5xbf16> to vector<20x20x5xbf16>
    %2 = arith.extf %1 : vector<20x20x5xbf16> to vector<20x20x5xf32>
    %3 = vector.extract_strided_slice %2 {offsets = [0, 0, 0], sizes = [16, 16, 5], strides = [1, 1, 1]} : vector<20x20x5xf32> to vector<16x16x5xf32>
    %4 = vector.extract_strided_slice %2 {offsets = [0, 1, 0], sizes = [16, 16, 5], strides = [1, 1, 1]} : vector<20x20x5xf32> to vector<16x16x5xf32>
    %5 = vector.extract_strided_slice %2 {offsets = [0, 2, 0], sizes = [16, 16, 5], strides = [1, 1, 1]} : vector<20x20x5xf32> to vector<16x16x5xf32>
    %6 = vector.extract_strided_slice %2 {offsets = [0, 3, 0], sizes = [16, 16, 5], strides = [1, 1, 1]} : vector<20x20x5xf32> to vector<16x16x5xf32>
    %7 = vector.extract_strided_slice %2 {offsets = [0, 4, 0], sizes = [16, 16, 5], strides = [1, 1, 1]} : vector<20x20x5xf32> to vector<16x16x5xf32>
    %8 = vector.extract_strided_slice %2 {offsets = [1, 0, 0], sizes = [16, 16, 5], strides = [1, 1, 1]} : vector<20x20x5xf32> to vector<16x16x5xf32>
    %9 = vector.extract_strided_slice %2 {offsets = [1, 1, 0], sizes = [16, 16, 5], strides = [1, 1, 1]} : vector<20x20x5xf32> to vector<16x16x5xf32>
    %10 = vector.extract_strided_slice %2 {offsets = [1, 2, 0], sizes = [16, 16, 5], strides = [1, 1, 1]} : vector<20x20x5xf32> to vector<16x16x5xf32>
    %11 = vector.extract_strided_slice %2 {offsets = [1, 3, 0], sizes = [16, 16, 5], strides = [1, 1, 1]} : vector<20x20x5xf32> to vector<16x16x5xf32>
    %12 = vector.extract_strided_slice %2 {offsets = [1, 4, 0], sizes = [16, 16, 5], strides = [1, 1, 1]} : vector<20x20x5xf32> to vector<16x16x5xf32>
    %13 = vector.extract_strided_slice %2 {offsets = [2, 0, 0], sizes = [16, 16, 5], strides = [1, 1, 1]} : vector<20x20x5xf32> to vector<16x16x5xf32>
    %14 = vector.extract_strided_slice %2 {offsets = [2, 1, 0], sizes = [16, 16, 5], strides = [1, 1, 1]} : vector<20x20x5xf32> to vector<16x16x5xf32>
    %15 = vector.extract_strided_slice %2 {offsets = [2, 2, 0], sizes = [16, 16, 5], strides = [1, 1, 1]} : vector<20x20x5xf32> to vector<16x16x5xf32>
    %16 = vector.extract_strided_slice %2 {offsets = [2, 3, 0], sizes = [16, 16, 5], strides = [1, 1, 1]} : vector<20x20x5xf32> to vector<16x16x5xf32>
    %17 = vector.extract_strided_slice %2 {offsets = [2, 4, 0], sizes = [16, 16, 5], strides = [1, 1, 1]} : vector<20x20x5xf32> to vector<16x16x5xf32>
    %18 = vector.extract_strided_slice %2 {offsets = [3, 0, 0], sizes = [16, 16, 5], strides = [1, 1, 1]} : vector<20x20x5xf32> to vector<16x16x5xf32>
    %19 = vector.extract_strided_slice %2 {offsets = [3, 1, 0], sizes = [16, 16, 5], strides = [1, 1, 1]} : vector<20x20x5xf32> to vector<16x16x5xf32>
    %20 = vector.extract_strided_slice %2 {offsets = [3, 2, 0], sizes = [16, 16, 5], strides = [1, 1, 1]} : vector<20x20x5xf32> to vector<16x16x5xf32>
    %21 = vector.extract_strided_slice %2 {offsets = [3, 3, 0], sizes = [16, 16, 5], strides = [1, 1, 1]} : vector<20x20x5xf32> to vector<16x16x5xf32>
    %22 = vector.extract_strided_slice %2 {offsets = [3, 4, 0], sizes = [16, 16, 5], strides = [1, 1, 1]} : vector<20x20x5xf32> to vector<16x16x5xf32>
    %23 = vector.extract_strided_slice %2 {offsets = [4, 0, 0], sizes = [16, 16, 5], strides = [1, 1, 1]} : vector<20x20x5xf32> to vector<16x16x5xf32>
    %24 = vector.extract_strided_slice %2 {offsets = [4, 1, 0], sizes = [16, 16, 5], strides = [1, 1, 1]} : vector<20x20x5xf32> to vector<16x16x5xf32>
    %25 = vector.extract_strided_slice %2 {offsets = [4, 2, 0], sizes = [16, 16, 5], strides = [1, 1, 1]} : vector<20x20x5xf32> to vector<16x16x5xf32>
    %26 = vector.extract_strided_slice %2 {offsets = [4, 3, 0], sizes = [16, 16, 5], strides = [1, 1, 1]} : vector<20x20x5xf32> to vector<16x16x5xf32>
    %27 = vector.extract_strided_slice %2 {offsets = [4, 4, 0], sizes = [16, 16, 5], strides = [1, 1, 1]} : vector<20x20x5xf32> to vector<16x16x5xf32>
    %28 = tpu.concatenate %3, %4, %5, %6, %7, %8, %9, %10, %11, %12, %13, %14, %15, %16, %17, %18 in 2 : vector<16x16x5xf32>, vector<16x16x5xf32>, vector<16x16x5xf32>, vector<16x16x5xf32>, vector<16x16x5xf32>, vector<16x16x5xf32>, vector<16x16x5xf32>, vector<16x16x5xf32>, vector<16x16x5xf32>, vector<16x16x5xf32>, vector<16x16x5xf32>, vector<16x16x5xf32>, vector<16x16x5xf32>, vector<16x16x5xf32>, vector<16x16x5xf32>, vector<16x16x5xf32> -> vector<16x16x80xf32>
    %29 = tpu.concatenate %19, %20, %21, %22, %23, %24, %25, %26, %27 in 2 : vector<16x16x5xf32>, vector<16x16x5xf32>, vector<16x16x5xf32>, vector<16x16x5xf32>, vector<16x16x5xf32>, vector<16x16x5xf32>, vector<16x16x5xf32>, vector<16x16x5xf32>, vector<16x16x5xf32> -> vector<16x16x45xf32>
    %30 = tpu.concatenate %28, %29 in 2 : vector<16x16x80xf32>, vector<16x16x45xf32> -> vector<16x16x125xf32>
    %31 = vector.shape_cast %30 : vector<16x16x125xf32> to vector<256x125xf32>
    %32 = arith.truncf %31 : vector<256x125xf32> to vector<256x125xbf16>
    %c0_4 = arith.constant 0 : index
    %c0_5 = arith.constant 0 : index
    %33 = vector.load %arg3[%c0_4, %c0_5] : memref<125x32xbf16, #tpu.memory_space<vmem>>, vector<125x32xbf16>
    %cst = arith.constant dense<0.000000e+00> : vector<256x32xf32>
    %34 = tpu.matmul %32, %33, %cst {dimension_numbers = #tpu.dot_dimension_numbers<[1], [0], [0], [1], [0, 0, 1, 1], [], []>} : vector<256x125xbf16>, vector<125x32xbf16>, vector<256x32xf32> -> vector<256x32xf32>
    %c0_6 = arith.constant 0 : index
    %c0_7 = arith.constant 0 : index
    %35 = vector.load %arg4[%c0_6, %c0_7] : memref<1x32xf32, #tpu.memory_space<vmem>>, vector<1x32xf32>
    %36 = vector.broadcast %35 : vector<1x32xf32> to vector<256x32xf32>
    %37 = arith.addf %34, %36 : vector<256x32xf32>
    %cst_8 = arith.constant 0.000000e+00 : f32
    %38 = vector.broadcast %cst_8 : f32 to vector<256x32xf32>
    %39 = arith.cmpf ogt, %37, %38 : vector<256x32xf32>
    %cst_9 = arith.constant 1.000000e-01 : f32
    %40 = vector.broadcast %cst_9 : f32 to vector<256x32xf32>
    %41 = arith.mulf %40, %37 : vector<256x32xf32>
    %42 = arith.select %39, %37, %41 : vector<256x32xi1>, vector<256x32xf32>
    %c0_10 = arith.constant 0 : index
    %c0_11 = arith.constant 0 : index
    %43 = vector.load %arg5[%c0_10, %c0_11] : memref<256x32xf32, #tpu.memory_space<vmem>>, vector<256x32xf32>
    tpu.vector_store %arg5[%c0_10, %c0_11], %42 {strides = array<i32>} : memref<256x32xf32, #tpu.memory_space<vmem>>, vector<256x32xf32>,
    return
  }
  func.func @transform_0(%arg0: i32, %arg1: i32) -> (i32, i32, i32, i32, i32) {
    %c0_i32 = arith.constant 0 : i32
    %c0_i32_0 = arith.constant 0 : i32
    %c0_i32_1 = arith.constant 0 : i32
    %c0_i32_2 = arith.constant 0 : i32
    return %arg0, %arg1, %c0_i32, %c0_i32_0, %c0_i32_1 : i32, i32, i32, i32, i32
  }
  func.func @transform_1(%arg0: i32, %arg1: i32) -> (i32, i32) {
    %c0_i32 = arith.constant 0 : i32
    %c0_i32_0 = arith.constant 0 : i32
    %c0_i32_1 = arith.constant 0 : i32
    return %c0_i32, %c0_i32_0 : i32, i32
  }
  func.func @transform_2(%arg0: i32, %arg1: i32) -> (i32, i32) {
    %c0_i32 = arith.constant 0 : i32
    %c0_i32_0 = arith.constant 0 : i32
    %c0_i32_1 = arith.constant 0 : i32
    return %c0_i32, %c0_i32_0 : i32, i32
  }
  func.func @transform_3(%arg0: i32, %arg1: i32) -> (i32, i32) {
    %c1_i32 = arith.constant 1 : i32
    %0 = arith.muli %arg0, %c1_i32 : i32
    %1 = arith.addi %0, %arg1 : i32
    %c0_i32 = arith.constant 0 : i32
    %c0_i32_0 = arith.constant 0 : i32
    return %1, %c0_i32 : i32, i32
  }
}

</mosaic_0001>

<bundles_post_ra>
// kernel: deconv_block_apply.2
= control target key start
LH: loop header
LB: loop body
LE: loop exit
PB: predicated region body
PF: predicated region fallthrough
CT: control target
= control target key end

     0   :  { %vm18_vm0 = vcmask 24576   ;;  %vm86_vm1 = vcmask 31744   ;;  %v448_v0 = vmov 0.0   ;;  %s1341_s0 = inlined_call_operand.vmem [shape: f32[512,4], index: 0, kind: input, shape index: {}]   ;;  %s1342_s1 = inlined_call_operand.vmem [shape: f32[1,4], index: 1, kind: input, shape index: {}]   ;;  %s1343_s2 = inlined_call_operand.vmem [shape: f32[1,4], index: 2, kind: input, shape index: {}]   ;;  %s1344_s3 = inlined_call_operand.vmem [shape: f32[2,4], index: 3, kind: output, shape index: {}]  }
   0x1   :  { %19 = vst.msk [vmem:[#allocation2] sm:$0x1] %vm18_vm0, %v448_v0  ;;  %20 = vst.msk [vmem:[#allocation3] sm:$0x1] %vm18_vm0, %v448_v0  ;;  %v474_v1 = vld [vmem:[%s1341_s0] sm:$0xff]  ;;  %v479_v2 = vld [vmem:[%s1341_s0 + $0x8] sm:$0xff] }
   0x2   :  { %v484_v3 = vld [vmem:[%s1341_s0 + $0x10] sm:$0xff]  ;;  %v489_v4 = vld [vmem:[%s1341_s0 + $0x18] sm:$0xff]  ;;  %v87_v5 = vsel %vm86_vm1, %v474_v1, 0.0  ;;  %v88_v6 = vsel %vm86_vm1, %v479_v2, 0.0  ;;  %v500_v8 = vld [vmem:[%s1341_s0 + $0x20] sm:$0xff] }
   0x3   :  { %v90_v7 = vsel %vm86_vm1, %v484_v3, 0.0  ;;  %v89_v9 = vadd.f32 %v88_v6, %v87_v5  ;;  %v92_v10 = vsel %vm86_vm1, %v489_v4, 0.0  ;;  %v507_v11 = vld [vmem:[%s1341_s0 + $0x28] sm:$0xff]  ;;  %v94_v13 = vsel %vm86_vm1, %v500_v8, 0.0  ;;  %v514_v14 = vld [vmem:[%s1341_s0 + $0x30] sm:$0xff]  ;;  %v519_v16 = vld [vmem:[%s1341_s0 + $0x38] sm:$0xff] }
   0x4   :  { %v524_v17 = vld [vmem:[%s1341_s0 + $0x40] sm:$0xff]  ;;  %v96_v18 = vsel %vm86_vm1, %v507_v11, 0.0  ;;  %v531_v19 = vld [vmem:[%s1341_s0 + $0x48] sm:$0xff]  ;;  %v536_v20 = vld [vmem:[%s1341_s0 + $0x50] sm:$0xff]  ;;  %v98_v23 = vsel %vm86_vm1, %v514_v14, 0.0  ;;  %v100_v25 = vsel %vm86_vm1, %v519_v16, 0.0 }
   0x5   :  { %v91_v12 = vadd.f32 %v90_v7, %v89_v9  ;;  %v541_v21 = vld [vmem:[%s1341_s0 + $0x58] sm:$0xff]  ;;  %v102_v26 = vsel %vm86_vm1, %v524_v17, 0.0  ;;  %v552_v27 = vld [vmem:[%s1341_s0 + $0x108] sm:$0xff]  ;;  %v557_v28 = vld [vmem:[%s1341_s0 + $0x110] sm:$0xff]  ;;  %v104_v30 = vsel %vm86_vm1, %v531_v19, 0.0  ;;  %v106_v31 = vsel %vm86_vm1, %v536_v20, 0.0 }
   0x6   :  { %v562_v29 = vld [vmem:[%s1341_s0 + $0x118] sm:$0xff]  ;;  %v570_v32 = vsel %vm86_vm1, %v541_v21, 0.0  ;;  %v575_v33 = vld [vmem:[%s1341_s0 + $0x120] sm:$0xff]  ;;  %v580_v34 = vld [vmem:[%s1341_s0 + $0x128] sm:$0xff]  ;;  %v589_v37 = vsel %vm86_vm1, %v552_v27, 0.0  ;;  %v593_v38 = vsel %vm86_vm1, %v557_v28, 0.0 }
   0x7   :  { %v93_v15 = vadd.f32 %v92_v10, %v91_v12  ;;  %v585_v35 = vld [vmem:[%s1341_s0 + $0x130] sm:$0xff]  ;;  %1367 = vst [vmem:[#allocation4_spill] sm:$0xff] %v589_v37  ;;  %1368 = vst [vmem:[#allocation5_spill] sm:$0xff] %v593_v38  ;;  %v597_v39 = vsel %vm86_vm1, %v562_v29, 0.0  ;;  %v602_v40 = vld [vmem:[%s1341_s0 + $0x138] sm:$0xff]  ;;  %v616_v43 = vsel %vm86_vm1, %v575_v33, 0.0 }
   0x8   :  { %1369 = vst [vmem:[#allocation6_spill] sm:$0xff] %v597_v39  ;;  %v607_v41 = vld [vmem:[%s1341_s0 + $0x140] sm:$0xff]  ;;  %v612_v42 = vld [vmem:[%s1341_s0 + $0x148] sm:$0xff]  ;;  %1370 = vst [vmem:[#allocation7_spill] sm:$0xff] %v616_v43  ;;  %v620_v44 = vsel %vm86_vm1, %v580_v34, 0.0  ;;  %v624_v45 = vsel %vm86_vm1, %v585_v35, 0.0 }
   0x9   :  { %v95_v22 = vadd.f32 %v94_v13, %v93_v15  ;;  %1371 = vst [vmem:[#allocation8_spill] sm:$0xff] %v620_v44  ;;  %1372 = vst [vmem:[#allocation9_spill] sm:$0xff] %v624_v45  ;;  %v629_v46 = vld [vmem:[%s1341_s0 + $0x150] sm:$0xff]  ;;  %v634_v47 = vld [vmem:[%s1341_s0 + $0x158] sm:$0xff]  ;;  %v643_v50 = vsel %vm86_vm1, %v602_v40, 0.0  ;;  %v647_v51 = vsel %vm86_vm1, %v607_v41, 0.0 }
   0xa   :  { %v639_v48 = vld [vmem:[%s1341_s0 + $0x160] sm:$0xff]  ;;  %1373 = vst [vmem:[#allocation10_spill] sm:$0xff] %v643_v50  ;;  %1374 = vst [vmem:[#allocation11_spill] sm:$0xff] %v647_v51  ;;  %v651_v52 = vsel %vm86_vm1, %v612_v42, 0.0  ;;  %v656_v53 = vld [vmem:[%s1341_s0 + $0x168] sm:$0xff]  ;;  %v670_v56 = vsel %vm86_vm1, %v629_v46, 0.0 }
   0xb   :  { %v97_v24 = vadd.f32 %v96_v18, %v95_v22  ;;  %1375 = vst [vmem:[#allocation12_spill] sm:$0xff] %v651_v52  ;;  %v661_v54 = vld [vmem:[%s1341_s0 + $0x170] sm:$0xff]  ;;  %v666_v55 = vld [vmem:[%s1341_s0 + $0x178] sm:$0xff]  ;;  %1376 = vst [vmem:[#allocation13_spill] sm:$0xff] %v670_v56  ;;  %v674_v57 = vsel %vm86_vm1, %v634_v47, 0.0  ;;  %v678_v58 = vsel %vm86_vm1, %v639_v48, 0.0 }
   0xc   :  { %1377 = vst [vmem:[#allocation14_spill] sm:$0xff] %v674_v57  ;;  %1378 = vst [vmem:[#allocation15_spill] sm:$0xff] %v678_v58  ;;  %v683_v59 = vld [vmem:[%s1341_s0 + $0x60] sm:$0xff]  ;;  %v693_v61 = vld [vmem:[%s1341_s0 + $0x188] sm:$0xff]  ;;  %v702_v0 = vsel %vm86_vm1, %v656_v53, 0.0  ;;  %v706_v5 = vsel %vm86_vm1, %v661_v54, 0.0 }
   0xd   :  { %v99_v36 = vadd.f32 %v98_v23, %v97_v24  ;;  %v688_v60 = vld [vmem:[%s1341_s0 + $0x180] sm:$0xff]  ;;  %v698_v62 = vld [vmem:[%s1341_s0 + $0x190] sm:$0xff]  ;;  %1379 = vst [vmem:[#allocation16_spill] sm:$0xff] %v702_v0  ;;  %1380 = vst [vmem:[#allocation17_spill] sm:$0xff] %v706_v5  ;;  %v710_v6 = vsel %vm86_vm1, %v666_v55, 0.0  ;;  %v733_v13 = vsel %vm86_vm1, %v693_v61, 0.0 }
   0xe   :  { %1381 = vst [vmem:[#allocation18_spill] sm:$0xff] %v710_v6  ;;  %v715_v7 = vld [vmem:[%s1341_s0 + $0x198] sm:$0xff]  ;;  %v720_v9 = vld [vmem:[%s1341_s0 + $0x1a0] sm:$0xff]  ;;  %v725_v10 = vld [vmem:[%s1341_s0 + $0x1a8] sm:$0xff]  ;;  %v729_v12 = vsel %vm86_vm1, %v688_v60, 0.0  ;;  %v737_v15 = vsel %vm86_vm1, %v698_v62, 0.0 }
   0xf   :  { %v101_v49 = vadd.f32 %v100_v25, %v99_v36  ;;  %1382 = vst [vmem:[#allocation19_spill] sm:$0xff] %v729_v12  ;;  %1383 = vst [vmem:[#allocation20_spill] sm:$0xff] %v733_v13  ;;  %v742_v18 = vld [vmem:[%s1341_s0 + $0x68] sm:$0xff]  ;;  %v747_v22 = vld [vmem:[%s1341_s0 + $0x1b0] sm:$0xff]  ;;  %v765_v36 = vsel %vm86_vm1, %v720_v9, 0.0 }
  0x10   :  { %1384 = vst [vmem:[#allocation21_spill] sm:$0xff] %v737_v15  ;;  %v752_v23 = vld [vmem:[%s1341_s0 + $0x1b8] sm:$0xff]  ;;  %v757_v24 = vld [vmem:[%s1341_s0 + $0x1c0] sm:$0xff]  ;;  %1386 = vst [vmem:[#allocation23_spill] sm:$0xff] %v765_v36  ;;  %v788_v36 = vsel %vm86_vm1, %v747_v22, 0.0 }
  0x11   :  { %v103_v63 = vadd.f32 %v102_v26, %v101_v49  ;;  %v761_v26 = vsel %vm86_vm1, %v715_v7, 0.0  ;;  %v769_v49 = vsel %vm86_vm1, %v725_v10, 0.0  ;;  %v774_v15 = vld [vmem:[%s1341_s0 + $0x1c8] sm:$0xff]  ;;  %1390 = vst [vmem:[#allocation27_spill] sm:$0xff] %v788_v36  ;;  %v801_v13 = vld [vmem:[%s1341_s0 + $0x1e0] sm:$0xff]  ;;  %v811_v36 = vld [vmem:[%s1341_s0 + $0x1f0] sm:$0xff] }
  0x12   :  { %1385 = vst [vmem:[#allocation22_spill] sm:$0xff] %v761_v26  ;;  %1387 = vst [vmem:[#allocation24_spill] sm:$0xff] %v769_v49  ;;  %v792_v49 = vsel %vm86_vm1, %v752_v23, 0.0  ;;  %v796_v26 = vsel %vm86_vm1, %v757_v24, 0.0  ;;  %v806_v12 = vld [vmem:[%s1341_s0 + $0x1e8] sm:$0xff]  ;;  %v815_v6 = vsel %vm86_vm1, %v774_v15, 0.0 }
  0x13   :  { %v105_v25 = vadd.f32 %v104_v30, %v103_v63  ;;  %v779_v30 = vld [vmem:[%s1341_s0 + $0x1d0] sm:$0xff]  ;;  %v784_v63 = vld [vmem:[%s1341_s0 + $0x1d8] sm:$0xff]  ;;  %1391 = vst [vmem:[#allocation28_spill] sm:$0xff] %v792_v49  ;;  %1392 = vst [vmem:[#allocation29_spill] sm:$0xff] %v796_v26 }
  0x14   :  { %1388 = vst [vmem:[#allocation25_spill] sm:$0xff] %v779_v30  ;;  %1389 = vst [vmem:[#allocation26_spill] sm:$0xff] %v784_v63  ;;  %v819_v26 = vsel %vm86_vm1, %v779_v30, 0.0  ;;  %v823_v5 = vsel %vm86_vm1, %v784_v63, 0.0  ;;  %v828_v0 = vld [vmem:[%s1341_s0 + $0x1f8] sm:$0xff]  ;;  %v882_v56 = vld [vmem:[%s1341_s0 + $0xa0] sm:$0xff] }
  0x15   :  { %1393 = vst [vmem:[#allocation30_spill] sm:$0xff] %v801_v13  ;;  %1394 = vst [vmem:[#allocation31_spill] sm:$0xff] %v806_v12  ;;  %v107_v49 = vadd.f32 %v106_v31, %v105_v25  ;;  %v110_v31 = vsel %vm86_vm1, %v683_v59, 0.0  ;;  %v834_v25 = vsel %vm86_vm1, %v801_v13, 0.0  ;;  %v850_v57 = vsel %vm86_vm1, %v828_v0, 0.0  ;;  %v887_v51 = vld [vmem:[%s1341_s0 + $0xa8] sm:$0xff] }
  0x16   :  { %1395 = vst [vmem:[#allocation32_spill] sm:$0xff] %v811_v36  ;;  %1396 = vst [vmem:[#allocation33_spill] sm:$0xff] %v815_v6  ;;  %v838_v6 = vsel %vm86_vm1, %v806_v12, 0.0  ;;  %v892_v50 = vld [vmem:[%s1341_s0 + $0xb0] sm:$0xff]  ;;  %v897_v45 = vld [vmem:[%s1341_s0 + $0xb8] sm:$0xff] }
  0x17   :  { %1397 = vst [vmem:[#allocation34_spill] sm:$0xff] %v819_v26  ;;  %1398 = vst [vmem:[#allocation35_spill] sm:$0xff] %v823_v5  ;;  %v842_v26 = vsel %vm86_vm1, %v811_v36, 0.0  ;;  %v35_v5 = vld [vmem:[%s1341_s0 + $0x70] sm:$0xff]  ;;  %v109_v58 = vadd.f32 %v570_v32, %v107_v49  ;;  %v112_v32 = vsel %vm86_vm1, %v742_v18, 0.0  ;;  %v907_v43 = vld [vmem:[%s1341_s0 + $0xc0] sm:$0xff] }
  0x18   :  { %1399 = vst [vmem:[#allocation36_spill] sm:$0xff] %v828_v0  ;;  %1400 = vst [vmem:[#allocation37_spill] sm:$0xff] %v834_v25  ;;  %v855_v25 = vld [vmem:[%s1341_s0 + $0x78] sm:$0xff]  ;;  %v872_v49 = vld [vmem:[%s1341_s0 + $0x90] sm:$0xff]  ;;  %v114_v44 = vsel %vm86_vm1, %v35_v5, 0.0  ;;  %v226_v0 = vmul.f32 %v484_v3, %v484_v3  ;;  %v126_v3 = vsel %vm86_vm1, %v882_v56, 0.0 }
  0x19   :  { %1401 = vst [vmem:[#allocation38_spill] sm:$0xff] %v838_v6  ;;  %1402 = vst [vmem:[#allocation39_spill] sm:$0xff] %v842_v26  ;;  %v860_v6 = vld [vmem:[%s1341_s0 + $0x80] sm:$0xff]  ;;  %v865_v26 = vld [vmem:[%s1341_s0 + $0x88] sm:$0xff]  ;;  %v111_v52 = vadd.f32 %v110_v31, %v109_v58  ;;  %v224_v58 = vmul.f32 %v474_v1, %v474_v1  ;;  %v225_v31 = vmul.f32 %v479_v2, %v479_v2  ;;  %v116_v1 = vsel %vm86_vm1, %v855_v25, 0.0 }
  0x1a   :  { %1403 = vst [vmem:[#allocation40_spill] sm:$0xff] %v850_v57  ;;  %1404 = vst [vmem:[#allocation41_spill] sm:$0xff] %v855_v25  ;;  %v877_v57 = vld [vmem:[%s1341_s0 + $0x98] sm:$0xff]  ;;  %v912_v39 = vld [vmem:[%s1341_s0 + $0xc8] sm:$0xff]  ;;  %v118_v2 = vsel %vm86_vm1, %v860_v6, 0.0  ;;  %v961_v63 = vsel %vm86_vm1, %v897_v45, 0.0 }
  0x1b   :  { %1405 = vst [vmem:[#allocation42_spill] sm:$0xff] %v860_v6  ;;  %1406 = vst [vmem:[#allocation43_spill] sm:$0xff] %v865_v26  ;;  %v917_v38 = vld [vmem:[%s1341_s0 + $0xd0] sm:$0xff]  ;;  %v113_v37 = vadd.f32 %v112_v32, %v111_v52  ;;  %v928_v36 = vld [vmem:[%s1341_s0 + $0xd8] sm:$0xff]  ;;  %v120_v52 = vsel %vm86_vm1, %v865_v26, 0.0  ;;  %v122_v32 = vsel %vm86_vm1, %v872_v49, 0.0 }
  0x1c   :  { %1407 = vst [vmem:[#allocation44_spill] sm:$0xff] %v872_v49  ;;  %1408 = vst [vmem:[#allocation45_spill] sm:$0xff] %v877_v57  ;;  %v933_v12 = vld [vmem:[%s1341_s0 + $0xe0] sm:$0xff]  ;;  %v124_v6 = vsel %vm86_vm1, %v877_v57, 0.0  ;;  %v946_v25 = vld [vmem:[%s1341_s0 + $0xe8] sm:$0xff]  ;;  %v128_v49 = vsel %vm86_vm1, %v887_v51, 0.0 }
  0x1d   :  { %1409 = vst [vmem:[#allocation46_spill] sm:$0xff] %v882_v56  ;;  %1410 = vst [vmem:[#allocation47_spill] sm:$0xff] %v887_v51  ;;  %v951_v13 = vld [vmem:[%s1341_s0 + $0xf0] sm:$0xff]  ;;  %v115_v26 = vadd.f32 %v114_v44, %v113_v37  ;;  %v130_v57 = vsel %vm86_vm1, %v892_v50, 0.0  ;;  %v227_v56 = vmul.f32 %v489_v4, %v489_v4  ;;  %v965_v30 = vsel %vm86_vm1, %v907_v43, 0.0 }
  0x1e   :  { %1411 = vst [vmem:[#allocation48_spill] sm:$0xff] %v892_v50  ;;  %1412 = vst [vmem:[#allocation49_spill] sm:$0xff] %v897_v45  ;;  %v969_v37 = vsel %vm86_vm1, %v912_v39, 0.0  ;;  %v973_v44 = vsel %vm86_vm1, %v917_v38, 0.0  ;;  %v977_v4 = vsel %vm86_vm1, %v928_v36, 0.0  ;;  %v981_v45 = vsel %vm86_vm1, %v933_v12, 0.0 }
  0x1f   :  { %1413 = vst [vmem:[#allocation50_spill] sm:$0xff] %v907_v43  ;;  %1414 = vst [vmem:[#allocation51_spill] sm:$0xff] %v912_v39  ;;  %v117_v50 = vadd.f32 %v116_v1, %v115_v26  ;;  %v228_v43 = vmul.f32 %v500_v8, %v500_v8  ;;  %v987_v39 = vsel %vm86_vm1, %v946_v25, 0.0  ;;  %v229_v26 = vmul.f32 %v507_v11, %v507_v11 }
  0x20   :  { %1415 = vst [vmem:[#allocation52_spill] sm:$0xff] %v917_v38  ;;  %1416 = vst [vmem:[#allocation53_spill] sm:$0xff] %v928_v36  ;;  %v991_v38 = vsel %vm86_vm1, %v951_v13, 0.0  ;;  %v230_v1 = vmul.f32 %v514_v14, %v514_v14  ;;  %v232_v8 = vmul.f32 %v524_v17, %v524_v17  ;;  %v235_v51 = vmul.f32 %v541_v21, %v541_v21 }
  0x21   :  { %1417 = vst [vmem:[#allocation54_spill] sm:$0xff] %v933_v12  ;;  %1418 = vst [vmem:[#allocation55_spill] sm:$0xff] %v946_v25  ;;  %v119_v36 = vadd.f32 %v118_v2, %v117_v50  ;;  %v231_v12 = vmul.f32 %v519_v16, %v519_v16  ;;  %v233_v25 = vmul.f32 %v531_v19, %v531_v19 }
  0x22   :  { %1419 = vst [vmem:[#allocation56_spill] sm:$0xff] %v951_v13  ;;  %v234_v13 = vmul.f32 %v536_v20, %v536_v20  ;;  %v236_v11 = vmul.f32 %v683_v59, %v683_v59  ;;  %v1011_v14 = vmul.f32 %v742_v18, %v742_v18  ;;  %v1013_v50 = vmul.f32 %v35_v5, %v35_v5 }
  0x23   :  { %v121_v16 = vadd.f32 %v120_v52, %v119_v36  ;;  %v257_v17 = vmul.f32 %v552_v27, %v552_v27  ;;  %v258_v19 = vmul.f32 %v557_v28, %v557_v28  ;;  %v259_v20 = vmul.f32 %v562_v29, %v562_v29 }
  0x24   :  { %v260_v21 = vmul.f32 %v575_v33, %v575_v33  ;;  %v261_v59 = vmul.f32 %v580_v34, %v580_v34  ;;  %v262_v18 = vmul.f32 %v585_v35, %v585_v35  ;;  %v263_v36 = vmul.f32 %v602_v40, %v602_v40 }
  0x25   :  { %v123_v5 = vadd.f32 %v122_v32, %v121_v16  ;;  %v264_v27 = vmul.f32 %v607_v41, %v607_v41  ;;  %v265_v28 = vmul.f32 %v612_v42, %v612_v42  ;;  %v266_v29 = vmul.f32 %v629_v46, %v629_v46 }
  0x26   :  { %v267_v33 = vmul.f32 %v634_v47, %v634_v47  ;;  %v288_v34 = vsel %vm86_vm1, %v224_v58, 0.0  ;;  %v289_v35 = vsel %vm86_vm1, %v225_v31, 0.0  ;;  %v268_v40 = vmul.f32 %v639_v48, %v639_v48 }
  0x27   :  { %v125_v2 = vadd.f32 %v124_v6, %v123_v5  ;;  %v290_v52 = vadd.f32 %v289_v35, %v288_v34  ;;  %v291_v41 = vsel %vm86_vm1, %v226_v0, 0.0  ;;  %v269_v42 = vmul.f32 %v656_v53, %v656_v53  ;;  %v1422_v35 = vld [vmem:[#allocation30_spill] sm:$0xff] }
  0x28   :  { %v270_v46 = vmul.f32 %v661_v54, %v661_v54  ;;  %v271_v47 = vmul.f32 %v666_v55, %v666_v55  ;;  %v293_v58 = vsel %vm86_vm1, %v227_v56, 0.0  ;;  %v272_v6 = vmul.f32 %v688_v60, %v688_v60 }
  0x29   :  { %v127_v32 = vadd.f32 %v126_v3, %v125_v2  ;;  %v273_v48 = vmul.f32 %v693_v61, %v693_v61  ;;  %v292_v31 = vadd.f32 %v291_v41, %v290_v52  ;;  %v274_v0 = vmul.f32 %v698_v62, %v698_v62 }
  0x2a   :  { %v275_v53 = vmul.f32 %v715_v7, %v715_v7  ;;  %v276_v54 = vmul.f32 %v720_v9, %v720_v9  ;;  %v295_v55 = vsel %vm86_vm1, %v228_v43, 0.0  ;;  %v277_v3 = vmul.f32 %v725_v10, %v725_v10  ;;  %v1421_v10 = vld [vmem:[#allocation26_spill] sm:$0xff] }
  0x2b   :  { %v129_v56 = vadd.f32 %v128_v49, %v127_v32  ;;  %v278_v60 = vmul.f32 %v747_v22, %v747_v22  ;;  %v294_v61 = vadd.f32 %v293_v58, %v292_v31  ;;  %v279_v16 = vmul.f32 %v752_v23, %v752_v23  ;;  %v1420_v49 = vld [vmem:[#allocation25_spill] sm:$0xff]  ;;  %v1423_v23 = vld [vmem:[#allocation31_spill] sm:$0xff] }
  0x2c   :  { %v280_v62 = vmul.f32 %v757_v24, %v757_v24  ;;  %v281_v7 = vmul.f32 %v774_v15, %v774_v15  ;;  %v297_v9 = vsel %vm86_vm1, %v229_v26, 0.0  ;;  %v282_v5 = vmul.f32 %v1420_v49, %v1420_v49  ;;  %v1424_v24 = vld [vmem:[#allocation32_spill] sm:$0xff] }
  0x2d   :  { %v131_v43 = vadd.f32 %v130_v57, %v129_v56  ;;  %v283_v34 = vmul.f32 %v1421_v10, %v1421_v10  ;;  %v296_v22 = vadd.f32 %v295_v55, %v294_v61  ;;  %v284_v2 = vmul.f32 %v1422_v35, %v1422_v35  ;;  %v1425_v26 = vld [vmem:[#allocation36_spill] sm:$0xff] }
  0x2e   :  { %v285_v52 = vmul.f32 %v1423_v23, %v1423_v23  ;;  %v286_v41 = vmul.f32 %v1424_v24, %v1424_v24  ;;  %v299_v15 = vsel %vm86_vm1, %v230_v1, 0.0  ;;  %v287_v58 = vmul.f32 %v1425_v26, %v1425_v26  ;;  %v1426_v24 = vld [vmem:[#allocation41_spill] sm:$0xff] }
  0x2f   :  { %v133_v57 = vadd.f32 %v961_v63, %v131_v43  ;;  %v298_v32 = vadd.f32 %v297_v9, %v296_v22  ;;  %v301_v31 = vsel %vm86_vm1, %v231_v12, 0.0  ;;  %v303_v55 = vsel %vm86_vm1, %v232_v8, 0.0 }
  0x30   :  { %v305_v56 = vsel %vm86_vm1, %v233_v25, 0.0  ;;  %v307_v61 = vsel %vm86_vm1, %v234_v13, 0.0  ;;  %v309_v49 = vsel %vm86_vm1, %v235_v51, 0.0  ;;  %v311_v1 = vsel %vm86_vm1, %v236_v11, 0.0 }
  0x31   :  { %v135_v10 = vadd.f32 %v965_v30, %v133_v57  ;;  %v300_v35 = vadd.f32 %v299_v15, %v298_v32  ;;  %v1093_v63 = vsel %vm86_vm1, %v257_v17, 0.0  ;;  %v1096_v9 = vsel %vm86_vm1, %v258_v19, 0.0 }
  0x32   :  { %v1099_v12 = vsel %vm86_vm1, %v259_v20, 0.0  ;;  %v1102_v25 = vsel %vm86_vm1, %v260_v21, 0.0  ;;  %v1105_v13 = vsel %vm86_vm1, %v261_v59, 0.0  ;;  %v1109_v8 = vsel %vm86_vm1, %v262_v18, 0.0 }
  0x33   :  { %v137_v51 = vadd.f32 %v969_v37, %v135_v10  ;;  %v302_v30 = vadd.f32 %v301_v31, %v300_v35  ;;  %v1112_v11 = vsel %vm86_vm1, %v263_v36, 0.0  ;;  %v1115_v17 = vsel %vm86_vm1, %v264_v27, 0.0 }
  0x34   :  { %v1118_v19 = vsel %vm86_vm1, %v265_v28, 0.0  ;;  %v1121_v20 = vsel %vm86_vm1, %v266_v29, 0.0  ;;  %v1124_v21 = vsel %vm86_vm1, %v267_v33, 0.0  ;;  %v1128_v18 = vsel %vm86_vm1, %v268_v40, 0.0 }
  0x35   :  { %v139_v37 = vadd.f32 %v973_v44, %v137_v51  ;;  %v304_v59 = vadd.f32 %v303_v55, %v302_v30  ;;  %v1131_v36 = vsel %vm86_vm1, %v269_v42, 0.0  ;;  %v1134_v27 = vsel %vm86_vm1, %v270_v46, 0.0  ;;  %v1430_v51 = vld [vmem:[#allocation4_spill] sm:$0xff] }
  0x36   :  { %v1137_v28 = vsel %vm86_vm1, %v271_v47, 0.0  ;;  %v1140_v29 = vsel %vm86_vm1, %v272_v6, 0.0  ;;  %v1143_v33 = vsel %vm86_vm1, %v273_v48, 0.0  ;;  %v1147_v40 = vsel %vm86_vm1, %v274_v0, 0.0 }
  0x37   :  { %v141_v44 = vadd.f32 %v977_v4, %v139_v37  ;;  %v306_v43 = vadd.f32 %v305_v56, %v304_v59  ;;  %v1150_v42 = vsel %vm86_vm1, %v275_v53, 0.0  ;;  %v1153_v46 = vsel %vm86_vm1, %v276_v54, 0.0  ;;  %v1167_v4 = vld [vmem:[%s1341_s0 + $0xf8] sm:$0xff]  ;;  %v1431_v59 = vld [vmem:[#allocation45_spill] sm:$0xff] }
  0x38   :  { %v1156_v47 = vsel %vm86_vm1, %v277_v3, 0.0  ;;  %v1159_v6 = vsel %vm86_vm1, %v278_v60, 0.0  ;;  %v1162_v48 = vsel %vm86_vm1, %v279_v16, 0.0  ;;  %v1171_v54 = vsel %vm86_vm1, %v280_v62, 0.0  ;;  %v1428_v56 = vld [vmem:[#allocation43_spill] sm:$0xff] }
  0x39   :  { %v143_v0 = vadd.f32 %v981_v45, %v141_v44  ;;  %v308_v53 = vadd.f32 %v307_v61, %v306_v43  ;;  %v1174_v3 = vsel %vm86_vm1, %v281_v7, 0.0  ;;  %v1177_v60 = vsel %vm86_vm1, %v282_v5, 0.0  ;;  %v1191_v45 = vld [vmem:[%s1341_s0 + $0x100] sm:$0xff]  ;;  %v1432_v43 = vld [vmem:[#allocation5_spill] sm:$0xff] }
  0x3a   :  { %v1180_v16 = vsel %vm86_vm1, %v283_v34, 0.0  ;;  %v1183_v22 = vsel %vm86_vm1, %v284_v2, 0.0  ;;  %v1186_v23 = vsel %vm86_vm1, %v285_v52, 0.0  ;;  %v1195_v5 = vsel %vm86_vm1, %v286_v41, 0.0  ;;  %v1427_v41 = vld [vmem:[#allocation42_spill] sm:$0xff] }
  0x3b   :  { %v145_v62 = vadd.f32 %v987_v39, %v143_v0  ;;  %v310_v7 = vadd.f32 %v309_v49, %v308_v53  ;;  %v1198_v34 = vsel %vm86_vm1, %v287_v58, 0.0  ;;  %v148_v2 = vsel %vm86_vm1, %v1167_v4, 0.0 }
  0x3c   :  { %v239_v52 = vmul.f32 %v1426_v24, %v1426_v24  ;;  %v313_v15 = vsel %vm86_vm1, %v1011_v14, 0.0  ;;  %v150_v39 = vsel %vm86_vm1, %v1191_v45, 0.0  ;;  %v240_v32 = vmul.f32 %v1427_v41, %v1427_v41  ;;  %v1434_v24 = vld [vmem:[#allocation6_spill] sm:$0xff]  ;;  %v1436_v41 = vld [vmem:[#allocation7_spill] sm:$0xff] }
  0x3d   :  { %v147_v57 = vadd.f32 %v991_v38, %v145_v62  ;;  %v312_v26 = vadd.f32 %v311_v1, %v310_v7  ;;  %v315_v58 = vsel %vm86_vm1, %v1013_v50, 0.0  ;;  %v241_v61 = vmul.f32 %v1428_v56, %v1428_v56  ;;  %v1429_v38 = vld [vmem:[#allocation44_spill] sm:$0xff]  ;;  %v1433_v62 = vld [vmem:[#allocation46_spill] sm:$0xff] }
  0x3e   :  { %v317_v49 = vsel %vm86_vm1, %v239_v52, 0.0  ;;  %v242_v35 = vmul.f32 %v1429_v38, %v1429_v38  ;;  %v319_v1 = vsel %vm86_vm1, %v240_v32, 0.0  ;;  %v243_v50 = vmul.f32 %v1431_v59, %v1431_v59 }
  0x3f   :  { %v149_v31 = vadd.f32 %v148_v2, %v147_v57  ;;  %v314_v55 = vadd.f32 %v313_v15, %v312_v26  ;;  %v321_v44 = vsel %vm86_vm1, %v241_v61, 0.0  ;;  %v244_v7 = vmul.f32 %v1433_v62, %v1433_v62  ;;  %v1435_v57 = vld [vmem:[#allocation47_spill] sm:$0xff]  ;;  %v1438_v61 = vld [vmem:[#allocation8_spill] sm:$0xff] }
  0x40   :  { %v323_v2 = vsel %vm86_vm1, %v242_v35, 0.0  ;;  %v245_v26 = vmul.f32 %v1435_v57, %v1435_v57 }
  0x41   :  { %v151_v14 = vadd.f32 %v150_v39, %v149_v31  ;;  %v316_v10 = vadd.f32 %v315_v58, %v314_v55  ;;  %v325_v39 = vsel %vm86_vm1, %v243_v50, 0.0  ;;  %v1437_v31 = vld [vmem:[#allocation48_spill] sm:$0xff]  ;;  %v327_v56 = vsel %vm86_vm1, %v244_v7, 0.0 }
  0x42   :  { %v246_v55 = vmul.f32 %v1437_v31, %v1437_v31  ;;  %v329_v35 = vsel %vm86_vm1, %v245_v26, 0.0 }
  0x43   :  { %v153_v30 = vadd.f32 %v1430_v51, %v151_v14  ;;  %v318_v37 = vadd.f32 %v317_v49, %v316_v10  ;;  %v1439_v10 = vld [vmem:[#allocation49_spill] sm:$0xff] }
  0x44   :  { %v247_v38 = vmul.f32 %v1439_v10, %v1439_v10  ;;  %v331_v50 = vsel %vm86_vm1, %v246_v55, 0.0 }
  0x45   :  { %v155_v0 = vadd.f32 %v1432_v43, %v153_v30  ;;  %v320_v53 = vadd.f32 %v319_v1, %v318_v37  ;;  %v1440_v1 = vld [vmem:[#allocation9_spill] sm:$0xff]  ;;  %v1441_v37 = vld [vmem:[#allocation50_spill] sm:$0xff] }
  0x46   :  { %v248_v59 = vmul.f32 %v1441_v37, %v1441_v37  ;;  %v333_v7 = vsel %vm86_vm1, %v247_v38, 0.0 }
  0x47   :  { %v157_v52 = vadd.f32 %v1434_v24, %v155_v0  ;;  %v322_v15 = vadd.f32 %v321_v44, %v320_v53  ;;  %v1442_v44 = vld [vmem:[#allocation10_spill] sm:$0xff]  ;;  %v1443_v53 = vld [vmem:[#allocation51_spill] sm:$0xff] }
  0x48   :  { %v249_v62 = vmul.f32 %v1443_v53, %v1443_v53  ;;  %v335_v26 = vsel %vm86_vm1, %v248_v59, 0.0 }
  0x49   :  { %v159_v32 = vadd.f32 %v1436_v41, %v157_v52  ;;  %v324_v58 = vadd.f32 %v323_v2, %v322_v15  ;;  %v1444_v2 = vld [vmem:[#allocation11_spill] sm:$0xff]  ;;  %v1445_v15 = vld [vmem:[#allocation52_spill] sm:$0xff] }
  0x4a   :  { %v250_v57 = vmul.f32 %v1445_v15, %v1445_v15  ;;  %v337_v55 = vsel %vm86_vm1, %v249_v62, 0.0 }
  0x4b   :  { %v161_v49 = vadd.f32 %v1438_v61, %v159_v32  ;;  %v326_v14 = vadd.f32 %v325_v39, %v324_v58  ;;  %v1446_v39 = vld [vmem:[#allocation12_spill] sm:$0xff]  ;;  %v1447_v58 = vld [vmem:[#allocation53_spill] sm:$0xff] }
  0x4c   :  { %v251_v31 = vmul.f32 %v1447_v58, %v1447_v58  ;;  %v339_v38 = vsel %vm86_vm1, %v250_v57, 0.0  ;;  %v1455_v57 = vld [vmem:[#allocation17_spill] sm:$0xff]  ;;  %v1456_v58 = vld [vmem:[#allocation18_spill] sm:$0xff] }
  0x4d   :  { %v163_v51 = vadd.f32 %v1440_v1, %v161_v49  ;;  %v328_v30 = vadd.f32 %v327_v56, %v326_v14  ;;  %v1448_v56 = vld [vmem:[#allocation13_spill] sm:$0xff]  ;;  %v1449_v14 = vld [vmem:[#allocation54_spill] sm:$0xff] }
  0x4e   :  { %v252_v10 = vmul.f32 %v1449_v14, %v1449_v14  ;;  %v341_v59 = vsel %vm86_vm1, %v251_v31, 0.0 }
  0x4f   :  { %v165_v43 = vadd.f32 %v1442_v44, %v163_v51  ;;  %v330_v0 = vadd.f32 %v329_v35, %v328_v30  ;;  %v1450_v35 = vld [vmem:[#allocation14_spill] sm:$0xff]  ;;  %v1451_v30 = vld [vmem:[#allocation55_spill] sm:$0xff] }
  0x50   :  { %v253_v37 = vmul.f32 %v1451_v30, %v1451_v30  ;;  %v343_v62 = vsel %vm86_vm1, %v252_v10, 0.0  ;;  %v1458_v10 = vld [vmem:[#allocation20_spill] sm:$0xff] }
  0x51   :  { %v167_v24 = vadd.f32 %v1444_v2, %v165_v43  ;;  %v332_v52 = vadd.f32 %v331_v50, %v330_v0  ;;  %v1452_v50 = vld [vmem:[#allocation15_spill] sm:$0xff]  ;;  %v1453_v0 = vld [vmem:[#allocation56_spill] sm:$0xff] }
  0x52   :  { %v254_v53 = vmul.f32 %v1453_v0, %v1453_v0  ;;  %v345_v15 = vsel %vm86_vm1, %v253_v37, 0.0  ;;  %v1460_v37 = vld [vmem:[#allocation22_spill] sm:$0xff]  ;;  %v1462_v0 = vld [vmem:[#allocation24_spill] sm:$0xff] }
  0x53   :  { %v169_v41 = vadd.f32 %v1446_v39, %v167_v24  ;;  %v334_v32 = vadd.f32 %v333_v7, %v332_v52  ;;  %v1454_v7 = vld [vmem:[#allocation16_spill] sm:$0xff]  ;;  %v255_v52 = vmul.f32 %v1167_v4, %v1167_v4 }
  0x55   :  { %v171_v61 = vadd.f32 %v1448_v56, %v169_v41  ;;  %v336_v49 = vadd.f32 %v335_v26, %v334_v32  ;;  %v256_v41 = vmul.f32 %v1191_v45, %v1191_v45  ;;  %v347_v32 = vsel %vm86_vm1, %v254_v53, 0.0 }
  0x56   :  { %v349_v56 = vsel %vm86_vm1, %v255_v52, 0.0  ;;  %v1464_v52 = vld [vmem:[#allocation28_spill] sm:$0xff] }
  0x57   :  { %v173_v1 = vadd.f32 %v1450_v35, %v171_v61  ;;  %v338_v51 = vadd.f32 %v337_v55, %v336_v49  ;;  %v1457_v61 = vld [vmem:[#allocation19_spill] sm:$0xff]  ;;  %v351_v4 = vsel %vm86_vm1, %v256_v41, 0.0  ;;  %v1466_v41 = vld [vmem:[#allocation33_spill] sm:$0xff] }
  0x59   :  { %v175_v44 = vadd.f32 %v1452_v50, %v173_v1  ;;  %v340_v43 = vadd.f32 %v339_v38, %v338_v51  ;;  %v1459_v1 = vld [vmem:[#allocation21_spill] sm:$0xff]  ;;  %v1461_v50 = vld [vmem:[#allocation23_spill] sm:$0xff] }
  0x5b   :  { %v177_v2 = vadd.f32 %v1454_v7, %v175_v44  ;;  %v342_v24 = vadd.f32 %v341_v59, %v340_v43  ;;  %v1463_v7 = vld [vmem:[#allocation27_spill] sm:$0xff] }
  0x5d   :  { %v179_v26 = vadd.f32 %v1455_v57, %v177_v2  ;;  %v344_v39 = vadd.f32 %v343_v62, %v342_v24 }
  0x5f   :  { %v181_v31 = vadd.f32 %v1456_v58, %v179_v26  ;;  %v346_v55 = vadd.f32 %v345_v15, %v344_v39  ;;  %v1465_v26 = vld [vmem:[#allocation29_spill] sm:$0xff]  ;;  %v1467_v58 = vld [vmem:[#allocation34_spill] sm:$0xff] }
  0x61   :  { %v183_v49 = vadd.f32 %v1457_v61, %v181_v31  ;;  %v348_v14 = vadd.f32 %v347_v32, %v346_v55  ;;  %v1468_v55 = vld [vmem:[#allocation35_spill] sm:$0xff]  ;;  %v1469_v61 = vld [vmem:[#allocation37_spill] sm:$0xff] }
  0x63   :  { %v185_v38 = vadd.f32 %v1458_v10, %v183_v49  ;;  %v350_v35 = vadd.f32 %v349_v56, %v348_v14  ;;  %v1470_v14 = vld [vmem:[#allocation38_spill] sm:$0xff]  ;;  %v1471_v10 = vld [vmem:[#allocation39_spill] sm:$0xff] }
  0x65   :  { %v187_v51 = vadd.f32 %v1459_v1, %v185_v38  ;;  %v352_v30 = vadd.f32 %v351_v4, %v350_v35  ;;  %v1472_v35 = vld [vmem:[#allocation40_spill] sm:$0xff] }
  0x67   :  { %v189_v45 = vadd.f32 %v1460_v37, %v187_v51  ;;  %v354_v59 = vadd.f32 %v1093_v63, %v352_v30 }
  0x69   :  { %v191_v44 = vadd.f32 %v1461_v50, %v189_v45  ;;  %v356_v43 = vadd.f32 %v1096_v9, %v354_v59 }
  0x6b   :  { %v193_v53 = vadd.f32 %v1462_v0, %v191_v44  ;;  %v358_v62 = vadd.f32 %v1099_v12, %v356_v43 }
  0x6d   :  { %v195_v2 = vadd.f32 %v1463_v7, %v193_v53  ;;  %v360_v24 = vadd.f32 %v1102_v25, %v358_v62 }
  0x6f   :  { %v197_v15 = vadd.f32 %v1464_v52, %v195_v2  ;;  %v362_v57 = vadd.f32 %v1105_v13, %v360_v24 }
  0x71   :  { %v199_v39 = vadd.f32 %v1465_v26, %v197_v15  ;;  %v364_v63 = vadd.f32 %v1109_v8, %v362_v57 }
  0x73   :  { %v201_v32 = vadd.f32 %v1466_v41, %v199_v39  ;;  %v366_v9 = vadd.f32 %v1112_v11, %v364_v63 }
  0x75   :  { %v203_v31 = vadd.f32 %v1467_v58, %v201_v32  ;;  %v368_v12 = vadd.f32 %v1115_v17, %v366_v9  ;;  %v437_v32 = vld [vmem:[%s1343_s2] sm:$0x1] }
  0x77   :  { %v205_v56 = vadd.f32 %v1468_v55, %v203_v31  ;;  %v370_v25 = vadd.f32 %v1118_v19, %v368_v12 }
  0x79   :  { %v207_v49 = vadd.f32 %v1469_v61, %v205_v56  ;;  %v372_v13 = vadd.f32 %v1121_v20, %v370_v25 }
  0x7b   :  { %v209_v4 = vadd.f32 %v1470_v14, %v207_v49  ;;  %v374_v8 = vadd.f32 %v1124_v21, %v372_v13 }
  0x7d   :  { %v211_v38 = vadd.f32 %v1471_v10, %v209_v4  ;;  %v376_v11 = vadd.f32 %v1128_v18, %v374_v8  ;;  %v85_v18 = vld [vmem:[#allocation2] sm:$0x1] }
  0x7f   :  { %v213_v1 = vadd.f32 %v1472_v35, %v211_v38  ;;  %v378_v17 = vadd.f32 %v1131_v36, %v376_v11 }
  0x81   :  { %v214_v51 = vrot.slane %v213_v1, 4  ;;  %v380_v30 = vadd.f32 %v1134_v27, %v378_v17 }
  0x83   :  { %v215_v19 = vadd.f32 %v214_v51, %v213_v1  ;;  %v382_v37 = vadd.f32 %v1137_v28, %v380_v30 }
  0x85   :  { %v216_v45 = vrot.slane %v215_v19, 2  ;;  %v384_v20 = vadd.f32 %v1140_v29, %v382_v37 }
  0x87   :  { %v217_v59 = vadd.f32 %v216_v45, %v215_v19  ;;  %v386_v21 = vadd.f32 %v1143_v33, %v384_v20 }
  0x89   :  { %v218_v50 = vrot.slane %v217_v59, 1  ;;  %v388_v44 = vadd.f32 %v1147_v40, %v386_v21 }
  0x8b   :  { %v219_v43 = vadd.f32 %v218_v50, %v217_v59  ;;  %v390_v0 = vadd.f32 %v1150_v42, %v388_v44 }
  0x8d   :  { %v220_v36 = vadd.f32 %v219_v43, %v85_v18  ;;  %v392_v53 = vadd.f32 %v1153_v46, %v390_v0 }
  0x8f   :  { %222 = vst.msk [vmem:[#allocation2] sm:$0x1] %vm18_vm0, %v220_v36  ;;  %v394_v27 = vadd.f32 %v1156_v47, %v392_v53 }
  0x91   :  { %v396_v28 = vadd.f32 %v1159_v6, %v394_v27 }
  0x93   :  { %v398_v29 = vadd.f32 %v1162_v48, %v396_v28 }
  0x95   :  { %v400_v33 = vadd.f32 %v1171_v54, %v398_v29  ;;  %v223_v54 = vld [vmem:[#allocation3] sm:$0x1] }
  0x96   :  { %v426_v26 = vld [vmem:[#allocation2] sm:$0x1] }
  0x97   :  { %v402_v62 = vadd.f32 %v1174_v3, %v400_v33 }
  0x99   :  { %v404_v40 = vadd.f32 %v1177_v60, %v402_v62  ;;  %v427_v60 = vmul.f32 0.001953125, %v426_v26 }
  0x9b   :  { %v406_v7 = vadd.f32 %v1180_v16, %v404_v40  ;;  %v430_v16 = vmul.f32 %v427_v60, %v427_v60 }
  0x9d   :  { %v408_v42 = vadd.f32 %v1183_v22, %v406_v7 }
  0x9f   :  { %v410_v46 = vadd.f32 %v1186_v23, %v408_v42 }
  0xa1   :  { %v412_v2 = vadd.f32 %v1195_v5, %v410_v46  ;;  %v432_v5 = vld [vmem:[%s1342_s1] sm:$0x1] }
  0xa3   :  { %v414_v47 = vadd.f32 %v1198_v34, %v412_v2 }
  0xa5   :  { %v415_v24 = vrot.slane %v414_v47, 4 }
  0xa7   :  { %v416_v6 = vadd.f32 %v415_v24, %v414_v47 }
  0xa9   :  { %v417_v52 = vrot.slane %v416_v6, 2 }
  0xab   :  { %v418_v48 = vadd.f32 %v417_v52, %v416_v6 }
  0xad   :  { %v419_v15 = vrot.slane %v418_v48, 1 }
  0xaf   :  { %v420_v57 = vadd.f32 %v419_v15, %v418_v48 }
  0xb1   :  { %v421_v3 = vadd.f32 %v420_v57, %v223_v54 }
  0xb3   :  { %422 = vst.msk [vmem:[#allocation3] sm:$0x1] %vm18_vm0, %v421_v3 }
  0xba   :  { %v428_v22 = vld [vmem:[#allocation3] sm:$0x1] }
  0xbb   :  { %v429_v39 = vmul.f32 0.001953125, %v428_v22 }
  0xbd   :  { %v431_v23 = vsub.f32 %v429_v39, %v430_v16 }
  0xbf   :  { %v433_v63 = vadd.f32 1e-05, %v431_v23 }
  0xc1   :  { %446 = vrsqrt.f32 %v433_v63 }
  0xcb   :  { %v447_v34 = vpop.eup %446 }
  0xcc   :  { %v435_v41 = vmul.f32 %v447_v34, %v432_v5 }
  0xce   :  { %436 = vst.msk [vmem:[%s1344_s3] sm:$0x1] %vm18_vm0, %v435_v41  ;;  %v438_v9 = vmul.f32 %v435_v41, %v427_v60 }
  0xd0   :  { %v439_v58 = vsub.f32 %v437_v32, %v438_v9 }
  0xd2   :  { %440 = vst.msk [vmem:[%s1344_s3 + $0x1] sm:$0x1] %vm18_vm0, %v439_v58 }

// kernel: deconv_block_apply.3
= control target key start
LH: loop header
LB: loop body
LE: loop exit
PB: predicated region body
PF: predicated region fallthrough
CT: control target
= control target key end

     0   :  { %s6506_s12 = smov 0   ;;  %s6508_s13 = smov 0   ;;  %s11686_s0 = inlined_call_operand.vmem [shape: bf16[2,1,20,20,5], index: 0, kind: input, shape index: {}]   ;;  %s11687_s1 = inlined_call_operand.vmem [shape: bf16[125,32], index: 1, kind: input, shape index: {}]   ;;  %s11688_s2 = inlined_call_operand.vmem [shape: f32[1,32], index: 2, kind: input, shape index: {}]   ;;  %s11689_s3 = inlined_call_operand.vmem [shape: f32[512,32], index: 3, kind: output, shape index: {}]  }
   0x1   :  { %s6510_s14 = smov 0  }
   0x2 LB: > { %s25_s15 = sadd.s32 1, %s6463_s13  ;;  %p4442_p0 = scmp.ge.s32.totalorder %s6467_s14, 1  ;;  %s6467_s14 = sphi %s6510_s14, %s13_s14   ;;  %s6463_s13 = sphi %s6508_s13, %s13583_s13   ;;  %s6459_s12 = sphi %s6506_s12, %s13582_s12  }
   0x3   : > { %p27_p1 = scmp.ge.s32.totalorder %s25_s15, 2  ;;  %p157_p2 = scmp.lt.s32.totalorder %s6467_s14, 3 }
   0x5   : > { %s13585_s15 = smov (%p27_p1, %s25_s15), 0  ;;  %p158_p3 = pnand %p4442_p0, %p157_p2 }
   0x7   : > { %161 = sbr.rel (%p158_p3) target bundleno = 1208 (0x4b8), region = 32 }
   0xe   : > { %p186_p4 = scmp.lt.s32.totalorder %s6459_s12, 1  ;;  %vm372_vm0 = vcmask 1046528   ;;  %s6469_s21 = smov 5   ;;  %vm549_vm1 = vcmask 1045504   ;;  %vm726_vm2 = vcmask 1044480   ;;  %vm903_vm3 = vcmask 1043456  }
   0xf   : > { %s6470_s22 = smov 10   ;;  %s6471_s23 = smov 15   ;;  %vm2184_vm4 = vcmask 39936   ;;  %vm2217_vm5 = vcmask 80896   ;;  %vm12220_vm6 = vcmask 121856   ;;  %vm2283_vm7 = vcmask 162816  }
  0x10   : > { %s187_s16 = scalar_select %p186_p4, %s6459_s12, 1  ;;  %vm2316_vm8 = vcmask 203776   ;;  %vm2349_vm9 = vcmask 244736   ;;  %vm2382_vm10 = vcmask 285696   ;;  %vm2415_vm11 = vcmask 326656  }
  0x11   : > { %s6472_s24 = smov 20   ;;  %s6473_s25 = smov 25   ;;  %vm2448_vm12 = vcmask 367616   ;;  %vm2481_vm13 = vcmask 408576   ;;  %vm2514_vm14 = vcmask 449536   ;;  %vm2547_vm15 = vcmask 490496  }
  0x12   : > { %s4610_s17 = smul.u32 240, %s187_s16  ;;  %s6474_s26 = smov 30  }
  0x13   : > { %s6475_s27 = smov 35   ;;  %s6476_s28 = smov 40  }
  0x14   : > { %s6531_s20 = scalar_lea.vmem %s11686_s0, %s4610_s17  ;;  %s6477_s29 = smov 45  }
  0x15   : > { %v4513_v0 = vld [vmem:[%s6531_s20 + $0x18] sm:$0xff]   ;;  %v212_v1 = vld [vmem:[%s6531_s20 + $0x20] sm:$0x3]  ;;  %v206_v7 = vld [vmem:[%s6531_s20 + $0x8] sm:$0x3]  ;;  %s6478_s30 = smov 50  }
  0x16   : > { %v4474_v2 = vld [vmem:[%s6531_s20] sm:$0xff]   ;;  %v6536_v3 = vunpack.c.l.bf16 %v4513_v0  ;;  %v6538_v4 = vunpack.c.h.bf16 %v4513_v0  ;;  %v6540_v5 = vunpack.c.l.bf16 %v212_v1  ;;  %v215_v9 = vld [vmem:[%s6531_s20 + $0x2c] sm:$0x3]  ;;  %v6549_v11 = vunpack.c.l.bf16 %v206_v7  ;;  %v209_v26 = vld [vmem:[%s6531_s20 + $0x14] sm:$0x3]  ;;  %s6479_s4 = smov 55  }
  0x17   : > { %v6542_v6 = vunpack.c.l.bf16 %v4474_v2  ;;  %v213_v8 = vld [vmem:[%s6531_s20 + $0x24] sm:$0xff]   ;;  %v6547_v10 = vunpack.c.h.bf16 %v4474_v2  ;;  %v207_v14 = vld [vmem:[%s6531_s20 + $0xc] sm:$0xff]   ;;  %v6562_v21 = vunpack.c.l.bf16 %v215_v9  ;;  %v219_v28 = vld [vmem:[%s6531_s20 + $0x3c] sm:$0xff]   ;;  %v6584_v38 = vunpack.c.l.bf16 %v209_v26  ;;  %s6480_s5 = smov 60   ;;  %s6481_s6 = smov 65  }
  0x18   : > { %12304 = vst [vmem:[#allocation2_spill] sm:$0xff] %v6536_v3  ;;  %12305 = vst [vmem:[#allocation3_spill] sm:$0xff] %v6538_v4  ;;  %v6551_v12 = vunpack.c.l.bf16 %v213_v8  ;;  %v6553_v13 = vunpack.c.h.bf16 %v213_v8  ;;  %v383_v15 = vrot.slane %v6536_v3, 1  ;;  %v384_v16 = vrot.slane %v6538_v4, 1  ;;  %v221_v32 = vld [vmem:[%s6531_s20 + $0x44] sm:$0x3] }
  0x19   : > { %12306 = vst [vmem:[#allocation4_spill] sm:$0xff] %v6542_v6  ;;  %12307 = vst [vmem:[#allocation5_spill] sm:$0xff] %v6547_v10  ;;  %v386_v17 = vrot.slane %v6540_v5, 1  ;;  %v373_v18 = vrot.slane %v6542_v6, 1  ;;  %v374_v19 = vrot.slane %v6547_v10, 1  ;;  %v376_v20 = vrot.slane %v6549_v11, 1 }
  0x1a   : > { %12308 = vst [vmem:[#allocation6_spill] sm:$0xff] %v6551_v12  ;;  %12309 = vst [vmem:[#allocation7_spill] sm:$0xff] %v6553_v13  ;;  %v388_v22 = vrot.slane %v6551_v12, 1  ;;  %v385_v23 = vsel %vm372_vm0, %v383_v15, %v384_v16  ;;  %v389_v25 = vrot.slane %v6553_v13, 1  ;;  %v6569_v27 = vunpack.c.l.bf16 %v207_v14  ;;  %v4514_v33 = vld [vmem:[%s6531_s20 + $0x30] sm:$0xff]   ;;  %v4515_v61 = vld [vmem:[%s6531_s20 + $0x48] sm:$0xff]  }
  0x1b   : > { %12310 = vst [vmem:[#allocation8_spill] sm:$0xff] %v6562_v21  ;;  %v387_v24 = vsel %vm372_vm0, %v384_v16, %v386_v17  ;;  %v375_v30 = vsel %vm372_vm0, %v373_v18, %v374_v19  ;;  %v377_v31 = vsel %vm372_vm0, %v374_v19, %v376_v20  ;;  %v11690_v36 = vrot.slane %v6562_v21, 1  ;;  %v218_v42 = vld [vmem:[%s6531_s20 + $0x38] sm:$0x3]  ;;  %v227_v56 = vld [vmem:[%s6531_s20 + $0x5c] sm:$0x3] }
  0x1c   : > { %12311 = vst [vmem:[#allocation9_spill] sm:$0xff] %v6569_v27  ;;  %v6572_v29 = vpack.i.bf16 %v387_v24, %v385_v23  ;;  %v4652_v34 = vpack.i.bf16 %v377_v31, %v375_v30  ;;  %v390_v35 = vsel %vm372_vm0, %v388_v22, %v389_v25  ;;  %v6580_v37 = vunpack.c.h.bf16 %v207_v14  ;;  %v225_v47 = vld [vmem:[%s6531_s20 + $0x54] sm:$0xff]   ;;  %v224_v2 = vld [vmem:[%s6531_s20 + $0x50] sm:$0x3]  ;;  %s6482_s7 = smov 70   ;;  %s6483_s8 = smov 75  }
  0x1d   : > { %v378_v39 = vrot.slane %v6569_v27, 1  ;;  %v6587_v40 = vunpack.c.l.bf16 %v219_v28  ;;  %v6589_v41 = vunpack.c.h.bf16 %v219_v28  ;;  %v392_v43 = vsel %vm372_vm0, %v389_v25, %v11690_v36  ;;  %v231_v15 = vld [vmem:[%s6531_s20 + $0x6c] sm:$0xff]   ;;  %v233_v20 = vld [vmem:[%s6531_s20 + $0x74] sm:$0x3] }
  0x1e   : > { %12312 = vst [vmem:[#allocation10_spill] sm:$0xff] %v6572_v29  ;;  %12313 = vst [vmem:[#allocation11_spill] sm:$0xff] %v6580_v37  ;;  %4663 = vrot.lane.b32.xlu1 %v6572_v29, %s6469_s21  ;;  %4653 = vrot.lane.b32.xlu0 %v4652_v34, %s6469_s21  ;;  %v379_v44 = vrot.slane %v6580_v37, 1  ;;  %v6597_v45 = vunpack.c.l.bf16 %v221_v32  ;;  %v6599_v46 = vunpack.c.l.bf16 %v4514_v33  ;;  %v6602_v48 = vpack.i.bf16 %v392_v43, %v390_v35  ;;  %v4516_v32 = vld [vmem:[%s6531_s20 + $0x60] sm:$0xff]  }
  0x1f   : > { %12314 = vst [vmem:[#allocation12_spill] sm:$0xff] %v6587_v40  ;;  %12315 = vst [vmem:[#allocation13_spill] sm:$0xff] %v6589_v41  ;;  %v381_v49 = vrot.slane %v6584_v38, 1  ;;  %v398_v50 = vrot.slane %v6587_v40, 1  ;;  %v399_v51 = vrot.slane %v6589_v41, 1  ;;  %v6611_v54 = vunpack.c.h.bf16 %v4514_v33  ;;  %v237_v43 = vld [vmem:[%s6531_s20 + $0x84] sm:$0xff]  }
  0x20   : > { %12316 = vst [vmem:[#allocation14_spill] sm:$0xff] %v6597_v45  ;;  %12317 = vst [vmem:[#allocation15_spill] sm:$0xff] %v6599_v46  ;;  %v380_v52 = vsel %vm372_vm0, %v378_v39, %v379_v44  ;;  %v6609_v53 = vrot.slane %v6597_v45, 1  ;;  %v6613_v55 = vunpack.c.l.bf16 %v218_v42  ;;  %v393_v59 = vrot.slane %v6599_v46, 1  ;;  %v230_v42 = vld [vmem:[%s6531_s20 + $0x68] sm:$0x3] }
  0x21   : > { %12318 = vst [vmem:[#allocation16_spill] sm:$0xff] %v6602_v48  ;;  %12320 = vst [vmem:[#allocation18_spill] sm:$0xff] %v6611_v54  ;;  %v382_v57 = vsel %vm372_vm0, %v379_v44, %v381_v49  ;;  %v400_v58 = vsel %vm372_vm0, %v398_v50, %v399_v51  ;;  %v6621_v60 = vunpack.c.l.bf16 %v225_v47  ;;  %v394_v0 = vrot.slane %v6611_v54, 1 }
  0x22   : > { %12319 = vst [vmem:[#allocation17_spill] sm:$0xff] %v6609_v53  ;;  %12321 = vst [vmem:[#allocation19_spill] sm:$0xff] %v6613_v55  ;;  %4668 = vrot.lane.b32.xlu1 %v6602_v48, %s6469_s21  ;;  %v6624_v62 = vpack.i.bf16 %v382_v57, %v380_v52  ;;  %v402_v63 = vsel %vm372_vm0, %v399_v51, %v6609_v53  ;;  %v6630_v1 = vrot.slane %v6613_v55, 1  ;;  %v6635_v8 = vunpack.c.h.bf16 %v225_v47 }
  0x23   : > { %12322 = vst [vmem:[#allocation20_spill] sm:$0xff] %v6621_v60  ;;  %v6633_v7 = vpack.i.bf16 %v402_v63, %v400_v58  ;;  %v6637_v9 = vunpack.c.l.bf16 %v227_v56  ;;  %v408_v14 = vrot.slane %v6621_v60, 1  ;;  %v395_v16 = vsel %vm372_vm0, %v393_v59, %v394_v0  ;;  %v239_v58 = vld [vmem:[%s6531_s20 + $0x8c] sm:$0x3] }
  0x24   : > { %12323 = vst [vmem:[#allocation21_spill] sm:$0xff] %v6624_v62  ;;  %12324 = vst [vmem:[#allocation22_spill] sm:$0xff] %v6630_v1  ;;  %4658 = vrot.lane.b32.xlu0 %v6624_v62, %s6469_s21  ;;  %v397_v17 = vsel %vm372_vm0, %v394_v0, %v6630_v1  ;;  %v6646_v18 = vunpack.c.l.bf16 %v4515_v61  ;;  %v6648_v19 = vunpack.c.h.bf16 %v4515_v61  ;;  %v409_v23 = vrot.slane %v6635_v8, 1  ;;  %v242_v1 = vld [vmem:[%s6531_s20 + $0x98] sm:$0x3] }
  0x25   : > { %12325 = vst [vmem:[#allocation23_spill] sm:$0xff] %v6633_v7  ;;  %12326 = vst [vmem:[#allocation24_spill] sm:$0xff] %v6635_v8  ;;  %v6653_v22 = vpack.i.bf16 %v397_v17, %v395_v16  ;;  %v6657_v24 = vrot.slane %v6637_v9, 1  ;;  %v6659_v25 = vunpack.c.l.bf16 %v224_v2  ;;  %v6663_v30 = vunpack.c.l.bf16 %v231_v15  ;;  %v4517_v2 = vld [vmem:[%s6531_s20 + $0x78] sm:$0xff]  }
  0x26   : > { %12327 = vst [vmem:[#allocation25_spill] sm:$0xff] %v6637_v9  ;;  %12328 = vst [vmem:[#allocation26_spill] sm:$0xff] %v6646_v18  ;;  %4678 = vrot.lane.b32.xlu1 %v6633_v7, %s6469_s21  ;;  %v403_v26 = vrot.slane %v6646_v18, 1  ;;  %v404_v28 = vrot.slane %v6648_v19, 1  ;;  %v6665_v31 = vunpack.c.h.bf16 %v231_v15  ;;  %v410_v33 = vsel %vm372_vm0, %v408_v14, %v409_v23 }
  0x27   : > { %12329 = vst [vmem:[#allocation27_spill] sm:$0xff] %v6648_v19  ;;  %12330 = vst [vmem:[#allocation28_spill] sm:$0xff] %v6653_v22  ;;  %v412_v34 = vsel %vm372_vm0, %v409_v23, %v6657_v24  ;;  %v6672_v35 = vrot.slane %v6659_v25, 1  ;;  %v6674_v39 = vunpack.c.l.bf16 %v233_v20  ;;  %v418_v49 = vrot.slane %v6663_v30, 1  ;;  %v236_v20 = vld [vmem:[%s6531_s20 + $0x80] sm:$0x3] }
  0x28   : > { %12331 = vst [vmem:[#allocation29_spill] sm:$0xff] %v6657_v24  ;;  %12332 = vst [vmem:[#allocation30_spill] sm:$0xff] %v6659_v25  ;;  %4673 = vrot.lane.b32.xlu0 %v6653_v22, %s6469_s21  ;;  %v6680_v44 = vpack.i.bf16 %v412_v34, %v410_v33  ;;  %v405_v47 = vsel %vm372_vm0, %v403_v26, %v404_v28  ;;  %v419_v50 = vrot.slane %v6665_v31, 1  ;;  %v6690_v56 = vunpack.c.l.bf16 %v4516_v32  ;;  %v243_v23 = vld [vmem:[%s6531_s20 + $0x9c] sm:$0xff]  }
  0x29   : > { %12333 = vst [vmem:[#allocation31_spill] sm:$0xff] %v6663_v30  ;;  %12334 = vst [vmem:[#allocation32_spill] sm:$0xff] %v6665_v31  ;;  %v407_v51 = vsel %vm372_vm0, %v404_v28, %v6672_v35  ;;  %v6688_v52 = vrot.slane %v6674_v39, 1  ;;  %v6692_v57 = vunpack.c.h.bf16 %v4516_v32  ;;  %v6700_v63 = vunpack.c.l.bf16 %v230_v42 }
  0x2a   : > { %12335 = vst [vmem:[#allocation33_spill] sm:$0xff] %v6672_v35  ;;  %12336 = vst [vmem:[#allocation34_spill] sm:$0xff] %v6674_v39  ;;  %4688 = vrot.lane.b32.xlu1 %v6680_v44, %s6469_s21  ;;  %v6697_v59 = vpack.i.bf16 %v407_v51, %v405_v47  ;;  %v420_v61 = vsel %vm372_vm0, %v418_v49, %v419_v50  ;;  %v6702_v0 = vunpack.c.l.bf16 %v237_v43  ;;  %v413_v15 = vrot.slane %v6690_v56, 1  ;;  %v245_v49 = vld [vmem:[%s6531_s20 + $0xa4] sm:$0x3] }
  0x2b   : > { %12337 = vst [vmem:[#allocation35_spill] sm:$0xff] %v6680_v44  ;;  %12338 = vst [vmem:[#allocation36_spill] sm:$0xff] %v6688_v52  ;;  %v422_v14 = vsel %vm372_vm0, %v419_v50, %v6688_v52  ;;  %v414_v16 = vrot.slane %v6692_v57, 1  ;;  %v6709_v17 = vunpack.c.h.bf16 %v237_v43  ;;  %v6718_v28 = vrot.slane %v6700_v63, 1 }
  0x2c   : > { %12339 = vst [vmem:[#allocation37_spill] sm:$0xff] %v6690_v56  ;;  %12340 = vst [vmem:[#allocation38_spill] sm:$0xff] %v6692_v57  ;;  %4683 = vrot.lane.b32.xlu0 %v6697_v59, %s6469_s21  ;;  %v6715_v26 = vpack.i.bf16 %v422_v14, %v420_v61  ;;  %v6720_v32 = vunpack.c.l.bf16 %v239_v58  ;;  %v428_v33 = vrot.slane %v6702_v0, 1  ;;  %v6725_v43 = vunpack.c.l.bf16 %v4517_v2  ;;  %v4518_v14 = vld [vmem:[%s6531_s20 + $0x90] sm:$0xff]  }
  0x2d   : > { %12341 = vst [vmem:[#allocation39_spill] sm:$0xff] %v6697_v59  ;;  %12342 = vst [vmem:[#allocation40_spill] sm:$0xff] %v6700_v63  ;;  %v415_v34 = vsel %vm372_vm0, %v413_v15, %v414_v16  ;;  %v429_v42 = vrot.slane %v6709_v17, 1  ;;  %v6727_v47 = vunpack.c.h.bf16 %v4517_v2  ;;  %v417_v50 = vsel %vm372_vm0, %v414_v16, %v6718_v28  ;;  %v248_v59 = vld [vmem:[%s6531_s20 + $0xb0] sm:$0x3] }
  0x2e   : > { %12343 = vst [vmem:[#allocation41_spill] sm:$0xff] %v6702_v0  ;;  %12344 = vst [vmem:[#allocation42_spill] sm:$0xff] %v6709_v17  ;;  %4698 = vrot.lane.b32.xlu1 %v6715_v26, %s6469_s21  ;;  %v6735_v51 = vrot.slane %v6720_v32, 1  ;;  %v6737_v58 = vunpack.c.l.bf16 %v236_v20  ;;  %v6739_v61 = vunpack.c.l.bf16 %v243_v23  ;;  %v6742_v15 = vpack.i.bf16 %v417_v50, %v415_v34  ;;  %v249_v34 = vld [vmem:[%s6531_s20 + $0xb4] sm:$0xff]  }
  0x2f   : > { %12345 = vst [vmem:[#allocation43_spill] sm:$0xff] %v6715_v26  ;;  %12346 = vst [vmem:[#allocation44_spill] sm:$0xff] %v6718_v28  ;;  %v430_v2 = vsel %vm372_vm0, %v428_v33, %v429_v42  ;;  %v423_v36 = vrot.slane %v6725_v43, 1  ;;  %v424_v24 = vrot.slane %v6727_v47, 1  ;;  %v6752_v20 = vunpack.c.h.bf16 %v243_v23  ;;  %v251_v26 = vld [vmem:[%s6531_s20 + $0xbc] sm:$0x3] }
  0x30   : > { %12347 = vst [vmem:[#allocation45_spill] sm:$0xff] %v6720_v32  ;;  %12348 = vst [vmem:[#allocation46_spill] sm:$0xff] %v6725_v43  ;;  %v432_v52 = vsel %vm372_vm0, %v429_v42, %v6735_v51  ;;  %v6750_v16 = vrot.slane %v6737_v58, 1  ;;  %v6754_v28 = vunpack.c.l.bf16 %v245_v49  ;;  %4693 = vrot.lane.b32.xlu0 %v6742_v15, %s6469_s21  ;;  %v438_v42 = vrot.slane %v6739_v61, 1 }
  0x31   : > { %12349 = vst [vmem:[#allocation47_spill] sm:$0xff] %v6727_v47  ;;  %12350 = vst [vmem:[#allocation48_spill] sm:$0xff] %v6735_v51  ;;  %v6760_v33 = vpack.i.bf16 %v432_v52, %v430_v2  ;;  %v425_v50 = vsel %vm372_vm0, %v423_v36, %v424_v24  ;;  %v6764_v51 = vunpack.c.l.bf16 %v4518_v14  ;;  %v439_v49 = vrot.slane %v6752_v20, 1 }
  0x32   : > { %12351 = vst [vmem:[#allocation49_spill] sm:$0xff] %v6737_v58  ;;  %12352 = vst [vmem:[#allocation50_spill] sm:$0xff] %v6739_v61  ;;  %v427_v23 = vsel %vm372_vm0, %v424_v24, %v6750_v16  ;;  %v6770_v35 = vrot.slane %v6754_v28, 1  ;;  %v6772_v53 = vunpack.c.h.bf16 %v4518_v14  ;;  %v6779_v52 = vunpack.c.l.bf16 %v242_v1  ;;  %v4519_v24 = vld [vmem:[%s6531_s20 + $0xa8] sm:$0xff]  }
  0x33   : > { %12353 = vst [vmem:[#allocation51_spill] sm:$0xff] %v6742_v15  ;;  %12354 = vst [vmem:[#allocation52_spill] sm:$0xff] %v6750_v16  ;;  %4708 = vrot.lane.b32.xlu1 %v6760_v33, %s6469_s21  ;;  %v6777_v36 = vpack.i.bf16 %v427_v23, %v425_v50  ;;  %v433_v2 = vrot.slane %v6764_v51, 1  ;;  %v6782_v44 = vunpack.c.l.bf16 %v249_v34  ;;  %v440_v16 = vsel %vm372_vm0, %v438_v42, %v439_v49 }
  0x34   : > { %12355 = vst [vmem:[#allocation53_spill] sm:$0xff] %v6752_v20  ;;  %12356 = vst [vmem:[#allocation54_spill] sm:$0xff] %v6754_v28  ;;  %v442_v15 = vsel %vm372_vm0, %v439_v49, %v6770_v35  ;;  %v434_v14 = vrot.slane %v6772_v53, 1  ;;  %v6789_v7 = vunpack.c.h.bf16 %v249_v34  ;;  %v6797_v50 = vrot.slane %v6779_v52, 1 }
  0x35   : > { %12357 = vst [vmem:[#allocation55_spill] sm:$0xff] %v6760_v33  ;;  %12358 = vst [vmem:[#allocation56_spill] sm:$0xff] %v6764_v51  ;;  %4703 = vrot.lane.b32.xlu0 %v6777_v36, %s6469_s21  ;;  %v6794_v1 = vpack.i.bf16 %v442_v15, %v440_v16  ;;  %v6799_v23 = vunpack.c.l.bf16 %v251_v26  ;;  %v448_v42 = vrot.slane %v6782_v44, 1  ;;  %v6806_v34 = vunpack.c.h.bf16 %v4519_v24 }
  0x36   : > { %12359 = vst [vmem:[#allocation57_spill] sm:$0xff] %v6770_v35  ;;  %12360 = vst [vmem:[#allocation58_spill] sm:$0xff] %v6772_v53  ;;  %v435_v33 = vsel %vm372_vm0, %v433_v2, %v434_v14  ;;  %v449_v49 = vrot.slane %v6789_v7, 1  ;;  %v6804_v35 = vunpack.c.l.bf16 %v4519_v24  ;;  %v437_v15 = vsel %vm372_vm0, %v434_v14, %v6797_v50 }
  0x37   : > { %12361 = vst [vmem:[#allocation59_spill] sm:$0xff] %v6777_v36  ;;  %12362 = vst [vmem:[#allocation60_spill] sm:$0xff] %v6779_v52  ;;  %4718 = vrot.lane.b32.xlu1 %v6794_v1, %s6469_s21  ;;  %v6813_v16 = vrot.slane %v6799_v23, 1  ;;  %v6815_v26 = vunpack.c.l.bf16 %v248_v59  ;;  %v555_v36 = vrot.slane %v6569_v27, 2  ;;  %v6818_v2 = vpack.i.bf16 %v437_v15, %v435_v33 }
  0x38   : > { %12363 = vst [vmem:[#allocation61_spill] sm:$0xff] %v6782_v44  ;;  %12364 = vst [vmem:[#allocation62_spill] sm:$0xff] %v6789_v7  ;;  %v450_v48 = vsel %vm372_vm0, %v448_v42, %v449_v49  ;;  %v443_v24 = vrot.slane %v6804_v35, 1  ;;  %v444_v22 = vrot.slane %v6806_v34, 1  ;;  %v558_v59 = vrot.slane %v6584_v38, 2 }
  0x39   : > { %12365 = vst [vmem:[#allocation63_spill] sm:$0xff] %v6794_v1  ;;  %12366 = vst [vmem:[#allocation64_spill] sm:$0xff] %v6797_v50  ;;  %v452_v1 = vsel %vm372_vm0, %v449_v49, %v6813_v16  ;;  %v6826_v14 = vrot.slane %v6815_v26, 1  ;;  %v556_v50 = vrot.slane %v6580_v37, 2  ;;  %4713 = vrot.lane.b32.xlu0 %v6818_v2, %s6469_s21  ;;  %v550_v15 = vrot.slane %v6542_v6, 2 }
  0x3a   : > { %12367 = vst [vmem:[#allocation65_spill] sm:$0xff] %v6799_v23  ;;  %12368 = vst [vmem:[#allocation66_spill] sm:$0xff] %v6804_v35  ;;  %v6832_v33 = vpack.i.bf16 %v452_v1, %v450_v48  ;;  %v445_v42 = vsel %vm372_vm0, %v443_v24, %v444_v22  ;;  %v551_v62 = vrot.slane %v6547_v10, 2 }
  0x3b   : > { %12369 = vst [vmem:[#allocation67_spill] sm:$0xff] %v6806_v34  ;;  %12370 = vst [vmem:[#allocation68_spill] sm:$0xff] %v6813_v16  ;;  %v447_v49 = vsel %vm372_vm0, %v444_v22, %v6826_v14  ;;  %v557_v16 = vsel %vm549_vm1, %v555_v36, %v556_v50  ;;  %v559_v29 = vsel %vm549_vm1, %v556_v50, %v558_v59  ;;  %v566_v22 = vrot.slane %v6553_v13, 2 }
  0x3c   : > { %12371 = vst [vmem:[#allocation69_spill] sm:$0xff] %v6815_v26  ;;  %12372 = vst [vmem:[#allocation70_spill] sm:$0xff] %v6818_v2  ;;  %v553_v26 = vrot.slane %v6549_v11, 2  ;;  %4728 = vrot.lane.b32.xlu1 %v6832_v33, %s6469_s21  ;;  %v6844_v48 = vpack.i.bf16 %v447_v49, %v445_v42  ;;  %v6846_v1 = vpack.i.bf16 %v559_v29, %v557_v16  ;;  %v565_v2 = vrot.slane %v6551_v12, 2 }
  0x3d   : > { %12373 = vst [vmem:[#allocation71_spill] sm:$0xff] %v6826_v14  ;;  %12374 = vst [vmem:[#allocation72_spill] sm:$0xff] %v6832_v33  ;;  %v552_v24 = vsel %vm549_vm1, %v550_v15, %v551_v62  ;;  %v11746_v36 = vrot.slane %v6562_v21, 2  ;;  %v560_v50 = vrot.slane %v6536_v3, 2  ;;  %v561_v42 = vrot.slane %v6538_v4, 2 }
  0x3e   : > { %12375 = vst [vmem:[#allocation73_spill] sm:$0xff] %v6844_v48  ;;  %12376 = vst [vmem:[#allocation74_spill] sm:$0xff] %v6846_v1  ;;  %v554_v10 = vsel %vm549_vm1, %v551_v62, %v553_v26  ;;  %4723 = vrot.lane.b32.xlu0 %v6844_v48, %s6469_s21  ;;  %v563_v29 = vrot.slane %v6540_v5, 2  ;;  %v575_v16 = vrot.slane %v6587_v40, 2  ;;  %v567_v15 = vsel %vm549_vm1, %v565_v2, %v566_v22 }
  0x3f   : > { %v4732_v59 = vpack.i.bf16 %v554_v10, %v552_v24  ;;  %v569_v62 = vsel %vm549_vm1, %v566_v22, %v11746_v36  ;;  %v576_v26 = vrot.slane %v6589_v41, 2  ;;  %v6865_v49 = vrot.slane %v6597_v45, 2 }
  0x40   : > { %4738 = vrot.lane.b32.xlu1 %v6846_v1, %s6470_s22  ;;  %v6869_v10 = vpack.i.bf16 %v569_v62, %v567_v15  ;;  %v562_v24 = vsel %vm549_vm1, %v560_v50, %v561_v42  ;;  %v564_v14 = vsel %vm549_vm1, %v561_v42, %v563_v29  ;;  %v570_v2 = vrot.slane %v6599_v46, 2 }
  0x41   : > { %12377 = vst [vmem:[#allocation75_spill] sm:$0xff] %v6865_v49  ;;  %v6874_v33 = vpack.i.bf16 %v564_v14, %v562_v24  ;;  %v577_v22 = vsel %vm549_vm1, %v575_v16, %v576_v26  ;;  %v579_v36 = vsel %vm549_vm1, %v576_v26, %v6865_v49  ;;  %v571_v48 = vrot.slane %v6611_v54, 2 }
  0x42   : > { %12378 = vst [vmem:[#allocation76_spill] sm:$0xff] %v6869_v10  ;;  %4733 = vrot.lane.b32.xlu0 %v4732_v59, %s6470_s22  ;;  %v6881_v1 = vpack.i.bf16 %v579_v36, %v577_v22  ;;  %v6884_v15 = vrot.slane %v6613_v55, 2  ;;  %v585_v50 = vrot.slane %v6621_v60, 2  ;;  %v586_v42 = vrot.slane %v6635_v8, 2 }
  0x43   : > { %12379 = vst [vmem:[#allocation77_spill] sm:$0xff] %v6874_v33  ;;  %v572_v14 = vsel %vm549_vm1, %v570_v2, %v571_v48  ;;  %v6890_v29 = vrot.slane %v6637_v9, 2  ;;  %v580_v16 = vrot.slane %v6646_v18, 2  ;;  %v581_v62 = vrot.slane %v6648_v19, 2 }
  0x44   : > { %12380 = vst [vmem:[#allocation78_spill] sm:$0xff] %v6881_v1  ;;  %12381 = vst [vmem:[#allocation79_spill] sm:$0xff] %v6884_v15  ;;  %4748 = vrot.lane.b32.xlu1 %v6869_v10, %s6470_s22  ;;  %v574_v36 = vsel %vm549_vm1, %v571_v48, %v6884_v15  ;;  %v587_v59 = vsel %vm549_vm1, %v585_v50, %v586_v42  ;;  %v6900_v26 = vrot.slane %v6659_v25, 2  ;;  %v595_v24 = vrot.slane %v6663_v30, 2 }
  0x45   : > { %12382 = vst [vmem:[#allocation80_spill] sm:$0xff] %v6890_v29  ;;  %v6903_v2 = vpack.i.bf16 %v574_v36, %v572_v14  ;;  %v589_v22 = vsel %vm549_vm1, %v586_v42, %v6890_v29  ;;  %v596_v49 = vrot.slane %v6665_v31, 2  ;;  %v582_v48 = vsel %vm549_vm1, %v580_v16, %v581_v62 }
  0x46   : > { %12383 = vst [vmem:[#allocation81_spill] sm:$0xff] %v6900_v26  ;;  %4743 = vrot.lane.b32.xlu0 %v6874_v33, %s6470_s22  ;;  %v6910_v10 = vpack.i.bf16 %v589_v22, %v587_v59  ;;  %v6914_v50 = vrot.slane %v6674_v39, 2  ;;  %v590_v15 = vrot.slane %v6690_v56, 2  ;;  %v584_v14 = vsel %vm549_vm1, %v581_v62, %v6900_v26 }
  0x47   : > { %12384 = vst [vmem:[#allocation82_spill] sm:$0xff] %v6903_v2  ;;  %v597_v36 = vsel %vm549_vm1, %v595_v24, %v596_v49  ;;  %v591_v42 = vrot.slane %v6692_v57, 2  ;;  %v6922_v29 = vrot.slane %v6700_v63, 2  ;;  %v605_v59 = vrot.slane %v6702_v0, 2 }
  0x48   : > { %12385 = vst [vmem:[#allocation83_spill] sm:$0xff] %v6910_v10  ;;  %12386 = vst [vmem:[#allocation84_spill] sm:$0xff] %v6914_v50  ;;  %4758 = vrot.lane.b32.xlu1 %v6881_v1, %s6470_s22  ;;  %v599_v16 = vsel %vm549_vm1, %v596_v49, %v6914_v50  ;;  %v606_v22 = vrot.slane %v6709_v17, 2  ;;  %v6931_v33 = vrot.slane %v6720_v32, 2  ;;  %v6935_v62 = vpack.i.bf16 %v584_v14, %v582_v48 }
  0x49   : > { %12387 = vst [vmem:[#allocation85_spill] sm:$0xff] %v6922_v29  ;;  %v6937_v24 = vpack.i.bf16 %v599_v16, %v597_v36  ;;  %v592_v26 = vsel %vm549_vm1, %v590_v15, %v591_v42  ;;  %v594_v1 = vsel %vm549_vm1, %v591_v42, %v6922_v29  ;;  %v600_v50 = vrot.slane %v6725_v43, 2 }
  0x4a   : > { %12388 = vst [vmem:[#allocation86_spill] sm:$0xff] %v6931_v33  ;;  %4753 = vrot.lane.b32.xlu0 %v6903_v2, %s6470_s22  ;;  %12389 = vst [vmem:[#allocation87_spill] sm:$0xff] %v6935_v62  ;;  %v607_v49 = vsel %vm549_vm1, %v605_v59, %v606_v22  ;;  %v601_v17 = vrot.slane %v6727_v47, 2  ;;  %v6946_v32 = vrot.slane %v6737_v58, 2  ;;  %v609_v48 = vsel %vm549_vm1, %v606_v22, %v6931_v33 }
  0x4b   : > { %12390 = vst [vmem:[#allocation88_spill] sm:$0xff] %v6937_v24  ;;  %v615_v15 = vrot.slane %v6739_v61, 2  ;;  %v616_v14 = vrot.slane %v6752_v20, 2  ;;  %v6955_v36 = vrot.slane %v6754_v28, 2  ;;  %v6959_v42 = vpack.i.bf16 %v594_v1, %v592_v26 }
  0x4c   : > { %12391 = vst [vmem:[#allocation89_spill] sm:$0xff] %v6946_v32  ;;  %4768 = vrot.lane.b32.xlu1 %v6910_v10, %s6470_s22  ;;  %v610_v16 = vrot.slane %v6764_v51, 2  ;;  %v611_v59 = vrot.slane %v6772_v53, 2  ;;  %v6963_v29 = vpack.i.bf16 %v609_v48, %v607_v49  ;;  %v602_v22 = vsel %vm549_vm1, %v600_v50, %v601_v17 }
  0x4d   : > { %12392 = vst [vmem:[#allocation90_spill] sm:$0xff] %v6955_v36  ;;  %12393 = vst [vmem:[#allocation91_spill] sm:$0xff] %v6959_v42  ;;  %v604_v33 = vsel %vm549_vm1, %v601_v17, %v6946_v32  ;;  %v6969_v10 = vrot.slane %v6779_v52, 2  ;;  %v617_v1 = vsel %vm549_vm1, %v615_v15, %v616_v14  ;;  %v619_v26 = vsel %vm549_vm1, %v616_v14, %v6955_v36 }
  0x4e   : > { %4763 = vrot.lane.b32.xlu0 %v6935_v62, %s6470_s22  ;;  %12394 = vst [vmem:[#allocation92_spill] sm:$0xff] %v6963_v29  ;;  %v625_v62 = vrot.slane %v6782_v44, 2  ;;  %v626_v49 = vrot.slane %v6789_v7, 2  ;;  %v6979_v50 = vrot.slane %v6799_v23, 2  ;;  %v732_v17 = vrot.slane %v6569_v27, 3  ;;  %v12398_v23 = vld [vmem:[#allocation69_spill] sm:$0xff] }
  0x4f   : > { %12395 = vst [vmem:[#allocation93_spill] sm:$0xff] %v6969_v10  ;;  %v733_v48 = vrot.slane %v6580_v37, 3  ;;  %v735_v32 = vrot.slane %v6584_v38, 3  ;;  %v6986_v15 = vpack.i.bf16 %v604_v33, %v602_v22  ;;  %v612_v14 = vsel %vm549_vm1, %v610_v16, %v611_v59 }
  0x50   : > { %4778 = vrot.lane.b32.xlu1 %v6937_v24, %s6470_s22  ;;  %12396 = vst [vmem:[#allocation94_spill] sm:$0xff] %v6979_v50  ;;  %v620_v36 = vrot.slane %v6804_v35, 2  ;;  %v621_v24 = vrot.slane %v6806_v34, 2  ;;  %v614_v2 = vsel %vm549_vm1, %v611_v59, %v6969_v10  ;;  %v6994_v7 = vrot.slane %v12398_v23, 2 }
  0x51   : > { %12397 = vst [vmem:[#allocation95_spill] sm:$0xff] %v6986_v15  ;;  %v734_v44 = vsel %vm726_vm2, %v732_v17, %v733_v48  ;;  %v736_v52 = vsel %vm726_vm2, %v733_v48, %v735_v32  ;;  %v7000_v33 = vpack.i.bf16 %v619_v26, %v617_v1  ;;  %v627_v22 = vsel %vm549_vm1, %v625_v62, %v626_v49  ;;  %v12403_v26 = vld [vmem:[#allocation5_spill] sm:$0xff] }
  0x52   : > { %4773 = vrot.lane.b32.xlu0 %v6959_v42, %s6470_s22  ;;  %12399 = vst [vmem:[#allocation96_spill] sm:$0xff] %v6994_v7  ;;  %v7002_v16 = vpack.i.bf16 %v736_v52, %v734_v44  ;;  %v629_v42 = vsel %vm549_vm1, %v626_v49, %v6979_v50  ;;  %v7009_v59 = vpack.i.bf16 %v614_v2, %v612_v14  ;;  %v727_v1 = vrot.slane %v6542_v6, 3 }
  0x53   : > { %12400 = vst [vmem:[#allocation97_spill] sm:$0xff] %v7000_v33  ;;  %v622_v17 = vsel %vm549_vm1, %v620_v36, %v621_v24  ;;  %v624_v32 = vsel %vm549_vm1, %v621_v24, %v6994_v7  ;;  %v728_v44 = vrot.slane %v12403_v26, 3  ;;  %v730_v52 = vrot.slane %v6549_v11, 3 }
  0x54   : > { %4788 = vrot.lane.b32.xlu1 %v6963_v29, %s6470_s22  ;;  %12401 = vst [vmem:[#allocation98_spill] sm:$0xff] %v7002_v16  ;;  %12402 = vst [vmem:[#allocation99_spill] sm:$0xff] %v7009_v59  ;;  %v7019_v62 = vpack.i.bf16 %v629_v42, %v627_v22  ;;  %v742_v49 = vrot.slane %v6551_v12, 3  ;;  %v743_v2 = vrot.slane %v6553_v13, 3  ;;  %v737_v48 = vrot.slane %v6536_v3, 3 }
  0x55   : > { %v738_v24 = vrot.slane %v6538_v4, 3  ;;  %v740_v14 = vrot.slane %v6540_v5, 3  ;;  %v7029_v7 = vpack.i.bf16 %v624_v32, %v622_v17  ;;  %v729_v42 = vsel %vm726_vm2, %v727_v1, %v728_v44 }
  0x56   : > { %4783 = vrot.lane.b32.xlu0 %v6986_v15, %s6470_s22  ;;  %12404 = vst [vmem:[#allocation100_spill] sm:$0xff] %v7019_v62  ;;  %v731_v22 = vsel %vm726_vm2, %v728_v44, %v730_v52  ;;  %v744_v36 = vsel %vm726_vm2, %v742_v49, %v743_v2  ;;  %v752_v50 = vrot.slane %v6587_v40, 3  ;;  %v753_v10 = vrot.slane %v6589_v41, 3 }
  0x57   : > { %12405 = vst [vmem:[#allocation101_spill] sm:$0xff] %v7029_v7  ;;  %v739_v17 = vsel %vm726_vm2, %v737_v48, %v738_v24  ;;  %v741_v32 = vsel %vm726_vm2, %v738_v24, %v740_v14  ;;  %v7044_v1 = vrot.slane %v6597_v45, 3  ;;  %v4812_v44 = vpack.i.bf16 %v731_v22, %v729_v42 }
  0x58   : > { %4798 = vrot.lane.b32.xlu1 %v7000_v33, %s6470_s22  ;;  %v12406_v33 = vrot.slane %v6562_v21, 3  ;;  %v747_v52 = vrot.slane %v6599_v46, 3  ;;  %v748_v49 = vrot.slane %v6611_v54, 3  ;;  %v754_v48 = vsel %vm726_vm2, %v752_v50, %v753_v10 }
  0x59   : > { %12407 = vst [vmem:[#allocation102_spill] sm:$0xff] %v7044_v1  ;;  %v756_v24 = vsel %vm726_vm2, %v753_v10, %v7044_v1  ;;  %v762_v14 = vrot.slane %v6621_v60, 3  ;;  %v763_v42 = vrot.slane %v6635_v8, 3  ;;  %v758_v50 = vrot.slane %v6648_v19, 3 }
  0x5a   : > { %4793 = vrot.lane.b32.xlu0 %v7009_v59, %s6470_s22  ;;  %v746_v29 = vsel %vm726_vm2, %v743_v2, %v12406_v33  ;;  %v7057_v2 = vpack.i.bf16 %v741_v32, %v739_v17  ;;  %v7072_v17 = vrot.slane %v6659_v25, 3  ;;  %v772_v10 = vrot.slane %v6663_v30, 3 }
  0x5b   : > { %v7055_v33 = vpack.i.bf16 %v746_v29, %v744_v36  ;;  %v757_v36 = vrot.slane %v6646_v18, 3  ;;  %v773_v32 = vrot.slane %v6665_v31, 3  ;;  %v767_v22 = vrot.slane %v6690_v56, 3 }
  0x5c   : > { %4808 = vrot.lane.b32.xlu1 %v7019_v62, %s6470_s22  ;;  %v7051_v62 = vrot.slane %v6613_v55, 3  ;;  %12410 = vst [vmem:[#allocation105_spill] sm:$0xff] %v7057_v2  ;;  %12411 = vst [vmem:[#allocation106_spill] sm:$0xff] %v7072_v17  ;;  %v768_v59 = vrot.slane %v6692_v57, 3  ;;  %v777_v15 = vrot.slane %v6725_v43, 3 }
  0x5d   : > { %12409 = vst [vmem:[#allocation104_spill] sm:$0xff] %v7055_v33 }
  0x5e   : > { %4803 = vrot.lane.b32.xlu0 %v7029_v7, %s6470_s22  ;;  %12408 = vst [vmem:[#allocation103_spill] sm:$0xff] %v7051_v62  ;;  %v749_v7 = vsel %vm726_vm2, %v747_v52, %v748_v49  ;;  %v751_v29 = vsel %vm726_vm2, %v748_v49, %v7051_v62  ;;  %v764_v52 = vsel %vm726_vm2, %v762_v14, %v763_v42  ;;  %v12413_v49 = vrot.slane %v6637_v9, 3 }
  0x5f   : > { %v7087_v1 = vpack.i.bf16 %v751_v29, %v749_v7  ;;  %v12415_v14 = vrot.slane %v6674_v39, 3  ;;  %v782_v29 = vrot.slane %v6702_v0, 3 }
  0x60   : > { %4818 = vrot.lane.b32.xlu1 %v7002_v16, %s6471_s23  ;;  %v766_v62 = vsel %vm726_vm2, %v763_v42, %v12413_v49  ;;  %v759_v16 = vsel %vm726_vm2, %v757_v36, %v758_v50  ;;  %v7099_v49 = vrot.slane %v6700_v63, 3  ;;  %v12418_v36 = vld [vmem:[#allocation42_spill] sm:$0xff] }
  0x61   : > { %12414 = vst [vmem:[#allocation108_spill] sm:$0xff] %v7087_v1  ;;  %v776_v42 = vsel %vm726_vm2, %v773_v32, %v12415_v14  ;;  %v7103_v7 = vpack.i.bf16 %v766_v62, %v764_v52  ;;  %v769_v62 = vsel %vm726_vm2, %v767_v22, %v768_v59  ;;  %v912_v52 = vrot.slane %v6584_v38, 4 }
  0x62   : > { %4813 = vrot.lane.b32.xlu0 %v4812_v44, %s6471_s23  ;;  %v7079_v44 = vpack.i.bf16 %v756_v24, %v754_v48  ;;  %v761_v48 = vsel %vm726_vm2, %v758_v50, %v7072_v17  ;;  %v774_v24 = vsel %vm726_vm2, %v772_v10, %v773_v32  ;;  %12416 = vst [vmem:[#allocation109_spill] sm:$0xff] %v7099_v49  ;;  %v12419_v50 = vld [vmem:[#allocation45_spill] sm:$0xff]  ;;  %v909_v10 = vrot.slane %v6569_v27, 4 }
  0x63   : > { %12417 = vst [vmem:[#allocation110_spill] sm:$0xff] %v7103_v7  ;;  %v7108_v17 = vrot.slane %v12419_v50, 3  ;;  %v910_v32 = vrot.slane %v6580_v37, 4  ;;  %v7114_v14 = vpack.i.bf16 %v761_v48, %v759_v16  ;;  %v778_v27 = vrot.slane %v6727_v47, 3 }
  0x64   : > { %4828 = vrot.lane.b32.xlu1 %v7055_v33, %s6471_s23  ;;  %12412 = vst [vmem:[#allocation107_spill] sm:$0xff] %v7079_v44  ;;  %v783_v33 = vrot.slane %v12418_v36, 3  ;;  %v792_v16 = vrot.slane %v6739_v61, 3  ;;  %v793_v48 = vrot.slane %v6752_v20, 3 }
  0x65   : > { %12420 = vst [vmem:[#allocation111_spill] sm:$0xff] %v7108_v17  ;;  %12421 = vst [vmem:[#allocation112_spill] sm:$0xff] %v7114_v14  ;;  %v911_v22 = vsel %vm903_vm3, %v909_v10, %v910_v32  ;;  %v913_v38 = vsel %vm903_vm3, %v910_v32, %v912_v52  ;;  %v788_v10 = vrot.slane %v6772_v53, 3  ;;  %v779_v32 = vsel %vm726_vm2, %v777_v15, %v778_v27  ;;  %v12426_v52 = vld [vmem:[#allocation60_spill] sm:$0xff]  ;;  %v12429_v15 = vld [vmem:[#allocation62_spill] sm:$0xff] }
  0x66   : > { %4823 = vrot.lane.b32.xlu0 %v7057_v2, %s6471_s23  ;;  %v771_v2 = vsel %vm726_vm2, %v768_v59, %v7099_v49  ;;  %v786_v59 = vsel %vm726_vm2, %v783_v33, %v7108_v17  ;;  %v7137_v37 = vpack.i.bf16 %v913_v38, %v911_v22  ;;  %v7150_v17 = vrot.slane %v12426_v52, 3  ;;  %v12428_v38 = vld [vmem:[#allocation61_spill] sm:$0xff] }
  0x67   : > { %v7141_v49 = vpack.i.bf16 %v771_v2, %v769_v62  ;;  %v794_v2 = vsel %vm726_vm2, %v792_v16, %v793_v48  ;;  %v12430_v53 = vld [vmem:[#allocation65_spill] sm:$0xff]  ;;  %v797_v16 = vrot.slane %v6804_v35, 3 }
  0x68   : > { %4838 = vrot.lane.b32.xlu1 %v7079_v44, %s6471_s23  ;;  %v7116_v44 = vpack.i.bf16 %v776_v42, %v774_v24  ;;  %v784_v24 = vsel %vm726_vm2, %v782_v29, %v783_v33  ;;  %v7135_v42 = vrot.slane %v6754_v28, 3  ;;  %v12425_v29 = vrot.slane %v6737_v58, 3  ;;  %12427 = vst [vmem:[#allocation116_spill] sm:$0xff] %v7150_v17 }
  0x69   : > { %12424 = vst [vmem:[#allocation115_spill] sm:$0xff] %v7141_v49  ;;  %v7154_v22 = vpack.i.bf16 %v786_v59, %v784_v24  ;;  %v791_v24 = vsel %vm726_vm2, %v788_v10, %v7150_v17  ;;  %v7172_v59 = vrot.slane %v12398_v23, 3  ;;  %v905_v17 = vrot.slane %v12403_v26, 4 }
  0x6a   : > { %4833 = vrot.lane.b32.xlu0 %v7087_v1, %s6471_s23  ;;  %12422 = vst [vmem:[#allocation113_spill] sm:$0xff] %v7116_v44  ;;  %12423 = vst [vmem:[#allocation114_spill] sm:$0xff] %v7135_v42  ;;  %v781_v33 = vsel %vm726_vm2, %v778_v27, %v12425_v29  ;;  %v796_v62 = vsel %vm726_vm2, %v793_v48, %v7135_v42  ;;  %v803_v1 = vrot.slane %v12429_v15, 3  ;;  %v798_v48 = vrot.slane %v6806_v34, 3 }
  0x6b   : > { %v7164_v27 = vpack.i.bf16 %v781_v33, %v779_v32  ;;  %12432 = vst [vmem:[#allocation118_spill] sm:$0xff] %v7172_v59  ;;  %v12434_v33 = vrot.slane %v12430_v53, 3  ;;  %v904_v42 = vrot.slane %v6542_v6, 4 }
  0x6c   : > { %4848 = vrot.lane.b32.xlu1 %v7103_v7, %s6471_s23  ;;  %v787_v7 = vrot.slane %v6764_v51, 3  ;;  %v7176_v51 = vpack.i.bf16 %v796_v62, %v794_v2  ;;  %v801_v2 = vsel %vm726_vm2, %v798_v48, %v7172_v59  ;;  %v919_v62 = vrot.slane %v6551_v12, 4 }
  0x6d   : > { %12431 = vst [vmem:[#allocation117_spill] sm:$0xff] %v7164_v27  ;;  %v929_v59 = vrot.slane %v6587_v40, 4 }
  0x6e   : > { %4843 = vrot.lane.b32.xlu0 %v7114_v14, %s6471_s23  ;;  %v802_v14 = vrot.slane %v12428_v38, 3  ;;  %v789_v29 = vsel %vm726_vm2, %v787_v7, %v788_v10  ;;  %12433 = vst [vmem:[#allocation119_spill] sm:$0xff] %v7176_v51  ;;  %v806_v7 = vsel %vm726_vm2, %v803_v1, %v12434_v33  ;;  %v914_v33 = vrot.slane %v6536_v3, 4 }
  0x6f   : > { %v7184_v10 = vpack.i.bf16 %v791_v24, %v789_v29  ;;  %v920_v29 = vrot.slane %v6553_v13, 4  ;;  %v922_v24 = vrot.slane %v6562_v21, 4  ;;  %v930_v21 = vrot.slane %v6589_v41, 4 }
  0x70   : > { %4858 = vrot.lane.b32.xlu1 %v7116_v44, %s6471_s23  ;;  %v804_v32 = vsel %vm726_vm2, %v802_v14, %v803_v1  ;;  %v799_v44 = vsel %vm726_vm2, %v797_v16, %v798_v48  ;;  %v907_v14 = vrot.slane %v6549_v11, 4  ;;  %v906_v48 = vsel %vm903_vm3, %v904_v42, %v905_v17 }
  0x71   : > { %12435 = vst [vmem:[#allocation120_spill] sm:$0xff] %v7184_v10  ;;  %v7194_v1 = vpack.i.bf16 %v806_v7, %v804_v32  ;;  %v7201_v16 = vpack.i.bf16 %v801_v2, %v799_v44  ;;  %v915_v32 = vrot.slane %v6538_v4, 4  ;;  %v917_v7 = vrot.slane %v6540_v5, 4 }
  0x72   : > { %4853 = vrot.lane.b32.xlu0 %v7141_v49, %s6471_s23  ;;  %v908_v11 = vsel %vm903_vm3, %v905_v17, %v907_v14  ;;  %v921_v44 = vsel %vm903_vm3, %v919_v62, %v920_v29  ;;  %v923_v2 = vsel %vm903_vm3, %v920_v29, %v922_v24  ;;  %v932_v42 = vrot.slane %v6597_v45, 4 }
  0x73   : > { %12436 = vst [vmem:[#allocation121_spill] sm:$0xff] %v7194_v1  ;;  %12437 = vst [vmem:[#allocation122_spill] sm:$0xff] %v7201_v16  ;;  %v4892_v17 = vpack.i.bf16 %v908_v11, %v906_v48  ;;  %v924_v14 = vrot.slane %v6599_v46, 4  ;;  %v925_v5 = vrot.slane %v6611_v54, 4  ;;  %v916_v6 = vsel %vm903_vm3, %v914_v33, %v915_v32 }
  0x74   : > { %4868 = vrot.lane.b32.xlu1 %v7154_v22, %s6471_s23  ;;  %v918_v26 = vsel %vm903_vm3, %v915_v32, %v917_v7  ;;  %v7224_v62 = vpack.i.bf16 %v923_v2, %v921_v44  ;;  %v931_v29 = vsel %vm903_vm3, %v929_v59, %v930_v21  ;;  %v933_v24 = vsel %vm903_vm3, %v930_v21, %v932_v42 }
  0x75   : > { %v939_v48 = vrot.slane %v6621_v60, 4  ;;  %v940_v11 = vrot.slane %v6635_v8, 4  ;;  %v942_v33 = vrot.slane %v6637_v9, 4  ;;  %v7232_v32 = vpack.i.bf16 %v918_v26, %v916_v6 }
  0x76   : > { %4863 = vrot.lane.b32.xlu0 %v7164_v27, %s6471_s23  ;;  %12438 = vst [vmem:[#allocation123_spill] sm:$0xff] %v7224_v62  ;;  %v926_v7 = vsel %vm903_vm3, %v924_v14, %v925_v5  ;;  %v934_v44 = vrot.slane %v6646_v18, 4  ;;  %v935_v59 = vrot.slane %v6648_v19, 4  ;;  %v937_v21 = vrot.slane %v6659_v25, 4 }
  0x77   : > { %12439 = vst [vmem:[#allocation124_spill] sm:$0xff] %v7232_v32  ;;  %v7241_v2 = vpack.i.bf16 %v933_v24, %v931_v29  ;;  %v949_v42 = vrot.slane %v6663_v30, 4  ;;  %v950_v6 = vrot.slane %v6665_v31, 4  ;;  %v941_v26 = vsel %vm903_vm3, %v939_v48, %v940_v11 }
  0x78   : > { %4878 = vrot.lane.b32.xlu1 %v7176_v51, %s6471_s23  ;;  %v945_v29 = vrot.slane %v6692_v57, 4  ;;  %v936_v24 = vsel %vm903_vm3, %v934_v44, %v935_v59  ;;  %v938_v25 = vsel %vm903_vm3, %v935_v59, %v937_v21  ;;  %v947_v9 = vrot.slane %v6700_v63, 4  ;;  %v12447_v63 = vld [vmem:[#allocation58_spill] sm:$0xff] }
  0x79   : > { %12440 = vst [vmem:[#allocation125_spill] sm:$0xff] %v7241_v2  ;;  %v7268_v44 = vpack.i.bf16 %v938_v25, %v936_v24  ;;  %v970_v25 = vrot.slane %v6752_v20, 4 }
  0x7a   : > { %4873 = vrot.lane.b32.xlu0 %v7184_v10, %s6471_s23  ;;  %v948_v21 = vsel %vm903_vm3, %v945_v29, %v947_v9  ;;  %v972_v9 = vrot.slane %v6754_v28, 4  ;;  %v979_v28 = vrot.slane %v12428_v38, 4 }
  0x7b   : > { %12443 = vst [vmem:[#allocation128_spill] sm:$0xff] %v7268_v44 }
  0x7c   : > { %4888 = vrot.lane.b32.xlu1 %v7194_v1, %s6471_s23  ;;  %v927_v1 = vrot.slane %v6613_v55, 4 }
  0x7e   : > { %4883 = vrot.lane.b32.xlu0 %v7201_v16, %s6471_s23  ;;  %v928_v45 = vsel %vm903_vm3, %v925_v5, %v927_v1  ;;  %v952_v1 = vrot.slane %v6674_v39, 4  ;;  %v944_v5 = vrot.slane %v6690_v56, 4  ;;  %v962_v39 = vrot.slane %v12419_v50, 4  ;;  %v12446_v50 = vld [vmem:[#allocation56_spill] sm:$0xff] }
  0x7f   : > { %v7250_v14 = vpack.i.bf16 %v928_v45, %v926_v7  ;;  %v960_v7 = vrot.slane %v12418_v36, 4 }
  0x80   : > { %4898 = vrot.lane.b32.xlu1 %v7137_v37, %s6472_s24  ;;  %v953_v45 = vsel %vm903_vm3, %v950_v6, %v952_v1  ;;  %v946_v59 = vsel %vm903_vm3, %v944_v5, %v945_v29  ;;  %v969_v1 = vrot.slane %v6739_v61, 4 }
  0x81   : > { %12441 = vst [vmem:[#allocation126_spill] sm:$0xff] %v7250_v14  ;;  %v963_v5 = vsel %vm903_vm3, %v960_v7, %v962_v39  ;;  %v7286_v29 = vpack.i.bf16 %v948_v21, %v946_v59  ;;  %v973_v21 = vsel %vm903_vm3, %v970_v25, %v972_v9 }
  0x82   : > { %4893 = vrot.lane.b32.xlu0 %v4892_v17, %s6472_s24  ;;  %v943_v17 = vsel %vm903_vm3, %v940_v11, %v942_v33  ;;  %v951_v11 = vsel %vm903_vm3, %v949_v42, %v950_v6  ;;  %v959_v33 = vrot.slane %v6702_v0, 4  ;;  %v955_v42 = vrot.slane %v6727_v47, 4 }
  0x83   : > { %v7259_v48 = vpack.i.bf16 %v943_v17, %v941_v26  ;;  %v954_v26 = vrot.slane %v6725_v43, 4  ;;  %v957_v6 = vrot.slane %v6737_v58, 4  ;;  %v7277_v17 = vpack.i.bf16 %v953_v45, %v951_v11  ;;  %12445 = vst [vmem:[#allocation130_spill] sm:$0xff] %v7286_v29 }
  0x84   : > { %4908 = vrot.lane.b32.xlu1 %v7224_v62, %s6472_s24  ;;  %v961_v24 = vsel %vm903_vm3, %v959_v33, %v960_v7  ;;  %v964_v58 = vrot.slane %v12446_v50, 4  ;;  %v965_v11 = vrot.slane %v12447_v63, 4  ;;  %v967_v33 = vrot.slane %v12426_v52, 4 }
  0x85   : > { %12442 = vst [vmem:[#allocation127_spill] sm:$0xff] %v7259_v48  ;;  %12444 = vst [vmem:[#allocation129_spill] sm:$0xff] %v7277_v17  ;;  %v956_v55 = vsel %vm903_vm3, %v954_v26, %v955_v42  ;;  %v7299_v7 = vpack.i.bf16 %v963_v5, %v961_v24  ;;  %v971_v59 = vsel %vm903_vm3, %v969_v1, %v970_v25  ;;  %v982_v26 = vrot.slane %v12430_v53, 4 }
  0x86   : > { %4903 = vrot.lane.b32.xlu0 %v7232_v32, %s6472_s24  ;;  %v968_v24 = vsel %vm903_vm3, %v965_v11, %v967_v33  ;;  %v974_v1 = vrot.slane %v6804_v35, 4  ;;  %v975_v25 = vrot.slane %v6806_v34, 4  ;;  %v977_v5 = vrot.slane %v12398_v23, 4 }
  0x87   : > { %12450 = vst [vmem:[#allocation133_spill] sm:$0xff] %v7299_v7  ;;  %v7319_v9 = vpack.i.bf16 %v973_v21, %v971_v59 }
  0x88   : > { %4918 = vrot.lane.b32.xlu1 %v7241_v2, %s6472_s24  ;;  %v976_v23 = vsel %vm903_vm3, %v974_v1, %v975_v25  ;;  %v978_v53 = vsel %vm903_vm3, %v975_v25, %v977_v5  ;;  %v12460_v1 = vld [vmem:[#allocation11_spill] sm:$0xff]  ;;  %v7368_v5 = vpack.i.bf16 %v6553_v13, %v6551_v12 }
  0x89   : > { %12453 = vst [vmem:[#allocation136_spill] sm:$0xff] %v7319_v9 }
  0x8a   : > { %4913 = vrot.lane.b32.xlu0 %v7250_v14, %s6472_s24  ;;  %12463 = vst [vmem:[#allocation144_spill] sm:$0xff] %v7368_v5 }
  0x8c   : > { %4928 = vrot.lane.b32.xlu1 %v7259_v48, %s6472_s24  ;;  %v958_v48 = vsel %vm903_vm3, %v955_v42, %v957_v6  ;;  %v966_v6 = vsel %vm903_vm3, %v964_v58, %v965_v11 }
  0x8d   : > { %v7308_v42 = vpack.i.bf16 %v958_v48, %v956_v55  ;;  %v7327_v11 = vpack.i.bf16 %v968_v24, %v966_v6  ;;  %v12459_v24 = vld [vmem:[#allocation9_spill] sm:$0xff] }
  0x8e   : > { %4923 = vrot.lane.b32.xlu0 %v7268_v44, %s6472_s24  ;;  %v4972_v25 = vpack.i.bf16 %v12460_v1, %v12459_v24 }
  0x8f   : > { %12451 = vst [vmem:[#allocation134_spill] sm:$0xff] %v7308_v42  ;;  %12455 = vst [vmem:[#allocation138_spill] sm:$0xff] %v7327_v11 }
  0x90   : > { %v7290_v45 = vpop.permute.xlu1 %4663  ;;  %4938 = vrot.lane.b32.xlu1 %v7277_v17, %s6472_s24  ;;  %v7297_v39 = vpop.permute.xlu0 %4653 }
  0x91   : > { %12448 = vst [vmem:[#allocation131_spill] sm:$0xff] %v7290_v45  ;;  %12449 = vst [vmem:[#allocation132_spill] sm:$0xff] %v7297_v39  ;;  %v980_v45 = vrot.slane %v12429_v15, 4 }
  0x92   : > { %4933 = vrot.lane.b32.xlu0 %v7286_v29, %s6472_s24 }
  0x93   : > { %v981_v55 = vsel %vm903_vm3, %v979_v28, %v980_v45  ;;  %v983_v48 = vsel %vm903_vm3, %v980_v45, %v982_v26  ;;  %v7341_v45 = vpack.i.bf16 %v978_v53, %v976_v23  ;;  %v7349_v26 = vpack.i.bf16 %v6538_v4, %v6536_v3 }
  0x94   : > { %v7311_v52 = vpop.permute.xlu1 %4668  ;;  %4948 = vrot.lane.b32.xlu1 %v7299_v7, %s6472_s24  ;;  %v7335_v59 = vpack.i.bf16 %v983_v48, %v981_v55  ;;  %v7363_v23 = vpack.i.bf16 %v6611_v54, %v6599_v46  ;;  %v7376_v48 = vpack.i.bf16 %v6648_v19, %v6646_v18  ;;  %v7424_v3 = vpack.i.bf16 %v12447_v63, %v12446_v50  ;;  %v12497_v63 = vld [vmem:[#allocation28_spill] sm:$0xff]  ;;  %v12505_v18 = vld [vmem:[#allocation51_spill] sm:$0xff] }
  0x95   : > { %12452 = vst [vmem:[#allocation135_spill] sm:$0xff] %v7311_v52  ;;  %12457 = vst [vmem:[#allocation140_spill] sm:$0xff] %v7341_v45  ;;  %v7433_v4 = vpack.i.bf16 %v12418_v36, %v6702_v0  ;;  %v7453_v0 = vpack.i.bf16 %v6752_v20, %v6739_v61  ;;  %v12498_v61 = vld [vmem:[#allocation16_spill] sm:$0xff]  ;;  %v12502_v20 = vld [vmem:[#allocation23_spill] sm:$0xff] }
  0x96   : > { %4943 = vrot.lane.b32.xlu0 %v7308_v42, %s6472_s24  ;;  %v7325_v58 = vpop.permute.xlu0 %4658  ;;  %12456 = vst [vmem:[#allocation139_spill] sm:$0xff] %v7335_v59  ;;  %12462 = vst [vmem:[#allocation143_spill] sm:$0xff] %v7363_v23  ;;  %v12553_v54 = vld [vmem:[#allocation92_spill] sm:$0xff] }
  0x97   : > { %12454 = vst [vmem:[#allocation137_spill] sm:$0xff] %v7325_v58  ;;  %12465 = vst [vmem:[#allocation146_spill] sm:$0xff] %v7376_v48 }
  0x98   : > { %v7329_v33 = vpop.permute.xlu1 %4678  ;;  %4958 = vrot.lane.b32.xlu1 %v7319_v9, %s6472_s24  ;;  %12477 = vst [vmem:[#allocation158_spill] sm:$0xff] %v7424_v3  ;;  %12479 = vst [vmem:[#allocation160_spill] sm:$0xff] %v7433_v4 }
  0x99   : > { %12485 = vst [vmem:[#allocation166_spill] sm:$0xff] %v7453_v0 }
  0x9a   : > { %4953 = vrot.lane.b32.xlu0 %v7327_v11, %s6472_s24  ;;  %v7339_v28 = vpop.permute.xlu0 %4673 }
  0x9c   : > { %4968 = vrot.lane.b32.xlu1 %v7335_v59, %s6472_s24  ;;  %v7345_v21 = vpop.permute.xlu1 %4688 }
  0x9e   : > { %4963 = vrot.lane.b32.xlu0 %v7341_v45, %s6472_s24  ;;  %v7353_v6 = vpop.permute.xlu0 %4683 }
  0x9f   : > { %12458 = vst [vmem:[#allocation141_spill] sm:$0xff] %v7353_v6  ;;  %v12518_v6 = vld [vmem:[#allocation55_spill] sm:$0xff] }
  0xa0   : > { %4978 = vrot.lane.b32.xlu1 %v7349_v26, %s6473_s25  ;;  %v7359_v53 = vpop.permute.xlu1 %4698 }
  0xa1   : > { %12461 = vst [vmem:[#allocation142_spill] sm:$0xff] %v7359_v53 }
  0xa2   : > { %4973 = vrot.lane.b32.xlu0 %v4972_v25, %s6473_s25  ;;  %v7370_v55 = vpop.permute.xlu0 %4693  ;;  %v7384_v25 = vpack.i.bf16 %v6589_v41, %v6587_v40 }
  0xa3   : > { %12464 = vst [vmem:[#allocation145_spill] sm:$0xff] %v7370_v55  ;;  %v7392_v55 = vpack.i.bf16 %v6692_v57, %v6690_v56  ;;  %v7416_v57 = vpack.i.bf16 %v6665_v31, %v6663_v30  ;;  %v7441_v31 = vpack.i.bf16 %v6806_v34, %v6804_v35  ;;  %v12493_v34 = vld [vmem:[#allocation10_spill] sm:$0xff] }
  0xa4   : > { %4988 = vrot.lane.b32.xlu1 %v7363_v23, %s6473_s25  ;;  %12467 = vst [vmem:[#allocation148_spill] sm:$0xff] %v7384_v25 }
  0xa5   : > { %v7378_v24 = vpop.permute.xlu1 %4708  ;;  %12469 = vst [vmem:[#allocation150_spill] sm:$0xff] %v7392_v55  ;;  %12475 = vst [vmem:[#allocation156_spill] sm:$0xff] %v7416_v57 }
  0xa6   : > { %12466 = vst [vmem:[#allocation147_spill] sm:$0xff] %v7378_v24  ;;  %4983 = vrot.lane.b32.xlu0 %v7368_v5, %s6473_s25  ;;  %v7400_v24 = vpack.i.bf16 %v6635_v8, %v6621_v60  ;;  %12481 = vst [vmem:[#allocation162_spill] sm:$0xff] %v7441_v31  ;;  %v12510_v60 = vld [vmem:[#allocation59_spill] sm:$0xff] }
  0xa7   : > { %v7386_v1 = vpop.permute.xlu0 %4703 }
  0xa8   : > { %12468 = vst [vmem:[#allocation149_spill] sm:$0xff] %v7386_v1  ;;  %4998 = vrot.lane.b32.xlu1 %v7376_v48, %s6473_s25  ;;  %12471 = vst [vmem:[#allocation152_spill] sm:$0xff] %v7400_v24  ;;  %v7408_v1 = vpack.i.bf16 %v6727_v47, %v6725_v43  ;;  %v4520_v43 = vld [vmem:[%s6531_s20 + $0xc0] sm:$0xff]  }
  0xa9   : > { %v7394_v53 = vpop.permute.xlu1 %4718  ;;  %v7443_v58 = vunpack.c.l.bf16 %v4520_v43  ;;  %v7445_v52 = vunpack.c.h.bf16 %v4520_v43 }
  0xaa   : > { %12470 = vst [vmem:[#allocation151_spill] sm:$0xff] %v7394_v53  ;;  %4993 = vrot.lane.b32.xlu0 %v7384_v25, %s6473_s25  ;;  %12473 = vst [vmem:[#allocation154_spill] sm:$0xff] %v7408_v1 }
  0xab   : > { %v7402_v12 = vpop.permute.xlu0 %4713  ;;  %12482 = vst [vmem:[#allocation163_spill] sm:$0xff] %v7443_v58  ;;  %12483 = vst [vmem:[#allocation164_spill] sm:$0xff] %v7445_v52  ;;  %v7461_v36 = vpack.i.bf16 %v7445_v52, %v7443_v58 }
  0xac   : > { %12472 = vst [vmem:[#allocation153_spill] sm:$0xff] %v7402_v12  ;;  %5008 = vrot.lane.b32.xlu1 %v7392_v55, %s6473_s25 }
  0xad   : > { %12487 = vst [vmem:[#allocation168_spill] sm:$0xff] %v7461_v36 }
  0xae   : > { %5003 = vrot.lane.b32.xlu0 %v7400_v24, %s6473_s25  ;;  %v7412_v56 = vpop.permute.xlu1 %4728 }
  0xaf   : > { %12474 = vst [vmem:[#allocation155_spill] sm:$0xff] %v7412_v56 }
  0xb0   : > { %v7418_v13 = vpop.permute.xlu0 %4723  ;;  %5018 = vrot.lane.b32.xlu1 %v7408_v1, %s6473_s25 }
  0xb1   : > { %12476 = vst [vmem:[#allocation157_spill] sm:$0xff] %v7418_v13  ;;  %v1180_v13 = vrot.slane %v7445_v52, 1 }
  0xb2   : > { %5013 = vrot.lane.b32.xlu0 %v7416_v57, %s6473_s25  ;;  %v7429_v47 = vpop.permute.xlu1 %4738 }
  0xb3   : > { %12478 = vst [vmem:[#allocation159_spill] sm:$0xff] %v7429_v47 }
  0xb4   : > { %v7435_v30 = vpop.permute.xlu0 %4733  ;;  %5028 = vrot.lane.b32.xlu1 %v7424_v3, %s6473_s25 }
  0xb5   : > { %12480 = vst [vmem:[#allocation161_spill] sm:$0xff] %v7435_v30 }
  0xb6   : > { %5023 = vrot.lane.b32.xlu0 %v7433_v4, %s6473_s25  ;;  %v7449_v47 = vpop.permute.xlu1 %4748 }
  0xb7   : > { %12484 = vst [vmem:[#allocation165_spill] sm:$0xff] %v7449_v47  ;;  %v7469_v47 = vpack.i.bf16 %v12429_v15, %v12428_v38  ;;  %v12494_v38 = vld [vmem:[#allocation21_spill] sm:$0xff] }
  0xb8   : > { %v7455_v30 = vpop.permute.xlu0 %4743  ;;  %5038 = vrot.lane.b32.xlu1 %v7441_v31, %s6473_s25 }
  0xb9   : > { %12486 = vst [vmem:[#allocation167_spill] sm:$0xff] %v7455_v30  ;;  %12489 = vst [vmem:[#allocation170_spill] sm:$0xff] %v7469_v47 }
  0xba   : > { %5033 = vrot.lane.b32.xlu0 %v7453_v0, %s6473_s25  ;;  %v7465_v43 = vpop.permute.xlu1 %4758 }
  0xbb   : > { %12488 = vst [vmem:[#allocation169_spill] sm:$0xff] %v7465_v43 }
  0xbc   : > { %v7471_v39 = vpop.permute.xlu0 %4753  ;;  %5048 = vrot.lane.b32.xlu1 %v7461_v36, %s6473_s25 }
  0xbd   : > { %12490 = vst [vmem:[#allocation171_spill] sm:$0xff] %v7471_v39  ;;  %v12501_v39 = vld [vmem:[#allocation39_spill] sm:$0xff] }
  0xbe   : > { %5043 = vrot.lane.b32.xlu0 %v7469_v47, %s6473_s25  ;;  %v7477_v30 = vpop.permute.xlu1 %4768 }
  0xbf   : > { %12491 = vst [vmem:[#allocation172_spill] sm:$0xff] %v7477_v30 }
  0xc0   : > { %v7479_v35 = vpop.permute.xlu0 %4763  ;;  %5058 = vrot.lane.b32.xlu1 %v12493_v34, %s6474_s26 }
  0xc1   : > { %12492 = vst [vmem:[#allocation173_spill] sm:$0xff] %v7479_v35 }
  0xc2   : > { %5053 = vrot.lane.b32.xlu0 %v12494_v38, %s6474_s26  ;;  %v7485_v15 = vpop.permute.xlu1 %4778 }
  0xc3   : > { %12495 = vst [vmem:[#allocation10_spill] sm:$0xff] %v7485_v15  ;;  %v254_v15 = vld [vmem:[%s6531_s20 + $0xc8] sm:$0x3] }
  0xc4   : > { %v7487_v50 = vpop.permute.xlu0 %4773  ;;  %5068 = vrot.lane.b32.xlu1 %v12497_v63, %s6474_s26  ;;  %v7508_v19 = vunpack.c.l.bf16 %v254_v15  ;;  %v12512_v15 = vld [vmem:[#allocation43_spill] sm:$0xff] }
  0xc5   : > { %12496 = vst [vmem:[#allocation21_spill] sm:$0xff] %v7487_v50 }
  0xc6   : > { %5063 = vrot.lane.b32.xlu0 %v12498_v61, %s6474_s26  ;;  %v7493_v30 = vpop.permute.xlu1 %4788  ;;  %12506 = vst [vmem:[#allocation51_spill] sm:$0xff] %v7508_v19 }
  0xc7   : > { %12499 = vst [vmem:[#allocation28_spill] sm:$0xff] %v7493_v30  ;;  %v12507_v30 = vld [vmem:[#allocation35_spill] sm:$0xff] }
  0xc8   : > { %v7495_v35 = vpop.permute.xlu0 %4783  ;;  %5078 = vrot.lane.b32.xlu1 %v12501_v39, %s6474_s26 }
  0xc9   : > { %12500 = vst [vmem:[#allocation16_spill] sm:$0xff] %v7495_v35 }
  0xca   : > { %5073 = vrot.lane.b32.xlu0 %v12502_v20, %s6474_s26  ;;  %v7501_v38 = vpop.permute.xlu1 %4798 }
  0xcb   : > { %12503 = vst [vmem:[#allocation39_spill] sm:$0xff] %v7501_v38  ;;  %v1179_v38 = vrot.slane %v7443_v58, 1 }
  0xcc   : > { %v7504_v50 = vpop.permute.xlu0 %4793  ;;  %5088 = vrot.lane.b32.xlu1 %v12505_v18, %s6474_s26 }
  0xcd   : > { %12504 = vst [vmem:[#allocation23_spill] sm:$0xff] %v7504_v50  ;;  %v7521_v50 = vrot.slane %v7508_v19, 1 }
  0xce   : > { %5083 = vrot.lane.b32.xlu0 %v12507_v30, %s6474_s26  ;;  %v7512_v35 = vpop.permute.xlu1 %4808 }
  0xcf   : > { %12508 = vst [vmem:[#allocation35_spill] sm:$0xff] %v7512_v35  ;;  %12511 = vst [vmem:[#allocation59_spill] sm:$0xff] %v7521_v50  ;;  %v12515_v35 = vld [vmem:[#allocation70_spill] sm:$0xff]  ;;  %v7536_v53 = vsel %vm372_vm0, %v1180_v13, %v7521_v50 }
  0xd0   : > { %v7514_v43 = vpop.permute.xlu0 %4803  ;;  %5098 = vrot.lane.b32.xlu1 %v12510_v60, %s6474_s26  ;;  %12517 = vst [vmem:[#allocation177_spill] sm:$0xff] %v7536_v53 }
  0xd1   : > { %12509 = vst [vmem:[#allocation174_spill] sm:$0xff] %v7514_v43  ;;  %v7532_v43 = vsel %vm372_vm0, %v1179_v38, %v1180_v13  ;;  %v12523_v38 = vld [vmem:[#allocation63_spill] sm:$0xff] }
  0xd2   : > { %5093 = vrot.lane.b32.xlu0 %v12512_v15, %s6474_s26  ;;  %v7525_v56 = vpop.permute.xlu1 %4818  ;;  %12516 = vst [vmem:[#allocation176_spill] sm:$0xff] %v7532_v43 }
  0xd3   : > { %12513 = vst [vmem:[#allocation43_spill] sm:$0xff] %v7525_v56  ;;  %v12521_v56 = vld [vmem:[#allocation73_spill] sm:$0xff] }
  0xd4   : > { %v7527_v12 = vpop.permute.xlu0 %4813  ;;  %5108 = vrot.lane.b32.xlu1 %v12515_v35, %s6474_s26 }
  0xd5   : > { %12514 = vst [vmem:[#allocation175_spill] sm:$0xff] %v7527_v12  ;;  %v7548_v12 = vpack.i.bf16 %v7536_v53, %v7532_v43  ;;  %v12529_v43 = vld [vmem:[#allocation77_spill] sm:$0xff]  ;;  %v12530_v53 = vld [vmem:[#allocation74_spill] sm:$0xff] }
  0xd6   : > { %5103 = vrot.lane.b32.xlu0 %v12518_v6, %s6474_s26  ;;  %v7540_v8 = vpop.permute.xlu1 %4828 }
  0xd7   : > { %12519 = vst [vmem:[#allocation55_spill] sm:$0xff] %v7540_v8  ;;  %12522 = vst [vmem:[#allocation179_spill] sm:$0xff] %v7548_v12  ;;  %v12526_v8 = vld [vmem:[#allocation72_spill] sm:$0xff] }
  0xd8   : > { %v7542_v46 = vpop.permute.xlu0 %4823  ;;  %5118 = vrot.lane.b32.xlu1 %v12521_v56, %s6474_s26  ;;  %v12534_v56 = vld [vmem:[#allocation76_spill] sm:$0xff] }
  0xd9   : > { %12520 = vst [vmem:[#allocation178_spill] sm:$0xff] %v7542_v46 }
  0xda   : > { %5113 = vrot.lane.b32.xlu0 %v12523_v38, %s6474_s26  ;;  %v7552_v35 = vpop.permute.xlu1 %4838 }
  0xdb   : > { %12524 = vst [vmem:[#allocation63_spill] sm:$0xff] %v7552_v35 }
  0xdc   : > { %v7554_v13 = vpop.permute.xlu0 %4833  ;;  %5128 = vrot.lane.b32.xlu1 %v7548_v12, %s6474_s26  ;;  %v12533_v12 = vld [vmem:[#allocation82_spill] sm:$0xff] }
  0xdd   : > { %12525 = vst [vmem:[#allocation180_spill] sm:$0xff] %v7554_v13 }
  0xde   : > { %5123 = vrot.lane.b32.xlu0 %v12526_v8, %s6474_s26  ;;  %v7560_v46 = vpop.permute.xlu1 %4848  ;;  %v12537_v8 = vld [vmem:[#allocation87_spill] sm:$0xff] }
  0xdf   : > { %12527 = vst [vmem:[#allocation181_spill] sm:$0xff] %v7560_v46 }
  0xe0   : > { %v7562_v50 = vpop.permute.xlu0 %4843  ;;  %5138 = vrot.lane.b32.xlu1 %v12529_v43, %s6475_s27  ;;  %v12538_v43 = vld [vmem:[#allocation78_spill] sm:$0xff] }
  0xe1   : > { %12528 = vst [vmem:[#allocation182_spill] sm:$0xff] %v7562_v50 }
  0xe2   : > { %5133 = vrot.lane.b32.xlu0 %v12530_v53, %s6475_s27  ;;  %v7568_v35 = vpop.permute.xlu1 %4858 }
  0xe3   : > { %12531 = vst [vmem:[#allocation74_spill] sm:$0xff] %v7568_v35 }
  0xe4   : > { %v7570_v13 = vpop.permute.xlu0 %4853  ;;  %5148 = vrot.lane.b32.xlu1 %v12533_v12, %s6475_s27  ;;  %v12542_v12 = vld [vmem:[#allocation83_spill] sm:$0xff] }
  0xe5   : > { %12532 = vst [vmem:[#allocation183_spill] sm:$0xff] %v7570_v13  ;;  %v12541_v13 = vld [vmem:[#allocation91_spill] sm:$0xff] }
  0xe6   : > { %5143 = vrot.lane.b32.xlu0 %v12534_v56, %s6475_s27  ;;  %v7576_v46 = vpop.permute.xlu1 %4868 }
  0xe7   : > { %12535 = vst [vmem:[#allocation184_spill] sm:$0xff] %v7576_v46 }
  0xe8   : > { %v7578_v50 = vpop.permute.xlu0 %4863  ;;  %5158 = vrot.lane.b32.xlu1 %v12537_v8, %s6475_s27  ;;  %v1280_v8 = vrot.slane %v7443_v58, 2 }
  0xe9   : > { %12536 = vst [vmem:[#allocation185_spill] sm:$0xff] %v7578_v50  ;;  %v12545_v50 = vld [vmem:[#allocation95_spill] sm:$0xff] }
  0xea   : > { %5153 = vrot.lane.b32.xlu0 %v12538_v43, %s6475_s27  ;;  %v7584_v53 = vpop.permute.xlu1 %4878  ;;  %v1281_v43 = vrot.slane %v7445_v52, 2 }
  0xeb   : > { %12539 = vst [vmem:[#allocation186_spill] sm:$0xff] %v7584_v53  ;;  %v7601_v53 = vrot.slane %v7508_v19, 2 }
  0xec   : > { %v7586_v35 = vpop.permute.xlu0 %4873  ;;  %5168 = vrot.lane.b32.xlu1 %v12541_v13, %s6475_s27 }
  0xed   : > { %12540 = vst [vmem:[#allocation187_spill] sm:$0xff] %v7586_v35  ;;  %12546 = vst [vmem:[#allocation190_spill] sm:$0xff] %v7601_v53  ;;  %v12547_v35 = vld [vmem:[#allocation88_spill] sm:$0xff] }
  0xee   : > { %5163 = vrot.lane.b32.xlu0 %v12542_v12, %s6475_s27  ;;  %v7592_v56 = vpop.permute.xlu1 %4888 }
  0xef   : > { %12543 = vst [vmem:[#allocation188_spill] sm:$0xff] %v7592_v56  ;;  %v12550_v56 = vld [vmem:[#allocation99_spill] sm:$0xff] }
  0xf0   : > { %v7594_v46 = vpop.permute.xlu0 %4883  ;;  %5178 = vrot.lane.b32.xlu1 %v12545_v50, %s6475_s27  ;;  %v7616_v50 = vsel %vm549_vm1, %v1281_v43, %v7601_v53 }
  0xf1   : > { %12544 = vst [vmem:[#allocation189_spill] sm:$0xff] %v7594_v46  ;;  %v7612_v46 = vsel %vm549_vm1, %v1280_v8, %v1281_v43  ;;  %12552 = vst [vmem:[#allocation194_spill] sm:$0xff] %v7616_v50  ;;  %v12558_v8 = vld [vmem:[#allocation97_spill] sm:$0xff] }
  0xf2   : > { %5173 = vrot.lane.b32.xlu0 %v12547_v35, %s6475_s27  ;;  %v7605_v13 = vpop.permute.xlu1 %4898  ;;  %12551 = vst [vmem:[#allocation193_spill] sm:$0xff] %v7612_v46 }
  0xf3   : > { %12548 = vst [vmem:[#allocation191_spill] sm:$0xff] %v7605_v13  ;;  %v12556_v13 = vld [vmem:[#allocation101_spill] sm:$0xff] }
  0xf4   : > { %v7607_v12 = vpop.permute.xlu0 %4893  ;;  %5188 = vrot.lane.b32.xlu1 %v12550_v56, %s6475_s27 }
  0xf5   : > { %12549 = vst [vmem:[#allocation192_spill] sm:$0xff] %v7607_v12  ;;  %v7628_v12 = vpack.i.bf16 %v7616_v50, %v7612_v46  ;;  %v12562_v50 = vld [vmem:[#allocation105_spill] sm:$0xff]  ;;  %v12563_v46 = vld [vmem:[#allocation98_spill] sm:$0xff] }
  0xf6   : > { %5183 = vrot.lane.b32.xlu0 %v12553_v54, %s6475_s27  ;;  %v7620_v40 = vpop.permute.xlu1 %4908 }
  0xf7   : > { %12554 = vst [vmem:[#allocation195_spill] sm:$0xff] %v7620_v40  ;;  %12557 = vst [vmem:[#allocation197_spill] sm:$0xff] %v7628_v12  ;;  %v12559_v40 = vld [vmem:[#allocation100_spill] sm:$0xff] }
  0xf8   : > { %v7622_v35 = vpop.permute.xlu0 %4903  ;;  %5198 = vrot.lane.b32.xlu1 %v12556_v13, %s6475_s27 }
  0xf9   : > { %12555 = vst [vmem:[#allocation196_spill] sm:$0xff] %v7622_v35 }
  0xfa   : > { %5193 = vrot.lane.b32.xlu0 %v12558_v8, %s6475_s27  ;;  %v7632_v56 = vpop.permute.xlu1 %4918 }
  0xfc   : > { %v7634_v43 = vpop.permute.xlu0 %4913  ;;  %5208 = vrot.lane.b32.xlu1 %v7628_v12, %s6475_s27  ;;  %v12566_v12 = vld [vmem:[#allocation108_spill] sm:$0xff] }
  0xfe   : > { %5203 = vrot.lane.b32.xlu0 %v12559_v40, %s6475_s27  ;;  %v7640_v35 = vpop.permute.xlu1 %4928  ;;  %v12567_v40 = vld [vmem:[#allocation104_spill] sm:$0xff] }
  0xff   : > { %12560 = vst [vmem:[#allocation198_spill] sm:$0xff] %v7640_v35  ;;  %v12570_v35 = vld [vmem:[#allocation112_spill] sm:$0xff] }
 0x100   : > { %v7642_v53 = vpop.permute.xlu0 %4923  ;;  %5218 = vrot.lane.b32.xlu1 %v12562_v50, %s6476_s28  ;;  %v12571_v50 = vld [vmem:[#allocation107_spill] sm:$0xff] }
 0x101   : > { %12561 = vst [vmem:[#allocation199_spill] sm:$0xff] %v7642_v53 }
 0x102   : > { %5213 = vrot.lane.b32.xlu0 %v12563_v46, %s6476_s28  ;;  %v7648_v13 = vpop.permute.xlu1 %4938 }
 0x103   : > { %12564 = vst [vmem:[#allocation98_spill] sm:$0xff] %v7648_v13 }
 0x104   : > { %v7650_v8 = vpop.permute.xlu0 %4933  ;;  %5228 = vrot.lane.b32.xlu1 %v12566_v12, %s6476_s28 }
 0x105   : > { %12565 = vst [vmem:[#allocation200_spill] sm:$0xff] %v7650_v8  ;;  %v12572_v8 = vld [vmem:[#allocation110_spill] sm:$0xff] }
 0x106   : > { %5223 = vrot.lane.b32.xlu0 %v12567_v40, %s6476_s28  ;;  %v7656_v54 = vpop.permute.xlu1 %4948  ;;  %v12576_v40 = vld [vmem:[#allocation113_spill] sm:$0xff] }
 0x107   : > { %12568 = vst [vmem:[#allocation201_spill] sm:$0xff] %v7656_v54 }
 0x108   : > { %v7658_v53 = vpop.permute.xlu0 %4943  ;;  %5238 = vrot.lane.b32.xlu1 %v12570_v35, %s6476_s28  ;;  %v1382_v35 = vrot.slane %v7445_v52, 3 }
 0x109   : > { %12569 = vst [vmem:[#allocation202_spill] sm:$0xff] %v7658_v53  ;;  %v1381_v53 = vrot.slane %v7443_v58, 3 }
 0x10a   : > { %5233 = vrot.lane.b32.xlu0 %v12571_v50, %s6476_s28  ;;  %v7664_v46 = vpop.permute.xlu1 %4958  ;;  %v7681_v50 = vrot.slane %v7508_v19, 3 }
 0x10c   : > { %v7666_v13 = vpop.permute.xlu0 %4953  ;;  %5248 = vrot.lane.b32.xlu1 %v7141_v49, %s6476_s28  ;;  %12575 = vst [vmem:[#allocation205_spill] sm:$0xff] %v7681_v50 }
 0x10e   : > { %5243 = vrot.lane.b32.xlu0 %v12572_v8, %s6476_s28  ;;  %v7672_v12 = vpop.permute.xlu1 %4968 }
 0x10f   : > { %12573 = vst [vmem:[#allocation203_spill] sm:$0xff] %v7672_v12 }
 0x110   : > { %v7674_v54 = vpop.permute.xlu0 %4963  ;;  %5258 = vrot.lane.b32.xlu1 %v7164_v27, %s6476_s28  ;;  %v7696_v27 = vsel %vm726_vm2, %v1382_v35, %v7681_v50  ;;  %v12586_v50 = vld [vmem:[#allocation121_spill] sm:$0xff] }
 0x111   : > { %12574 = vst [vmem:[#allocation204_spill] sm:$0xff] %v7674_v54  ;;  %v7692_v54 = vsel %vm726_vm2, %v1381_v53, %v1382_v35  ;;  %12580 = vst [vmem:[#allocation209_spill] sm:$0xff] %v7696_v27 }
 0x112   : > { %5253 = vrot.lane.b32.xlu0 %v12576_v40, %s6476_s28  ;;  %v7685_v49 = vpop.permute.xlu1 %4978  ;;  %12579 = vst [vmem:[#allocation208_spill] sm:$0xff] %v7692_v54 }
 0x113   : > { %12577 = vst [vmem:[#allocation206_spill] sm:$0xff] %v7685_v49 }
 0x114   : > { %v7687_v8 = vpop.permute.xlu0 %4973  ;;  %5268 = vrot.lane.b32.xlu1 %v7184_v10, %s6476_s28 }
 0x115   : > { %12578 = vst [vmem:[#allocation207_spill] sm:$0xff] %v7687_v8  ;;  %v7708_v8 = vpack.i.bf16 %v7696_v27, %v7692_v54 }
 0x116   : > { %5263 = vrot.lane.b32.xlu0 %v7154_v22, %s6476_s28  ;;  %v7700_v12 = vpop.permute.xlu1 %4988 }
 0x117   : > { %12581 = vst [vmem:[#allocation210_spill] sm:$0xff] %v7700_v12  ;;  %12583 = vst [vmem:[#allocation212_spill] sm:$0xff] %v7708_v8 }
 0x118   : > { %v7702_v40 = vpop.permute.xlu0 %4983  ;;  %5278 = vrot.lane.b32.xlu1 %v7201_v16, %s6476_s28 }
 0x119   : > { %12582 = vst [vmem:[#allocation211_spill] sm:$0xff] %v7702_v40 }
 0x11a   : > { %5273 = vrot.lane.b32.xlu0 %v7176_v51, %s6476_s28  ;;  %v7712_v53 = vpop.permute.xlu1 %4998 }
 0x11b   : > { %12584 = vst [vmem:[#allocation213_spill] sm:$0xff] %v7712_v53 }
 0x11c   : > { %v7714_v35 = vpop.permute.xlu0 %4993  ;;  %5288 = vrot.lane.b32.xlu1 %v7708_v8, %s6476_s28 }
 0x11d   : > { %12585 = vst [vmem:[#allocation214_spill] sm:$0xff] %v7714_v35 }
 0x11e   : > { %5283 = vrot.lane.b32.xlu0 %v12586_v50, %s6476_s28  ;;  %v7720_v40 = vpop.permute.xlu1 %5008 }
 0x11f   : > { %12587 = vst [vmem:[#allocation215_spill] sm:$0xff] %v7720_v40 }
 0x120   : > { %v7722_v12 = vpop.permute.xlu0 %5003  ;;  %5298 = vrot.lane.b32.xlu1 %v7232_v32, %s6477_s29 }
 0x121   : > { %12588 = vst [vmem:[#allocation216_spill] sm:$0xff] %v7722_v12 }
 0x122   : > { %5293 = vrot.lane.b32.xlu0 %v7137_v37, %s6477_s29  ;;  %v7728_v27 = vpop.permute.xlu1 %5018 }
 0x123   : > { %12589 = vst [vmem:[#allocation217_spill] sm:$0xff] %v7728_v27 }
 0x124   : > { %v7730_v54 = vpop.permute.xlu0 %5013  ;;  %5308 = vrot.lane.b32.xlu1 %v7250_v14, %s6477_s29 }
 0x125   : > { %12590 = vst [vmem:[#allocation218_spill] sm:$0xff] %v7730_v54  ;;  %v12595_v54 = vld [vmem:[#allocation127_spill] sm:$0xff] }
 0x126   : > { %5303 = vrot.lane.b32.xlu0 %v7224_v62, %s6477_s29  ;;  %v7736_v49 = vpop.permute.xlu1 %5028  ;;  %v12661_v62 = vld [vmem:[#allocation171_spill] sm:$0xff] }
 0x127   : > { %12591 = vst [vmem:[#allocation219_spill] sm:$0xff] %v7736_v49 }
 0x128   : > { %v7738_v8 = vpop.permute.xlu0 %5023  ;;  %5318 = vrot.lane.b32.xlu1 %v7268_v44, %s6477_s29  ;;  %v1483_v44 = vrot.slane %v7445_v52, 4 }
 0x129   : > { %12592 = vst [vmem:[#allocation220_spill] sm:$0xff] %v7738_v8  ;;  %v1482_v8 = vrot.slane %v7443_v58, 4 }
 0x12a   : > { %5313 = vrot.lane.b32.xlu0 %v7241_v2, %s6477_s29  ;;  %v7744_v37 = vpop.permute.xlu1 %5038  ;;  %v1485_v2 = vrot.slane %v7508_v19, 4 }
 0x12b   : > { %12593 = vst [vmem:[#allocation221_spill] sm:$0xff] %v7744_v37 }
 0x12c   : > { %v7746_v27 = vpop.permute.xlu0 %5033  ;;  %5328 = vrot.lane.b32.xlu1 %v7286_v29, %s6477_s29 }
 0x12d   : > { %12594 = vst [vmem:[#allocation222_spill] sm:$0xff] %v7746_v27 }
 0x12e   : > { %5323 = vrot.lane.b32.xlu0 %v12595_v54, %s6477_s29  ;;  %v7752_v14 = vpop.permute.xlu1 %5048  ;;  %v1484_v54 = vsel %vm903_vm3, %v1482_v8, %v1483_v44 }
 0x12f   : > { %12596 = vst [vmem:[#allocation223_spill] sm:$0xff] %v7752_v14 }
 0x130   : > { %v7754_v49 = vpop.permute.xlu0 %5043  ;;  %5338 = vrot.lane.b32.xlu1 %v7308_v42, %s6477_s29  ;;  %v1486_v42 = vsel %vm903_vm3, %v1483_v44, %v1485_v2 }
 0x131   : > { %12597 = vst [vmem:[#allocation224_spill] sm:$0xff] %v7754_v49  ;;  %v7779_v58 = vpack.i.bf16 %v1486_v42, %v1484_v54 }
 0x132   : > { %5333 = vrot.lane.b32.xlu0 %v7277_v17, %s6477_s29  ;;  %v7763_v29 = vpop.permute.xlu1 %5058 }
 0x133   : > { %12598 = vst [vmem:[#allocation225_spill] sm:$0xff] %v7763_v29  ;;  %12602 = vst [vmem:[#allocation229_spill] sm:$0xff] %v7779_v58 }
 0x134   : > { %v7765_v32 = vpop.permute.xlu0 %5053  ;;  %5348 = vrot.lane.b32.xlu1 %v7327_v11, %s6477_s29 }
 0x135   : > { %12599 = vst [vmem:[#allocation226_spill] sm:$0xff] %v7765_v32 }
 0x136   : > { %5343 = vrot.lane.b32.xlu0 %v7299_v7, %s6477_s29  ;;  %v7773_v52 = vpop.permute.xlu1 %5068  ;;  %v12655_v7 = vld [vmem:[#allocation169_spill] sm:$0xff] }
 0x137   : > { %12600 = vst [vmem:[#allocation227_spill] sm:$0xff] %v7773_v52  ;;  %v4760_v17 = vunpack.i.l.bf16 %v12655_v7 }
 0x138   : > { %v7775_v19 = vpop.permute.xlu0 %5063  ;;  %5358 = vrot.lane.b32.xlu1 %v7341_v45, %s6477_s29 }
 0x139   : > { %12601 = vst [vmem:[#allocation228_spill] sm:$0xff] %v7775_v19 }
 0x13a   : > { %5353 = vrot.lane.b32.xlu0 %v7319_v9, %s6477_s29  ;;  %v7783_v32 = vpop.permute.xlu1 %5078  ;;  %v12654_v9 = vld [vmem:[#allocation20_spill] sm:$0xff] }
 0x13b   : > { %12603 = vst [vmem:[#allocation230_spill] sm:$0xff] %v7783_v32 }
 0x13c   : > { %v7785_v8 = vpop.permute.xlu0 %5073  ;;  %5368 = vrot.lane.b32.xlu1 %v7779_v58, %s6477_s29 }
 0x13d   : > { %12604 = vst [vmem:[#allocation231_spill] sm:$0xff] %v7785_v8 }
 0x13e   : > { %5363 = vrot.lane.b32.xlu0 %v7335_v59, %s6477_s29  ;;  %v7791_v2 = vpop.permute.xlu1 %5088  ;;  %v12653_v59 = vld [vmem:[#allocation157_spill] sm:$0xff] }
 0x13f   : > { %12605 = vst [vmem:[#allocation232_spill] sm:$0xff] %v7791_v2  ;;  %v4726_v11 = vunpack.i.h.bf16 %v12653_v59 }
 0x140   : > { %v7793_v44 = vpop.permute.xlu0 %5083  ;;  %5378 = vrot.lane.b32.xlu1 %v7368_v5, %s6478_s30  ;;  %v12642_v5 = vld [vmem:[#allocation15_spill] sm:$0xff] }
 0x141   : > { %12606 = vst [vmem:[#allocation233_spill] sm:$0xff] %v7793_v44 }
 0x142   : > { %5373 = vrot.lane.b32.xlu0 %v7349_v26, %s6478_s30  ;;  %v7799_v54 = vpop.permute.xlu1 %5098 }
 0x143   : > { %12607 = vst [vmem:[#allocation234_spill] sm:$0xff] %v7799_v54 }
 0x144   : > { %v7801_v42 = vpop.permute.xlu0 %5093  ;;  %5388 = vrot.lane.b32.xlu1 %v7384_v25, %s6478_s30 }
 0x145   : > { %12608 = vst [vmem:[#allocation235_spill] sm:$0xff] %v7801_v42 }
 0x146   : > { %5383 = vrot.lane.b32.xlu0 %v7363_v23, %s6478_s30  ;;  %v7807_v19 = vpop.permute.xlu1 %5108  ;;  %v4690_v23 = vunpack.i.l.bf16 %v7345_v21 }
 0x147   : > { %12609 = vst [vmem:[#allocation236_spill] sm:$0xff] %v7807_v19 }
 0x148   : > { %v7809_v52 = vpop.permute.xlu0 %5103  ;;  %5398 = vrot.lane.b32.xlu1 %v7400_v24, %s6478_s30 }
 0x149   : > { %12610 = vst [vmem:[#allocation237_spill] sm:$0xff] %v7809_v52  ;;  %v255_v52 = vld [vmem:[%s6531_s20 + $0xcc] sm:$0xff]  }
 0x14a   : > { %5393 = vrot.lane.b32.xlu0 %v7376_v48, %s6478_s30  ;;  %v7815_v26 = vpop.permute.xlu1 %5118 }
 0x14b   : > { %12611 = vst [vmem:[#allocation238_spill] sm:$0xff] %v7815_v26 }
 0x14c   : > { %v7817_v54 = vpop.permute.xlu0 %5113  ;;  %5408 = vrot.lane.b32.xlu1 %v7416_v57, %s6478_s30  ;;  %v7838_v57 = vunpack.c.l.bf16 %v255_v52 }
 0x14d   : > { %12612 = vst [vmem:[#allocation239_spill] sm:$0xff] %v7817_v54 }
 0x14e   : > { %5403 = vrot.lane.b32.xlu0 %v7392_v55, %s6478_s30  ;;  %v7823_v42 = vpop.permute.xlu1 %5128  ;;  %12617 = vst [vmem:[#allocation244_spill] sm:$0xff] %v7838_v57  ;;  %v7840_v55 = vunpack.c.h.bf16 %v255_v52 }
 0x14f   : > { %12613 = vst [vmem:[#allocation240_spill] sm:$0xff] %v7823_v42 }
 0x150   : > { %v7825_v19 = vpop.permute.xlu0 %5123  ;;  %5418 = vrot.lane.b32.xlu1 %v7433_v4, %s6478_s30  ;;  %12618 = vst [vmem:[#allocation245_spill] sm:$0xff] %v7840_v55 }
 0x151   : > { %12614 = vst [vmem:[#allocation241_spill] sm:$0xff] %v7825_v19 }
 0x152   : > { %5413 = vrot.lane.b32.xlu0 %v7408_v1, %s6478_s30  ;;  %v7832_v29 = vpop.permute.xlu1 %5138  ;;  %v12638_v1 = vld [vmem:[#allocation12_spill] sm:$0xff] }
 0x153   : > { %12615 = vst [vmem:[#allocation242_spill] sm:$0xff] %v7832_v29 }
 0x154   : > { %v7834_v24 = vpop.permute.xlu0 %5133  ;;  %5428 = vrot.lane.b32.xlu1 %v7453_v0, %s6478_s30 }
 0x155   : > { %12616 = vst [vmem:[#allocation243_spill] sm:$0xff] %v7834_v24  ;;  %v7852_v24 = vpack.i.bf16 %v7840_v55, %v7838_v57 }
 0x156   : > { %5423 = vrot.lane.b32.xlu0 %v7424_v3, %s6478_s30  ;;  %v7844_v25 = vpop.permute.xlu1 %5148 }
 0x157   : > { %12619 = vst [vmem:[#allocation246_spill] sm:$0xff] %v7844_v25  ;;  %12621 = vst [vmem:[#allocation248_spill] sm:$0xff] %v7852_v24 }
 0x158   : > { %v7846_v4 = vpop.permute.xlu0 %5143  ;;  %5438 = vrot.lane.b32.xlu1 %v7469_v47, %s6478_s30 }
 0x159   : > { %12620 = vst [vmem:[#allocation247_spill] sm:$0xff] %v7846_v4 }
 0x15a   : > { %5433 = vrot.lane.b32.xlu0 %v7441_v31, %s6478_s30  ;;  %v7856_v29 = vpop.permute.xlu1 %5158 }
 0x15b   : > { %12622 = vst [vmem:[#allocation249_spill] sm:$0xff] %v7856_v29 }
 0x15c   : > { %v7858_v52 = vpop.permute.xlu0 %5153  ;;  %5448 = vrot.lane.b32.xlu1 %v7852_v24, %s6478_s30 }
 0x15d   : > { %12623 = vst [vmem:[#allocation250_spill] sm:$0xff] %v7858_v52 }
 0x15e   : > { %5443 = vrot.lane.b32.xlu0 %v7461_v36, %s6478_s30  ;;  %v7864_v4 = vpop.permute.xlu1 %5168  ;;  %s4444_s30 = sshll.u32 %s6459_s12, 5 }
 0x15f   : > { %12624 = vst [vmem:[#allocation251_spill] sm:$0xff] %v7864_v4  ;;  %v12682_v4 = vld [vmem:[#allocation63_spill] sm:$0xff]  ;;  %p197_p5 = scmp.lt.s32.totalorder %s4444_s30, 63 }
 0x160   : > { %v7866_v25 = vpop.permute.xlu0 %5163  ;;  %5458 = vrot.lane.b32.xlu1 %v12498_v61, %s6479_s4  ;;  %v4840_v52 = vunpack.i.l.bf16 %v12682_v4 }
 0x161   : > { %12625 = vst [vmem:[#allocation252_spill] sm:$0xff] %v7866_v25  ;;  %s13587_s30 = smov (!%p197_p5, %s4444_s30), 63 }
 0x162   : > { %5453 = vrot.lane.b32.xlu0 %v12493_v34, %s6479_s4  ;;  %v7872_v47 = vpop.permute.xlu1 %5178  ;;  %v257_v34 = vld [vmem:[%s6531_s20 + $0xd4] sm:$0x3] }
 0x163   : > { %12626 = vst [vmem:[#allocation253_spill] sm:$0xff] %v7872_v47  ;;  %v4675_v47 = vunpack.i.l.bf16 %v7339_v28 }
 0x164   : > { %v7874_v0 = vpop.permute.xlu0 %5173  ;;  %5468 = vrot.lane.b32.xlu1 %v12502_v20, %s6479_s4  ;;  %v7895_v20 = vunpack.c.l.bf16 %v257_v34 }
 0x165   : > { %12627 = vst [vmem:[#allocation254_spill] sm:$0xff] %v7874_v0 }
 0x166   : > { %5463 = vrot.lane.b32.xlu0 %v12497_v63, %s6479_s4  ;;  %v7880_v24 = vpop.permute.xlu1 %5188  ;;  %12632 = vst [vmem:[#allocation259_spill] sm:$0xff] %v7895_v20  ;;  %v7910_v34 = vrot.slane %v7895_v20, 1 }
 0x167   : > { %12628 = vst [vmem:[#allocation255_spill] sm:$0xff] %v7880_v24  ;;  %v1682_v24 = vrot.slane %v7838_v57, 1 }
 0x168   : > { %v7882_v36 = vpop.permute.xlu0 %5183  ;;  %5478 = vrot.lane.b32.xlu1 %v12507_v30, %s6479_s4  ;;  %v4681_v30 = vunpack.i.h.bf16 %v7329_v33  ;;  %12635 = vst [vmem:[#allocation262_spill] sm:$0xff] %v7910_v34 }
 0x169   : > { %12629 = vst [vmem:[#allocation256_spill] sm:$0xff] %v7882_v36 }
 0x16a   : > { %5473 = vrot.lane.b32.xlu0 %v12501_v39, %s6479_s4  ;;  %v7888_v61 = vpop.permute.xlu1 %5198  ;;  %v4680_v39 = vunpack.i.l.bf16 %v7329_v33  ;;  %v2196_v3 = vsel %vm2184_vm4, %v6589_v41, %v4681_v30  ;;  %v12643_v30 = vld [vmem:[#allocation70_spill] sm:$0xff]  ;;  %v12646_v41 = vld [vmem:[#allocation141_spill] sm:$0xff] }
 0x16b   : > { %12630 = vst [vmem:[#allocation257_spill] sm:$0xff] %v7888_v61  ;;  %v4686_v58 = vunpack.i.h.bf16 %v12646_v41 }
 0x16c   : > { %v7891_v0 = vpop.permute.xlu0 %5193  ;;  %5488 = vrot.lane.b32.xlu1 %v12512_v15, %s6479_s4  ;;  %v1683_v15 = vrot.slane %v7840_v55, 1  ;;  %v2195_v48 = vsel %vm2184_vm4, %v12638_v1, %v4680_v39  ;;  %v12645_v1 = vld [vmem:[#allocation24_spill] sm:$0xff] }
 0x16d   : > { %12631 = vst [vmem:[#allocation258_spill] sm:$0xff] %v7891_v0  ;;  %v12660_v0 = vld [vmem:[#allocation53_spill] sm:$0xff] }
 0x16e   : > { %5483 = vrot.lane.b32.xlu0 %v12505_v18, %s6479_s4  ;;  %v7899_v63 = vpop.permute.xlu1 %5208  ;;  %v4676_v18 = vunpack.i.h.bf16 %v7339_v28  ;;  %v7928_v28 = vsel %vm372_vm0, %v1682_v24, %v1683_v15 }
 0x16f   : > { %12633 = vst [vmem:[#allocation260_spill] sm:$0xff] %v7899_v63  ;;  %12639 = vst [vmem:[#allocation265_spill] sm:$0xff] %v7928_v28 }
 0x170   : > { %v7902_v36 = vpop.permute.xlu0 %5203  ;;  %5498 = vrot.lane.b32.xlu1 %v12518_v6, %s6479_s4  ;;  %v4691_v6 = vunpack.i.h.bf16 %v7345_v21 }
 0x171   : > { %12634 = vst [vmem:[#allocation261_spill] sm:$0xff] %v7902_v36 }
 0x172   : > { %5493 = vrot.lane.b32.xlu0 %v12510_v60, %s6479_s4  ;;  %v7916_v31 = vpop.permute.xlu1 %5218  ;;  %v7932_v60 = vsel %vm372_vm0, %v1683_v15, %v7910_v34  ;;  %v2200_v24 = vsel %vm2184_vm4, %v12645_v1, %v4691_v6  ;;  %v4685_v15 = vunpack.i.l.bf16 %v12646_v41  ;;  %v12647_v34 = vld [vmem:[#allocation151_spill] sm:$0xff] }
 0x173   : > { %12636 = vst [vmem:[#allocation263_spill] sm:$0xff] %v7916_v31  ;;  %12640 = vst [vmem:[#allocation266_spill] sm:$0xff] %v7932_v60  ;;  %v12641_v31 = vld [vmem:[#allocation18_spill] sm:$0xff]  ;;  %v4721_v45 = vunpack.i.h.bf16 %v12647_v34  ;;  %v7957_v6 = vpack.i.bf16 %v7932_v60, %v7928_v28  ;;  %v12658_v28 = vld [vmem:[#allocation27_spill] sm:$0xff] }
 0x174   : > { %v7919_v33 = vpop.permute.xlu0 %5213  ;;  %5508 = vrot.lane.b32.xlu1 %v12523_v38, %s6479_s4  ;;  %v2193_v38 = vsel %vm2184_vm4, %v12642_v5, %v4675_v47  ;;  %v2198_v36 = vsel %vm2184_vm4, %v12658_v28, %v4686_v58  ;;  %v12666_v58 = vld [vmem:[#allocation62_spill] sm:$0xff]  ;;  %v12668_v28 = vld [vmem:[#allocation67_spill] sm:$0xff] }
 0x175   : > { %12637 = vst [vmem:[#allocation264_spill] sm:$0xff] %v7919_v33  ;;  %v2194_v33 = vsel %vm2184_vm4, %v12641_v31, %v4676_v18  ;;  %v4720_v18 = vunpack.i.l.bf16 %v12647_v34  ;;  %v12648_v31 = vld [vmem:[#allocation153_spill] sm:$0xff]  ;;  %12651 = vst [vmem:[#allocation151_spill] sm:$0xff] %v7957_v6  ;;  %v4725_v34 = vunpack.i.l.bf16 %v12653_v59  ;;  %v2212_v59 = vsel %vm2184_vm4, %v12660_v0, %v4721_v45  ;;  %v12669_v0 = vld [vmem:[#allocation66_spill] sm:$0xff] }
 0x176   : > { %5503 = vrot.lane.b32.xlu0 %v12643_v30, %s6479_s4  ;;  %v7941_v39 = vpop.permute.xlu1 %5228  ;;  %v4716_v47 = vunpack.i.h.bf16 %v12648_v31  ;;  %v4715_v21 = vunpack.i.l.bf16 %v12648_v31  ;;  %v12650_v30 = vld [vmem:[#allocation72_spill] sm:$0xff]  ;;  %v2199_v31 = vsel %vm2184_vm4, %v12654_v9, %v4690_v23  ;;  %v4755_v23 = vunpack.i.l.bf16 %v12661_v62  ;;  %v12662_v9 = vld [vmem:[#allocation50_spill] sm:$0xff]  ;;  %v12667_v45 = vld [vmem:[#allocation61_spill] sm:$0xff] }
 0x177   : > { %12644 = vst [vmem:[#allocation70_spill] sm:$0xff] %v7941_v39  ;;  %v12652_v39 = vld [vmem:[#allocation155_spill] sm:$0xff]  ;;  %v2211_v16 = vsel %vm2184_vm4, %v12662_v9, %v4720_v18  ;;  %v2214_v18 = vsel %vm2184_vm4, %v12668_v28, %v4726_v11  ;;  %v12673_v28 = vld [vmem:[#allocation173_spill] sm:$0xff] }
 0x178   : > { %v7951_v5 = vpop.permute.xlu0 %5223  ;;  %5518 = vrot.lane.b32.xlu1 %v12650_v30, %s6479_s4  ;;  %v4731_v1 = vunpack.i.h.bf16 %v12652_v39  ;;  %v4730_v41 = vunpack.i.l.bf16 %v12652_v39  ;;  %v12656_v30 = vld [vmem:[#allocation73_spill] sm:$0xff]  ;;  %v12659_v39 = vld [vmem:[#allocation26_spill] sm:$0xff] }
 0x179   : > { %12649 = vst [vmem:[#allocation141_spill] sm:$0xff] %v7951_v5  ;;  %v4761_v5 = vunpack.i.h.bf16 %v12655_v7  ;;  %v2197_v63 = vsel %vm2184_vm4, %v12659_v39, %v4685_v15  ;;  %v12663_v7 = vld [vmem:[#allocation58_spill] sm:$0xff] }
 0x17a   : > { %5513 = vrot.lane.b32.xlu0 %v12656_v30, %s6479_s4  ;;  %v7969_v60 = vpop.permute.xlu1 %5238  ;;  %v2210_v50 = vsel %vm2184_vm4, %v12663_v7, %v4716_v47  ;;  %v12664_v30 = vld [vmem:[#allocation56_spill] sm:$0xff]  ;;  %v2216_v15 = vsel %vm2184_vm4, %v12666_v58, %v4731_v1  ;;  %v2215_v39 = vsel %vm2184_vm4, %v12667_v45, %v4730_v41  ;;  %v2213_v47 = vsel %vm2184_vm4, %v12669_v0, %v4725_v34  ;;  %v12677_v0 = vld [vmem:[#allocation23_spill] sm:$0xff] }
 0x17b   : > { %12657 = vst [vmem:[#allocation153_spill] sm:$0xff] %v7969_v60  ;;  %v2209_v61 = vsel %vm2184_vm4, %v12664_v30, %v4715_v21  ;;  %v2229_v9 = vsel %vm2217_vm5, %v2196_v3, %v4761_v5  ;;  %v2228_v21 = vsel %vm2217_vm5, %v2195_v48, %v4760_v17  ;;  %v4756_v7 = vunpack.i.h.bf16 %v12661_v62  ;;  %v12670_v30 = vld [vmem:[#allocation179_spill] sm:$0xff]  ;;  %v12672_v58 = vld [vmem:[#allocation172_spill] sm:$0xff] }
 0x17c   : > { %v7984_v10 = vpop.permute.xlu0 %5233  ;;  %5528 = vrot.lane.b32.xlu1 %v7957_v6, %s6479_s4  ;;  %v2226_v41 = vsel %vm2217_vm5, %v2193_v38, %v4755_v23  ;;  %v4771_v45 = vunpack.i.h.bf16 %v12672_v58  ;;  %v4770_v11 = vunpack.i.l.bf16 %v12672_v58  ;;  %v4765_v34 = vunpack.i.l.bf16 %v12673_v28  ;;  %v12674_v5 = vld [vmem:[#allocation39_spill] sm:$0xff] }
 0x17d   : > { %12665 = vst [vmem:[#allocation72_spill] sm:$0xff] %v7984_v10  ;;  %v4766_v3 = vunpack.i.h.bf16 %v12673_v28  ;;  %v4801_v17 = vunpack.i.h.bf16 %v12674_v5  ;;  %v4800_v62 = vunpack.i.l.bf16 %v12674_v5  ;;  %v4796_v38 = vunpack.i.h.bf16 %v12677_v0  ;;  %v12678_v6 = vld [vmem:[#allocation35_spill] sm:$0xff]  ;;  %v12679_v10 = vld [vmem:[#allocation174_spill] sm:$0xff] }
 0x17e   : > { %5523 = vrot.lane.b32.xlu0 %v12670_v30, %s6479_s4  ;;  %v8001_v1 = vpop.permute.xlu1 %5248  ;;  %v12676_v30 = vld [vmem:[#allocation76_spill] sm:$0xff]  ;;  %v4795_v23 = vunpack.i.l.bf16 %v12677_v0  ;;  %v4811_v58 = vunpack.i.h.bf16 %v12678_v6  ;;  %v2227_v28 = vsel %vm2217_vm5, %v2194_v33, %v4756_v7  ;;  %v4806_v60 = vunpack.i.h.bf16 %v12679_v10 }
 0x17f   : > { %12671 = vst [vmem:[#allocation155_spill] sm:$0xff] %v8001_v1  ;;  %v4810_v1 = vunpack.i.l.bf16 %v12678_v6  ;;  %v4805_v5 = vunpack.i.l.bf16 %v12679_v10  ;;  %v2232_v25 = vsel %vm2217_vm5, %v2199_v31, %v4770_v11  ;;  %v2230_v0 = vsel %vm2217_vm5, %v2197_v63, %v4765_v34 }
 0x180   : > { %v8010_v48 = vpop.permute.xlu0 %5243  ;;  %5538 = vrot.lane.b32.xlu1 %v12676_v30, %s6480_s5  ;;  %v2233_v30 = vsel %vm2217_vm5, %v2200_v24, %v4771_v45  ;;  %v2231_v6 = vsel %vm2217_vm5, %v2198_v36, %v4766_v3  ;;  %v2245_v33 = vsel %vm2217_vm5, %v2212_v59, %v4801_v17  ;;  %v2244_v7 = vsel %vm2217_vm5, %v2211_v16, %v4800_v62  ;;  %v12685_v16 = vld [vmem:[#allocation82_spill] sm:$0xff]  ;;  %v12689_v3 = vld [vmem:[#allocation181_spill] sm:$0xff]  ;;  %v12692_v17 = vld [vmem:[#allocation83_spill] sm:$0xff] }
 0x181   : > { %12675 = vst [vmem:[#allocation157_spill] sm:$0xff] %v8010_v48  ;;  %v12680_v48 = vld [vmem:[#allocation77_spill] sm:$0xff]  ;;  %v2243_v24 = vsel %vm2217_vm5, %v2210_v50, %v4796_v38  ;;  %v2249_v31 = vsel %vm2217_vm5, %v2216_v15, %v4811_v58  ;;  %v2248_v63 = vsel %vm2217_vm5, %v2215_v39, %v4810_v1  ;;  %v2246_v45 = vsel %vm2217_vm5, %v2213_v47, %v4805_v5  ;;  %v12690_v1 = vld [vmem:[#allocation182_spill] sm:$0xff]  ;;  %v12694_v38 = vld [vmem:[#allocation187_spill] sm:$0xff] }
 0x182   : > { %5533 = vrot.lane.b32.xlu0 %v12680_v48, %s6480_s5  ;;  %v8023_v51 = vpop.permute.xlu1 %5258  ;;  %v12684_v48 = vld [vmem:[#allocation78_spill] sm:$0xff]  ;;  %v2247_v36 = vsel %vm2217_vm5, %v2214_v18, %v4806_v60  ;;  %v4841_v59 = vunpack.i.h.bf16 %v12682_v4  ;;  %v8048_v34 = vsel %vm12220_vm6, %v2228_v21, %v4840_v52  ;;  %v4850_v39 = vunpack.i.l.bf16 %v12689_v3 }
 0x183   : > { %12681 = vst [vmem:[#allocation169_spill] sm:$0xff] %v8023_v51  ;;  %v2242_v51 = vsel %vm2217_vm5, %v2209_v61, %v4795_v23  ;;  %12687 = vst [vmem:[#allocation179_spill] sm:$0xff] %v8048_v34  ;;  %v12688_v61 = vld [vmem:[#allocation180_spill] sm:$0xff]  ;;  %v4851_v47 = vunpack.i.h.bf16 %v12689_v3  ;;  %v4846_v60 = vunpack.i.h.bf16 %v12690_v1  ;;  %v4845_v4 = vunpack.i.l.bf16 %v12690_v1  ;;  %v12693_v62 = vld [vmem:[#allocation186_spill] sm:$0xff] }
 0x184   : > { %v8032_v10 = vpop.permute.xlu0 %5253  ;;  %5548 = vrot.lane.b32.xlu1 %v12684_v48, %s6480_s5  ;;  %v4836_v50 = vunpack.i.h.bf16 %v12688_v61  ;;  %v4835_v15 = vunpack.i.l.bf16 %v12688_v61  ;;  %v4881_v52 = vunpack.i.h.bf16 %v12693_v62  ;;  %v4880_v21 = vunpack.i.l.bf16 %v12693_v62  ;;  %v12696_v48 = vld [vmem:[#allocation188_spill] sm:$0xff]  ;;  %v12697_v3 = vld [vmem:[#allocation87_spill] sm:$0xff] }
 0x185   : > { %12683 = vst [vmem:[#allocation73_spill] sm:$0xff] %v8032_v10  ;;  %v4876_v23 = vunpack.i.h.bf16 %v12694_v38  ;;  %v4875_v58 = vunpack.i.l.bf16 %v12694_v38  ;;  %v8065_v5 = vsel %vm12220_vm6, %v2229_v9, %v4841_v59  ;;  %v4890_v61 = vunpack.i.l.bf16 %v12696_v48  ;;  %v12702_v9 = vld [vmem:[#allocation189_spill] sm:$0xff]  ;;  %v12923_v10 = vld [vmem:[#allocation64_spill] sm:$0xff] }
 0x186   : > { %5543 = vrot.lane.b32.xlu0 %v12685_v16, %s6480_s5  ;;  %v8045_v11 = vpop.permute.xlu1 %5268  ;;  %12695 = vst [vmem:[#allocation173_spill] sm:$0xff] %v8065_v5  ;;  %v4891_v16 = vunpack.i.h.bf16 %v12696_v48  ;;  %v8077_v62 = vsel %vm12220_vm6, %v2227_v28, %v4836_v50  ;;  %v8080_v38 = vsel %vm12220_vm6, %v2232_v25, %v4850_v39  ;;  %v4885_v59 = vunpack.i.l.bf16 %v12702_v9 }
 0x187   : > { %12686 = vst [vmem:[#allocation171_spill] sm:$0xff] %v8045_v11  ;;  %12700 = vst [vmem:[#allocation23_spill] sm:$0xff] %v8077_v62  ;;  %v8087_v48 = vsel %vm12220_vm6, %v2230_v0, %v4845_v4  ;;  %v8097_v28 = vsel %vm12220_vm6, %v2244_v7, %v4880_v21  ;;  %v8100_v25 = vsel %vm12220_vm6, %v2245_v33, %v4881_v52  ;;  %v12714_v7 = vld [vmem:[#allocation91_spill] sm:$0xff]  ;;  %v12719_v21 = vld [vmem:[#allocation92_spill] sm:$0xff] }
 0x188   : > { %v8056_v18 = vpop.permute.xlu0 %5263  ;;  %5558 = vrot.lane.b32.xlu1 %v12692_v17, %s6480_s5  ;;  %v8074_v17 = vsel %vm12220_vm6, %v2226_v41, %v4835_v15  ;;  %12701 = vst [vmem:[#allocation35_spill] sm:$0xff] %v8080_v38  ;;  %12704 = vst [vmem:[#allocation77_spill] sm:$0xff] %v8087_v48  ;;  %v12707_v41 = vld [vmem:[#allocation88_spill] sm:$0xff]  ;;  %v8106_v0 = vsel %vm12220_vm6, %v2243_v24, %v4876_v23  ;;  %v8112_v50 = vsel %vm12220_vm6, %v2249_v31, %v4891_v16  ;;  %v12717_v31 = vld [vmem:[#allocation198_spill] sm:$0xff] }
 0x189   : > { %12691 = vst [vmem:[#allocation172_spill] sm:$0xff] %v8056_v18  ;;  %12699 = vst [vmem:[#allocation76_spill] sm:$0xff] %v8074_v17  ;;  %v8084_v18 = vsel %vm12220_vm6, %v2233_v30, %v4851_v47  ;;  %v8103_v30 = vsel %vm12220_vm6, %v2242_v51, %v4875_v58  ;;  %v4886_v15 = vunpack.i.h.bf16 %v12702_v9  ;;  %v8120_v33 = vsel %vm12220_vm6, %v2246_v45, %v4885_v59  ;;  %v12720_v23 = vld [vmem:[#allocation199_spill] sm:$0xff] }
 0x18a   : > { %5553 = vrot.lane.b32.xlu0 %v12697_v3, %s6480_s5  ;;  %v8071_v1 = vpop.permute.xlu1 %5278  ;;  %12703 = vst [vmem:[#allocation174_spill] sm:$0xff] %v8084_v18  ;;  %v8090_v3 = vsel %vm12220_vm6, %v2231_v6, %v4846_v60  ;;  %12708 = vst [vmem:[#allocation82_spill] sm:$0xff] %v8097_v28  ;;  %v8109_v6 = vsel %vm12220_vm6, %v2248_v63, %v4890_v61  ;;  %v4921_v51 = vunpack.i.h.bf16 %v7632_v56  ;;  %v4920_v24 = vunpack.i.l.bf16 %v7632_v56  ;;  %v12722_v59 = vld [vmem:[#allocation95_spill] sm:$0xff] }
 0x18b   : > { %12698 = vst [vmem:[#allocation39_spill] sm:$0xff] %v8071_v1  ;;  %12705 = vst [vmem:[#allocation63_spill] sm:$0xff] %v8090_v3  ;;  %v4915_v63 = vunpack.i.l.bf16 %v7634_v43  ;;  %v4916_v47 = vunpack.i.h.bf16 %v7634_v43  ;;  %v4931_v60 = vunpack.i.h.bf16 %v12717_v31  ;;  %v4930_v4 = vunpack.i.l.bf16 %v12717_v31 }
 0x18c   : > { %v8092_v11 = vpop.permute.xlu0 %5273  ;;  %5568 = vrot.lane.b32.xlu1 %v12707_v41, %s6480_s5  ;;  %12709 = vst [vmem:[#allocation180_spill] sm:$0xff] %v8100_v25  ;;  %12710 = vst [vmem:[#allocation181_spill] sm:$0xff] %v8103_v30  ;;  %v4925_v45 = vunpack.i.l.bf16 %v12720_v23  ;;  %v1783_v58 = vrot.slane %v7838_v57, 2  ;;  %v1784_v16 = vrot.slane %v7840_v55, 2  ;;  %v8136_v56 = vrot.slane %v7895_v20, 2 }
 0x18d   : > { %12706 = vst [vmem:[#allocation78_spill] sm:$0xff] %v8092_v11  ;;  %12711 = vst [vmem:[#allocation182_spill] sm:$0xff] %v8106_v0  ;;  %v4926_v43 = vunpack.i.h.bf16 %v12720_v23  ;;  %v4961_v61 = vunpack.i.h.bf16 %v7664_v46  ;;  %v4960_v9 = vunpack.i.l.bf16 %v7664_v46  ;;  %v2294_v31 = vsel %vm2283_vm7, %v8048_v34, %v4920_v24  ;;  %v12726_v24 = vld [vmem:[#allocation97_spill] sm:$0xff] }
 0x18e   : > { %12712 = vst [vmem:[#allocation83_spill] sm:$0xff] %v8109_v6  ;;  %12713 = vst [vmem:[#allocation186_spill] sm:$0xff] %v8112_v50  ;;  %5563 = vrot.lane.b32.xlu0 %v12714_v7, %s6480_s5  ;;  %v8117_v39 = vpop.permute.xlu1 %5288  ;;  %v8146_v7 = vsel %vm12220_vm6, %v2247_v36, %v4886_v15  ;;  %v2292_v23 = vsel %vm2283_vm7, %v8074_v17, %v4915_v63  ;;  %v2293_v46 = vsel %vm2283_vm7, %v8077_v62, %v4916_v47 }
 0x18f   : > { %12715 = vst [vmem:[#allocation187_spill] sm:$0xff] %v8117_v39  ;;  %12716 = vst [vmem:[#allocation188_spill] sm:$0xff] %v8120_v33  ;;  %v2299_v36 = vsel %vm2283_vm7, %v8084_v18, %v4931_v60  ;;  %v4955_v63 = vunpack.i.l.bf16 %v7666_v13  ;;  %v8168_v34 = vsel %vm549_vm1, %v1783_v58, %v1784_v16  ;;  %v8172_v47 = vsel %vm549_vm1, %v1784_v16, %v8136_v56 }
 0x190   : > { %v8128_v52 = vpop.permute.xlu0 %5283  ;;  %5578 = vrot.lane.b32.xlu1 %v12719_v21, %s6480_s5  ;;  %12721 = vst [vmem:[#allocation189_spill] sm:$0xff] %v8136_v56  ;;  %12724 = vst [vmem:[#allocation91_spill] sm:$0xff] %v8146_v7  ;;  %v2295_v21 = vsel %vm2283_vm7, %v8065_v5, %v4921_v51  ;;  %v2296_v51 = vsel %vm2283_vm7, %v8087_v48, %v4925_v45  ;;  %v2297_v60 = vsel %vm2283_vm7, %v8090_v3, %v4926_v43  ;;  %v12729_v45 = vld [vmem:[#allocation99_spill] sm:$0xff]  ;;  %v12732_v5 = vld [vmem:[#allocation204_spill] sm:$0xff] }
 0x191   : > { %12718 = vst [vmem:[#allocation87_spill] sm:$0xff] %v8128_v52  ;;  %12727 = vst [vmem:[#allocation92_spill] sm:$0xff] %v8168_v34  ;;  %v4956_v58 = vunpack.i.h.bf16 %v7666_v13  ;;  %v4965_v17 = vunpack.i.l.bf16 %v12732_v5  ;;  %v4966_v43 = vunpack.i.h.bf16 %v12732_v5  ;;  %v8197_v13 = vpack.i.bf16 %v8172_v47, %v8168_v34 }
 0x192   : > { %5573 = vrot.lane.b32.xlu0 %v12722_v59, %s6480_s5  ;;  %v8143_v41 = vpop.permute.xlu1 %5298  ;;  %v2298_v59 = vsel %vm2283_vm7, %v8080_v38, %v4930_v4  ;;  %12728 = vst [vmem:[#allocation199_spill] sm:$0xff] %v8172_v47  ;;  %v2310_v4 = vsel %vm2283_vm7, %v8097_v28, %v4960_v9  ;;  %v12731_v38 = vld [vmem:[#allocation203_spill] sm:$0xff]  ;;  %v12736_v62 = vunpack.i.l.bf16 %v7712_v53  ;;  %v12737_v5 = vunpack.i.h.bf16 %v7712_v53 }
 0x193   : > { %12723 = vst [vmem:[#allocation88_spill] sm:$0xff] %v8143_v41  ;;  %v4971_v48 = vunpack.i.h.bf16 %v12731_v38  ;;  %v4970_v16 = vunpack.i.l.bf16 %v12731_v38  ;;  %v2308_v38 = vsel %vm2283_vm7, %v8103_v30, %v4955_v63  ;;  %v2309_v63 = vsel %vm2283_vm7, %v8106_v0, %v4956_v58 }
 0x194   : > { %v8160_v15 = vpop.permute.xlu0 %5293  ;;  %5588 = vrot.lane.b32.xlu1 %v12726_v24, %s6480_s5  ;;  %v2311_v24 = vsel %vm2283_vm7, %v8100_v25, %v4961_v61  ;;  %v2312_v3 = vsel %vm2283_vm7, %v8120_v33, %v4965_v17  ;;  %v2313_v28 = vsel %vm2283_vm7, %v8146_v7, %v4966_v43  ;;  %v2328_v58 = vsel %vm2316_vm8, %v2295_v21, %v12737_v5 }
 0x195   : > { %12725 = vst [vmem:[#allocation198_spill] sm:$0xff] %v8160_v15  ;;  %v2314_v25 = vsel %vm2283_vm7, %v8109_v6, %v4970_v16  ;;  %v2315_v9 = vsel %vm2283_vm7, %v8112_v50, %v4971_v48  ;;  %v12738_v48 = vunpack.i.l.bf16 %v7714_v35  ;;  %v12739_v16 = vunpack.i.h.bf16 %v7714_v35  ;;  %v12917_v15 = vld [vmem:[#allocation71_spill] sm:$0xff] }
 0x196   : > { %5583 = vrot.lane.b32.xlu0 %v12729_v45, %s6480_s5  ;;  %v8182_v18 = vpop.permute.xlu1 %5308  ;;  %v12734_v45 = vld [vmem:[#allocation100_spill] sm:$0xff]  ;;  %v12740_v6 = vunpack.i.l.bf16 %v7720_v40  ;;  %v12742_v5 = vunpack.i.l.bf16 %v7722_v12  ;;  %v12743_v33 = vunpack.i.h.bf16 %v7722_v12  ;;  %v12750_v7 = vunpack.i.h.bf16 %v7746_v27 }
 0x197   : > { %12730 = vst [vmem:[#allocation95_spill] sm:$0xff] %v8182_v18  ;;  %v2325_v17 = vsel %vm2316_vm8, %v2292_v23, %v12738_v48  ;;  %v2326_v43 = vsel %vm2316_vm8, %v2293_v46, %v12739_v16  ;;  %v12744_v48 = vld [vmem:[#allocation197_spill] sm:$0xff]  ;;  %v12751_v53 = vunpack.i.l.bf16 %v7752_v14  ;;  %v12752_v35 = vunpack.i.h.bf16 %v7752_v14 }
 0x198   : > { %v8191_v61 = vpop.permute.xlu0 %5303  ;;  %5598 = vrot.lane.b32.xlu1 %v12734_v45, %s6480_s5  ;;  %v12735_v45 = vld [vmem:[#allocation101_spill] sm:$0xff]  ;;  %v2329_v50 = vsel %vm2316_vm8, %v2296_v51, %v12742_v5  ;;  %v2330_v23 = vsel %vm2316_vm8, %v2297_v60, %v12743_v33  ;;  %v12745_v33 = vld [vmem:[#allocation104_spill] sm:$0xff]  ;;  %v1885_v51 = vrot.slane %v7840_v55, 3  ;;  %v2342_v12 = vsel %vm2316_vm8, %v2309_v63, %v12750_v7 }
 0x199   : > { %12733 = vst [vmem:[#allocation97_spill] sm:$0xff] %v8191_v61  ;;  %v12746_v16 = vld [vmem:[#allocation105_spill] sm:$0xff] }
 0x19a   : > { %5593 = vrot.lane.b32.xlu0 %v12735_v45, %s6480_s5  ;;  %v8209_v34 = vpop.permute.xlu1 %5318  ;;  %v2327_v45 = vsel %vm2316_vm8, %v2294_v31, %v12736_v62  ;;  %v2331_v62 = vsel %vm2316_vm8, %v2298_v59, %v12740_v6  ;;  %v12741_v31 = vunpack.i.h.bf16 %v7720_v40  ;;  %v12110_v6 = vunpack.i.l.bf16 %v7744_v37 }
 0x19b   : > { %v5321_v47 = vunpack.i.h.bf16 %v8209_v34 }
 0x19c   : > { %v8227_v0 = vpop.permute.xlu0 %5313  ;;  %5608 = vrot.lane.b32.xlu1 %v8197_v13, %s6480_s5  ;;  %v2332_v21 = vsel %vm2316_vm8, %v2299_v36, %v12741_v31  ;;  %v1884_v31 = vrot.slane %v7838_v57, 3  ;;  %v2343_v40 = vsel %vm2316_vm8, %v2310_v4, %v12110_v6  ;;  %v2347_v36 = vsel %vm2316_vm8, %v2314_v25, %v12751_v53 }
 0x19d   : > { %v2348_v4 = vsel %vm2316_vm8, %v2315_v9, %v12752_v35  ;;  %v12117_v53 = vunpack.i.l.bf16 %v7783_v32  ;;  %v12757_v9 = vld [vmem:[#allocation108_spill] sm:$0xff]  ;;  %v12765_v25 = vunpack.i.l.bf16 %v7785_v8 }
 0x19e   : > { %5603 = vrot.lane.b32.xlu0 %v12744_v48, %s6480_s5  ;;  %v8251_v46 = vpop.permute.xlu1 %5328  ;;  %v12749_v48 = vunpack.i.l.bf16 %v7746_v27  ;;  %v8309_v14 = vsel %vm726_vm2, %v1884_v31, %v1885_v51  ;;  %v12794_v27 = vld [vmem:[#allocation155_spill] sm:$0xff] }
 0x19f   : > { %12759 = vst [vmem:[#allocation100_spill] sm:$0xff] %v8309_v14  ;;  %v2360_v31 = vsel %vm2349_vm9, %v2327_v45, %v12117_v53  ;;  %v2358_v35 = vsel %vm2349_vm9, %v2325_v17, %v12765_v25  ;;  %v12768_v45 = vunpack.i.l.bf16 %v7791_v2 }
 0x1a0   : > { %v8259_v5 = vpop.permute.xlu0 %5323  ;;  %5618 = vrot.lane.b32.xlu1 %v12745_v33, %s6481_s6  ;;  %v12748_v33 = vunpack.i.h.bf16 %v7744_v37 }
 0x1a2   : > { %5613 = vrot.lane.b32.xlu0 %v12746_v16, %s6481_s6  ;;  %v8267_v59 = vpop.permute.xlu1 %5338  ;;  %v2344_v60 = vsel %vm2316_vm8, %v2311_v24, %v12748_v33  ;;  %v2341_v16 = vsel %vm2316_vm8, %v2308_v38, %v12749_v48  ;;  %v12754_v24 = vld [vmem:[#allocation107_spill] sm:$0xff]  ;;  %v12755_v33 = vunpack.i.l.bf16 %v7754_v49  ;;  %v12756_v48 = vunpack.i.h.bf16 %v7754_v49 }
 0x1a3   : > { %12747 = vst [vmem:[#allocation99_spill] sm:$0xff] %v8267_v59  ;;  %v12909_v59 = vld [vmem:[#allocation149_spill] sm:$0xff] }
 0x1a4   : > { %v8290_v6 = vpop.permute.xlu0 %5333  ;;  %5628 = vrot.lane.b32.xlu1 %v12754_v24, %s6481_s6  ;;  %v2345_v38 = vsel %vm2316_vm8, %v2312_v3, %v12755_v33  ;;  %v2346_v7 = vsel %vm2316_vm8, %v2313_v28, %v12756_v48  ;;  %v12760_v3 = vrot.slane %v7895_v20, 3  ;;  %v12766_v48 = vunpack.i.h.bf16 %v7785_v8  ;;  %v12791_v8 = vld [vmem:[#allocation72_spill] sm:$0xff] }
 0x1a5   : > { %12753 = vst [vmem:[#allocation203_spill] sm:$0xff] %v8290_v6  ;;  %v12780_v33 = vunpack.i.h.bf16 %v7825_v19  ;;  %v12908_v6 = vld [vmem:[#allocation42_spill] sm:$0xff]  ;;  %v4706_v61 = vunpack.i.h.bf16 %v12909_v59 }
 0x1a6   : > { %5623 = vrot.lane.b32.xlu0 %v12757_v9, %s6481_s6  ;;  %v8306_v24 = vpop.permute.xlu1 %5348  ;;  %v8314_v28 = vsel %vm726_vm2, %v1885_v51, %v12760_v3  ;;  %v12763_v9 = vld [vmem:[#allocation110_spill] sm:$0xff]  ;;  %v12764_v51 = vunpack.i.h.bf16 %v7783_v32  ;;  %v2359_v49 = vsel %vm2349_vm9, %v2326_v43, %v12766_v48  ;;  %v12770_v43 = vunpack.i.l.bf16 %v7793_v44 }
 0x1a7   : > { %12758 = vst [vmem:[#allocation204_spill] sm:$0xff] %v8306_v24  ;;  %12761 = vst [vmem:[#allocation101_spill] sm:$0xff] %v8314_v28  ;;  %v12771_v48 = vunpack.i.h.bf16 %v7793_v44  ;;  %v12801_v44 = vld [vmem:[#allocation257_spill] sm:$0xff] }
 0x1a8   : > { %v8320_v63 = vpop.permute.xlu0 %5343  ;;  %5638 = vrot.lane.b32.xlu1 %v12763_v9, %s6481_s6  ;;  %v2361_v3 = vsel %vm2349_vm9, %v2328_v58, %v12764_v51  ;;  %v12767_v9 = vld [vmem:[#allocation112_spill] sm:$0xff]  ;;  %v2364_v58 = vsel %vm2349_vm9, %v2331_v62, %v12768_v45  ;;  %v12769_v51 = vunpack.i.h.bf16 %v7791_v2  ;;  %v2362_v25 = vsel %vm2349_vm9, %v2329_v50, %v12770_v43  ;;  %v12773_v43 = vld [vmem:[#allocation115_spill] sm:$0xff] }
 0x1a9   : > { %12762 = vst [vmem:[#allocation197_spill] sm:$0xff] %v8320_v63  ;;  %v12120_v62 = vunpack.i.l.bf16 %v7817_v54  ;;  %v12776_v50 = vunpack.i.h.bf16 %v7817_v54  ;;  %v12787_v2 = vunpack.i.h.bf16 %v7856_v29  ;;  %v12905_v63 = vld [vmem:[#allocation37_spill] sm:$0xff] }
 0x1aa   : > { %5633 = vrot.lane.b32.xlu0 %v12767_v9, %s6481_s6  ;;  %v8340_v37 = vpop.permute.xlu1 %5358  ;;  %v2365_v53 = vsel %vm2349_vm9, %v2332_v21, %v12769_v51  ;;  %v2363_v9 = vsel %vm2349_vm9, %v2330_v23, %v12771_v48  ;;  %v12772_v21 = vld [vmem:[#allocation113_spill] sm:$0xff]  ;;  %v12774_v48 = vunpack.i.l.bf16 %v7815_v26 }
 0x1ab   : > { %v8383_v17 = vsel %vm2349_vm9, %v2341_v16, %v12120_v62 }
 0x1ac   : > { %v8358_v45 = vpop.permute.xlu0 %5353  ;;  %5648 = vrot.lane.b32.xlu1 %v12772_v21, %s6481_s6  ;;  %v8373_v32 = vsel %vm2349_vm9, %v2343_v40, %v12774_v48  ;;  %v12775_v21 = vunpack.i.h.bf16 %v7815_v26  ;;  %v8414_v40 = vsel %vm2349_vm9, %v2346_v7, %v12780_v33  ;;  %v12786_v7 = vunpack.i.l.bf16 %v7856_v29  ;;  %v12795_v26 = vld [vmem:[#allocation120_spill] sm:$0xff] }
 0x1ae   : > { %5643 = vrot.lane.b32.xlu0 %v12773_v43, %s6481_s6  ;;  %v8368_v23 = vpop.permute.xlu1 %5368  ;;  %v8378_v51 = vsel %vm2349_vm9, %v2344_v60, %v12775_v21  ;;  %v8388_v43 = vsel %vm2349_vm9, %v2342_v12, %v12776_v50  ;;  %v12777_v60 = vunpack.i.l.bf16 %v7823_v42  ;;  %v12778_v21 = vunpack.i.h.bf16 %v7823_v42 }
 0x1af   : > { %v12779_v50 = vunpack.i.l.bf16 %v7825_v19  ;;  %v2393_v33 = vsel %vm2382_vm10, %v2360_v31, %v12786_v7 }
 0x1b0   : > { %v8392_v48 = vpop.permute.xlu0 %5363  ;;  %5658 = vrot.lane.b32.xlu1 %v7154_v22, %s6481_s6  ;;  %v8399_v16 = vsel %vm2349_vm9, %v2347_v36, %v12777_v60  ;;  %v8404_v12 = vsel %vm2349_vm9, %v2348_v4, %v12778_v21  ;;  %v12781_v22 = vld [vmem:[#allocation250_spill] sm:$0xff]  ;;  %v12782_v60 = vld [vmem:[#allocation117_spill] sm:$0xff]  ;;  %v12784_v4 = vld [vmem:[#allocation251_spill] sm:$0xff]  ;;  %v2394_v36 = vsel %vm2382_vm10, %v2361_v3, %v12787_v2 }
 0x1b1   : > { %v8409_v62 = vsel %vm2349_vm9, %v2345_v38, %v12779_v50  ;;  %v12785_v38 = vld [vmem:[#allocation252_spill] sm:$0xff]  ;;  %v12789_v21 = vld [vmem:[#allocation119_spill] sm:$0xff]  ;;  %v12790_v50 = vld [vmem:[#allocation153_spill] sm:$0xff]  ;;  %v12792_v7 = vunpack.i.l.bf16 %v12781_v22  ;;  %v12793_v3 = vunpack.i.h.bf16 %v12781_v22  ;;  %v12797_v54 = vunpack.i.l.bf16 %v12784_v4 }
 0x1b2   : > { %5653 = vrot.lane.b32.xlu0 %v12782_v60, %s6481_s6  ;;  %v8420_v42 = vpop.permute.xlu1 %5378  ;;  %v12798_v30 = vunpack.i.h.bf16 %v12784_v4  ;;  %v12807_v22 = vunpack.i.h.bf16 %v12791_v8  ;;  %v12808_v4 = vunpack.i.l.bf16 %v12794_v27 }
 0x1b3   : > { %12783 = vst [vmem:[#allocation104_spill] sm:$0xff] %v8420_v42  ;;  %v2391_v2 = vsel %vm2382_vm10, %v2358_v35, %v12792_v7  ;;  %v2392_v29 = vsel %vm2382_vm10, %v2359_v49, %v12793_v3  ;;  %v2397_v31 = vsel %vm2382_vm10, %v2364_v58, %v12797_v54  ;;  %v12799_v7 = vunpack.i.l.bf16 %v12785_v38 }
 0x1b4   : > { %v8432_v60 = vpop.permute.xlu0 %5373  ;;  %5668 = vrot.lane.b32.xlu1 %v12789_v21, %s6481_s6  ;;  %v2398_v35 = vsel %vm2382_vm10, %v2365_v53, %v12798_v30  ;;  %v12800_v3 = vunpack.i.h.bf16 %v12785_v38  ;;  %v5320_v54 = vunpack.i.l.bf16 %v8209_v34  ;;  %v12803_v30 = vld [vmem:[#allocation121_spill] sm:$0xff]  ;;  %v12804_v53 = vunpack.i.l.bf16 %v12790_v50 }
 0x1b5   : > { %12788 = vst [vmem:[#allocation105_spill] sm:$0xff] %v8432_v60  ;;  %v2395_v49 = vsel %vm2382_vm10, %v2362_v25, %v12799_v7  ;;  %v12805_v7 = vunpack.i.h.bf16 %v12790_v50  ;;  %v2425_v34 = vsel %vm2415_vm11, %v2392_v29, %v12807_v22  ;;  %v12809_v38 = vunpack.i.h.bf16 %v12794_v27  ;;  %v12813_v29 = vld [vmem:[#allocation212_spill] sm:$0xff] }
 0x1b6   : > { %5663 = vrot.lane.b32.xlu0 %v12795_v26, %s6481_s6  ;;  %v8451_v19 = vpop.permute.xlu1 %5388  ;;  %v2396_v21 = vsel %vm2382_vm10, %v2363_v9, %v12800_v3  ;;  %v2426_v25 = vsel %vm2415_vm11, %v2393_v33, %v12804_v53  ;;  %v12806_v3 = vunpack.i.l.bf16 %v12791_v8  ;;  %v5316_v53 = vunpack.i.h.bf16 %v8227_v0 }
 0x1b7   : > { %12796 = vst [vmem:[#allocation107_spill] sm:$0xff] %v8451_v19  ;;  %v2427_v9 = vsel %vm2415_vm11, %v2394_v36, %v12805_v7  ;;  %v2431_v33 = vsel %vm2415_vm11, %v2398_v35, %v12809_v38  ;;  %v5315_v36 = vunpack.i.l.bf16 %v8227_v0  ;;  %v12810_v7 = vld [vmem:[#allocation122_spill] sm:$0xff]  ;;  %v5331_v38 = vunpack.i.h.bf16 %v8251_v46 }
 0x1b8   : > { %v8469_v58 = vpop.permute.xlu0 %5383  ;;  %5678 = vrot.lane.b32.xlu1 %v12803_v30, %s6481_s6  ;;  %v2424_v26 = vsel %vm2415_vm11, %v2391_v2, %v12806_v3  ;;  %v2430_v30 = vsel %vm2415_vm11, %v2397_v31, %v12808_v4  ;;  %v12811_v3 = vld [vmem:[#allocation157_spill] sm:$0xff]  ;;  %v2459_v4 = vsel %vm2448_vm12, %v2426_v25, %v5320_v54  ;;  %v2460_v31 = vsel %vm2448_vm12, %v2427_v9, %v5321_v47 }
 0x1b9   : > { %12802 = vst [vmem:[#allocation108_spill] sm:$0xff] %v8469_v58  ;;  %v5330_v35 = vunpack.i.l.bf16 %v8251_v46  ;;  %v12812_v0 = vpack.i.bf16 %v8314_v28, %v8309_v14  ;;  %v2457_v47 = vsel %vm2448_vm12, %v2424_v26, %v5315_v36  ;;  %v2458_v25 = vsel %vm2448_vm12, %v2425_v34, %v5316_v53  ;;  %v12884_v14 = vld [vmem:[#allocation168_spill] sm:$0xff] }
 0x1ba   : > { %5673 = vrot.lane.b32.xlu0 %v12810_v7, %s6481_s6  ;;  %v5399_v2 = vpop.permute.xlu1 %5398  ;;  %v5326_v46 = vunpack.i.h.bf16 %v8259_v5  ;;  %v5325_v9 = vunpack.i.l.bf16 %v8259_v5  ;;  %v12814_v26 = vunpack.i.l.bf16 %v12811_v3  ;;  %v12815_v53 = vunpack.i.h.bf16 %v12811_v3  ;;  %v12899_v58 = vld [vmem:[#allocation248_spill] sm:$0xff] }
 0x1bb   : > { %v5401_v22 = vunpack.i.h.bf16 %v5399_v2  ;;  %v5400_v8 = vunpack.i.l.bf16 %v5399_v2  ;;  %v2463_v36 = vsel %vm2448_vm12, %v2430_v30, %v5330_v35 }
 0x1bc   : > { %v5394_v27 = vpop.permute.xlu0 %5393  ;;  %5688 = vrot.lane.b32.xlu1 %v12812_v0, %s6481_s6  ;;  %v2428_v34 = vsel %vm2415_vm11, %v2395_v49, %v12814_v26  ;;  %v2429_v5 = vsel %vm2415_vm11, %v2396_v21, %v12815_v53  ;;  %v12826_v53 = vld [vmem:[#allocation126_spill] sm:$0xff] }
 0x1bd   : > { %v8506_v7 = vsel %vm2481_vm13, %v2459_v4, %v5400_v8  ;;  %v8509_v50 = vsel %vm2481_vm13, %v2460_v31, %v5401_v22  ;;  %v5396_v2 = vunpack.i.h.bf16 %v5394_v27  ;;  %v5395_v54 = vunpack.i.l.bf16 %v5394_v27 }
 0x1be   : > { %5683 = vrot.lane.b32.xlu0 %v12813_v29, %s6481_s6  ;;  %v5409_v0 = vpop.permute.xlu1 %5408  ;;  %v2464_v29 = vsel %vm2448_vm12, %v2431_v33, %v5331_v38  ;;  %v2461_v30 = vsel %vm2448_vm12, %v2428_v34, %v5325_v9  ;;  %v2462_v33 = vsel %vm2448_vm12, %v2429_v5, %v5326_v46  ;;  %v12818_v38 = vld [vmem:[#allocation124_spill] sm:$0xff]  ;;  %v12823_v34 = vld [vmem:[#allocation125_spill] sm:$0xff]  ;;  %v12825_v9 = vunpack.i.h.bf16 %v12801_v44  ;;  %s4445_s6 = sshll.u32 %s13587_s30, 3 }
 0x1bf   : > { %v8518_v8 = vsel %vm2481_vm13, %v2457_v47, %v5395_v54  ;;  %v8521_v22 = vsel %vm2481_vm13, %v2458_v25, %v5396_v2  ;;  %v5411_v4 = vunpack.i.h.bf16 %v5409_v0  ;;  %v5410_v27 = vunpack.i.l.bf16 %v5409_v0  ;;  %v12816_v54 = vld [vmem:[#allocation123_spill] sm:$0xff]  ;;  %v12817_v0 = vld [vmem:[#allocation258_spill] sm:$0xff]  ;;  %s11581_s9 = scalar_lea.vmem %s11689_s3, %s4445_s6 }
 0x1c0   : > { %v5404_v31 = vpop.permute.xlu0 %5403  ;;  %5698 = vrot.lane.b32.xlu1 %v12816_v54, %s6482_s7  ;;  %v12148_v26 = vunpack.i.h.bf16 %v12817_v0  ;;  %v12147_v21 = vunpack.i.l.bf16 %v12817_v0  ;;  %v12153_v5 = vunpack.i.l.bf16 %v8117_v39 }
 0x1c1   : > { %v8534_v2 = vsel %vm2481_vm13, %v2463_v36, %v5410_v27  ;;  %v8537_v47 = vsel %vm2481_vm13, %v2464_v29, %v5411_v4  ;;  %v5406_v49 = vunpack.i.h.bf16 %v5404_v31  ;;  %v5405_v25 = vunpack.i.l.bf16 %v5404_v31  ;;  %v12820_v27 = vld [vmem:[#allocation260_spill] sm:$0xff]  ;;  %v12821_v31 = vld [vmem:[#allocation261_spill] sm:$0xff] }
 0x1c2   : > { %5693 = vrot.lane.b32.xlu0 %v12818_v38, %s6482_s7  ;;  %v8545_v35 = vpop.permute.xlu1 %5418  ;;  %v12149_v4 = vunpack.i.l.bf16 %v12820_v27  ;;  %v5360_v38 = vunpack.i.l.bf16 %v8340_v37 }
 0x1c3   : > { %12819 = vst [vmem:[#allocation110_spill] sm:$0xff] %v8545_v35  ;;  %v8550_v36 = vsel %vm2481_vm13, %v2461_v30, %v5405_v25  ;;  %v8553_v29 = vsel %vm2481_vm13, %v2462_v33, %v5406_v49  ;;  %v12151_v25 = vunpack.i.l.bf16 %v8071_v1  ;;  %v12824_v33 = vunpack.i.l.bf16 %v12801_v44  ;;  %v12878_v44 = vld [vmem:[#allocation135_spill] sm:$0xff] }
 0x1c4   : > { %v8557_v46 = vpop.permute.xlu0 %5413  ;;  %5708 = vrot.lane.b32.xlu1 %v12823_v34, %s6482_s7  ;;  %v2410_v34 = vsel %vm2382_vm10, %v8378_v51, %v12825_v9  ;;  %v2407_v30 = vsel %vm2382_vm10, %v8383_v17, %v12147_v21  ;;  %v2413_v51 = vsel %vm2382_vm10, %v8399_v16, %v12149_v4  ;;  %v12828_v9 = vunpack.i.h.bf16 %v12820_v27  ;;  %v12832_v4 = vld [vmem:[#allocation127_spill] sm:$0xff] }
 0x1c5   : > { %12822 = vst [vmem:[#allocation112_spill] sm:$0xff] %v8557_v46  ;;  %v2409_v54 = vsel %vm2382_vm10, %v8373_v32, %v12824_v33  ;;  %v2408_v32 = vsel %vm2382_vm10, %v8388_v43, %v12148_v26  ;;  %v12829_v33 = vunpack.i.l.bf16 %v12821_v31  ;;  %v12830_v21 = vunpack.i.h.bf16 %v12821_v31  ;;  %v12877_v31 = vld [vmem:[#allocation132_spill] sm:$0xff] }
 0x1c6   : > { %5703 = vrot.lane.b32.xlu0 %v12826_v53, %s6482_s7  ;;  %v8579_v49 = vpop.permute.xlu1 %5428  ;;  %v2414_v53 = vsel %vm2382_vm10, %v8404_v12, %v12828_v9  ;;  %v5361_v26 = vunpack.i.h.bf16 %v8340_v37  ;;  %v2442_v12 = vsel %vm2415_vm11, %v2409_v54, %v12151_v25  ;;  %v12836_v27 = vunpack.i.h.bf16 %v8117_v39 }
 0x1c7   : > { %12827 = vst [vmem:[#allocation113_spill] sm:$0xff] %v8579_v49  ;;  %v2411_v17 = vsel %vm2382_vm10, %v8409_v62, %v12829_v33  ;;  %v2412_v43 = vsel %vm2382_vm10, %v8414_v40, %v12830_v21  ;;  %v12833_v62 = vunpack.i.h.bf16 %v8071_v1  ;;  %v12834_v33 = vunpack.i.l.bf16 %v8092_v11  ;;  %v12897_v49 = vld [vmem:[#allocation32_spill] sm:$0xff] }
 0x1c8   : > { %v8607_v16 = vpop.permute.xlu0 %5423  ;;  %5718 = vrot.lane.b32.xlu1 %v12832_v4, %s6482_s7  ;;  %v12835_v21 = vunpack.i.h.bf16 %v8092_v11  ;;  %v2446_v4 = vsel %vm2415_vm11, %v2413_v51, %v12153_v5  ;;  %v2447_v54 = vsel %vm2415_vm11, %v2414_v53, %v12836_v27  ;;  %v5356_v25 = vunpack.i.h.bf16 %v8358_v45  ;;  %v12879_v11 = vld [vmem:[#allocation166_spill] sm:$0xff] }
 0x1c9   : > { %12831 = vst [vmem:[#allocation115_spill] sm:$0xff] %v8607_v16  ;;  %v2443_v9 = vsel %vm2415_vm11, %v2410_v34, %v12833_v62  ;;  %v2440_v40 = vsel %vm2415_vm11, %v2407_v30, %v12834_v33  ;;  %v5355_v34 = vunpack.i.l.bf16 %v8358_v45  ;;  %v12837_v62 = vld [vmem:[#allocation128_spill] sm:$0xff]  ;;  %v2475_v51 = vsel %vm2448_vm12, %v2442_v12, %v5360_v38  ;;  %v12838_v45 = vld [vmem:[#allocation129_spill] sm:$0xff] }
 0x1ca   : > { %v2441_v37 = vsel %vm2415_vm11, %v2408_v32, %v12835_v21  ;;  %5713 = vrot.lane.b32.xlu0 %v12837_v62, %s6482_s7  ;;  %v5439_v30 = vpop.permute.xlu1 %5438  ;;  %v2476_v5 = vsel %vm2448_vm12, %v2443_v9, %v5361_v26  ;;  %v5371_v27 = vunpack.i.h.bf16 %v8368_v23  ;;  %v5370_v53 = vunpack.i.l.bf16 %v8368_v23  ;;  %v12839_v9 = vld [vmem:[#allocation130_spill] sm:$0xff] }
 0x1cb   : > { %v5441_v21 = vunpack.i.h.bf16 %v5439_v30  ;;  %v5440_v3 = vunpack.i.l.bf16 %v5439_v30  ;;  %v2473_v38 = vsel %vm2448_vm12, %v2440_v40, %v5355_v34  ;;  %v2474_v26 = vsel %vm2448_vm12, %v2441_v37, %v5356_v25 }
 0x1cc   : > { %v5434_v39 = vpop.permute.xlu0 %5433  ;;  %5728 = vrot.lane.b32.xlu1 %v12838_v45, %s6482_s7  ;;  %v5366_v12 = vunpack.i.h.bf16 %v8392_v48  ;;  %v5365_v23 = vunpack.i.l.bf16 %v8392_v48  ;;  %v12840_v40 = vunpack.i.l.bf16 %v8128_v52  ;;  %v12841_v37 = vunpack.i.h.bf16 %v8128_v52 }
 0x1cd   : > { %v8642_v62 = vsel %vm2481_vm13, %v2475_v51, %v5440_v3  ;;  %v8645_v33 = vsel %vm2481_vm13, %v2476_v5, %v5441_v21  ;;  %v5436_v32 = vunpack.i.h.bf16 %v5434_v39  ;;  %v5435_v30 = vunpack.i.l.bf16 %v5434_v39 }
 0x1ce   : > { %5723 = vrot.lane.b32.xlu0 %v12839_v9, %s6482_s7  ;;  %v5449_v45 = vpop.permute.xlu1 %5448  ;;  %v2444_v25 = vsel %vm2415_vm11, %v2411_v17, %v12840_v40  ;;  %v2445_v48 = vsel %vm2415_vm11, %v2412_v43, %v12841_v37  ;;  %v2479_v34 = vsel %vm2448_vm12, %v2446_v4, %v5370_v53  ;;  %v2480_v51 = vsel %vm2448_vm12, %v2447_v54, %v5371_v27  ;;  %v12843_v4 = vld [vmem:[#allocation134_spill] sm:$0xff] }
 0x1cf   : > { %v8654_v3 = vsel %vm2481_vm13, %v2473_v38, %v5435_v30  ;;  %v8657_v5 = vsel %vm2481_vm13, %v2474_v26, %v5436_v32  ;;  %v5451_v21 = vunpack.i.h.bf16 %v5449_v45  ;;  %v5450_v39 = vunpack.i.l.bf16 %v5449_v45  ;;  %v12842_v30 = vld [vmem:[#allocation133_spill] sm:$0xff] }
 0x1d0   : > { %v5444_v9 = vpop.permute.xlu0 %5443  ;;  %5738 = vrot.lane.b32.xlu1 %v12842_v30, %s6482_s7  ;;  %v2477_v45 = vsel %vm2448_vm12, %v2444_v25, %v5365_v23  ;;  %v2478_v43 = vsel %vm2448_vm12, %v2445_v48, %v5366_v12  ;;  %v12847_v23 = vrot.slane %v7840_v55, 4  ;;  %v12848_v12 = vrot.slane %v7838_v57, 4  ;;  %v12854_v30 = vld [vmem:[#allocation139_spill] sm:$0xff] }
 0x1d1   : > { %v8670_v32 = vsel %vm2481_vm13, %v2479_v34, %v5450_v39  ;;  %v8673_v38 = vsel %vm2481_vm13, %v2480_v51, %v5451_v21  ;;  %v5446_v26 = vunpack.i.h.bf16 %v5444_v9  ;;  %v5445_v17 = vunpack.i.l.bf16 %v5444_v9  ;;  %v12846_v21 = vld [vmem:[#allocation136_spill] sm:$0xff]  ;;  %v12851_v34 = vld [vmem:[#allocation138_spill] sm:$0xff] }
 0x1d2   : > { %5733 = vrot.lane.b32.xlu0 %v12843_v4, %s6482_s7  ;;  %v8679_v54 = vpop.permute.xlu1 %5458  ;;  %v1987_v40 = vsel %vm903_vm3, %v12848_v12, %v12847_v23  ;;  %v12849_v25 = vrot.slane %v7895_v20, 4  ;;  %v12850_v37 = vmov %v12847_v23  ;;  %v12902_v20 = vld [vmem:[#allocation22_spill] sm:$0xff] }
 0x1d3   : > { %12844 = vst [vmem:[#allocation117_spill] sm:$0xff] %v8679_v54  ;;  %v8682_v27 = vsel %vm2481_vm13, %v2477_v45, %v5445_v17  ;;  %v8685_v53 = vsel %vm2481_vm13, %v2478_v43, %v5446_v26  ;;  %v12855_v17 = vld [vmem:[#allocation140_spill] sm:$0xff]  ;;  %v12895_v54 = vld [vmem:[#allocation33_spill] sm:$0xff] }
 0x1d4   : > { %v8687_v39 = vpop.permute.xlu0 %5453  ;;  %5748 = vrot.lane.b32.xlu1 %v12846_v21, %s6482_s7  ;;  %v1989_v48 = vsel %vm903_vm3, %v12850_v37, %v12849_v25  ;;  %v12856_v37 = vld [vmem:[#allocation229_spill] sm:$0xff]  ;;  %vm12240_vm3 = vcmask 531456  }
 0x1d5   : > { %12845 = vst [vmem:[#allocation119_spill] sm:$0xff] %v8687_v39  ;;  %v5767_v26 = vpack.i.bf16 %v1989_v48, %v1987_v40 }
 0x1d6   : > { %5743 = vrot.lane.b32.xlu0 %v12851_v34, %s6482_s7  ;;  %v8703_v51 = vpop.permute.xlu1 %5468 }
 0x1d7   : > { %12852 = vst [vmem:[#allocation120_spill] sm:$0xff] %v8703_v51  ;;  %v12893_v51 = vld [vmem:[#allocation145_spill] sm:$0xff] }
 0x1d8   : > { %v8705_v9 = vpop.permute.xlu0 %5463  ;;  %5758 = vrot.lane.b32.xlu1 %v12854_v30, %s6482_s7  ;;  %v4696_v39 = vunpack.i.h.bf16 %v12893_v51 }
 0x1d9   : > { %12853 = vst [vmem:[#allocation121_spill] sm:$0xff] %v8705_v9 }
 0x1da   : > { %5753 = vrot.lane.b32.xlu0 %v12855_v17, %s6482_s7  ;;  %v5479_v45 = vpop.permute.xlu1 %5478 }
 0x1db   : > { %v5481_v43 = vunpack.i.h.bf16 %v5479_v45  ;;  %v5480_v4 = vunpack.i.l.bf16 %v5479_v45 }
 0x1dc   : > { %v5474_v21 = vpop.permute.xlu0 %5473  ;;  %5768 = vrot.lane.b32.xlu1 %v5767_v26, %s6482_s7 }
 0x1dd   : > { %v8714_v23 = vsel %vm2514_vm14, %v8506_v7, %v5480_v4  ;;  %v8718_v12 = vsel %vm2514_vm14, %v8509_v50, %v5481_v43  ;;  %v5476_v25 = vunpack.i.h.bf16 %v5474_v21  ;;  %v5475_v40 = vunpack.i.l.bf16 %v5474_v21  ;;  %v12857_v50 = vld [vmem:[#allocation143_spill] sm:$0xff] }
 0x1de   : > { %5763 = vrot.lane.b32.xlu0 %v12856_v37, %s6482_s7  ;;  %v5489_v48 = vpop.permute.xlu1 %5488  ;;  %v12862_v37 = vld [vmem:[#allocation148_spill] sm:$0xff] }
 0x1df   : > { %v8724_v34 = vsel %vm2514_vm14, %v8518_v8, %v5475_v40  ;;  %v8728_v30 = vsel %vm2514_vm14, %v8521_v22, %v5476_v25  ;;  %v5491_v7 = vunpack.i.h.bf16 %v5489_v48  ;;  %v5490_v26 = vunpack.i.l.bf16 %v5489_v48  ;;  %v12858_v22 = vld [vmem:[#allocation144_spill] sm:$0xff] }
 0x1e0   : > { %v5484_v17 = vpop.permute.xlu0 %5483  ;;  %5778 = vrot.lane.b32.xlu1 %v12857_v50, %s6483_s8 }
 0x1e1   : > { %v8734_v45 = vsel %vm2514_vm14, %v8534_v2, %v5490_v26  ;;  %v8738_v43 = vsel %vm2514_vm14, %v8537_v47, %v5491_v7  ;;  %v5486_v8 = vunpack.i.h.bf16 %v5484_v17  ;;  %v5485_v4 = vunpack.i.l.bf16 %v5484_v17  ;;  %v12861_v47 = vld [vmem:[#allocation146_spill] sm:$0xff] }
 0x1e2   : > { %5773 = vrot.lane.b32.xlu0 %v12858_v22, %s6483_s8  ;;  %v8742_v21 = vpop.permute.xlu1 %5498  ;;  %v12865_v26 = vld [vmem:[#allocation150_spill] sm:$0xff] }
 0x1e3   : > { %12859 = vst [vmem:[#allocation122_spill] sm:$0xff] %v8742_v21  ;;  %v8746_v25 = vsel %vm2514_vm14, %v8550_v36, %v5485_v4  ;;  %v8750_v40 = vsel %vm2514_vm14, %v8553_v29, %v5486_v8  ;;  %v12866_v36 = vld [vmem:[#allocation152_spill] sm:$0xff]  ;;  %v12867_v4 = vld [vmem:[#allocation154_spill] sm:$0xff] }
 0x1e4   : > { %v8752_v2 = vpop.permute.xlu0 %5493  ;;  %5788 = vrot.lane.b32.xlu1 %v12861_v47, %s6483_s8  ;;  %v12891_v21 = vld [vmem:[#allocation170_spill] sm:$0xff] }
 0x1e5   : > { %12860 = vst [vmem:[#allocation212_spill] sm:$0xff] %v8752_v2 }
 0x1e6   : > { %5783 = vrot.lane.b32.xlu0 %v12862_v37, %s6483_s8  ;;  %v8758_v48 = vpop.permute.xlu1 %5508 }
 0x1e7   : > { %12863 = vst [vmem:[#allocation123_spill] sm:$0xff] %v8758_v48  ;;  %v12882_v48 = vld [vmem:[#allocation3_spill] sm:$0xff] }
 0x1e8   : > { %v8760_v7 = vpop.permute.xlu0 %5503  ;;  %5798 = vrot.lane.b32.xlu1 %v12865_v26, %s6483_s8 }
 0x1e9   : > { %12864 = vst [vmem:[#allocation124_spill] sm:$0xff] %v8760_v7 }
 0x1ea   : > { %5793 = vrot.lane.b32.xlu0 %v12866_v36, %s6483_s8  ;;  %v5519_v29 = vpop.permute.xlu1 %5518  ;;  %v12868_v36 = vld [vmem:[#allocation156_spill] sm:$0xff] }
 0x1eb   : > { %v5521_v17 = vunpack.i.h.bf16 %v5519_v29  ;;  %v5520_v50 = vunpack.i.l.bf16 %v5519_v29 }
 0x1ec   : > { %v5514_v8 = vpop.permute.xlu0 %5513  ;;  %5808 = vrot.lane.b32.xlu1 %v12867_v4, %s6483_s8 }
 0x1ed   : > { %v8770_v22 = vsel %vm2514_vm14, %v8642_v62, %v5520_v50  ;;  %v8774_v47 = vsel %vm2514_vm14, %v8645_v33, %v5521_v17  ;;  %v5516_v37 = vunpack.i.h.bf16 %v5514_v8  ;;  %v5515_v26 = vunpack.i.l.bf16 %v5514_v8  ;;  %v12869_v33 = vld [vmem:[#allocation158_spill] sm:$0xff] }
 0x1ee   : > { %5803 = vrot.lane.b32.xlu0 %v12868_v36, %s6483_s8  ;;  %v5529_v7 = vpop.permute.xlu1 %5528  ;;  %v4521_v36 = vld [vmem:[%s6531_s20 + $0xd8] sm:$0xff]  }
 0x1ef   : > { %v8780_v29 = vsel %vm2514_vm14, %v8654_v3, %v5515_v26  ;;  %v8784_v4 = vsel %vm2514_vm14, %v8657_v5, %v5516_v37  ;;  %v5531_v62 = vunpack.i.h.bf16 %v5529_v7  ;;  %v5530_v50 = vunpack.i.l.bf16 %v5529_v7  ;;  %v12870_v5 = vld [vmem:[#allocation160_spill] sm:$0xff] }
 0x1f0   : > { %v5524_v52 = vpop.permute.xlu0 %5523  ;;  %5818 = vrot.lane.b32.xlu1 %v12869_v33, %s6483_s8 }
 0x1f1   : > { %v8790_v17 = vsel %vm2514_vm14, %v8670_v32, %v5530_v50  ;;  %v8794_v8 = vsel %vm2514_vm14, %v8673_v38, %v5531_v62  ;;  %v5526_v3 = vunpack.i.h.bf16 %v5524_v52  ;;  %v5525_v26 = vunpack.i.l.bf16 %v5524_v52  ;;  %v12872_v50 = vld [vmem:[#allocation131_spill] sm:$0xff]  ;;  %v12874_v52 = vld [vmem:[#allocation162_spill] sm:$0xff] }
 0x1f2   : > { %5813 = vrot.lane.b32.xlu0 %v12870_v5, %s6483_s8  ;;  %v8799_v37 = vpop.permute.xlu1 %5538  ;;  %v4666_v33 = vunpack.i.h.bf16 %v12872_v50  ;;  %v8814_v62 = vunpack.c.l.bf16 %v4521_v36  ;;  %v8816_v5 = vunpack.c.h.bf16 %v4521_v36  ;;  %v4665_v1 = vunpack.i.l.bf16 %v12872_v50 }
 0x1f3   : > { %12871 = vst [vmem:[#allocation125_spill] sm:$0xff] %v8799_v37  ;;  %v8803_v7 = vsel %vm2514_vm14, %v8682_v27, %v5525_v26  ;;  %v8807_v32 = vsel %vm2514_vm14, %v8685_v53, %v5526_v3  ;;  %v4656_v27 = vunpack.i.h.bf16 %v12877_v31  ;;  %v4655_v26 = vunpack.i.l.bf16 %v12877_v31  ;;  %v12887_v37 = vld [vmem:[#allocation4_spill] sm:$0xff] }
 0x1f4   : > { %v8810_v38 = vpop.permute.xlu0 %5533  ;;  %5828 = vrot.lane.b32.xlu1 %v12874_v52, %s6483_s8  ;;  %12875 = vst [vmem:[#allocation127_spill] sm:$0xff] %v8814_v62  ;;  %12876 = vst [vmem:[#allocation128_spill] sm:$0xff] %v8816_v5  ;;  %v4671_v53 = vunpack.i.h.bf16 %v12878_v44  ;;  %v4670_v3 = vunpack.i.l.bf16 %v12878_v44  ;;  %v12881_v52 = vld [vmem:[#allocation137_spill] sm:$0xff]  ;;  %v8830_v36 = vsel %vm2184_vm4, %v12882_v48, %v4666_v33  ;;  %v5847_v31 = vpack.i.bf16 %v8816_v5, %v8814_v62  ;;  %v12885_v44 = vld [vmem:[#allocation2_spill] sm:$0xff] }
 0x1f5   : > { %12873 = vst [vmem:[#allocation126_spill] sm:$0xff] %v8810_v38  ;;  %v4661_v28 = vunpack.i.h.bf16 %v12881_v52  ;;  %v8840_v38 = vsel %vm2184_vm4, %v12885_v44, %v4665_v1  ;;  %v8848_v48 = vsel %vm2184_vm4, %v12887_v37, %v4655_v26  ;;  %v12888_v33 = vld [vmem:[#allocation7_spill] sm:$0xff]  ;;  %v4660_v2 = vunpack.i.l.bf16 %v12881_v52  ;;  %v12890_v1 = vld [vmem:[#allocation142_spill] sm:$0xff] }
 0x1f6   : > { %5823 = vrot.lane.b32.xlu0 %v12879_v11, %s6483_s8  ;;  %v8825_v0 = vpop.permute.xlu1 %5548  ;;  %v12886_v11 = vld [vmem:[#allocation5_spill] sm:$0xff]  ;;  %v4701_v44 = vunpack.i.h.bf16 %v12890_v1  ;;  %v4700_v26 = vunpack.i.l.bf16 %v12890_v1 }
 0x1f7   : > { %12880 = vst [vmem:[#allocation129_spill] sm:$0xff] %v8825_v0  ;;  %v8844_v0 = vsel %vm2184_vm4, %v12886_v11, %v4656_v27  ;;  %v12892_v11 = vld [vmem:[#allocation11_spill] sm:$0xff] }
 0x1f8   : > { %v8832_v50 = vpop.permute.xlu0 %5543  ;;  %5838 = vrot.lane.b32.xlu1 %v12884_v14, %s6483_s8  ;;  %v12889_v14 = vld [vmem:[#allocation6_spill] sm:$0xff]  ;;  %v8864_v37 = vsel %vm2184_vm4, %v12892_v11, %v4661_v28  ;;  %v12896_v11 = vld [vmem:[#allocation9_spill] sm:$0xff]  ;;  %v8884_v46 = vsel %vm2184_vm4, %v12897_v49, %v4701_v44  ;;  %v12920_v49 = vld [vmem:[#allocation167_spill] sm:$0xff] }
 0x1f9   : > { %12883 = vst [vmem:[#allocation130_spill] sm:$0xff] %v8832_v50  ;;  %v8852_v50 = vsel %vm2184_vm4, %v12888_v33, %v4671_v53  ;;  %v8856_v9 = vsel %vm2184_vm4, %v12889_v14, %v4670_v3  ;;  %v4695_v3 = vunpack.i.l.bf16 %v12893_v51  ;;  %v12894_v14 = vld [vmem:[#allocation17_spill] sm:$0xff]  ;;  %v2187_v51 = vsel %vm2184_vm4, %v12896_v11, %v4660_v2  ;;  %v12903_v11 = vld [vmem:[#allocation31_spill] sm:$0xff] }
 0x1fa   : > { %5833 = vrot.lane.b32.xlu0 %v12891_v21, %s6483_s8  ;;  %v5559_v27 = vpop.permute.xlu1 %5558  ;;  %v5857_v21 = vpack.i.bf16 %v12895_v54, %v12894_v14  ;;  %v8902_v60 = vsel %vm2184_vm4, %v12903_v11, %v4700_v26  ;;  %v12926_v54 = vld [vmem:[#allocation46_spill] sm:$0xff] }
 0x1fb   : > { %v5561_v53 = vunpack.i.h.bf16 %v5559_v27  ;;  %v5560_v33 = vunpack.i.l.bf16 %v5559_v27 }
 0x1fc   : > { %v5554_v52 = vpop.permute.xlu0 %5553  ;;  %5848 = vrot.lane.b32.xlu1 %v5847_v31, %s6483_s8  ;;  %v12898_v31 = vld [vmem:[#allocation147_spill] sm:$0xff] }
 0x1fd   : > { %v8874_v16 = vsel %vm2547_vm15, %v8714_v23, %v5560_v33  ;;  %v8878_v28 = vsel %vm2547_vm15, %v8718_v12, %v5561_v53  ;;  %v5556_v1 = vunpack.i.h.bf16 %v5554_v52  ;;  %v5555_v27 = vunpack.i.l.bf16 %v5554_v52  ;;  %v12900_v33 = vld [vmem:[#allocation8_spill] sm:$0xff] }
 0x1fe   : > { %v4711_v35 = vunpack.i.h.bf16 %v12898_v31  ;;  %5843 = vrot.lane.b32.xlu0 %v12899_v58, %s6483_s8  ;;  %v5569_v23 = vpop.permute.xlu1 %5568  ;;  %v12901_v19 = vrot.slane %v12900_v33, 1  ;;  %v12904_v58 = vld [vmem:[#allocation38_spill] sm:$0xff] }
 0x1ff   : > { %v8894_v53 = vsel %vm2547_vm15, %v8724_v34, %v5555_v27  ;;  %v8898_v2 = vsel %vm2547_vm15, %v8728_v30, %v5556_v1  ;;  %v5571_v44 = vunpack.i.h.bf16 %v5569_v23  ;;  %v5570_v52 = vunpack.i.l.bf16 %v5569_v23  ;;  %v12906_v27 = vld [vmem:[#allocation36_spill] sm:$0xff] }
 0x200   : > { %v5852_v12 = vpack.i.bf16 %v12902_v20, %v12901_v19  ;;  %v8906_v42 = vsel %vm2184_vm4, %v12904_v58, %v4696_v39  ;;  %v8910_v19 = vsel %vm2184_vm4, %v12905_v63, %v4695_v3  ;;  %v5564_v34 = vpop.permute.xlu0 %5563  ;;  %5858 = vrot.lane.b32.xlu1 %v5857_v21, %s6469_s21  ;;  %v12907_v30 = vld [vmem:[#allocation52_spill] sm:$0xff]  ;;  %v8925_v3 = vsel %vm2184_vm4, %v12908_v6, %v4711_v35  ;;  %v12914_v6 = vld [vmem:[#allocation161_spill] sm:$0xff] }
 0x201   : > { %v5867_v1 = vpack.i.bf16 %v12907_v30, %v12906_v27  ;;  %v8917_v23 = vsel %vm2547_vm15, %v8734_v45, %v5570_v52  ;;  %v8921_v26 = vsel %vm2547_vm15, %v8738_v43, %v5571_v44  ;;  %v5566_v39 = vunpack.i.h.bf16 %v5564_v34  ;;  %v12911_v45 = vld [vmem:[#allocation29_spill] sm:$0xff]  ;;  %v12912_v52 = vld [vmem:[#allocation44_spill] sm:$0xff]  ;;  %v12913_v44 = vld [vmem:[#allocation159_spill] sm:$0xff] }
 0x202   : > { %v5565_v24 = vunpack.i.l.bf16 %v5564_v34  ;;  %v4710_v21 = vunpack.i.l.bf16 %v12898_v31  ;;  %5853 = vrot.lane.b32.xlu0 %v5852_v12, %s6469_s21  ;;  %v8930_v30 = vpop.permute.xlu1 %5578  ;;  %v5862_v27 = vpack.i.bf16 %v12912_v52, %v12911_v45  ;;  %v4705_v43 = vunpack.i.l.bf16 %v12909_v59  ;;  %v260_v31 = vld [vmem:[%s6531_s20 + $0xe0] sm:$0x3]  ;;  %v12916_v59 = vld [vmem:[#allocation57_spill] sm:$0xff] }
 0x203   : > { %12910 = vst [vmem:[#allocation133_spill] sm:$0xff] %v8930_v30  ;;  %v4741_v55 = vunpack.i.h.bf16 %v12913_v44  ;;  %v8942_v35 = vsel %vm2547_vm15, %v8750_v40, %v5566_v39  ;;  %v4740_v12 = vunpack.i.l.bf16 %v12913_v44  ;;  %v4736_v30 = vunpack.i.h.bf16 %v12914_v6  ;;  %v12919_v44 = vld [vmem:[#allocation41_spill] sm:$0xff] }
 0x204   : > { %v8938_v34 = vsel %vm2547_vm15, %v8746_v25, %v5565_v24  ;;  %v4735_v18 = vunpack.i.l.bf16 %v12914_v6  ;;  %v8948_v52 = vpop.permute.xlu0 %5573  ;;  %5868 = vrot.lane.b32.xlu1 %v5867_v1, %s6469_s21  ;;  %v5877_v57 = vpack.i.bf16 %v12917_v15, %v12916_v59  ;;  %v12918_v24 = vld [vmem:[#allocation165_spill] sm:$0xff]  ;;  %v2680_v40 = vrot.slane %v8814_v62, 1  ;;  %v12922_v1 = vld [vmem:[#allocation48_spill] sm:$0xff]  ;;  %v12925_v15 = vld [vmem:[#allocation47_spill] sm:$0xff] }
 0x205   : > { %12915 = vst [vmem:[#allocation134_spill] sm:$0xff] %v8948_v52  ;;  %v4751_v25 = vunpack.i.h.bf16 %v12918_v24  ;;  %v4750_v41 = vunpack.i.l.bf16 %v12918_v24  ;;  %v2681_v39 = vrot.slane %v8816_v5, 1  ;;  %v2207_v11 = vsel %vm2184_vm4, %v12919_v44, %v4710_v21  ;;  %v12927_v44 = vld [vmem:[#allocation10_spill] sm:$0xff] }
 0x206   : > { %v4746_v6 = vunpack.i.h.bf16 %v12920_v49  ;;  %5863 = vrot.lane.b32.xlu0 %v5862_v27, %s6469_s21  ;;  %v8961_v52 = vpop.permute.xlu1 %5588  ;;  %v5872_v58 = vpack.i.bf16 %v12923_v10, %v12922_v1  ;;  %v8965_v63 = vunpack.c.l.bf16 %v260_v31  ;;  %v8969_v24 = vsel %vm2184_vm4, %v12925_v15, %v4706_v61  ;;  %v12930_v1 = vld [vmem:[#allocation59_spill] sm:$0xff] }
 0x207   : > { %12921 = vst [vmem:[#allocation136_spill] sm:$0xff] %v8961_v52  ;;  %v8973_v45 = vsel %vm2184_vm4, %v12926_v54, %v4705_v43  ;;  %v4745_v21 = vunpack.i.l.bf16 %v12920_v49  ;;  %v4781_v59 = vunpack.i.h.bf16 %v12927_v44  ;;  %v8978_v27 = vsel %vm2217_vm5, %v2187_v51, %v4740_v12  ;;  %v12929_v43 = vld [vmem:[#allocation177_spill] sm:$0xff] }
 0x208   : > { %12924 = vst [vmem:[#allocation138_spill] sm:$0xff] %v8965_v63  ;;  %v8982_v52 = vsel %vm2217_vm5, %v8864_v37, %v4741_v55  ;;  %v8986_v31 = vsel %vm2217_vm5, %v8848_v48, %v4735_v18  ;;  %v8988_v61 = vpop.permute.xlu0 %5583  ;;  %5878 = vrot.lane.b32.xlu1 %v5877_v57, %s6469_s21  ;;  %v5887_v49 = vpack.i.bf16 %v12930_v1, %v12929_v43  ;;  %v4780_v48 = vunpack.i.l.bf16 %v12927_v44  ;;  %v12932_v37 = vld [vmem:[#allocation68_spill] sm:$0xff] }
 0x209   : > { %12928 = vst [vmem:[#allocation139_spill] sm:$0xff] %v8988_v61  ;;  %v8995_v15 = vsel %vm2217_vm5, %v8844_v0, %v4736_v30  ;;  %v8999_v51 = vsel %vm2217_vm5, %v8852_v50, %v4751_v25  ;;  %v9003_v55 = vsel %vm2217_vm5, %v8856_v9, %v4750_v41  ;;  %v9006_v18 = vsel %vm372_vm0, %v2680_v40, %v2681_v39  ;;  %v12933_v30 = vld [vmem:[#allocation176_spill] sm:$0xff]  ;;  %v12934_v40 = vld [vmem:[#allocation21_spill] sm:$0xff] }
 0x20a   : > { %12931 = vst [vmem:[#allocation140_spill] sm:$0xff] %v9006_v18  ;;  %v9010_v57 = vsel %vm2217_vm5, %v8830_v36, %v4746_v6  ;;  %5873 = vrot.lane.b32.xlu0 %v5872_v58, %s6469_s21  ;;  %v5599_v0 = vpop.permute.xlu1 %5598  ;;  %v5882_v50 = vpack.i.bf16 %v12933_v30, %v12932_v37  ;;  %v2683_v12 = vrot.slane %v8965_v63, 1  ;;  %v9019_v41 = vsel %vm2217_vm5, %v8840_v38, %v4745_v21  ;;  %v12935_v6 = vld [vmem:[#allocation28_spill] sm:$0xff]  ;;  %v12936_v30 = vld [vmem:[#allocation262_spill] sm:$0xff] }
 0x20b   : > { %v9023_v9 = vsel %vm2217_vm5, %v8884_v46, %v4781_v59  ;;  %v5601_v36 = vunpack.i.h.bf16 %v5599_v0  ;;  %v5600_v25 = vunpack.i.l.bf16 %v5599_v0  ;;  %v4776_v44 = vunpack.i.h.bf16 %v12934_v40 }
 0x20c   : > { %v4775_v58 = vunpack.i.l.bf16 %v12934_v40  ;;  %v4791_v43 = vunpack.i.h.bf16 %v12935_v6  ;;  %v5594_v61 = vpop.permute.xlu0 %5593  ;;  %5888 = vrot.lane.b32.xlu1 %v5887_v49, %s6469_s21  ;;  %v5897_v54 = vpack.i.bf16 %v9006_v18, %v12936_v30  ;;  %v2236_v0 = vsel %vm2217_vm5, %v8902_v60, %v4780_v48 }
 0x20d   : > { %v9033_v38 = vsel %vm2547_vm15, %v8770_v22, %v5600_v25  ;;  %v9037_v46 = vsel %vm2547_vm15, %v8774_v47, %v5601_v36  ;;  %v5596_v59 = vunpack.i.h.bf16 %v5594_v61  ;;  %v5595_v21 = vunpack.i.l.bf16 %v5594_v61  ;;  %v12938_v25 = vld [vmem:[#allocation79_spill] sm:$0xff] }
 0x20e   : > { %v4790_v40 = vunpack.i.l.bf16 %v12935_v6  ;;  %5883 = vrot.lane.b32.xlu0 %v5882_v50, %s6469_s21  ;;  %v5609_v49 = vpop.permute.xlu1 %5608  ;;  %v2684_v18 = vsel %vm372_vm0, %v2681_v39, %v2683_v12  ;;  %v2234_v60 = vsel %vm2217_vm5, %v8910_v19, %v4775_v58  ;;  %v2235_v48 = vsel %vm2217_vm5, %v8906_v42, %v4776_v44  ;;  %v12939_v58 = vld [vmem:[#allocation16_spill] sm:$0xff] }
 0x20f   : > { %v9046_v22 = vsel %vm2547_vm15, %v8780_v29, %v5595_v21  ;;  %v9050_v47 = vsel %vm2547_vm15, %v8784_v4, %v5596_v59  ;;  %v5611_v36 = vunpack.i.h.bf16 %v5609_v49  ;;  %v5610_v61 = vunpack.i.l.bf16 %v5609_v49  ;;  %v12940_v59 = vld [vmem:[#allocation151_spill] sm:$0xff] }
 0x210   : > { %v9058_v50 = vsel %vm2217_vm5, %v8925_v3, %v4791_v43  ;;  %v5604_v39 = vpop.permute.xlu0 %5603  ;;  %5898 = vrot.lane.b32.xlu1 %v5897_v54, %s6469_s21  ;;  %v12937_v29 = vrot.slane %v12900_v33, 2  ;;  %v9073_v3 = vsel %vm2217_vm5, %v2207_v11, %v4790_v40  ;;  %v4786_v43 = vunpack.i.h.bf16 %v12939_v58  ;;  %v12943_v49 = vld [vmem:[#allocation43_spill] sm:$0xff] }
 0x211   : > { %v9066_v6 = vsel %vm2547_vm15, %v8790_v17, %v5610_v61  ;;  %v9070_v19 = vsel %vm2547_vm15, %v8794_v8, %v5611_v36  ;;  %v5606_v42 = vunpack.i.h.bf16 %v5604_v39  ;;  %v5605_v44 = vunpack.i.l.bf16 %v5604_v39  ;;  %v12944_v40 = vld [vmem:[#allocation175_spill] sm:$0xff] }
 0x212   : > { %v5907_v4 = vpack.i.bf16 %v12938_v25, %v12937_v29  ;;  %v4785_v54 = vunpack.i.l.bf16 %v12939_v58  ;;  %5893 = vrot.lane.b32.xlu0 %v12940_v59, %s6469_s21  ;;  %v9079_v21 = vpop.permute.xlu1 %5618  ;;  %v9081_v17 = vpack.i.bf16 %v2683_v12, %v2684_v18  ;;  %v4821_v61 = vunpack.i.h.bf16 %v12943_v49  ;;  %v12945_v58 = vld [vmem:[#allocation55_spill] sm:$0xff]  ;;  %v12947_v12 = vld [vmem:[#allocation80_spill] sm:$0xff] }
 0x213   : > { %12941 = vst [vmem:[#allocation229_spill] sm:$0xff] %v9079_v21  ;;  %v4820_v8 = vunpack.i.l.bf16 %v12943_v49  ;;  %v9087_v36 = vsel %vm2547_vm15, %v8803_v7, %v5605_v44  ;;  %v9091_v11 = vsel %vm2547_vm15, %v8807_v32, %v5606_v42  ;;  %v4816_v39 = vunpack.i.h.bf16 %v12944_v40  ;;  %v12948_v49 = vld [vmem:[#allocation85_spill] sm:$0xff]  ;;  %v12949_v44 = vld [vmem:[#allocation178_spill] sm:$0xff] }
 0x214   : > { %12942 = vst [vmem:[#allocation143_spill] sm:$0xff] %v9081_v17  ;;  %v4815_v29 = vunpack.i.l.bf16 %v12944_v40  ;;  %v4830_v59 = vunpack.i.l.bf16 %v12945_v58  ;;  %v9096_v18 = vpop.permute.xlu0 %5613  ;;  %5908 = vrot.lane.b32.xlu1 %v5907_v4, %s6470_s22  ;;  %v5917_v21 = vpack.i.bf16 %v12948_v49, %v12947_v12  ;;  %v4831_v7 = vunpack.i.h.bf16 %v12945_v58  ;;  %v12950_v42 = vld [vmem:[#allocation74_spill] sm:$0xff]  ;;  %v12951_v40 = vld [vmem:[#allocation183_spill] sm:$0xff]  ;;  %v12954_v49 = vld [vmem:[#allocation81_spill] sm:$0xff] }
 0x215   : > { %12946 = vst [vmem:[#allocation144_spill] sm:$0xff] %v9096_v18  ;;  %v4826_v30 = vunpack.i.h.bf16 %v12949_v44  ;;  %v4825_v32 = vunpack.i.l.bf16 %v12949_v44  ;;  %v4860_v1 = vunpack.i.l.bf16 %v12950_v42  ;;  %v4861_v37 = vunpack.i.h.bf16 %v12950_v42  ;;  %v12953_v18 = vld [vmem:[#allocation75_spill] sm:$0xff] }
 0x216   : > { %v4856_v14 = vunpack.i.h.bf16 %v12951_v40  ;;  %v4855_v25 = vunpack.i.l.bf16 %v12951_v40  ;;  %5903 = vrot.lane.b32.xlu0 %v9081_v17, %s6469_s21  ;;  %v9110_v4 = vpop.permute.xlu1 %5628  ;;  %v5912_v58 = vpack.i.bf16 %v12954_v49, %v12953_v18  ;;  %v2238_v12 = vsel %vm2217_vm5, %v8973_v45, %v4785_v54 }
 0x217   : > { %12952 = vst [vmem:[#allocation146_spill] sm:$0xff] %v9110_v4  ;;  %v2239_v44 = vsel %vm2217_vm5, %v8969_v24, %v4786_v43  ;;  %v2253_v42 = vsel %vm12220_vm6, %v8978_v27, %v4820_v8  ;;  %v9122_v40 = vsel %vm12220_vm6, %v8982_v52, %v4821_v61  ;;  %v9126_v17 = vsel %vm12220_vm6, %v8986_v31, %v4815_v29  ;;  %v12957_v27 = vld [vmem:[#allocation86_spill] sm:$0xff]  ;;  %v12958_v43 = vld [vmem:[#allocation93_spill] sm:$0xff]  ;;  %v12964_v8 = vld [vmem:[#allocation84_spill] sm:$0xff] }
 0x218   : > { %v9130_v4 = vsel %vm12220_vm6, %v8995_v15, %v4816_v39  ;;  %v9134_v45 = vsel %vm12220_vm6, %v9003_v55, %v4830_v59  ;;  %v9136_v24 = vpop.permute.xlu0 %5623  ;;  %5918 = vrot.lane.b32.xlu1 %v5917_v21, %s6470_s22  ;;  %v5927_v52 = vpack.i.bf16 %v12958_v43, %v12957_v27  ;;  %v9143_v54 = vsel %vm12220_vm6, %v8999_v51, %v4831_v7  ;;  %v12965_v39 = vld [vmem:[#allocation89_spill] sm:$0xff]  ;;  %v12970_v27 = vld [vmem:[#allocation90_spill] sm:$0xff] }
 0x219   : > { %12955 = vst [vmem:[#allocation148_spill] sm:$0xff] %v9134_v45  ;;  %12956 = vst [vmem:[#allocation150_spill] sm:$0xff] %v9136_v24  ;;  %v9147_v31 = vsel %vm12220_vm6, %v9019_v41, %v4825_v32  ;;  %v9151_v15 = vsel %vm12220_vm6, %v9010_v57, %v4826_v30  ;;  %v9154_v55 = vsel %vm12220_vm6, %v2236_v0, %v4860_v1  ;;  %v12966_v30 = vld [vmem:[#allocation184_spill] sm:$0xff] }
 0x21a   : > { %12959 = vst [vmem:[#allocation152_spill] sm:$0xff] %v9143_v54  ;;  %12960 = vst [vmem:[#allocation154_spill] sm:$0xff] %v9154_v55  ;;  %v9158_v21 = vsel %vm12220_vm6, %v9023_v9, %v4861_v37  ;;  %v9161_v61 = vsel %vm12220_vm6, %v2234_v60, %v4855_v25  ;;  %v9164_v51 = vsel %vm12220_vm6, %v2235_v48, %v4856_v14  ;;  %5913 = vrot.lane.b32.xlu0 %v5912_v58, %s6470_s22  ;;  %v5639_v41 = vpop.permute.xlu1 %5638  ;;  %v12967_v9 = vld [vmem:[#allocation94_spill] sm:$0xff]  ;;  %v12968_v60 = vld [vmem:[#allocation193_spill] sm:$0xff] }
 0x21b   : > { %12961 = vst [vmem:[#allocation156_spill] sm:$0xff] %v9158_v21  ;;  %12962 = vst [vmem:[#allocation158_spill] sm:$0xff] %v9161_v61  ;;  %v5922_v57 = vpack.i.bf16 %v12965_v39, %v12964_v8  ;;  %v4871_v29 = vunpack.i.h.bf16 %v12966_v30  ;;  %v4870_v1 = vunpack.i.l.bf16 %v12966_v30  ;;  %v5641_v0 = vunpack.i.h.bf16 %v5639_v41  ;;  %v12969_v30 = vld [vmem:[#allocation185_spill] sm:$0xff]  ;;  %v12971_v39 = vld [vmem:[#allocation96_spill] sm:$0xff] }
 0x21c   : > { %12963 = vst [vmem:[#allocation160_spill] sm:$0xff] %v9164_v51  ;;  %v5640_v59 = vunpack.i.l.bf16 %v5639_v41  ;;  %v5634_v37 = vpop.permute.xlu0 %5633  ;;  %5928 = vrot.lane.b32.xlu1 %v5927_v52, %s6470_s22  ;;  %v5937_v14 = vpack.i.bf16 %v12968_v60, %v12967_v9  ;;  %v2752_v48 = vrot.slane %v8816_v5, 2  ;;  %v2754_v25 = vrot.slane %v8965_v63, 2 }
 0x21d   : > { %v9182_v32 = vsel %vm12240_vm3, %v8878_v28, %v5641_v0  ;;  %v5636_v58 = vunpack.i.h.bf16 %v5634_v37  ;;  %v5635_v41 = vunpack.i.l.bf16 %v5634_v37  ;;  %v4866_v24 = vunpack.i.h.bf16 %v12969_v30 }
 0x21e   : > { %v9178_v7 = vsel %vm12240_vm3, %v8874_v16, %v5640_v59  ;;  %v4865_v52 = vunpack.i.l.bf16 %v12969_v30  ;;  %5923 = vrot.lane.b32.xlu0 %v5922_v57, %s6470_s22  ;;  %v5649_v60 = vpop.permute.xlu1 %5648  ;;  %v5932_v63 = vpack.i.bf16 %v12971_v39, %v12970_v27  ;;  %v2751_v5 = vrot.slane %v8814_v62, 2  ;;  %v12973_v57 = vld [vmem:[#allocation191_spill] sm:$0xff] }
 0x21f   : > { %v9192_v16 = vsel %vm12240_vm3, %v8894_v53, %v5635_v41  ;;  %v9196_v28 = vsel %vm12240_vm3, %v8898_v2, %v5636_v58  ;;  %v5651_v0 = vunpack.i.h.bf16 %v5649_v60  ;;  %v5650_v59 = vunpack.i.l.bf16 %v5649_v60  ;;  %v12978_v60 = vld [vmem:[#allocation194_spill] sm:$0xff] }
 0x220   : > { %v9200_v37 = vsel %vm12220_vm6, %v9073_v3, %v4870_v1  ;;  %v4900_v30 = vunpack.i.l.bf16 %v12973_v57  ;;  %v5644_v8 = vpop.permute.xlu0 %5643  ;;  %5938 = vrot.lane.b32.xlu1 %v5937_v14, %s6470_s22  ;;  %v2755_v62 = vsel %vm549_vm1, %v2752_v48, %v2754_v25  ;;  %v9215_v3 = vsel %vm12220_vm6, %v9058_v50, %v4871_v29 }
 0x221   : > { %12972 = vst [vmem:[#allocation131_spill] sm:$0xff] %v9200_v37  ;;  %v9207_v53 = vsel %vm12240_vm3, %v8917_v23, %v5650_v59  ;;  %v9211_v2 = vsel %vm12240_vm3, %v8921_v26, %v5651_v0  ;;  %v5646_v58 = vunpack.i.h.bf16 %v5644_v8  ;;  %v5645_v41 = vunpack.i.l.bf16 %v5644_v8  ;;  %12974 = vst [vmem:[#allocation162_spill] sm:$0xff] %v9215_v3  ;;  %v12979_v59 = vld [vmem:[#allocation190_spill] sm:$0xff] }
 0x222   : > { %v9218_v1 = vsel %vm12220_vm6, %v2238_v12, %v4865_v52  ;;  %v9221_v14 = vsel %vm12220_vm6, %v2239_v44, %v4866_v24  ;;  %5933 = vrot.lane.b32.xlu0 %v5932_v63, %s6470_s22  ;;  %v9224_v23 = vpop.permute.xlu1 %5658  ;;  %v5942_v26 = vpack.i.bf16 %v12979_v59, %v12978_v60  ;;  %v4901_v0 = vunpack.i.h.bf16 %v12973_v57  ;;  %v12981_v44 = vld [vmem:[#allocation192_spill] sm:$0xff]  ;;  %v12984_v57 = vld [vmem:[#allocation195_spill] sm:$0xff] }
 0x223   : > { %12975 = vst [vmem:[#allocation132_spill] sm:$0xff] %v9218_v1  ;;  %12976 = vst [vmem:[#allocation135_spill] sm:$0xff] %v9221_v14  ;;  %v9231_v8 = vsel %vm12240_vm3, %v8938_v34, %v5645_v41  ;;  %v9235_v50 = vsel %vm12240_vm3, %v8942_v35, %v5646_v58  ;;  %v9238_v12 = vsel %vm549_vm1, %v2751_v5, %v2752_v48  ;;  %v4896_v24 = vunpack.i.h.bf16 %v12981_v44  ;;  %v12985_v5 = vld [vmem:[#allocation15_spill] sm:$0xff]  ;;  %v12986_v41 = vld [vmem:[#allocation18_spill] sm:$0xff] }
 0x224   : > { %12977 = vst [vmem:[#allocation166_spill] sm:$0xff] %v9224_v23  ;;  %12980 = vst [vmem:[#allocation137_spill] sm:$0xff] %v9238_v12  ;;  %v9241_v63 = vsel %vm2283_vm7, %v2253_v42, %v4900_v30  ;;  %v4895_v29 = vunpack.i.l.bf16 %v12981_v44  ;;  %v9245_v52 = vpop.permute.xlu0 %5653  ;;  %5948 = vrot.lane.b32.xlu1 %v8197_v13, %s6470_s22  ;;  %v9249_v34 = vpack.i.bf16 %v2754_v25, %v2755_v62  ;;  %v4911_v35 = vunpack.i.h.bf16 %v12984_v57  ;;  %v12987_v30 = vld [vmem:[#allocation196_spill] sm:$0xff]  ;;  %v12989_v25 = vld [vmem:[#allocation98_spill] sm:$0xff] }
 0x225   : > { %12982 = vst [vmem:[#allocation3_spill] sm:$0xff] %v9245_v52  ;;  %v4910_v58 = vunpack.i.l.bf16 %v12984_v57  ;;  %v2896_v48 = vrot.slane %v12985_v5, 7  ;;  %v4906_v60 = vunpack.i.h.bf16 %v12987_v30  ;;  %v4905_v23 = vunpack.i.l.bf16 %v12987_v30  ;;  %v12990_v42 = vld [vmem:[#allocation200_spill] sm:$0xff] }
 0x226   : > { %12983 = vst [vmem:[#allocation168_spill] sm:$0xff] %v9249_v34  ;;  %5943 = vrot.lane.b32.xlu0 %v5942_v26, %s6470_s22  ;;  %v9258_v44 = vpop.permute.xlu1 %5668  ;;  %v5952_v13 = vpack.i.bf16 %v9238_v12, %v8136_v56  ;;  %vm2895_vm6 = vcmask 1040384   ;;  %v9264_v62 = vsel %vm2283_vm7, %v9122_v40, %v4901_v0  ;;  %v4941_v57 = vunpack.i.h.bf16 %v12989_v25  ;;  %v12992_v26 = vld [vmem:[#allocation102_spill] sm:$0xff]  ;;  %v12994_v56 = vld [vmem:[#allocation56_spill] sm:$0xff] }
 0x227   : > { %12988 = vst [vmem:[#allocation2_spill] sm:$0xff] %v9258_v44  ;;  %v4940_v5 = vunpack.i.l.bf16 %v12989_v25  ;;  %v4936_v52 = vunpack.i.h.bf16 %v12990_v42  ;;  %v4935_v30 = vunpack.i.l.bf16 %v12990_v42  ;;  %v12993_v44 = vld [vmem:[#allocation106_spill] sm:$0xff]  ;;  %v2920_v39 = vrot.slane %v12994_v56, 7 }
 0x228   : > { %v9270_v59 = vpop.permute.xlu0 %5663  ;;  %5958 = vrot.lane.b32.xlu1 %v9249_v34, %s6470_s22  ;;  %v5967_v12 = vpack.i.bf16 %v12993_v44, %v12992_v26  ;;  %v12995_v40 = vld [vmem:[#allocation58_spill] sm:$0xff]  ;;  %v9280_v49 = vsel %vm2283_vm7, %v9126_v17, %v4895_v29  ;;  %v9284_v25 = vsel %vm2283_vm7, %v9130_v4, %v4896_v24  ;;  %v9288_v42 = vsel %vm2283_vm7, %v9134_v45, %v4910_v58  ;;  %v12998_v58 = vld [vmem:[#allocation103_spill] sm:$0xff]  ;;  %v13003_v45 = vld [vmem:[#allocation12_spill] sm:$0xff] }
 0x229   : > { %12991 = vst [vmem:[#allocation5_spill] sm:$0xff] %v9270_v59  ;;  %v2921_v0 = vrot.slane %v12995_v40, 7  ;;  %v12996_v59 = vrot.slane %v12986_v41, 7  ;;  %v9295_v56 = vsel %vm2283_vm7, %v9143_v54, %v4911_v35  ;;  %v9299_v17 = vsel %vm2283_vm7, %v9147_v31, %v4905_v23 }
 0x22a   : > { %v9303_v4 = vsel %vm2283_vm7, %v9151_v15, %v4906_v60  ;;  %5953 = vrot.lane.b32.xlu0 %v5952_v13, %s6470_s22  ;;  %v5679_v24 = vpop.permute.xlu1 %5678  ;;  %v12997_v29 = vrot.slane %v12900_v33, 3  ;;  %v9315_v35 = vsel %vm2283_vm7, %v9158_v21, %v4941_v57  ;;  %v9319_v15 = vsel %vm2283_vm7, %v9161_v61, %v4935_v30 }
 0x22b   : > { %v2898_v34 = vsel %vm2895_vm6, %v2896_v48, %v12996_v59  ;;  %v9311_v59 = vsel %vm2283_vm7, %v9154_v55, %v4940_v5  ;;  %v5681_v31 = vunpack.i.h.bf16 %v5679_v24  ;;  %v5680_v23 = vunpack.i.l.bf16 %v5679_v24  ;;  %v12999_v55 = vld [vmem:[#allocation201_spill] sm:$0xff] }
 0x22c   : > { %v5962_v40 = vpack.i.bf16 %v12998_v58, %v12997_v29  ;;  %v9323_v60 = vsel %vm2283_vm7, %v9164_v51, %v4936_v52  ;;  %v5674_v13 = vpop.permute.xlu0 %5673  ;;  %5968 = vrot.lane.b32.xlu1 %v5967_v12, %s6471_s23  ;;  %v5977_v29 = vpack.i.bf16 %v2898_v34, %v2896_v48  ;;  %v2922_v5 = vsel %vm2895_vm6, %v2920_v39, %v2921_v0  ;;  %v13000_v51 = vld [vmem:[#allocation111_spill] sm:$0xff]  ;;  %v13001_v12 = vld [vmem:[#allocation116_spill] sm:$0xff]  ;;  %v13002_v48 = vld [vmem:[#allocation13_spill] sm:$0xff] }
 0x22d   : > { %v9329_v57 = vsel %vm12240_vm3, %v9033_v38, %v5680_v23  ;;  %v9333_v24 = vsel %vm12240_vm3, %v9037_v46, %v5681_v31  ;;  %v5676_v30 = vunpack.i.h.bf16 %v5674_v13  ;;  %v5675_v21 = vunpack.i.l.bf16 %v5674_v13  ;;  %v13005_v13 = vld [vmem:[#allocation202_spill] sm:$0xff] }
 0x22e   : > { %v4950_v61 = vunpack.i.l.bf16 %v12999_v55  ;;  %5963 = vrot.lane.b32.xlu0 %v5962_v40, %s6471_s23  ;;  %v5689_v52 = vpop.permute.xlu1 %5688  ;;  %v5972_v34 = vpack.i.bf16 %v13001_v12, %v13000_v51  ;;  %v2900_v54 = vrot.slane %v13002_v48, 7  ;;  %v2899_v33 = vrot.slane %v13003_v45, 7  ;;  %v13006_v51 = vld [vmem:[#allocation50_spill] sm:$0xff] }
 0x22f   : > { %v9343_v38 = vsel %vm12240_vm3, %v9046_v22, %v5675_v21  ;;  %v9347_v46 = vsel %vm12240_vm3, %v9050_v47, %v5676_v30  ;;  %v5691_v31 = vunpack.i.h.bf16 %v5689_v52  ;;  %v5690_v23 = vunpack.i.l.bf16 %v5689_v52 }
 0x230   : > { %13004 = vst [vmem:[#allocation4_spill] sm:$0xff] %v9347_v46  ;;  %v4951_v40 = vunpack.i.h.bf16 %v12999_v55  ;;  %v4945_v44 = vunpack.i.l.bf16 %v13005_v13  ;;  %v5684_v9 = vpop.permute.xlu0 %5683  ;;  %5978 = vrot.lane.b32.xlu1 %v5977_v29, %s6472_s24  ;;  %v5987_v48 = vpack.i.bf16 %v2921_v0, %v2922_v5  ;;  %v2923_v45 = vrot.slane %v13006_v51, 7  ;;  %v13007_v46 = vld [vmem:[#allocation206_spill] sm:$0xff]  ;;  %v13010_v5 = vld [vmem:[#allocation53_spill] sm:$0xff] }
 0x231   : > { %v9355_v22 = vsel %vm12240_vm3, %v9066_v6, %v5690_v23  ;;  %v9359_v47 = vsel %vm12240_vm3, %v9070_v19, %v5691_v31  ;;  %v5686_v21 = vunpack.i.h.bf16 %v5684_v9  ;;  %v5685_v30 = vunpack.i.l.bf16 %v5684_v9  ;;  %v13012_v23 = vld [vmem:[#allocation207_spill] sm:$0xff] }
 0x232   : > { %v2306_v55 = vsel %vm2283_vm7, %v9200_v37, %v4950_v61  ;;  %v4946_v52 = vunpack.i.h.bf16 %v13005_v13  ;;  %v4980_v29 = vunpack.i.l.bf16 %v13007_v46  ;;  %5973 = vrot.lane.b32.xlu0 %v5972_v34, %s6471_s23  ;;  %v9366_v51 = vpop.permute.xlu1 %5698  ;;  %v13009_v6 = vrot.slane %v12986_v41, 7 }
 0x233   : > { %13008 = vst [vmem:[#allocation7_spill] sm:$0xff] %v9366_v51  ;;  %v9372_v19 = vsel %vm12240_vm3, %v9087_v36, %v5685_v30  ;;  %v9376_v9 = vsel %vm12240_vm3, %v9091_v11, %v5686_v21  ;;  %v2901_v61 = vsel %vm2895_vm6, %v2899_v33, %v2900_v54  ;;  %v2924_v31 = vrot.slane %v13010_v5, 7  ;;  %v13013_v30 = vld [vmem:[#allocation210_spill] sm:$0xff] }
 0x234   : > { %v5982_v0 = vpack.i.bf16 %v2920_v39, %v13009_v6  ;;  %v9382_v34 = vsel %vm2283_vm7, %v9215_v3, %v4951_v40  ;;  %v9386_v41 = vsel %vm2283_vm7, %v9218_v1, %v4945_v44  ;;  %v4981_v39 = vunpack.i.h.bf16 %v13007_v46  ;;  %v9389_v36 = vpop.permute.xlu0 %5693  ;;  %5988 = vrot.lane.b32.xlu1 %v5987_v48, %s6472_s24  ;;  %v13014_v44 = vld [vmem:[#allocation211_spill] sm:$0xff]  ;;  %v13016_v6 = vld [vmem:[#allocation217_spill] sm:$0xff] }
 0x235   : > { %13011 = vst [vmem:[#allocation6_spill] sm:$0xff] %v9389_v36  ;;  %v5997_v11 = vpack.i.bf16 %v2923_v45, %v2900_v54  ;;  %v4976_v13 = vunpack.i.h.bf16 %v13012_v23  ;;  %v4975_v21 = vunpack.i.l.bf16 %v13012_v23  ;;  %v9398_v5 = vsel %vm2283_vm7, %v9221_v14, %v4946_v52 }
 0x236   : > { %v4986_v1 = vunpack.i.h.bf16 %v13014_v44  ;;  %v4985_v46 = vunpack.i.l.bf16 %v13014_v44  ;;  %5983 = vrot.lane.b32.xlu0 %v5982_v0, %s6472_s24  ;;  %v9403_v48 = vpop.permute.xlu1 %5708  ;;  %v5992_v54 = vpack.i.bf16 %v2901_v61, %v2899_v33  ;;  %v9407_v23 = vsel %vm2316_vm8, %v9241_v63, %v4980_v29  ;;  %v13017_v44 = vld [vmem:[#allocation218_spill] sm:$0xff]  ;;  %v13019_v33 = vld [vmem:[#allocation19_spill] sm:$0xff]  ;;  %v13020_v63 = vld [vmem:[#allocation60_spill] sm:$0xff] }
 0x237   : > { %13015 = vst [vmem:[#allocation142_spill] sm:$0xff] %v9403_v48  ;;  %v12241_v36 = vunpack.i.h.bf16 %v13016_v6  ;;  %v12242_v40 = vunpack.i.l.bf16 %v13016_v6  ;;  %v2925_v52 = vsel %vm2895_vm6, %v2923_v45, %v2924_v31  ;;  %v9414_v14 = vsel %vm2316_vm8, %v9264_v62, %v4981_v39  ;;  %v13036_v6 = vld [vmem:[#allocation227_spill] sm:$0xff] }
 0x238   : > { %v12243_v0 = vunpack.i.l.bf16 %v13017_v44  ;;  %v9418_v48 = vpop.permute.xlu0 %5703  ;;  %5998 = vrot.lane.b32.xlu1 %v5997_v11, %s6472_s24  ;;  %v6007_v29 = vpack.i.bf16 %v13020_v63, %v13019_v33  ;;  %v9425_v61 = vsel %vm2316_vm8, %v9280_v49, %v4975_v21  ;;  %v9429_v45 = vsel %vm2316_vm8, %v9284_v25, %v4976_v13  ;;  %v13023_v13 = vld [vmem:[#allocation219_spill] sm:$0xff] }
 0x239   : > { %13018 = vst [vmem:[#allocation170_spill] sm:$0xff] %v9418_v48  ;;  %v13021_v62 = vunpack.i.l.bf16 %v13013_v30  ;;  %v13022_v51 = vunpack.i.h.bf16 %v13013_v30  ;;  %v9445_v49 = vsel %vm2316_vm8, %v9299_v17, %v4985_v46  ;;  %v9449_v25 = vsel %vm2316_vm8, %v9303_v4, %v4986_v1 }
 0x23a   : > { %v12244_v21 = vunpack.i.l.bf16 %v13023_v13  ;;  %5993 = vrot.lane.b32.xlu0 %v5992_v54, %s6472_s24  ;;  %v9463_v17 = vsel %vm2316_vm8, %v9315_v35, %v12241_v36  ;;  %vm12264_vm3 = vcmask 572416   ;;  %v6017_v35 = vpack.i.bf16 %v12923_v10, %v12902_v20  ;;  %v13026_v10 = vld [vmem:[#allocation14_spill] sm:$0xff] }
 0x23b   : > { %v9435_v39 = vsel %vm2316_vm8, %v9288_v42, %v13021_v62  ;;  %v9441_v11 = vsel %vm2316_vm8, %v9295_v56, %v13022_v51  ;;  %v5719_v42 = vpop.permute.xlu1 %5718  ;;  %v6002_v62 = vpack.i.bf16 %v2924_v31, %v2925_v52  ;;  %v9457_v56 = vsel %vm2316_vm8, %v9311_v59, %v12242_v40 }
 0x23c   : > { %v5721_v1 = vunpack.i.h.bf16 %v5719_v42  ;;  %v5720_v4 = vunpack.i.l.bf16 %v5719_v42  ;;  %v9469_v51 = vsel %vm2316_vm8, %v9319_v15, %v12243_v0  ;;  %v13024_v31 = vunpack.i.h.bf16 %v13017_v44  ;;  %v5714_v46 = vpop.permute.xlu0 %5713  ;;  %6008 = vrot.lane.b32.xlu1 %v6007_v29, %s6473_s25  ;;  %v13025_v29 = vld [vmem:[#allocation220_spill] sm:$0xff]  ;;  %v13028_v0 = vld [vmem:[#allocation225_spill] sm:$0xff] }
 0x23d   : > { %v5716_v52 = vunpack.i.h.bf16 %v5714_v46  ;;  %v5715_v42 = vunpack.i.l.bf16 %v5714_v46 }
 0x23e   : > { %v9475_v59 = vsel %vm2316_vm8, %v9323_v60, %v13024_v31  ;;  %v9482_v54 = vsel %vm12264_vm3, %v9178_v7, %v5720_v4  ;;  %v9486_v15 = vsel %vm12264_vm3, %v9182_v32, %v5721_v1  ;;  %v9492_v31 = vsel %vm2316_vm8, %v2306_v55, %v12244_v21  ;;  %6003 = vrot.lane.b32.xlu0 %v6002_v62, %s6472_s24  ;;  %v13027_v7 = vld [vmem:[#allocation54_spill] sm:$0xff]  ;;  %v13029_v60 = vld [vmem:[#allocation79_spill] sm:$0xff] }
 0x23f   : > { %v5729_v20 = vpop.permute.xlu1 %5728  ;;  %v6012_v4 = vpack.i.bf16 %v13027_v7, %v13026_v10  ;;  %v9500_v32 = vsel %vm12264_vm3, %v9192_v16, %v5715_v42  ;;  %v9504_v1 = vsel %vm12264_vm3, %v9196_v28, %v5716_v52  ;;  %v5061_v21 = vunpack.i.h.bf16 %v13028_v0 }
 0x240   : > { %v5731_v46 = vunpack.i.h.bf16 %v5729_v20  ;;  %v5730_v40 = vunpack.i.l.bf16 %v5729_v20  ;;  %v5060_v62 = vunpack.i.l.bf16 %v13028_v0  ;;  %v5724_v36 = vpop.permute.xlu0 %5723  ;;  %6018 = vrot.lane.b32.xlu1 %v6017_v35, %s6474_s26  ;;  %v6027_v48 = vpack.i.bf16 %v12958_v43, %v13029_v60  ;;  %v13031_v35 = vld [vmem:[#allocation226_spill] sm:$0xff]  ;;  %v13034_v60 = vld [vmem:[#allocation57_spill] sm:$0xff] }
 0x241   : > { %v5726_v52 = vunpack.i.h.bf16 %v5724_v36  ;;  %v5725_v42 = vunpack.i.l.bf16 %v5724_v36  ;;  %v13030_v20 = vunpack.i.h.bf16 %v13023_v13  ;;  %v5056_v55 = vunpack.i.h.bf16 %v13031_v35 }
 0x242   : > { %v9514_v16 = vsel %vm12264_vm3, %v9207_v53, %v5730_v40  ;;  %v9518_v28 = vsel %vm12264_vm3, %v9211_v2, %v5731_v46  ;;  %v5055_v43 = vunpack.i.l.bf16 %v13031_v35  ;;  %6013 = vrot.lane.b32.xlu0 %v6012_v4, %s6473_s25  ;;  %v13033_v40 = vld [vmem:[#allocation17_spill] sm:$0xff]  ;;  %v13035_v46 = vunpack.i.l.bf16 %v13025_v29 }
 0x243   : > { %v9524_v0 = vsel %vm2316_vm8, %v9382_v34, %v13030_v20  ;;  %v9529_v53 = vpop.permute.xlu1 %5738  ;;  %v6022_v2 = vpack.i.bf16 %v13034_v60, %v13033_v40  ;;  %v12251_v34 = vunpack.i.l.bf16 %v13036_v6  ;;  %v9542_v20 = vsel %vm12264_vm3, %v9231_v8, %v5725_v42  ;;  %v13039_v42 = vld [vmem:[#allocation228_spill] sm:$0xff] }
 0x244   : > { %13032 = vst [vmem:[#allocation11_spill] sm:$0xff] %v9529_v53  ;;  %v9537_v36 = vsel %vm2316_vm8, %v9386_v41, %v13035_v46  ;;  %v9546_v4 = vsel %vm12264_vm3, %v9235_v50, %v5726_v52  ;;  %v13037_v35 = vunpack.i.h.bf16 %v13025_v29  ;;  %v9556_v41 = vsel %vm2349_vm9, %v9407_v23, %v5060_v62  ;;  %v9562_v8 = vpop.permute.xlu0 %5733  ;;  %6028 = vrot.lane.b32.xlu1 %v6027_v48, %s6475_s27  ;;  %v13047_v52 = vld [vmem:[#allocation118_spill] sm:$0xff]  ;;  %v13049_v29 = vld [vmem:[#allocation20_spill] sm:$0xff] }
 0x245   : > { %v9560_v60 = vsel %vm2349_vm9, %v9414_v14, %v5061_v21  ;;  %13038 = vst [vmem:[#allocation145_spill] sm:$0xff] %v9562_v8  ;;  %v6037_v50 = vpack.i.bf16 %v13001_v12, %v12998_v58  ;;  %v5065_v46 = vunpack.i.l.bf16 %v13039_v42  ;;  %v9573_v62 = vsel %vm2349_vm9, %v9425_v61, %v5055_v43  ;;  %v13042_v61 = vld [vmem:[#allocation235_spill] sm:$0xff]  ;;  %v13050_v8 = vld [vmem:[#allocation24_spill] sm:$0xff] }
 0x246   : > { %v9552_v40 = vsel %vm2316_vm8, %v9398_v5, %v13037_v35  ;;  %v5066_v5 = vunpack.i.h.bf16 %v13039_v42  ;;  %v13040_v35 = vld [vmem:[#allocation234_spill] sm:$0xff]  ;;  %v9577_v14 = vsel %vm2349_vm9, %v9429_v45, %v5056_v55  ;;  %6023 = vrot.lane.b32.xlu0 %v6022_v2, %s6474_s26  ;;  %v6032_v12 = vpack.i.bf16 %v12970_v27, %v12953_v18  ;;  %v13043_v42 = vld [vmem:[#allocation27_spill] sm:$0xff] }
 0x247   : > { %v9581_v58 = vpop.permute.xlu1 %5748  ;;  %v9589_v21 = vsel %vm2349_vm9, %v9435_v39, %v12251_v34  ;;  %v12255_v43 = vunpack.i.l.bf16 %v13042_v61  ;;  %v2903_v45 = vrot.slane %v13043_v42, 7  ;;  %v13044_v55 = vld [vmem:[#allocation26_spill] sm:$0xff]  ;;  %v2905_v53 = vrot.slane %v13049_v29, 7 }
 0x248   : > { %13041 = vst [vmem:[#allocation9_spill] sm:$0xff] %v9581_v58  ;;  %v2902_v23 = vrot.slane %v13044_v55, 7  ;;  %v9594_v48 = vpop.permute.xlu0 %5743  ;;  %6038 = vrot.lane.b32.xlu1 %v6037_v50, %s6476_s28  ;;  %v13046_v2 = vld [vmem:[#allocation114_spill] sm:$0xff]  ;;  %v13051_v34 = vunpack.i.h.bf16 %v13036_v6  ;;  %v9610_v55 = vsel %vm2349_vm9, %v9445_v49, %v5065_v46  ;;  %v9614_v50 = vsel %vm2349_vm9, %v9449_v25, %v5066_v5  ;;  %v13054_v5 = vld [vmem:[#allocation67_spill] sm:$0xff] }
 0x249   : > { %13045 = vst [vmem:[#allocation147_spill] sm:$0xff] %v9594_v48  ;;  %v6047_v58 = vpack.i.bf16 %v13047_v52, %v13046_v2  ;;  %v13048_v18 = vld [vmem:[#allocation66_spill] sm:$0xff]  ;;  %v13053_v39 = vunpack.i.h.bf16 %v13040_v35  ;;  %v6042_v25 = vpack.i.bf16 %v13046_v2, %v12992_v26  ;;  %v2927_v46 = vrot.slane %v13054_v5, 7  ;;  %v13056_v2 = vld [vmem:[#allocation61_spill] sm:$0xff] }
 0x24a   : > { %v2926_v27 = vrot.slane %v13048_v18, 7  ;;  %v9606_v42 = vsel %vm2349_vm9, %v9441_v11, %v13051_v34  ;;  %v13052_v18 = vunpack.i.l.bf16 %v13040_v35  ;;  %6033 = vrot.lane.b32.xlu0 %v6032_v12, %s6475_s27  ;;  %v13055_v34 = vrot.slane %v13050_v8, 7  ;;  %v13057_v35 = vld [vmem:[#allocation62_spill] sm:$0xff] }
 0x24b   : > { %v9626_v11 = vsel %vm2349_vm9, %v9463_v17, %v13053_v39  ;;  %v5759_v49 = vpop.permute.xlu1 %5758  ;;  %v2904_v17 = vsel %vm2895_vm6, %v2902_v23, %v2903_v45  ;;  %v2929_v5 = vrot.slane %v13056_v2, 7  ;;  %v2930_v44 = vrot.slane %v13057_v35, 7 }
 0x24c   : > { %v9620_v29 = vsel %vm2349_vm9, %v9457_v56, %v13052_v18  ;;  %v9637_v56 = vsel %vm2349_vm9, %v9469_v51, %v12255_v43  ;;  %v5761_v18 = vunpack.i.h.bf16 %v5759_v49  ;;  %v5760_v48 = vunpack.i.l.bf16 %v5759_v49  ;;  %v5754_v39 = vpop.permute.xlu0 %5753  ;;  %6048 = vrot.lane.b32.xlu1 %v6047_v58, %s6471_s23  ;;  %v13058_v58 = vld [vmem:[#allocation236_spill] sm:$0xff] }
 0x24d   : > { %v6057_v12 = vpack.i.bf16 %v2926_v27, %v2903_v45  ;;  %v2907_v26 = vsel %vm2895_vm6, %v2905_v53, %v13055_v34  ;;  %v5756_v43 = vunpack.i.h.bf16 %v5754_v39  ;;  %v5755_v13 = vunpack.i.l.bf16 %v5754_v39 }
 0x24e   : > { %v9648_v51 = vsel %vm12264_vm3, %v9329_v57, %v5760_v48  ;;  %v9652_v49 = vsel %vm12264_vm3, %v9333_v24, %v5761_v18  ;;  %6043 = vrot.lane.b32.xlu0 %v6042_v25, %s6476_s28  ;;  %v6052_v2 = vpack.i.bf16 %v2904_v17, %v2902_v23  ;;  %v2928_v35 = vsel %vm2895_vm6, %v2926_v27, %v2927_v46  ;;  %v13059_v48 = vld [vmem:[#allocation4_spill] sm:$0xff]  ;;  %v13061_v25 = vld [vmem:[#allocation237_spill] sm:$0xff] }
 0x24f   : > { %v5769_v34 = vpop.permute.xlu1 %5768  ;;  %v9660_v57 = vsel %vm12264_vm3, %v9343_v38, %v5755_v13  ;;  %v9664_v24 = vsel %vm12264_vm3, %v13059_v48, %v5756_v43  ;;  %v13060_v45 = vunpack.i.h.bf16 %v13042_v61  ;;  %v12260_v37 = vunpack.i.l.bf16 %v13061_v25  ;;  %v13065_v48 = vld [vmem:[#allocation242_spill] sm:$0xff] }
 0x250   : > { %v5771_v18 = vunpack.i.h.bf16 %v5769_v34  ;;  %v5770_v39 = vunpack.i.l.bf16 %v5769_v34  ;;  %v5764_v23 = vpop.permute.xlu0 %5763  ;;  %6058 = vrot.lane.b32.xlu1 %v6057_v12, %s6472_s24  ;;  %v6067_v27 = vpack.i.bf16 %v2907_v26, %v2905_v53  ;;  %v2931_v38 = vsel %vm2895_vm6, %v2929_v5, %v2930_v44 }
 0x251   : > { %v2367_v3 = vsel %vm2349_vm9, %v9475_v59, %v13060_v45  ;;  %v5766_v17 = vunpack.i.h.bf16 %v5764_v23  ;;  %v5765_v34 = vunpack.i.l.bf16 %v5764_v23  ;;  %v13062_v59 = vunpack.i.l.bf16 %v13058_v58 }
 0x252   : > { %v9675_v13 = vsel %vm12264_vm3, %v9355_v22, %v5770_v39  ;;  %v9679_v43 = vsel %vm12264_vm3, %v9359_v47, %v5771_v18  ;;  %v13063_v12 = vunpack.i.h.bf16 %v13058_v58  ;;  %6053 = vrot.lane.b32.xlu0 %v6052_v2, %s6472_s24  ;;  %v6062_v47 = vpack.i.bf16 %v2927_v46, %v2928_v35  ;;  %v13066_v2 = vld [vmem:[#allocation243_spill] sm:$0xff] }
 0x253   : > { %v2372_v45 = vsel %vm2349_vm9, %v9492_v31, %v13062_v59  ;;  %v9691_v22 = vpop.permute.xlu1 %5778  ;;  %v5141_v18 = vunpack.i.h.bf16 %v13065_v48  ;;  %v5140_v39 = vunpack.i.l.bf16 %v13065_v48  ;;  %v9697_v23 = vsel %vm12264_vm3, %v9372_v19, %v5765_v34  ;;  %v13068_v19 = vld [vmem:[#allocation246_spill] sm:$0xff] }
 0x254   : > { %v2373_v53 = vsel %vm2349_vm9, %v9524_v0, %v13063_v12  ;;  %13064 = vst [vmem:[#allocation248_spill] sm:$0xff] %v9691_v22  ;;  %v9701_v31 = vsel %vm12264_vm3, %v9376_v9, %v5766_v17  ;;  %v2370_v0 = vsel %vm2349_vm9, %v9537_v36, %v12260_v37  ;;  %v5136_v59 = vunpack.i.h.bf16 %v13066_v2  ;;  %v9709_v35 = vpop.permute.xlu0 %5773  ;;  %6068 = vrot.lane.b32.xlu1 %v6067_v27, %s6472_s24  ;;  %v13069_v9 = vld [vmem:[#allocation247_spill] sm:$0xff]  ;;  %v13071_v37 = vld [vmem:[#allocation253_spill] sm:$0xff]  ;;  %v13074_v48 = vld [vmem:[#allocation254_spill] sm:$0xff] }
 0x255   : > { %v5135_v46 = vunpack.i.l.bf16 %v13066_v2  ;;  %13067 = vst [vmem:[#allocation22_spill] sm:$0xff] %v9709_v35  ;;  %v6077_v12 = vpack.i.bf16 %v2930_v44, %v2931_v38  ;;  %v5146_v17 = vunpack.i.h.bf16 %v13069_v9  ;;  %v5145_v26 = vunpack.i.l.bf16 %v13069_v9 }
 0x256   : > { %v13070_v22 = vunpack.i.h.bf16 %v13061_v25  ;;  %v12262_v35 = vunpack.i.l.bf16 %v13071_v37  ;;  %6063 = vrot.lane.b32.xlu0 %v6062_v47, %s6472_s24  ;;  %v13073_v27 = vrot.slane %v13050_v8, 7  ;;  %v2385_v34 = vsel %vm2382_vm10, %v9556_v41, %v5140_v39  ;;  %v13075_v8 = vld [vmem:[#allocation255_spill] sm:$0xff]  ;;  %v13077_v41 = vld [vmem:[#allocation25_spill] sm:$0xff] }
 0x257   : > { %v9723_v44 = vpop.permute.xlu1 %5788  ;;  %v9731_v9 = vsel %vm2382_vm10, %v9560_v60, %v5141_v18  ;;  %v2383_v2 = vsel %vm2382_vm10, %v9573_v62, %v5135_v46  ;;  %v9739_v47 = vsel %vm2382_vm10, %v9577_v14, %v5136_v59  ;;  %v13078_v60 = vld [vmem:[#allocation65_spill] sm:$0xff]  ;;  %v13079_v39 = vunpack.i.l.bf16 %v13068_v19 }
 0x258   : > { %v2371_v36 = vsel %vm2349_vm9, %v9552_v40, %v13070_v22  ;;  %13072 = vst [vmem:[#allocation149_spill] sm:$0xff] %v9723_v44  ;;  %v6072_v38 = vpack.i.bf16 %v2929_v5, %v13073_v27  ;;  %v12266_v22 = vunpack.i.l.bf16 %v13074_v48  ;;  %v12268_v5 = vunpack.i.l.bf16 %v13075_v8  ;;  %v9742_v27 = vpop.permute.xlu0 %5783  ;;  %6078 = vrot.lane.b32.xlu1 %v6077_v12, %s6472_s24 }
 0x259   : > { %13076 = vst [vmem:[#allocation159_spill] sm:$0xff] %v9742_v27  ;;  %v6087_v18 = vpack.i.bf16 %v13078_v60, %v13077_v41  ;;  %v9751_v40 = vsel %vm2382_vm10, %v9589_v21, %v13079_v39  ;;  %v13080_v62 = vunpack.i.h.bf16 %v13068_v19  ;;  %v9761_v59 = vsel %vm2382_vm10, %v9610_v55, %v5145_v26  ;;  %v13082_v26 = vld [vmem:[#allocation30_spill] sm:$0xff]  ;;  %v13085_v39 = vld [vmem:[#allocation256_spill] sm:$0xff] }
 0x25a   : > { %v9765_v46 = vsel %vm2382_vm10, %v9614_v50, %v5146_v17  ;;  %v9771_v21 = vsel %vm2382_vm10, %v9620_v29, %v12262_v35  ;;  %v13081_v12 = vunpack.i.h.bf16 %v13071_v37  ;;  %6073 = vrot.lane.b32.xlu0 %v6072_v38, %s6472_s24  ;;  %v13083_v50 = vld [vmem:[#allocation69_spill] sm:$0xff]  ;;  %v9787_v29 = vsel %vm2382_vm10, %v9637_v56, %v12266_v22  ;;  %v13087_v22 = vld [vmem:[#allocation68_spill] sm:$0xff]  ;;  %v13091_v37 = vld [vmem:[#allocation263_spill] sm:$0xff] }
 0x25b   : > { %v9757_v14 = vsel %vm2382_vm10, %v9606_v42, %v13080_v62  ;;  %v5799_v55 = vpop.permute.xlu1 %5798  ;;  %v6082_v17 = vpack.i.bf16 %v13083_v50, %v13082_v26  ;;  %v13084_v62 = vunpack.i.h.bf16 %v13074_v48  ;;  %v9797_v38 = vsel %vm2382_vm10, %v2372_v45, %v12268_v5  ;;  %v13086_v56 = vld [vmem:[#allocation29_spill] sm:$0xff] }
 0x25c   : > { %v9777_v42 = vsel %vm2382_vm10, %v9626_v11, %v13081_v12  ;;  %v5801_v11 = vunpack.i.h.bf16 %v5799_v55  ;;  %v5800_v12 = vunpack.i.l.bf16 %v5799_v55  ;;  %vm2646_vm3 = vcmask 613376   ;;  %v5794_v27 = vpop.permute.xlu0 %5793  ;;  %6088 = vrot.lane.b32.xlu1 %v6087_v18, %s6473_s25 }
 0x25d   : > { %v9792_v35 = vsel %vm2382_vm10, %v2367_v3, %v13084_v62  ;;  %v6097_v25 = vpack.i.bf16 %v13087_v22, %v13086_v56  ;;  %v5796_v62 = vunpack.i.h.bf16 %v5794_v27  ;;  %v5795_v45 = vunpack.i.l.bf16 %v5794_v27 }
 0x25e   : > { %v9805_v3 = vsel %vm2646_vm3, %v9482_v54, %v5800_v12  ;;  %v9809_v55 = vsel %vm2646_vm3, %v9486_v15, %v5801_v11  ;;  %v13090_v5 = vunpack.i.h.bf16 %v13075_v8  ;;  %v5220_v48 = vunpack.i.l.bf16 %v13091_v37  ;;  %6083 = vrot.lane.b32.xlu0 %v6082_v17, %s6473_s25  ;;  %v13092_v54 = vld [vmem:[#allocation33_spill] sm:$0xff]  ;;  %v13093_v12 = vld [vmem:[#allocation71_spill] sm:$0xff] }
 0x25f   : > { %13088 = vst [vmem:[#allocation161_spill] sm:$0xff] %v9805_v3  ;;  %13089 = vst [vmem:[#allocation165_spill] sm:$0xff] %v9809_v55  ;;  %v5809_v22 = vpop.permute.xlu1 %5808  ;;  %v6092_v56 = vpack.i.bf16 %v13093_v12, %v13092_v54  ;;  %v9823_v15 = vsel %vm2646_vm3, %v9500_v32, %v5795_v45  ;;  %v9827_v27 = vsel %vm2646_vm3, %v9504_v1, %v5796_v62  ;;  %v13096_v11 = vunpack.i.l.bf16 %v13085_v39  ;;  %v13097_v3 = vld [vmem:[#allocation264_spill] sm:$0xff]  ;;  %v13099_v45 = vld [vmem:[#allocation94_spill] sm:$0xff] }
 0x260   : > { %v9814_v44 = vsel %vm2382_vm10, %v2373_v53, %v13090_v5  ;;  %13094 = vst [vmem:[#allocation167_spill] sm:$0xff] %v9823_v15  ;;  %13095 = vst [vmem:[#allocation64_spill] sm:$0xff] %v9827_v27  ;;  %v5811_v53 = vunpack.i.h.bf16 %v5809_v22  ;;  %v5810_v5 = vunpack.i.l.bf16 %v5809_v22  ;;  %v5221_v17 = vunpack.i.h.bf16 %v13091_v37  ;;  %v5804_v54 = vpop.permute.xlu0 %5803  ;;  %6098 = vrot.lane.b32.xlu1 %v6097_v25, %s6474_s26  ;;  %v13098_v32 = vld [vmem:[#allocation80_spill] sm:$0xff] }
 0x261   : > { %v9832_v18 = vsel %vm2382_vm10, %v2370_v0, %v13096_v11  ;;  %v5215_v55 = vunpack.i.l.bf16 %v13097_v3  ;;  %v6107_v12 = vpack.i.bf16 %v13099_v45, %v13098_v32  ;;  %v5806_v15 = vunpack.i.h.bf16 %v5804_v54  ;;  %v13106_v45 = vld [vmem:[#allocation70_spill] sm:$0xff]  ;;  %v13126_v27 = vld [vmem:[#allocation164_spill] sm:$0xff] }
 0x262   : > { %v5805_v1 = vunpack.i.l.bf16 %v5804_v54  ;;  %v9841_v62 = vsel %vm2646_vm3, %v9514_v16, %v5810_v5  ;;  %v9845_v0 = vsel %vm2646_vm3, %v9518_v28, %v5811_v53  ;;  %v13102_v37 = vunpack.i.h.bf16 %v13085_v39  ;;  %6093 = vrot.lane.b32.xlu0 %v6092_v56, %s6474_s26  ;;  %v13104_v16 = vld [vmem:[#allocation81_spill] sm:$0xff]  ;;  %v13105_v5 = vld [vmem:[#allocation96_spill] sm:$0xff]  ;;  %v13115_v53 = vld [vmem:[#allocation38_spill] sm:$0xff] }
 0x263   : > { %13100 = vst [vmem:[#allocation10_spill] sm:$0xff] %v9841_v62  ;;  %13101 = vst [vmem:[#allocation177_spill] sm:$0xff] %v9845_v0  ;;  %v9853_v25 = vsel %vm2415_vm11, %v2385_v34, %v5220_v48  ;;  %v5216_v11 = vunpack.i.h.bf16 %v13097_v3  ;;  %v9857_v54 = vpop.permute.xlu1 %5818  ;;  %v6102_v32 = vpack.i.bf16 %v13105_v5, %v13104_v16  ;;  %v9869_v34 = vsel %vm2646_vm3, %v9546_v4, %v5806_v15  ;;  %v13109_v56 = vld [vmem:[#allocation141_spill] sm:$0xff] }
 0x264   : > { %v9850_v22 = vsel %vm2382_vm10, %v2371_v36, %v13102_v37  ;;  %13103 = vst [vmem:[#allocation176_spill] sm:$0xff] %v9857_v54  ;;  %v9865_v36 = vsel %vm2646_vm3, %v9542_v20, %v5805_v1  ;;  %13108 = vst [vmem:[#allocation28_spill] sm:$0xff] %v9869_v34  ;;  %v9873_v48 = vsel %vm2415_vm11, %v9731_v9, %v5221_v17  ;;  %v5226_v37 = vunpack.i.h.bf16 %v13109_v56  ;;  %v9879_v16 = vpop.permute.xlu0 %5813  ;;  %v13113_v15 = vld [vmem:[#allocation169_spill] sm:$0xff] }
 0x265   : > { %13107 = vst [vmem:[#allocation21_spill] sm:$0xff] %v9865_v36  ;;  %v9876_v3 = vsel %vm2415_vm11, %v2383_v2, %v5215_v55  ;;  %13110 = vst [vmem:[#allocation16_spill] sm:$0xff] %v9879_v16  ;;  %6108 = vrot.lane.b32.xlu1 %v6107_v12, %s6475_s27  ;;  %v13111_v20 = vrot.slane %v13077_v41, 3  ;;  %v13112_v1 = vrot.slane %v13078_v60, 3  ;;  %v5225_v4 = vunpack.i.l.bf16 %v13109_v56  ;;  %v13114_v9 = vld [vmem:[#allocation37_spill] sm:$0xff] }
 0x266   : > { %v2908_v17 = vrot.slane %v13114_v9, 7  ;;  %v9892_v55 = vsel %vm2415_vm11, %v9739_v47, %v5216_v11  ;;  %v13116_v12 = vld [vmem:[#allocation73_spill] sm:$0xff]  ;;  %6103 = vrot.lane.b32.xlu0 %v6102_v32, %s6475_s27  ;;  %v13120_v47 = vunpack.i.h.bf16 %v13106_v45  ;;  %v13121_v32 = vld [vmem:[#allocation171_spill] sm:$0xff]  ;;  %v13127_v2 = vunpack.i.l.bf16 %v13113_v15 }
 0x267   : > { %v6117_v5 = vpack.i.bf16 %v13112_v1, %v13111_v20  ;;  %v9897_v36 = vpop.permute.xlu1 %5828  ;;  %v13118_v20 = vld [vmem:[#allocation106_spill] sm:$0xff]  ;;  %v13119_v1 = vunpack.i.l.bf16 %v13106_v45 }
 0x268   : > { %13117 = vst [vmem:[#allocation151_spill] sm:$0xff] %v9897_v36  ;;  %v6112_v56 = vpack.i.bf16 %v13047_v52, %v13118_v20  ;;  %v9911_v11 = vsel %vm2415_vm11, %v9757_v14, %v13120_v47  ;;  %v9916_v28 = vpop.permute.xlu0 %5823  ;;  %v13123_v52 = vld [vmem:[#allocation109_spill] sm:$0xff]  ;;  %v13124_v20 = vld [vmem:[#allocation208_spill] sm:$0xff]  ;;  %v2933_v36 = vrot.slane %v13126_v27, 7  ;;  %v9925_v14 = vsel %vm2415_vm11, %v9761_v59, %v5225_v4 }
 0x269   : > { %v9905_v9 = vsel %vm2415_vm11, %v9751_v40, %v13119_v1  ;;  %13122 = vst [vmem:[#allocation43_spill] sm:$0xff] %v9916_v28  ;;  %6118 = vrot.lane.b32.xlu1 %v6117_v5, %s6476_s28  ;;  %v6127_v40 = vpack.i.bf16 %v13124_v20, %v13123_v52  ;;  %v13125_v1 = vld [vmem:[#allocation163_spill] sm:$0xff]  ;;  %v9929_v47 = vsel %vm2415_vm11, %v9765_v46, %v5226_v37  ;;  %v13128_v20 = vrot.slane %v13115_v53, 7  ;;  %v13131_v37 = vld [vmem:[#allocation172_spill] sm:$0xff] }
 0x26a   : > { %v2932_v34 = vrot.slane %v13125_v1, 7  ;;  %v9935_v62 = vsel %vm2415_vm11, %v9771_v21, %v13127_v2  ;;  %v13129_v28 = vunpack.i.h.bf16 %v13113_v15  ;;  %v13130_v4 = vunpack.i.l.bf16 %v13116_v12  ;;  %6113 = vrot.lane.b32.xlu0 %v6112_v56, %s6476_s28 }
 0x26b   : > { %v2910_v0 = vsel %vm2895_vm6, %v2908_v17, %v13128_v20  ;;  %v5839_v21 = vpop.permute.xlu1 %5838  ;;  %v13132_v2 = vunpack.i.h.bf16 %v13116_v12 }
 0x26c   : > { %v9944_v59 = vsel %vm2415_vm11, %v9777_v42, %v13129_v28  ;;  %v9950_v46 = vsel %vm2415_vm11, %v9787_v29, %v13130_v4  ;;  %v13133_v42 = vunpack.i.l.bf16 %v13121_v32  ;;  %v5841_v39 = vunpack.i.h.bf16 %v5839_v21  ;;  %v5834_v15 = vpop.permute.xlu0 %5833 }
 0x26d   : > { %v9958_v20 = vsel %vm2415_vm11, %v9792_v35, %v13132_v2  ;;  %v5840_v29 = vunpack.i.l.bf16 %v5839_v21  ;;  %v13134_v4 = vunpack.i.h.bf16 %v13121_v32  ;;  %6128 = vrot.lane.b32.xlu1 %v6127_v40, %s6471_s23  ;;  %v6137_v35 = vpack.i.bf16 %v2910_v0, %v2908_v17  ;;  %v13138_v17 = vld [vmem:[#allocation209_spill] sm:$0xff] }
 0x26e   : > { %v9964_v28 = vsel %vm2415_vm11, %v9797_v38, %v13133_v42  ;;  %v2934_v2 = vsel %vm2895_vm6, %v2932_v34, %v2933_v36  ;;  %v9981_v21 = vsel %vm2646_vm3, %v9652_v49, %v5841_v39  ;;  %v5836_v42 = vunpack.i.h.bf16 %v5834_v15  ;;  %6123 = vrot.lane.b32.xlu0 %v6117_v5, %s6471_s23  ;;  %v13139_v40 = vld [vmem:[#allocation205_spill] sm:$0xff] }
 0x26f   : > { %v9970_v56 = vsel %vm2415_vm11, %v9814_v44, %v13134_v4  ;;  %v9977_v38 = vsel %vm2646_vm3, %v9648_v51, %v5840_v29  ;;  %13136 = vst [vmem:[#allocation55_spill] sm:$0xff] %v9981_v21  ;;  %v5835_v16 = vunpack.i.l.bf16 %v5834_v15  ;;  %v13137_v44 = vunpack.i.l.bf16 %v13131_v37  ;;  %v5849_v0 = vpop.permute.xlu1 %5848  ;;  %v13140_v51 = vld [vmem:[#allocation32_spill] sm:$0xff] }
 0x270   : > { %13135 = vst [vmem:[#allocation175_spill] sm:$0xff] %v9977_v38  ;;  %v6132_v54 = vpack.i.bf16 %v13139_v40, %v13138_v17  ;;  %v2912_v29 = vrot.slane %v13140_v51, 7  ;;  %v13141_v38 = vld [vmem:[#allocation31_spill] sm:$0xff]  ;;  %v10000_v39 = vsel %vm2646_vm3, %v9664_v24, %v5836_v42  ;;  %v5850_v15 = vunpack.i.l.bf16 %v5849_v0  ;;  %v5844_v61 = vpop.permute.xlu0 %5843  ;;  %v13145_v51 = vld [vmem:[#allocation244_spill] sm:$0xff] }
 0x271   : > { %v9987_v4 = vsel %vm2415_vm11, %v9832_v18, %v13137_v44  ;;  %v2911_v12 = vrot.slane %v13141_v38, 7  ;;  %v9996_v49 = vsel %vm2646_vm3, %v9660_v57, %v5835_v16  ;;  %13143 = vst [vmem:[#allocation74_spill] sm:$0xff] %v10000_v39  ;;  %v5851_v18 = vunpack.i.h.bf16 %v5849_v0  ;;  %v13144_v44 = vld [vmem:[#allocation88_spill] sm:$0xff]  ;;  %6138 = vrot.lane.b32.xlu1 %v6137_v35, %s6472_s24  ;;  %v13148_v16 = vld [vmem:[#allocation198_spill] sm:$0xff] }
 0x272   : > { %13142 = vst [vmem:[#allocation178_spill] sm:$0xff] %v9996_v49  ;;  %v5301_v5 = vunpack.i.h.bf16 %v13144_v44  ;;  %v5300_v21 = vunpack.i.l.bf16 %v13144_v44  ;;  %v6147_v17 = vpack.i.bf16 %v2933_v36, %v2934_v2  ;;  %v2935_v38 = vrot.slane %v13145_v51, 7  ;;  %v13149_v44 = vld [vmem:[#allocation95_spill] sm:$0xff]  ;;  %6133 = vrot.lane.b32.xlu0 %v6132_v54, %s6471_s23 }
 0x273   : > { %v5846_v60 = vunpack.i.h.bf16 %v5844_v61  ;;  %v5845_v1 = vunpack.i.l.bf16 %v5844_v61  ;;  %v10008_v57 = vsel %vm2646_vm3, %v9675_v13, %v5850_v15  ;;  %v10012_v24 = vsel %vm2646_vm3, %v9679_v43, %v5851_v18  ;;  %v10018_v36 = vpop.permute.xlu1 %5858  ;;  %v13153_v18 = vld [vmem:[#allocation245_spill] sm:$0xff] }
 0x274   : > { %13146 = vst [vmem:[#allocation183_spill] sm:$0xff] %v10008_v57  ;;  %13147 = vst [vmem:[#allocation75_spill] sm:$0xff] %v10012_v24  ;;  %v5296_v42 = vunpack.i.h.bf16 %v13148_v16  ;;  %v5295_v0 = vunpack.i.l.bf16 %v13148_v16  ;;  %v5310_v49 = vunpack.i.l.bf16 %v13149_v44  ;;  %v13150_v61 = vrot.slane %v13115_v53, 7  ;;  %v13156_v57 = vld [vmem:[#allocation99_spill] sm:$0xff] }
 0x275   : > { %v10024_v13 = vsel %vm2646_vm3, %v9697_v23, %v5845_v1  ;;  %v10028_v43 = vsel %vm2646_vm3, %v9701_v31, %v5846_v60  ;;  %v2913_v2 = vsel %vm2895_vm6, %v2911_v12, %v2912_v29  ;;  %v2936_v15 = vrot.slane %v13153_v18, 7  ;;  %v10039_v23 = vpop.permute.xlu0 %5853  ;;  %6148 = vrot.lane.b32.xlu1 %v6147_v17, %s6472_s24  ;;  %v13155_v60 = vld [vmem:[#allocation97_spill] sm:$0xff] }
 0x276   : > { %v6142_v35 = vpack.i.bf16 %v2932_v34, %v13150_v61  ;;  %13151 = vst [vmem:[#allocation93_spill] sm:$0xff] %v10024_v13  ;;  %13152 = vst [vmem:[#allocation184_spill] sm:$0xff] %v10028_v43  ;;  %v13154_v16 = vunpack.i.h.bf16 %v13131_v37  ;;  %v2451_v53 = vsel %vm2448_vm12, %v9853_v25, %v5300_v21  ;;  %v5311_v34 = vunpack.i.h.bf16 %v13149_v44  ;;  %v13157_v21 = vld [vmem:[#allocation203_spill] sm:$0xff]  ;;  %v13171_v37 = vld [vmem:[#allocation34_spill] sm:$0xff] }
 0x277   : > { %v6157_v31 = vpack.i.bf16 %v2935_v38, %v2912_v29  ;;  %v5306_v1 = vunpack.i.h.bf16 %v13155_v60  ;;  %v5305_v61 = vunpack.i.l.bf16 %v13155_v60  ;;  %v5341_v24 = vunpack.i.h.bf16 %v13156_v57  ;;  %v10052_v17 = vpop.permute.xlu1 %5868 }
 0x278   : > { %v2437_v54 = vsel %vm2415_vm11, %v9850_v22, %v13154_v16  ;;  %v5340_v13 = vunpack.i.l.bf16 %v13156_v57  ;;  %v2452_v22 = vsel %vm2448_vm12, %v9873_v48, %v5301_v5  ;;  %v2449_v25 = vsel %vm2448_vm12, %v9876_v3, %v5295_v0  ;;  %6143 = vrot.lane.b32.xlu0 %v6142_v35, %s6472_s24  ;;  %13158 = vst [vmem:[#allocation193_spill] sm:$0xff] %v10052_v17  ;;  %v13159_v5 = vld [vmem:[#allocation204_spill] sm:$0xff] }
 0x279   : > { %v5335_v44 = vunpack.i.l.bf16 %v13157_v21  ;;  %v6152_v29 = vpack.i.bf16 %v2913_v2, %v2911_v12  ;;  %v2450_v16 = vsel %vm2448_vm12, %v9892_v55, %v5296_v42  ;;  %v2455_v60 = vsel %vm2448_vm12, %v9905_v9, %v5310_v49  ;;  %v10064_v43 = vpop.permute.xlu0 %5863  ;;  %6158 = vrot.lane.b32.xlu1 %v6157_v31, %s6472_s24  ;;  %v13161_v12 = vld [vmem:[#allocation40_spill] sm:$0xff]  ;;  %v13162_v55 = vld [vmem:[#allocation51_spill] sm:$0xff] }
 0x27a   : > { %v5336_v57 = vunpack.i.h.bf16 %v13157_v21  ;;  %v2937_v48 = vsel %vm2895_vm6, %v2935_v38, %v2936_v15  ;;  %v2456_v3 = vsel %vm2448_vm12, %v9911_v11, %v5311_v34  ;;  %v5351_v0 = vunpack.i.h.bf16 %v13159_v5  ;;  %13160 = vst [vmem:[#allocation185_spill] sm:$0xff] %v10064_v43  ;;  %v13163_v34 = vld [vmem:[#allocation197_spill] sm:$0xff] }
 0x27b   : > { %v5350_v35 = vunpack.i.l.bf16 %v13159_v5  ;;  %v6167_v42 = vpack.i.bf16 %v13162_v55, %v13161_v12  ;;  %v2453_v9 = vsel %vm2448_vm12, %v9925_v14, %v5305_v61  ;;  %v2454_v49 = vsel %vm2448_vm12, %v9929_v47, %v5306_v1  ;;  %v10082_v5 = vpop.permute.xlu1 %5878  ;;  %v13164_v1 = vld [vmem:[#allocation104_spill] sm:$0xff]  ;;  %v13240_v43 = vld [vmem:[#allocation45_spill] sm:$0xff] }
 0x27c   : > { %v2467_v11 = vsel %vm2448_vm12, %v9935_v62, %v5340_v13  ;;  %v2468_v38 = vsel %vm2448_vm12, %v9944_v59, %v5341_v24  ;;  %v2465_v2 = vsel %vm2448_vm12, %v9950_v46, %v5335_v44  ;;  %v5346_v31 = vunpack.i.h.bf16 %v13163_v34  ;;  %6153 = vrot.lane.b32.xlu0 %v6152_v29, %s6472_s24  ;;  %v13165_v59 = vld [vmem:[#allocation105_spill] sm:$0xff]  ;;  %v13174_v55 = vld [vmem:[#allocation36_spill] sm:$0xff] }
 0x27d   : > { %v5345_v21 = vunpack.i.l.bf16 %v13163_v34  ;;  %v6162_v14 = vpack.i.bf16 %v2936_v15, %v2937_v48  ;;  %v2466_v47 = vsel %vm2448_vm12, %v9958_v20, %v5336_v57  ;;  %v5381_v62 = vunpack.i.h.bf16 %v13164_v1  ;;  %v10094_v29 = vpop.permute.xlu0 %5873  ;;  %6168 = vrot.lane.b32.xlu1 %v6167_v42, %s6473_s25  ;;  %v13166_v20 = vld [vmem:[#allocation259_spill] sm:$0xff] }
 0x27e   : > { %v5380_v13 = vunpack.i.l.bf16 %v13164_v1  ;;  %v5375_v24 = vunpack.i.l.bf16 %v13165_v59  ;;  %v2471_v46 = vsel %vm2448_vm12, %v9964_v28, %v5350_v35  ;;  %v2472_v61 = vsel %vm2448_vm12, %v9970_v56, %v5351_v0  ;;  %v13167_v57 = vld [vmem:[#allocation107_spill] sm:$0xff]  ;;  %v13168_v1 = vld [vmem:[#allocation108_spill] sm:$0xff]  ;;  %v13169_v35 = vld [vmem:[#allocation110_spill] sm:$0xff] }
 0x27f   : > { %v5376_v44 = vunpack.i.h.bf16 %v13165_v59  ;;  %v6177_v15 = vpack.i.bf16 %v13166_v20, %v13153_v18  ;;  %v5391_v48 = vunpack.i.h.bf16 %v13167_v57  ;;  %v5390_v34 = vunpack.i.l.bf16 %v13167_v57  ;;  %v10108_v42 = vpop.permute.xlu1 %5888 }
 0x280   : > { %v5386_v39 = vunpack.i.h.bf16 %v13168_v1  ;;  %v5385_v28 = vunpack.i.l.bf16 %v13168_v1  ;;  %v2469_v56 = vsel %vm2448_vm12, %v9987_v4, %v5345_v21  ;;  %v2470_v0 = vsel %vm2448_vm12, %v2437_v54, %v5346_v31  ;;  %6163 = vrot.lane.b32.xlu0 %v6162_v14, %s6472_s24  ;;  %13170 = vst [vmem:[#allocation90_spill] sm:$0xff] %v10108_v42  ;;  %v13172_v54 = vld [vmem:[#allocation112_spill] sm:$0xff] }
 0x281   : > { %v5420_v59 = vunpack.i.l.bf16 %v13169_v35  ;;  %v6172_v18 = vpack.i.bf16 %v13145_v51, %v13171_v37  ;;  %v2484_v57 = vsel %vm2481_vm13, %v2451_v53, %v5380_v13  ;;  %v2485_v17 = vsel %vm2481_vm13, %v2452_v22, %v5381_v62  ;;  %v10119_v14 = vpop.permute.xlu0 %5883  ;;  %6178 = vrot.lane.b32.xlu1 %v6177_v15, %s6473_s25  ;;  %v13175_v51 = vld [vmem:[#allocation265_spill] sm:$0xff] }
 0x282   : > { %v2482_v1 = vsel %vm2481_vm13, %v2449_v25, %v5375_v24  ;;  %v5421_v27 = vunpack.i.h.bf16 %v13169_v35  ;;  %v2483_v4 = vsel %vm2481_vm13, %v2450_v16, %v5376_v44  ;;  %v5416_v31 = vunpack.i.h.bf16 %v13172_v54  ;;  %13173 = vst [vmem:[#allocation191_spill] sm:$0xff] %v10119_v14  ;;  %v13178_v13 = vld [vmem:[#allocation113_spill] sm:$0xff] }
 0x283   : > { %v5415_v21 = vunpack.i.l.bf16 %v13172_v54  ;;  %v6187_v41 = vpack.i.bf16 %v13175_v51, %v13174_v55  ;;  %v2488_v53 = vsel %vm2481_vm13, %v2455_v60, %v5390_v34  ;;  %v2489_v22 = vsel %vm2481_vm13, %v2456_v3, %v5391_v48  ;;  %v10136_v15 = vpop.permute.xlu1 %5898  ;;  %v13180_v51 = vld [vmem:[#allocation44_spill] sm:$0xff]  ;;  %v13181_v60 = vld [vmem:[#allocation59_spill] sm:$0xff]  ;;  %v13186_v54 = vld [vmem:[#allocation190_spill] sm:$0xff] }
 0x284   : > { %v10127_v25 = vsel %vm2481_vm13, %v2453_v9, %v5385_v28  ;;  %v10130_v16 = vsel %vm2481_vm13, %v2454_v49, %v5386_v39  ;;  %v2500_v62 = vsel %vm2481_vm13, %v2467_v11, %v5420_v59  ;;  %v5431_v24 = vunpack.i.h.bf16 %v13178_v13  ;;  %6173 = vrot.lane.b32.xlu0 %v6172_v18, %s6473_s25  ;;  %13179 = vst [vmem:[#allocation195_spill] sm:$0xff] %v10136_v15  ;;  %v13182_v9 = vld [vmem:[#allocation115_spill] sm:$0xff]  ;;  %v13183_v49 = vld [vmem:[#allocation117_spill] sm:$0xff] }
 0x285   : > { %13176 = vst [vmem:[#allocation194_spill] sm:$0xff] %v10127_v25  ;;  %13177 = vst [vmem:[#allocation192_spill] sm:$0xff] %v10130_v16  ;;  %v5430_v44 = vunpack.i.l.bf16 %v13178_v13  ;;  %v6182_v55 = vpack.i.bf16 %v13181_v60, %v13180_v51  ;;  %v2501_v3 = vsel %vm2481_vm13, %v2468_v38, %v5421_v27  ;;  %v5426_v48 = vunpack.i.h.bf16 %v13182_v9  ;;  %v10147_v18 = vpop.permute.xlu0 %5893  ;;  %6188 = vrot.lane.b32.xlu1 %v6187_v41, %s6474_s26  ;;  %v13185_v59 = vld [vmem:[#allocation85_spill] sm:$0xff]  ;;  %v13187_v27 = vld [vmem:[#allocation119_spill] sm:$0xff] }
 0x286   : > { %v5425_v39 = vunpack.i.l.bf16 %v13182_v9  ;;  %v5460_v34 = vunpack.i.l.bf16 %v13183_v49  ;;  %v2498_v11 = vsel %vm2481_vm13, %v2465_v2, %v5415_v21  ;;  %v2499_v28 = vsel %vm2481_vm13, %v2466_v47, %v5416_v31  ;;  %13184 = vst [vmem:[#allocation15_spill] sm:$0xff] %v10147_v18  ;;  %v13188_v60 = vld [vmem:[#allocation120_spill] sm:$0xff]  ;;  %v13191_v31 = vld [vmem:[#allocation122_spill] sm:$0xff] }
 0x287   : > { %v5461_v35 = vunpack.i.h.bf16 %v13183_v49  ;;  %v6197_v13 = vpack.i.bf16 %v13186_v54, %v13185_v59  ;;  %v5456_v38 = vunpack.i.h.bf16 %v13187_v27  ;;  %v5455_v51 = vunpack.i.l.bf16 %v13187_v27  ;;  %v10164_v41 = vpop.permute.xlu1 %5908  ;;  %v13192_v49 = vld [vmem:[#allocation266_spill] sm:$0xff] }
 0x288   : > { %v5471_v9 = vunpack.i.h.bf16 %v13188_v60  ;;  %v5470_v16 = vunpack.i.l.bf16 %v13188_v60  ;;  %v10157_v2 = vsel %vm2481_vm13, %v2471_v46, %v5430_v44  ;;  %v10160_v47 = vsel %vm2481_vm13, %v2472_v61, %v5431_v24  ;;  %6183 = vrot.lane.b32.xlu0 %v6182_v55, %s6474_s26  ;;  %v13193_v59 = vld [vmem:[#allocation262_spill] sm:$0xff]  ;;  %v13196_v44 = vld [vmem:[#allocation212_spill] sm:$0xff] }
 0x289   : > { %13189 = vst [vmem:[#allocation18_spill] sm:$0xff] %v10157_v2  ;;  %13190 = vst [vmem:[#allocation196_spill] sm:$0xff] %v10160_v47  ;;  %v5500_v21 = vunpack.i.l.bf16 %v13191_v31  ;;  %v6192_v54 = vpack.i.bf16 %v13193_v59, %v13192_v49  ;;  %v10169_v27 = vsel %vm2481_vm13, %v2469_v56, %v5425_v39  ;;  %v10172_v60 = vsel %vm2481_vm13, %v2470_v0, %v5426_v48  ;;  %v10179_v2 = vpop.permute.xlu0 %5903  ;;  %v13198_v49 = vld [vmem:[#allocation199_spill] sm:$0xff]  ;;  %v13199_v56 = vld [vmem:[#allocation189_spill] sm:$0xff] }
 0x28a   : > { %13194 = vst [vmem:[#allocation98_spill] sm:$0xff] %v10169_v27  ;;  %13195 = vst [vmem:[#allocation200_spill] sm:$0xff] %v10172_v60  ;;  %v2517_v46 = vsel %vm2514_vm14, %v2484_v57, %v5460_v34  ;;  %v5501_v61 = vunpack.i.h.bf16 %v13191_v31  ;;  %v2518_v24 = vsel %vm2514_vm14, %v2485_v17, %v5461_v35  ;;  %v5496_v47 = vunpack.i.h.bf16 %v13196_v44  ;;  %6198 = vrot.lane.b32.xlu1 %v6197_v13, %s6475_s27  ;;  %v13213_v31 = vld [vmem:[#allocation127_spill] sm:$0xff] }
 0x28b   : > { %v5495_v55 = vunpack.i.l.bf16 %v13196_v44  ;;  %13197 = vst [vmem:[#allocation102_spill] sm:$0xff] %v10179_v2  ;;  %v6207_v39 = vpack.i.bf16 %v13199_v56, %v13198_v49  ;;  %v2515_v0 = vsel %vm2514_vm14, %v2482_v1, %v5455_v51  ;;  %v2516_v48 = vsel %vm2514_vm14, %v2483_v4, %v5456_v38  ;;  %v10196_v13 = vpop.permute.xlu1 %5918  ;;  %v13204_v44 = vld [vmem:[#allocation84_spill] sm:$0xff]  ;;  %v13208_v38 = vld [vmem:[#allocation126_spill] sm:$0xff] }
 0x28c   : > { %v10187_v57 = vsel %vm2514_vm14, %v2488_v53, %v5470_v16  ;;  %v10190_v17 = vsel %vm2514_vm14, %v2489_v22, %v5471_v9  ;;  %v2533_v59 = vsel %vm2514_vm14, %v2500_v62, %v5500_v21  ;;  %6193 = vrot.lane.b32.xlu0 %v6192_v54, %s6474_s26  ;;  %13203 = vst [vmem:[#allocation103_spill] sm:$0xff] %v10196_v13  ;;  %v13205_v1 = vld [vmem:[#allocation92_spill] sm:$0xff]  ;;  %v13207_v53 = vld [vmem:[#allocation125_spill] sm:$0xff]  ;;  %v5535_v9 = vunpack.i.l.bf16 %v13208_v38 }
 0x28d   : > { %13200 = vst [vmem:[#allocation56_spill] sm:$0xff] %v10187_v57  ;;  %13201 = vst [vmem:[#allocation58_spill] sm:$0xff] %v10190_v17  ;;  %v6202_v51 = vpack.i.bf16 %v13205_v1, %v13204_v44  ;;  %v10201_v4 = vsel %vm2514_vm14, %v2501_v3, %v5501_v61  ;;  %v5541_v16 = vunpack.i.h.bf16 %v13207_v53  ;;  %v5540_v22 = vunpack.i.l.bf16 %v13207_v53  ;;  %v10209_v54 = vpop.permute.xlu0 %5913  ;;  %v13210_v3 = vld [vmem:[#allocation100_spill] sm:$0xff]  ;;  %v13211_v44 = vld [vmem:[#allocation133_spill] sm:$0xff] }
 0x28e   : > { %13206 = vst [vmem:[#allocation201_spill] sm:$0xff] %v10201_v4  ;;  %v2531_v49 = vsel %vm2514_vm14, %v2498_v11, %v5495_v55  ;;  %v2532_v62 = vsel %vm2514_vm14, %v2499_v28, %v5496_v47  ;;  %v5536_v21 = vunpack.i.h.bf16 %v13208_v38  ;;  %6208 = vrot.lane.b32.xlu1 %v6207_v39, %s6475_s27  ;;  %v13209_v56 = vrot.slane %v13171_v37, 3  ;;  %v13212_v53 = vld [vmem:[#allocation134_spill] sm:$0xff]  ;;  %v13214_v11 = vld [vmem:[#allocation128_spill] sm:$0xff] }
 0x28f   : > { %v5580_v1 = vunpack.i.l.bf16 %v13211_v44  ;;  %v5575_v35 = vunpack.i.l.bf16 %v13212_v53  ;;  %v2822_v17 = vrot.slane %v13213_v31, 3  ;;  %v2823_v55 = vrot.slane %v13214_v11, 3  ;;  %v10221_v47 = vpop.permute.xlu1 %5928  ;;  %v13215_v38 = vld [vmem:[#allocation46_spill] sm:$0xff] }
 0x290   : > { %v6217_v61 = vpack.i.bf16 %v13210_v3, %v13209_v56  ;;  %v5576_v28 = vunpack.i.h.bf16 %v13212_v53  ;;  %6203 = vrot.lane.b32.xlu0 %v6202_v51, %s6475_s27  ;;  %v6212_v39 = vpack.i.bf16 %v13139_v40, %v13123_v52  ;;  %v2914_v57 = vrot.slane %v13215_v38, 7  ;;  %v13216_v56 = vld [vmem:[#allocation47_spill] sm:$0xff]  ;;  %v13223_v40 = vld [vmem:[#allocation138_spill] sm:$0xff] }
 0x291   : > { %v2915_v3 = vrot.slane %v13216_v56, 7  ;;  %v10229_v25 = vsel %vm2547_vm15, %v2517_v46, %v5540_v22  ;;  %v10232_v34 = vsel %vm2547_vm15, %v2518_v24, %v5541_v16  ;;  %v10235_v53 = vsel %vm2547_vm15, %v2515_v0, %v5535_v9  ;;  %v261_v51 = vld [vmem:[%s6531_s20 + $0xe4] sm:$0xff]   ;;  %v10241_v52 = vpop.permute.xlu0 %5923  ;;  %v13228_v9 = vld [vmem:[#allocation101_spill] sm:$0xff] }
 0x292   : > { %13218 = vst [vmem:[#allocation116_spill] sm:$0xff] %v10229_v25  ;;  %13219 = vst [vmem:[#allocation13_spill] sm:$0xff] %v10232_v34  ;;  %v10239_v4 = vsel %vm2547_vm15, %v2516_v48, %v5536_v21  ;;  %6218 = vrot.lane.b32.xlu1 %v6217_v61, %s6476_s28  ;;  %v2825_v38 = vrot.slane %v13223_v40, 3  ;;  %v10245_v56 = vunpack.c.h.bf16 %v261_v51  ;;  %v10249_v24 = vsel %vm2547_vm15, %v2533_v59, %v5580_v1  ;;  %v13248_v25 = vld [vmem:[#allocation111_spill] sm:$0xff] }
 0x293   : > { %13220 = vst [vmem:[#allocation12_spill] sm:$0xff] %v10235_v53  ;;  %13221 = vst [vmem:[#allocation202_spill] sm:$0xff] %v10239_v4  ;;  %v10252_v0 = vsel %vm2547_vm15, %v2531_v49, %v5575_v35  ;;  %v2824_v48 = vsel %vm726_vm2, %v2822_v17, %v2823_v55  ;;  %v10256_v16 = vsel %vm2547_vm15, %v2532_v62, %v5576_v28  ;;  %v10259_v22 = vpop.permute.xlu1 %5938  ;;  %v13229_v21 = vrot.slane %v13166_v20, 3  ;;  %v13230_v17 = vld [vmem:[#allocation42_spill] sm:$0xff]  ;;  %v13231_v62 = vld [vmem:[#allocation41_spill] sm:$0xff] }
 0x294   : > { %13222 = vst [vmem:[#allocation50_spill] sm:$0xff] %v10241_v52  ;;  %13224 = vst [vmem:[#allocation206_spill] sm:$0xff] %v10249_v24  ;;  %6213 = vrot.lane.b32.xlu0 %v6212_v39, %s6476_s28  ;;  %v2916_v46 = vsel %vm2895_vm6, %v2914_v57, %v2915_v3  ;;  %v10265_v59 = vunpack.c.l.bf16 %v261_v51  ;;  %v2938_v35 = vrot.slane %v13213_v31, 7  ;;  %v2939_v49 = vrot.slane %v13214_v11, 7  ;;  %v263_v24 = vld [vmem:[%s6531_s20 + $0xec] sm:$0x3] }
 0x295   : > { %13225 = vst [vmem:[#allocation53_spill] sm:$0xff] %v10252_v0  ;;  %13226 = vst [vmem:[#allocation207_spill] sm:$0xff] %v10256_v16  ;;  %v6222_v27 = vpack.i.bf16 %v13229_v21, %v13228_v9  ;;  %v2918_v1 = vrot.slane %v13230_v17, 7  ;;  %v2917_v28 = vrot.slane %v13231_v62, 7  ;;  %v10273_v44 = vpop.permute.xlu0 %5933  ;;  %v13233_v9 = vld [vmem:[#allocation49_spill] sm:$0xff]  ;;  %v2826_v51 = vsel %vm726_vm2, %v2823_v55, %v2825_v38  ;;  %v13235_v17 = vld [vmem:[#allocation144_spill] sm:$0xff] }
 0x296   : > { %13227 = vst [vmem:[#allocation210_spill] sm:$0xff] %v10259_v22  ;;  %6228 = vrot.lane.b32.xlu1 %v6217_v61, %s6471_s23  ;;  %v13234_v21 = vrot.slane %v13233_v9, 3  ;;  %v2942_v20 = vrot.slane %v10245_v56, 7  ;;  %v6247_v62 = vpack.i.bf16 %v2916_v46, %v2914_v57  ;;  %v2941_v37 = vrot.slane %v10265_v59, 7 }
 0x297   : > { %v10285_v60 = vpop.permute.xlu1 %5948  ;;  %v10288_v61 = vunpack.c.l.bf16 %v263_v24  ;;  %v10292_v55 = vpack.i.bf16 %v2825_v38, %v2826_v51  ;;  %v2940_v15 = vsel %vm2895_vm6, %v2938_v35, %v2939_v49  ;;  %v6252_v2 = vpack.i.bf16 %v2938_v35, %v2915_v3 }
 0x298   : > { %v10278_v52 = vpack.i.bf16 %v2824_v48, %v13234_v21  ;;  %6223 = vrot.lane.b32.xlu0 %v6222_v27, %s6476_s28  ;;  %13236 = vst [vmem:[#allocation211_spill] sm:$0xff] %v10285_v60  ;;  %v3155_v48 = vrot.slane %v10265_v59, 1  ;;  %v3156_v21 = vrot.slane %v10245_v56, 1  ;;  %v2919_v18 = vsel %vm2895_vm6, %v2917_v28, %v2918_v1 }
 0x299   : > { %13237 = vst [vmem:[#allocation19_spill] sm:$0xff] %v10292_v55  ;;  %v10296_v57 = vpop.permute.xlu0 %5943  ;;  %v2943_v46 = vsel %vm2895_vm6, %v2941_v37, %v2942_v20  ;;  %v3158_v24 = vrot.slane %v10288_v61, 1  ;;  %v3226_v60 = vrot.slane %v10265_v59, 2  ;;  %v3227_v16 = vrot.slane %v10245_v56, 2 }
 0x29a   : > { %13238 = vst [vmem:[#allocation60_spill] sm:$0xff] %v10296_v57  ;;  %6238 = vrot.lane.b32.xlu1 %v10278_v52, %s6471_s23  ;;  %v3229_v38 = vrot.slane %v10288_v61, 2  ;;  %v3297_v51 = vrot.slane %v10265_v59, 3  ;;  %v3298_v3 = vrot.slane %v10245_v56, 3  ;;  %v3300_v35 = vrot.slane %v10288_v61, 3 }
 0x29b   : > { %v10309_v0 = vpop.permute.xlu1 %5958  ;;  %v6257_v57 = vpack.i.bf16 %v2939_v49, %v2940_v15  ;;  %v6267_v22 = vpack.i.bf16 %v2941_v37, %v2918_v1  ;;  %v6262_v13 = vpack.i.bf16 %v2919_v18, %v2917_v28  ;;  %v10312_v12 = vsel %vm372_vm0, %v3155_v48, %v3156_v21  ;;  %v13242_v37 = vld [vmem:[#allocation52_spill] sm:$0xff]  ;;  %v13245_v48 = vld [vmem:[#allocation89_spill] sm:$0xff] }
 0x29c   : > { %6233 = vrot.lane.b32.xlu0 %v6222_v27, %s6471_s23  ;;  %13239 = vst [vmem:[#allocation14_spill] sm:$0xff] %v10309_v0  ;;  %v10316_v42 = vpack.i.bf16 %v2942_v20, %v2943_v46  ;;  %v13243_v15 = vld [vmem:[#allocation140_spill] sm:$0xff]  ;;  %v3159_v1 = vsel %vm372_vm0, %v3156_v21, %v3158_v24  ;;  %v10331_v20 = vsel %vm549_vm1, %v3226_v60, %v3227_v16  ;;  %v5861_v18 = vunpack.i.h.bf16 %v10018_v36 }
 0x29d   : > { %v10322_v27 = vpop.permute.xlu0 %5953  ;;  %v13244_v28 = vld [vmem:[#allocation48_spill] sm:$0xff]  ;;  %v3230_v46 = vsel %vm549_vm1, %v3227_v16, %v3229_v38  ;;  %v10337_v53 = vsel %vm726_vm2, %v3297_v51, %v3298_v3  ;;  %v5860_v4 = vunpack.i.l.bf16 %v10018_v36  ;;  %v5856_v49 = vunpack.i.h.bf16 %v10039_v23  ;;  %v13246_v16 = vld [vmem:[#allocation137_spill] sm:$0xff] }
 0x29e   : > { %13241 = vst [vmem:[#allocation54_spill] sm:$0xff] %v10322_v27  ;;  %6248 = vrot.lane.b32.xlu1 %v6247_v62, %s6472_s24  ;;  %v3301_v62 = vsel %vm726_vm2, %v3298_v3, %v3300_v35  ;;  %v5855_v21 = vunpack.i.l.bf16 %v10039_v23  ;;  %v10350_v51 = vpack.i.bf16 %v3158_v24, %v3159_v1  ;;  %v13247_v27 = vld [vmem:[#allocation86_spill] sm:$0xff]  ;;  %v5881_v0 = vunpack.i.h.bf16 %v10082_v5  ;;  %v13249_v3 = vld [vmem:[#allocation8_spill] sm:$0xff] }
 0x29f   : > { %v10346_v60 = vpop.permute.xlu1 %5968  ;;  %v5880_v36 = vunpack.i.l.bf16 %v10082_v5  ;;  %v10359_v23 = vpack.i.bf16 %v3229_v38, %v3230_v46  ;;  %v6347_v39 = vpack.i.bf16 %v10337_v53, %v13248_v25  ;;  %v3371_v24 = vsel %vm2184_vm4, %v13082_v26, %v5861_v18 }
 0x2a0   : > { %6243 = vrot.lane.b32.xlu0 %v10292_v55, %s6471_s23  ;;  %v10363_v55 = vpack.i.bf16 %v3300_v35, %v3301_v62  ;;  %v3370_v1 = vsel %vm2184_vm4, %v13026_v10, %v5860_v4  ;;  %v3369_v5 = vsel %vm2184_vm4, %v13019_v33, %v5856_v49  ;;  %v3368_v14 = vsel %vm2184_vm4, %v13249_v3, %v5855_v21  ;;  %v13250_v49 = vld [vmem:[#allocation148_spill] sm:$0xff] }
 0x2a1   : > { %v10356_v34 = vpop.permute.xlu0 %5963  ;;  %v5876_v38 = vunpack.i.h.bf16 %v10094_v29  ;;  %v5875_v35 = vunpack.i.l.bf16 %v10094_v29  ;;  %v3379_v26 = vsel %vm2184_vm4, %v13083_v50, %v5881_v0  ;;  %v3378_v10 = vsel %vm2184_vm4, %v13027_v7, %v5880_v36  ;;  %v13251_v3 = vld [vmem:[#allocation152_spill] sm:$0xff] }
 0x2a2   : > { %6258 = vrot.lane.b32.xlu1 %v6257_v57, %s6472_s24  ;;  %v5911_v33 = vunpack.i.h.bf16 %v10164_v41  ;;  %v5910_v4 = vunpack.i.l.bf16 %v10164_v41  ;;  %v5915_v29 = vunpack.i.l.bf16 %v10209_v54  ;;  %v5931_v7 = vunpack.i.h.bf16 %v10221_v47 }
 0x2a3   : > { %v5979_v57 = vpop.permute.xlu1 %5978  ;;  %v5930_v0 = vunpack.i.l.bf16 %v10221_v47  ;;  %v13252_v41 = vunpack.i.l.bf16 %v13013_v30  ;;  %v5936_v47 = vunpack.i.h.bf16 %v10273_v44  ;;  %vm13258_vm2 = vcmask 121856  }
 0x2a4   : > { %6253 = vrot.lane.b32.xlu0 %v6252_v2, %s6472_s24  ;;  %v5981_v46 = vunpack.i.h.bf16 %v5979_v57  ;;  %v5980_v62 = vunpack.i.l.bf16 %v5979_v57  ;;  %v5916_v2 = vunpack.i.h.bf16 %v10209_v54  ;;  %vm13263_vm6 = vmmov %vm13258_vm2 }
 0x2a5   : > { %v10382_v18 = vpop.permute.xlu0 %5973  ;;  %vm13270_vm12 = vmmov %vm13258_vm2 }
 0x2a6   : > { %6268 = vrot.lane.b32.xlu1 %v6267_v22, %s6472_s24  ;;  %v3434_v21 = vsel %vm2283_vm7, %v13250_v49, %v5980_v62  ;;  %v3435_v50 = vsel %vm2283_vm7, %v13251_v3, %v5981_v46  ;;  %v13253_v22 = vunpack.i.h.bf16 %v13013_v30  ;;  %v3377_v62 = vsel %vm2184_vm4, %v13020_v63, %v5876_v38  ;;  %v6437_v30 = vld [vmem:[%s11687_s1] sm:$0xff]   ;;  %vm13274_vm13 = vmmov %vm13258_vm2 }
 0x2a7   : > { %v3482_v36 = vsel %vm2316_vm8, %v3434_v21, %v13252_v41  ;;  %v10400_v54 = vpop.permute.xlu1 %5988  ;;  %v3376_v46 = vsel %vm2184_vm4, %v13240_v43, %v5875_v35  ;;  %v5935_v49 = vunpack.i.l.bf16 %v10273_v44  ;;  %v3390_v21 = vsel %vm2217_vm5, %v3368_v14, %v5910_v4  ;;  %4546 = vmatprep.subr.bf16.mxu0 %v6437_v30  ;;  %4594 = vmatprep.subr.bf16.mxu1 %v6437_v30 }
 0x2a8   : > { %v3483_v57 = vsel %vm2316_vm8, %v3435_v50, %v13253_v22  ;;  %6263 = vrot.lane.b32.xlu0 %v6262_v13, %s6472_s24  ;;  %v3391_v13 = vsel %vm2217_vm5, %v3369_v5, %v5911_v33  ;;  %v5970_v3 = vunpack.i.l.bf16 %v10346_v60  ;;  %v13254_v50 = vunpack.i.l.bf16 %v13036_v6  ;;  %4547 = vmatpush3.bf16.msra.mxu0 %v6437_v30 }
 0x2a9   : > { %v10417_v38 = vpop.permute.xlu0 %5983  ;;  %v13255_v44 = vpack.i.bf16 %v13213_v31, %v13233_v9  ;;  %v3393_v35 = vsel %vm2217_vm5, %v3371_v24, %v5916_v2  ;;  %v13256_v41 = vunpack.i.h.bf16 %v13036_v6  ;;  %v5990_v5 = vunpack.i.l.bf16 %v10400_v54  ;;  %4602 = vmatpush3.bf16.msra.mxu1 %v6437_v30 }
 0x2aa   : > { %v3530_v63 = vsel %vm2349_vm9, %v3482_v36, %v13254_v50  ;;  %v5986_v33 = vunpack.i.h.bf16 %v10417_v38  ;;  %v3392_v4 = vsel %vm2217_vm5, %v3370_v1, %v5915_v29  ;;  %v3398_v36 = vsel %vm2217_vm5, %v3376_v46, %v5930_v0 }
 0x2ab   : > { %6278 = vrot.lane.b32.xlu1 %v13255_v44, %s6473_s25  ;;  %v3531_v14 = vsel %vm2349_vm9, %v3483_v57, %v13256_v41  ;;  %v3399_v22 = vsel %vm2217_vm5, %v3377_v62, %v5931_v7  ;;  %v5971_v50 = vunpack.i.h.bf16 %v10346_v60  ;;  %v10435_v6 = vpop.permute.xlu1 %5998  ;;  %v10438_v24 = vsel %vm2217_vm5, %v3379_v26, %v5936_v47  ;;  %v6438_v60 = vld [vmem:[%s11687_s1 + $0x8] sm:$0xff]  }
 0x2ac   : > { %6273 = vrot.lane.b32.xlu0 %v10316_v42, %s6472_s24  ;;  %v10441_v2 = vsel %vm2217_vm5, %v3378_v10, %v5935_v49  ;;  %v13257_v1 = vunpack.i.l.bf16 %v13068_v19  ;;  %v6001_v7 = vunpack.i.h.bf16 %v10435_v6  ;;  %v10451_v42 = vsel %vm13258_vm2, %v3392_v4, %v5970_v3  ;;  %v13260_v57 = vld [vmem:[#allocation131_spill] sm:$0xff]  ;;  %v13262_v3 = vld [vmem:[#allocation162_spill] sm:$0xff]  ;;  %4548 = vmatprep.subr.bf16.mxu0 %v6438_v60 }
 0x2ad   : > { %v5965_v26 = vunpack.i.l.bf16 %v10356_v34  ;;  %v13259_v0 = vunpack.i.h.bf16 %v13068_v19  ;;  %v3458_v62 = vsel %vm2283_vm7, %v13260_v57, %v5986_v33  ;;  %v5994_v46 = vpop.permute.xlu0 %5993  ;;  %v13261_v47 = vpack.i.bf16 %v10265_v59, %v13240_v43  ;;  %4595 = vmatprep.subr.bf16.mxu1 %v6438_v60  ;;  %4549 = vmatpush3.bf16.msra.mxu0 %v6438_v60  ;;  %v13266_v4 = vld [vmem:[#allocation219_spill] sm:$0xff] }
 0x2ae   : > { %v3578_v29 = vsel %vm2382_vm10, %v3530_v63, %v13257_v1  ;;  %v5966_v49 = vunpack.i.h.bf16 %v10356_v34  ;;  %v5975_v30 = vunpack.i.l.bf16 %v10382_v18  ;;  %v3459_v63 = vsel %vm2283_vm7, %v13262_v3, %v5990_v5  ;;  %4603 = vmatpush3.bf16.msra.mxu1 %v6438_v60  ;;  %v13272_v3 = vld [vmem:[#allocation23_spill] sm:$0xff] }
 0x2af   : > { %v3579_v10 = vsel %vm2382_vm10, %v3531_v14, %v13259_v0  ;;  %6288 = vrot.lane.b32.xlu1 %v13261_v47, %s6473_s25  ;;  %v5996_v44 = vunpack.i.h.bf16 %v5994_v46  ;;  %v10468_v19 = vsel %vm13263_vm6, %v3393_v35, %v5971_v50  ;;  %v5976_v41 = vunpack.i.h.bf16 %v10382_v18  ;;  %v10475_v34 = vpop.permute.xlu1 %6008  ;;  %v13268_v18 = vld [vmem:[#allocation181_spill] sm:$0xff]  ;;  %vm13280_vm6 = vmmov %vm13258_vm2 }
 0x2b0   : > { %v5995_v14 = vunpack.i.l.bf16 %v5994_v46  ;;  %v13264_v43 = vpack.i.bf16 %v13223_v40, %v13214_v11  ;;  %v13265_v59 = vunpack.i.l.bf16 %v13106_v45  ;;  %v5991_v33 = vunpack.i.h.bf16 %v10400_v54  ;;  %v6439_v46 = vld [vmem:[%s11687_s1 + $0x10] sm:$0xff]  }
 0x2b1   : > { %v13267_v35 = vunpack.i.l.bf16 %v13266_v4  ;;  %v3461_v1 = vsel %vm2283_vm7, %v13268_v18, %v6001_v7  ;;  %v13269_v0 = vunpack.i.h.bf16 %v13106_v45  ;;  %v13271_v54 = vunpack.i.h.bf16 %v13266_v4  ;;  %v10501_v45 = vpop.permute.xlu0 %6003  ;;  %4550 = vmatprep.subr.bf16.mxu0 %v6439_v46  ;;  %4596 = vmatprep.subr.bf16.mxu1 %v6439_v46 }
 0x2b2   : > { %6283 = vrot.lane.b32.xlu0 %v13264_v43, %s6473_s25  ;;  %v3626_v5 = vsel %vm2415_vm11, %v3578_v29, %v13265_v59  ;;  %v3412_v29 = vsel %vm13270_vm12, %v3390_v21, %v5965_v26  ;;  %v3438_v7 = vsel %vm2283_vm7, %v13272_v3, %v5996_v44  ;;  %v3413_v60 = vsel %vm13274_vm13, %v3391_v13, %v5966_v49  ;;  %v13275_v26 = vld [vmem:[#allocation76_spill] sm:$0xff]  ;;  %v13277_v59 = vld [vmem:[#allocation222_spill] sm:$0xff]  ;;  %vm13317_vm12 = vmmov %vm13258_vm2 }
 0x2b3   : > { %v3506_v50 = vsel %vm2316_vm8, %v3458_v62, %v13267_v35  ;;  %v10489_v57 = vsel %vm2415_vm11, %v3579_v10, %v13269_v0  ;;  %v3507_v47 = vsel %vm2316_vm8, %v3459_v63, %v13271_v54  ;;  %v5985_v62 = vunpack.i.l.bf16 %v10417_v38  ;;  %v10522_v13 = vpop.permute.xlu1 %6018  ;;  %4551 = vmatpush3.bf16.msra.mxu0 %v6439_v46  ;;  %4604 = vmatpush3.bf16.msra.mxu1 %v6439_v46  ;;  %v13291_v46 = vld [vmem:[#allocation231_spill] sm:$0xff]  ;;  %vm13318_vm13 = vmmov %vm13258_vm2 }
 0x2b4   : > { %v13273_v10 = vpack.i.bf16 %v13243_v15, %v13242_v37  ;;  %v3420_v21 = vsel %vm13258_vm2, %v3398_v36, %v5975_v30  ;;  %v3437_v43 = vsel %vm2283_vm7, %v13275_v26, %v5995_v14  ;;  %v3722_v63 = vrot.slane %v3626_v5, 1 }
 0x2b5   : > { %v13276_v38 = vunpack.i.l.bf16 %v13058_v58  ;;  %v13278_v4 = vunpack.i.l.bf16 %v13277_v59  ;;  %v6005_v37 = vunpack.i.l.bf16 %v10501_v45  ;;  %v13279_v15 = vpack.i.bf16 %v10288_v61, %v10245_v56  ;;  %v6440_v56 = vld [vmem:[%s11687_s1 + $0x18] sm:$0xff]   ;;  %v10543_v54 = vpop.permute.xlu0 %6013 }
 0x2b6   : > { %6298 = vrot.lane.b32.xlu1 %v13273_v10, %s6474_s26  ;;  %v3723_v36 = vrot.slane %v10489_v57, 1  ;;  %v3421_v49 = vsel %vm13280_vm6, %v3399_v22, %v5976_v41  ;;  %v3460_v30 = vsel %vm2283_vm7, %v3420_v21, %v5991_v33  ;;  %v13281_v14 = vunpack.i.h.bf16 %v13058_v58  ;;  %v13285_v58 = vld [vmem:[#allocation182_spill] sm:$0xff]  ;;  %4552 = vmatprep.subr.bf16.mxu0 %v6440_v56 }
 0x2b7   : > { %v3554_v44 = vsel %vm2349_vm9, %v3506_v50, %v13276_v38  ;;  %v3509_v35 = vsel %vm2316_vm8, %v3461_v1, %v13278_v4  ;;  %6293 = vrot.lane.b32.xlu0 %v13279_v15, %s6473_s25  ;;  %v13282_v50 = vld [vmem:[#allocation214_spill] sm:$0xff]  ;;  %v3436_v61 = vsel %vm2283_vm7, %v3412_v29, %v5985_v62  ;;  %v6000_v0 = vunpack.i.l.bf16 %v10435_v6  ;;  %v13288_v6 = vld [vmem:[#allocation239_spill] sm:$0xff]  ;;  %4597 = vmatprep.subr.bf16.mxu1 %v6440_v56  ;;  %v6029_v4 = vpop.permute.xlu1 %6028 }
 0x2b8   : > { %v3555_v5 = vsel %vm2349_vm9, %v3507_v47, %v13281_v14  ;;  %v13283_v18 = vunpack.i.h.bf16 %v13282_v50  ;;  %v13284_v22 = vunpack.i.l.bf16 %v13282_v50  ;;  %v3462_v33 = vsel %vm2283_vm7, %v13285_v58, %v6005_v37  ;;  %4553 = vmatpush3.bf16.msra.mxu0 %v6440_v56  ;;  %v6441_v50 = vld [vmem:[%s11687_s1 + $0x20] sm:$0xff]   ;;  %4605 = vmatpush3.bf16.msra.mxu1 %v6440_v56 }
 0x2b9   : > { %v13286_v47 = vpack.i.bf16 %v10312_v12, %v13244_v28  ;;  %v13287_v3 = vunpack.i.l.bf16 %v13075_v8  ;;  %v13289_v62 = vunpack.i.l.bf16 %v13288_v6  ;;  %v6011_v10 = vunpack.i.h.bf16 %v10475_v34  ;;  %4554 = vmatprep.subr.bf16.mxu0 %v6441_v50  ;;  %4598 = vmatprep.subr.bf16.mxu1 %v6441_v50 }
 0x2ba   : > { %v3486_v1 = vsel %vm2316_vm8, %v3438_v7, %v13283_v18  ;;  %v3485_v41 = vsel %vm2316_vm8, %v3437_v43, %v13284_v22  ;;  %v6010_v21 = vunpack.i.l.bf16 %v10475_v34  ;;  %v5615_v26 = vunpack.i.l.bf16 %v13235_v17  ;;  %v13296_v18 = vld [vmem:[#allocation258_spill] sm:$0xff] }
 0x2bb   : > { %6308 = vrot.lane.b32.xlu1 %v13286_v47, %s6474_s26  ;;  %v3602_v29 = vsel %vm2382_vm10, %v3554_v44, %v13287_v3  ;;  %v3557_v7 = vsel %vm2349_vm9, %v3509_v35, %v13289_v62  ;;  %v13290_v12 = vunpack.i.h.bf16 %v13075_v8  ;;  %v13292_v43 = vunpack.i.h.bf16 %v13291_v46  ;;  %v13293_v44 = vld [vmem:[#allocation143_spill] sm:$0xff]  ;;  %v13300_v47 = vld [vmem:[#allocation250_spill] sm:$0xff] }
 0x2bc   : > { %6303 = vrot.lane.b32.xlu0 %v13293_v44, %s6474_s26  ;;  %v10569_v34 = vsel %vm372_vm0, %v3722_v63, %v3723_v36  ;;  %v13294_v35 = vunpack.i.l.bf16 %v13291_v46  ;;  %v6006_v37 = vunpack.i.h.bf16 %v10501_v45  ;;  %v13295_v15 = vunpack.i.h.bf16 %v13277_v59  ;;  %v6039_v46 = vpop.permute.xlu1 %6038  ;;  %4555 = vmatpush3.bf16.msra.mxu0 %v6441_v50 }
 0x2bd   : > { %v3603_v28 = vsel %vm2382_vm10, %v3555_v5, %v13290_v12  ;;  %v3534_v38 = vsel %vm2349_vm9, %v3486_v1, %v13292_v43  ;;  %v6020_v5 = vunpack.i.l.bf16 %v10522_v13  ;;  %v3439_v63 = vsel %vm2283_vm7, %v3413_v60, %v6000_v0  ;;  %4606 = vmatpush3.bf16.msra.mxu1 %v6441_v50 }
 0x2be   : > { %v3533_v8 = vsel %vm2349_vm9, %v3485_v41, %v13294_v35  ;;  %v3510_v14 = vsel %vm2316_vm8, %v3462_v33, %v13295_v15  ;;  %v13297_v1 = vunpack.i.l.bf16 %v13296_v18  ;;  %v6030_v58 = vunpack.i.l.bf16 %v6029_v4  ;;  %v6024_v41 = vpop.permute.xlu0 %6023 }
 0x2bf   : > { %v13298_v45 = vpack.i.bf16 %v13246_v16, %v13245_v48  ;;  %v13299_v59 = vunpack.i.l.bf16 %v13121_v32  ;;  %v13301_v3 = vunpack.i.h.bf16 %v13300_v47  ;;  %v3484_v0 = vsel %vm2316_vm8, %v3436_v61, %v6010_v21 }
 0x2c0   : > { %v3605_v22 = vsel %vm2382_vm10, %v3557_v7, %v13297_v1  ;;  %v3508_v62 = vsel %vm2316_vm8, %v3460_v30, %v6011_v10  ;;  %v6021_v7 = vunpack.i.h.bf16 %v10522_v13  ;;  %v13302_v48 = vunpack.i.l.bf16 %v13300_v47  ;;  %6313 = vrot.lane.b32.xlu0 %v10350_v51, %s6474_s26  ;;  %v13309_v1 = vld [vmem:[#allocation168_spill] sm:$0xff]  ;;  %v10640_v50 = vpop.permute.xlu1 %6048 }
 0x2c1   : > { %6318 = vrot.lane.b32.xlu1 %v13298_v45, %s6475_s27  ;;  %v10593_v33 = vsel %vm2415_vm11, %v3602_v29, %v13299_v59  ;;  %v3582_v60 = vsel %vm2382_vm10, %v3534_v38, %v13301_v3  ;;  %v13303_v29 = vunpack.i.h.bf16 %v13288_v6  ;;  %v6031_v12 = vunpack.i.h.bf16 %v6029_v4 }
 0x2c2   : > { %v3581_v16 = vsel %vm2382_vm10, %v3533_v8, %v13302_v48  ;;  %v13304_v61 = vunpack.i.h.bf16 %v13121_v32  ;;  %v3463_v13 = vsel %vm2283_vm7, %v3421_v49, %v6006_v37  ;;  %v3532_v10 = vsel %vm2349_vm9, %v3484_v0, %v6020_v5  ;;  %v6034_v51 = vpop.permute.xlu0 %6033  ;;  %v6442_v49 = vld [vmem:[%s11687_s1 + $0x28] sm:$0xff]   ;;  %v13307_v37 = vld [vmem:[#allocation72_spill] sm:$0xff] }
 0x2c3   : > { %v3558_v56 = vsel %vm2349_vm9, %v3510_v14, %v13303_v29  ;;  %v6041_v21 = vunpack.i.h.bf16 %v6039_v46  ;;  %v6040_v43 = vunpack.i.l.bf16 %v6039_v46  ;;  %v6016_v6 = vunpack.i.h.bf16 %v10543_v54  ;;  %4556 = vmatprep.subr.bf16.mxu0 %v6442_v49  ;;  %4599 = vmatprep.subr.bf16.mxu1 %v6442_v49  ;;  %v6443_v48 = vld [vmem:[%s11687_s1 + $0x30] sm:$0xff]  }
 0x2c4   : > { %v10612_v30 = vsel %vm2415_vm11, %v3603_v28, %v13304_v61  ;;  %v6015_v38 = vunpack.i.l.bf16 %v10543_v54  ;;  %v3580_v44 = vsel %vm2382_vm10, %v3532_v10, %v6030_v58  ;;  %v13305_v32 = vpack.i.bf16 %v10331_v20, %v13247_v27  ;;  %6323 = vrot.lane.b32.xlu0 %v13309_v1, %s6475_s27  ;;  %4557 = vmatpush3.bf16.msra.mxu0 %v6442_v49  ;;  %v6059_v10 = vpop.permute.xlu1 %6058 }
 0x2c5   : > { %v3762_v28 = vrot.slane %v10593_v33, 1  ;;  %v13306_v4 = vunpack.i.h.bf16 %v13296_v18  ;;  %v3556_v54 = vsel %vm2349_vm9, %v3508_v62, %v6021_v7  ;;  %v3628_v8 = vsel %vm2415_vm11, %v3580_v44, %v6040_v43  ;;  %4607 = vmatpush3.bf16.msra.mxu1 %v6442_v49  ;;  %4558 = vmatprep.subr.bf16.mxu0 %v6443_v48 }
 0x2c6   : > { %6328 = vrot.lane.b32.xlu1 %v13305_v32, %s6475_s27  ;;  %v13308_v15 = vunpack.i.l.bf16 %v13307_v37  ;;  %v3604_v20 = vsel %vm2382_vm10, %v3556_v54, %v6031_v12  ;;  %v6026_v14 = vunpack.i.h.bf16 %v6024_v41  ;;  %v6025_v5 = vunpack.i.l.bf16 %v6024_v41  ;;  %v6044_v62 = vpop.permute.xlu0 %6043  ;;  %4600 = vmatprep.subr.bf16.mxu1 %v6443_v48 }
 0x2c7   : > { %v3606_v35 = vsel %vm2382_vm10, %v3558_v56, %v13306_v4  ;;  %v13310_v18 = vunpack.i.h.bf16 %v13307_v37  ;;  %v3652_v45 = vsel %vm2415_vm11, %v3604_v20, %v6041_v21  ;;  %v3725_v59 = vrot.slane %v3628_v8, 1  ;;  %v13311_v56 = vld [vmem:[#allocation78_spill] sm:$0xff] }
 0x2c8   : > { %v10635_v27 = vsel %vm2415_vm11, %v3581_v16, %v13308_v15  ;;  %v6036_v47 = vunpack.i.h.bf16 %v6034_v51  ;;  %v6035_v3 = vunpack.i.l.bf16 %v6034_v51  ;;  %v3487_v41 = vsel %vm2316_vm8, %v3439_v63, %v6015_v38  ;;  %6333 = vrot.lane.b32.xlu0 %v10359_v23, %s6475_s27  ;;  %4559 = vmatpush3.bf16.msra.mxu0 %v6443_v48  ;;  %v13314_v8 = vld [vmem:[#allocation82_spill] sm:$0xff]  ;;  %v13315_v15 = vld [vmem:[#allocation19_spill] sm:$0xff]  ;;  %s6484_s27 = smov 80  }
 0x2c9   : > { %v10645_v58 = vsel %vm2415_vm11, %v3582_v60, %v13310_v18  ;;  %v3511_v0 = vsel %vm2316_vm8, %v3463_v13, %v6016_v6  ;;  %v3763_v7 = vrot.slane %v10612_v30, 1  ;;  %v3727_v60 = vrot.slane %v10635_v27, 1  ;;  %4608 = vmatpush3.bf16.msra.mxu1 %v6443_v48  ;;  %v6069_v27 = vpop.permute.xlu1 %6068 }
 0x2ca   : > { %6338 = vrot.lane.b32.xlu1 %v10278_v52, %s6476_s28  ;;  %v6046_v16 = vunpack.i.h.bf16 %v6044_v62  ;;  %v6045_v29 = vunpack.i.l.bf16 %v6044_v62  ;;  %v13312_v12 = vunpack.i.l.bf16 %v13311_v56  ;;  %v13313_v46 = vunpack.i.h.bf16 %v13311_v56  ;;  %v6054_v23 = vpop.permute.xlu0 %6053  ;;  %v13321_v62 = vld [vmem:[#allocation179_spill] sm:$0xff]  ;;  %v13325_v56 = vld [vmem:[#allocation77_spill] sm:$0xff] }
 0x2cb   : > { %v3535_v52 = vsel %vm2349_vm9, %v3487_v41, %v6025_v5  ;;  %v3559_v30 = vsel %vm2349_vm9, %v3511_v0, %v6026_v14  ;;  %v3765_v13 = vrot.slane %v3652_v45, 1  ;;  %v3728_v21 = vrot.slane %v10645_v58, 1  ;;  %v13316_v14 = vld [vmem:[#allocation173_spill] sm:$0xff] }
 0x2cc   : > { %v3653_v63 = vsel %vm2415_vm11, %v3605_v22, %v13312_v12  ;;  %v3654_v61 = vsel %vm2415_vm11, %v3606_v35, %v13313_v46  ;;  %v3583_v43 = vsel %vm2382_vm10, %v3535_v52, %v6035_v3  ;;  %v3607_v22 = vsel %vm2382_vm10, %v3559_v30, %v6036_v47  ;;  %6343 = vrot.lane.b32.xlu0 %v13315_v15, %s6476_s28  ;;  %v13319_v3 = vld [vmem:[#allocation221_spill] sm:$0xff] }
 0x2cd   : > { %v6061_v6 = vunpack.i.h.bf16 %v6059_v10  ;;  %v3726_v38 = vsel %vm372_vm0, %v3723_v36, %v3725_v59  ;;  %v3631_v44 = vsel %vm2415_vm11, %v3583_v43, %v6045_v29  ;;  %v3655_v51 = vsel %vm2415_vm11, %v3607_v22, %v6046_v16  ;;  %v13324_v16 = vld [vmem:[#allocation63_spill] sm:$0xff]  ;;  %v13329_v22 = vld [vmem:[#allocation230_spill] sm:$0xff] }
 0x2ce   : > { %6348 = vrot.lane.b32.xlu1 %v6347_v39, %s6476_s28  ;;  %v3767_v32 = vrot.slane %v3653_v63, 1  ;;  %v3768_v49 = vrot.slane %v3654_v61, 1  ;;  %v6051_v4 = vunpack.i.h.bf16 %v10640_v50  ;;  %v6050_v57 = vunpack.i.l.bf16 %v10640_v50  ;;  %v6064_v18 = vpop.permute.xlu0 %6063  ;;  %v13326_v61 = vld [vmem:[#allocation238_spill] sm:$0xff] }
 0x2cf   : > { %v6056_v36 = vunpack.i.h.bf16 %v6054_v23  ;;  %v6055_v35 = vunpack.i.l.bf16 %v6054_v23  ;;  %v6060_v54 = vunpack.i.l.bf16 %v6059_v10  ;;  %v3464_v37 = vsel %vm2283_vm7, %v13314_v8, %v6061_v6  ;;  %v13333_v23 = vld [vmem:[#allocation180_spill] sm:$0xff] }
 0x2d0   : > { %v6357_v25 = vpack.i.bf16 %v3726_v38, %v10569_v34  ;;  %v3766_v53 = vsel %vm372_vm0, %v3763_v7, %v3765_v13  ;;  %v3730_v39 = vrot.slane %v3631_v44, 1  ;;  %v3770_v20 = vrot.slane %v3655_v51, 1  ;;  %6353 = vrot.lane.b32.xlu0 %v10363_v55, %s6476_s28  ;;  %v13331_v44 = vld [vmem:[#allocation216_spill] sm:$0xff] }
 0x2d1   : > { %v3441_v5 = vsel %vm2283_vm7, %v13316_v14, %v6056_v36  ;;  %v6071_v1 = vunpack.i.h.bf16 %v6069_v27  ;;  %v6070_v50 = vunpack.i.l.bf16 %v6069_v27  ;;  %v3764_v58 = vsel %vm372_vm0, %v3762_v28, %v3763_v7  ;;  %v13322_v28 = vld [vmem:[#allocation213_spill] sm:$0xff]  ;;  %v13340_v14 = vld [vmem:[#allocation224_spill] sm:$0xff] }
 0x2d2   : > { %6358 = vrot.lane.b32.xlu1 %v6357_v25, %s6484_s27  ;;  %v3729_v45 = vsel %vm372_vm0, %v3727_v60, %v3728_v21  ;;  %v3769_v34 = vsel %vm372_vm0, %v3767_v32, %v3768_v49  ;;  %v3422_v59 = vsel %vm13317_vm12, %v10441_v2, %v6050_v57  ;;  %v3423_v47 = vsel %vm13318_vm13, %v10438_v24, %v6051_v4  ;;  %v6079_v24 = vpop.permute.xlu1 %6078  ;;  %v6074_v55 = vpop.permute.xlu0 %6073  ;;  %v13337_v27 = vld [vmem:[#allocation257_spill] sm:$0xff] }
 0x2d3   : > { %v13320_v41 = vunpack.i.l.bf16 %v13319_v3  ;;  %v3440_v48 = vsel %vm2283_vm7, %v13321_v62, %v6055_v35  ;;  %v10706_v33 = vsel %vm2283_vm7, %v10451_v42, %v6060_v54  ;;  %v13323_v7 = vunpack.i.h.bf16 %v13322_v28  ;;  %v13336_v54 = vld [vmem:[#allocation91_spill] sm:$0xff] }
 0x2d4   : > { %v3444_v2 = vsel %vm2283_vm7, %v13324_v16, %v6071_v1  ;;  %v6362_v29 = vpack.i.bf16 %v3766_v53, %v3764_v58  ;;  %v3443_v12 = vsel %vm2283_vm7, %v13325_v56, %v6070_v50  ;;  %v6065_v63 = vunpack.i.l.bf16 %v6064_v18  ;;  %v13342_v50 = vld [vmem:[#allocation188_spill] sm:$0xff] }
 0x2d5   : > { %v3512_v0 = vsel %vm2316_vm8, %v3464_v37, %v13320_v41  ;;  %v3489_v60 = vsel %vm2316_vm8, %v3441_v5, %v13323_v7  ;;  %v3731_v46 = vsel %vm372_vm0, %v3728_v21, %v3730_v39  ;;  %v3771_v42 = vsel %vm372_vm0, %v3768_v49, %v3770_v20  ;;  %v13345_v7 = vld [vmem:[#allocation249_spill] sm:$0xff] }
 0x2d6   : > { %v13327_v52 = vunpack.i.l.bf16 %v13326_v61  ;;  %v13328_v13 = vunpack.i.l.bf16 %v13322_v28  ;;  %v6080_v43 = vunpack.i.l.bf16 %v6079_v24  ;;  %v13330_v6 = vunpack.i.h.bf16 %v13329_v22  ;;  %6363 = vrot.lane.b32.xlu0 %v6362_v29, %s6484_s27  ;;  %v6089_v15 = vpop.permute.xlu1 %6088  ;;  %v6084_v28 = vpop.permute.xlu0 %6083 }
 0x2d7   : > { %v13332_v51 = vunpack.i.h.bf16 %v13331_v44  ;;  %v3465_v32 = vsel %vm2283_vm7, %v13333_v23, %v6065_v63  ;;  %v6076_v49 = vunpack.i.h.bf16 %v6074_v55  ;;  %v13334_v4 = vunpack.i.l.bf16 %v13331_v44 }
 0x2d8   : > { %v3560_v30 = vsel %vm2349_vm9, %v3512_v0, %v13327_v52  ;;  %v3488_v10 = vsel %vm2316_vm8, %v3440_v48, %v13328_v13  ;;  %v3537_v38 = vsel %vm2349_vm9, %v3489_v60, %v13330_v6  ;;  %v13335_v36 = vunpack.i.h.bf16 %v13319_v3 }
 0x2d9   : > { %v3492_v21 = vsel %vm2316_vm8, %v3444_v2, %v13332_v51  ;;  %v3491_v57 = vsel %vm2316_vm8, %v3443_v12, %v13334_v4  ;;  %v3468_v8 = vsel %vm2283_vm7, %v13336_v54, %v6080_v43  ;;  %v6367_v37 = vpack.i.bf16 %v3731_v46, %v3729_v45  ;;  %v13347_v2 = vld [vmem:[#allocation233_spill] sm:$0xff] }
 0x2da   : > { %v3513_v35 = vsel %vm2316_vm8, %v3465_v32, %v13335_v36  ;;  %v13338_v25 = vunpack.i.l.bf16 %v13337_v27  ;;  %v13339_v39 = vunpack.i.h.bf16 %v13326_v61  ;;  %v13341_v5 = vunpack.i.h.bf16 %v13340_v14  ;;  %v13351_v61 = vld [vmem:[#allocation241_spill] sm:$0xff]  ;;  %v6099_v43 = vpop.permute.xlu1 %6098 }
 0x2db   : > { %v3467_v58 = vsel %vm2283_vm7, %v13342_v50, %v6076_v49  ;;  %v13343_v3 = vunpack.i.l.bf16 %v13329_v22  ;;  %v6066_v41 = vunpack.i.h.bf16 %v6064_v18  ;;  %v6081_v0 = vunpack.i.h.bf16 %v6079_v24  ;;  %6368 = vrot.lane.b32.xlu1 %v6367_v37, %s6484_s27  ;;  %v13358_v36 = vld [vmem:[#allocation261_spill] sm:$0xff] }
 0x2dc   : > { %v3608_v53 = vsel %vm2382_vm10, %v3560_v30, %v13338_v25  ;;  %v3561_v20 = vsel %vm2349_vm9, %v3513_v35, %v13339_v39  ;;  %v3516_v1 = vsel %vm2316_vm8, %v3468_v8, %v13341_v5  ;;  %v13344_v62 = vunpack.i.l.bf16 %v13340_v14 }
 0x2dd   : > { %v3536_v45 = vsel %vm2349_vm9, %v3488_v10, %v13343_v3  ;;  %v13346_v60 = vunpack.i.h.bf16 %v13345_v7  ;;  %v13348_v29 = vunpack.i.l.bf16 %v13347_v2  ;;  %v13349_v12 = vunpack.i.h.bf16 %v13347_v2 }
 0x2de   : > { %v3515_v48 = vsel %vm2316_vm8, %v3467_v58, %v13344_v62  ;;  %v6075_v24 = vunpack.i.l.bf16 %v6074_v55  ;;  %v13350_v63 = vunpack.i.h.bf16 %v13337_v27  ;;  %v13352_v52 = vunpack.i.h.bf16 %v13351_v61  ;;  %v6109_v5 = vpop.permute.xlu1 %6108 }
 0x2df   : > { %v3585_v16 = vsel %vm2382_vm10, %v3537_v38, %v13346_v60  ;;  %v3539_v56 = vsel %vm2349_vm9, %v3491_v57, %v13348_v29  ;;  %v3540_v18 = vsel %vm2349_vm9, %v3492_v21, %v13349_v12  ;;  %v6091_v13 = vunpack.i.h.bf16 %v6089_v15  ;;  %v13355_v21 = vld [vmem:[#allocation252_spill] sm:$0xff]  ;;  %v6094_v57 = vpop.permute.xlu0 %6093 }
 0x2e0   : > { %v3609_v46 = vsel %vm2382_vm10, %v3561_v20, %v13350_v63  ;;  %v3564_v30 = vsel %vm2349_vm9, %v3516_v1, %v13352_v52  ;;  %v6372_v10 = vpack.i.bf16 %v3771_v42, %v3769_v34  ;;  %v13353_v22 = vunpack.i.l.bf16 %v13345_v7 }
 0x2e1   : > { %v13354_v38 = vunpack.i.l.bf16 %v13351_v61  ;;  %v6090_v55 = vunpack.i.l.bf16 %v6089_v15  ;;  %v6086_v51 = vunpack.i.h.bf16 %v6084_v28  ;;  %v13356_v23 = vunpack.i.l.bf16 %v13355_v21  ;;  %v13360_v15 = vld [vmem:[#allocation39_spill] sm:$0xff] }
 0x2e2   : > { %v3584_v6 = vsel %vm2382_vm10, %v3536_v45, %v13353_v22  ;;  %v13357_v49 = vunpack.i.h.bf16 %v13355_v21  ;;  %v3466_v34 = vsel %vm2283_vm7, %v3422_v59, %v6066_v41  ;;  %v3469_v42 = vsel %vm2283_vm7, %v3423_v47, %v6081_v0  ;;  %6373 = vrot.lane.b32.xlu0 %v6372_v10, %s6484_s27  ;;  %v6119_v63 = vpop.permute.xlu1 %6118 }
 0x2e3   : > { %v3563_v44 = vsel %vm2349_vm9, %v3515_v48, %v13354_v38  ;;  %v3587_v32 = vsel %vm2382_vm10, %v3539_v56, %v13356_v23  ;;  %v13359_v35 = vunpack.i.h.bf16 %v13358_v36  ;;  %v3445_v8 = vsel %vm2283_vm7, %v10468_v19, %v6075_v24  ;;  %v6104_v0 = vpop.permute.xlu0 %6103  ;;  %v13364_v48 = vld [vmem:[#allocation153_spill] sm:$0xff] }
 0x2e4   : > { %v3588_v4 = vsel %vm2382_vm10, %v3540_v18, %v13357_v49  ;;  %v6085_v37 = vunpack.i.l.bf16 %v6084_v28  ;;  %v13361_v27 = vunpack.i.h.bf16 %v13360_v15  ;;  %v13362_v39 = vunpack.i.l.bf16 %v13358_v36 }
 0x2e5   : > { %v3612_v54 = vsel %vm2382_vm10, %v3564_v30, %v13359_v35  ;;  %v3517_v47 = vsel %vm2316_vm8, %v3469_v42, %v6091_v13  ;;  %v6101_v20 = vunpack.i.h.bf16 %v6099_v43  ;;  %v6100_v14 = vunpack.i.l.bf16 %v6099_v43  ;;  %v13367_v35 = vld [vmem:[#allocation87_spill] sm:$0xff] }
 0x2e6   : > { %v3657_v25 = vsel %vm2415_vm11, %v3609_v46, %v13361_v27  ;;  %v3611_v59 = vsel %vm2382_vm10, %v3563_v44, %v13362_v39  ;;  %v3493_v1 = vsel %vm2316_vm8, %v3445_v8, %v6090_v55  ;;  %v3514_v50 = vsel %vm2316_vm8, %v3466_v34, %v6086_v51  ;;  %v10826_v49 = vpop.permute.xlu1 %6128 }
 0x2e7   : > { %v6095_v58 = vunpack.i.l.bf16 %v6094_v57  ;;  %v13363_v19 = vunpack.i.l.bf16 %v13360_v15  ;;  %v6096_v45 = vunpack.i.h.bf16 %v6094_v57  ;;  %v6110_v41 = vunpack.i.l.bf16 %v6109_v5  ;;  %v6114_v43 = vpop.permute.xlu0 %6113 }
 0x2e8   : > { %v3773_v62 = vrot.slane %v3657_v25, 1  ;;  %v13365_v28 = vunpack.i.l.bf16 %v13364_v48  ;;  %v3490_v60 = vsel %vm2316_vm8, %v10706_v33, %v6085_v37  ;;  %v6111_v2 = vunpack.i.h.bf16 %v6109_v5 }
 0x2e9   : > { %v3656_v3 = vsel %vm2415_vm11, %v3608_v53, %v13363_v19  ;;  %v6105_v29 = vunpack.i.l.bf16 %v6104_v0  ;;  %v13366_v56 = vunpack.i.h.bf16 %v13364_v48  ;;  %v3541_v18 = vsel %vm2349_vm9, %v3493_v1, %v6100_v14 }
 0x2ea   : > { %v3632_v7 = vsel %vm2415_vm11, %v3584_v6, %v13365_v28  ;;  %v3565_v53 = vsel %vm2349_vm9, %v3517_v47, %v6101_v20  ;;  %v6106_v24 = vunpack.i.h.bf16 %v6104_v0  ;;  %v3772_v46 = vrot.slane %v3656_v3, 1  ;;  %v13370_v20 = vld [vmem:[#allocation157_spill] sm:$0xff] }
 0x2eb   : > { %v3633_v12 = vsel %vm2415_vm11, %v3585_v16, %v13366_v56  ;;  %v3538_v61 = vsel %vm2349_vm9, %v3490_v60, %v6095_v58  ;;  %v6121_v52 = vunpack.i.h.bf16 %v6119_v63  ;;  %v6120_v30 = vunpack.i.l.bf16 %v6119_v63  ;;  %v10837_v47 = vpop.permute.xlu0 %6123  ;;  %v13375_v56 = vld [vmem:[#allocation116_spill] sm:$0xff] }
 0x2ec   : > { %v3732_v13 = vrot.slane %v3632_v7, 1  ;;  %v3562_v33 = vsel %vm2349_vm9, %v3514_v50, %v6096_v45  ;;  %v3589_v10 = vsel %vm2382_vm10, %v3541_v18, %v6110_v41  ;;  %v3774_v22 = vsel %vm372_vm0, %v3772_v46, %v3773_v62  ;;  %v6139_v45 = vpop.permute.xlu1 %6138  ;;  %v13378_v46 = vld [vmem:[#allocation13_spill] sm:$0xff] }
 0x2ed   : > { %v3733_v16 = vrot.slane %v3633_v12, 1  ;;  %v3613_v6 = vsel %vm2382_vm10, %v3565_v53, %v6111_v2  ;;  %v3586_v38 = vsel %vm2382_vm10, %v3538_v61, %v6105_v29  ;;  %v6116_v44 = vunpack.i.h.bf16 %v6114_v43  ;;  %v13373_v2 = vld [vmem:[#allocation229_spill] sm:$0xff] }
 0x2ee   : > { %v6115_v55 = vunpack.i.l.bf16 %v6114_v43  ;;  %v3610_v51 = vsel %vm2382_vm10, %v3562_v33, %v6106_v24  ;;  %v3637_v21 = vsel %vm2415_vm11, %v3589_v10, %v6120_v30  ;;  %v3661_v23 = vsel %vm2415_vm11, %v3613_v6, %v6121_v52  ;;  %v13380_v52 = vld [vmem:[#allocation12_spill] sm:$0xff]  ;;  %v13383_v43 = vld [vmem:[#allocation202_spill] sm:$0xff] }
 0x2ef   : > { %v6485_v34 = vmov 65535   ;;  %v3658_v36 = vsel %vm2415_vm11, %v3610_v51, %v6116_v44  ;;  %v13368_v8 = vunpack.i.l.bf16 %v13367_v35  ;;  %v13369_v15 = vunpack.i.h.bf16 %v13367_v35  ;;  %v10858_v18 = vpop.permute.xlu0 %6133  ;;  %v13386_v44 = vld [vmem:[#allocation90_spill] sm:$0xff]  ;;  %v13387_v51 = vld [vmem:[#allocation35_spill] sm:$0xff] }
 0x2f0   : > { %v4066_v42 = vsel %vm549_vm1, 4294967295, %v6485_v34  ;;  %v3634_v57 = vsel %vm2415_vm11, %v3586_v38, %v6115_v55  ;;  %v3775_v39 = vrot.slane %v3658_v36, 1  ;;  %v13371_v14 = vunpack.i.l.bf16 %v13370_v20 }
 0x2f1   : > { %v3659_v37 = vsel %vm2415_vm11, %v3611_v59, %v13368_v8  ;;  %v3660_v27 = vsel %vm2415_vm11, %v3612_v54, %v13369_v15  ;;  %v3735_v25 = vrot.slane %v3634_v57, 1  ;;  %v13372_v1 = vunpack.i.h.bf16 %v13370_v20  ;;  %v6444_v59 = vld [vmem:[%s11687_s1 + $0x38] sm:$0x7f]   ;;  %v13389_v15 = vld [vmem:[#allocation3_spill] sm:$0xff] }
 0x2f2   : > { %v3635_v5 = vsel %vm2415_vm11, %v3587_v32, %v13371_v14  ;;  %v3740_v58 = vrot.slane %v3637_v21, 1  ;;  %v3780_v19 = vrot.slane %v3661_v23, 1  ;;  %v3734_v54 = vsel %vm372_vm0, %v3732_v13, %v3733_v16 }
 0x2f3   : > { %v3636_v50 = vsel %vm2415_vm11, %v3588_v4, %v13372_v1  ;;  %v4067_v3 = vsel %vm372_vm0, %v4066_v42, 0  ;;  %v3776_v41 = vsel %vm372_vm0, %v3773_v62, %v3775_v39  ;;  %v3736_v0 = vsel %vm372_vm0, %v3733_v16, %v3735_v25  ;;  %v13385_v16 = vld [vmem:[#allocation185_spill] sm:$0xff]  ;;  %v10895_v35 = vpop.permute.xlu0 %6143  ;;  %v13390_v39 = vld [vmem:[#allocation7_spill] sm:$0xff] }
 0x2f4   : > { %v3777_v32 = vrot.slane %v3659_v37, 1  ;;  %v3778_v48 = vrot.slane %v3660_v27, 1  ;;  %v6141_v28 = vunpack.i.h.bf16 %v6139_v45  ;;  %v6140_v7 = vunpack.i.l.bf16 %v6139_v45 }
 0x2f5   : > { %v3737_v4 = vrot.slane %v3635_v5, 1  ;;  %v3738_v60 = vrot.slane %v3636_v50, 1  ;;  %v13374_v29 = vunpack.i.l.bf16 %v13373_v2  ;;  %vm13376_vm1 = vcmask 531456   ;;  %v13391_v5 = vld [vmem:[#allocation191_spill] sm:$0xff] }
 0x2f6   : > { %v6382_v53 = vpack.i.bf16 %v3776_v41, %v3774_v22  ;;  %v6377_v24 = vpack.i.bf16 %v3736_v0, %v3734_v54  ;;  %v4069_v63 = vand.u32 %v6444_v59, %v4067_v3  ;;  %v13377_v62 = vunpack.i.h.bf16 %v13373_v2  ;;  %vm13379_vm2 = vmmov %vm13376_vm1  ;;  %v13392_v59 = vld [vmem:[#allocation215_spill] sm:$0xff]  ;;  %v13395_v41 = vld [vmem:[#allocation40_spill] sm:$0xff] }
 0x2f7   : > { %v10856_v12 = vsel %vm13376_vm1, %v13375_v56, %v13374_v29  ;;  %vm13381_vm6 = vmmov %vm13376_vm1  ;;  %v3781_v13 = vsel %vm372_vm0, %v3778_v48, %v3780_v19  ;;  %v3741_v33 = vsel %vm372_vm0, %v3738_v60, %v3740_v58  ;;  %v13382_v10 = vunpack.i.h.bf16 %v13235_v17  ;;  %v13388_v17 = vld [vmem:[#allocation174_spill] sm:$0xff]  ;;  %v13399_v2 = vld [vmem:[#allocation164_spill] sm:$0xff] }
 0x2f8   : > { %v10864_v61 = vsel %vm13379_vm2, %v13378_v46, %v13377_v62  ;;  %v10870_v30 = vsel %vm13381_vm6, %v13380_v52, %v5615_v26  ;;  %vm13384_vm12 = vmmov %vm13376_vm1  ;;  %v5866_v6 = vunpack.i.h.bf16 %v13385_v16  ;;  %v5865_v38 = vunpack.i.l.bf16 %v13385_v16  ;;  %6383 = vrot.lane.b32.xlu0 %v6382_v53, %s6484_s27  ;;  %6378 = vrot.lane.b32.xlu1 %v6377_v24, %s6484_s27  ;;  %v10885_v26 = vpop.permute.xlu1 %6148  ;;  %v13400_v53 = vld [vmem:[#allocation186_spill] sm:$0xff]  ;;  %v6154_v46 = vpop.permute.xlu0 %6153 }
 0x2f9   : > { %v10878_v22 = vsel %vm13384_vm12, %v13383_v43, %v13382_v10  ;;  %v5891_v55 = vunpack.i.h.bf16 %v13386_v44  ;;  %v3446_v21 = vsel %vm2283_vm7, %v13387_v51, %v6140_v7  ;;  %v3447_v23 = vsel %vm2283_vm7, %v13388_v17, %v6141_v28  ;;  %4560 = vmatprep.subr.bf16.mxu0 %v4069_v63  ;;  %4601 = vmatprep.subr.bf16.mxu1 %v4069_v63  ;;  %v13397_v28 = vld [vmem:[#allocation51_spill] sm:$0xff]  ;;  %v13402_v52 = vld [vmem:[#allocation210_spill] sm:$0xff]  ;;  %v13403_v10 = vld [vmem:[#allocation232_spill] sm:$0xff] }
 0x2fa   : > { %v3779_v34 = vsel %vm372_vm0, %v3777_v32, %v3778_v48  ;;  %v3739_v42 = vsel %vm372_vm0, %v3737_v4, %v3738_v60  ;;  %v5890_v57 = vunpack.i.l.bf16 %v13386_v44  ;;  %v6150_v36 = vunpack.i.l.bf16 %v10885_v26  ;;  %4561 = vmatpush3.bf16.msra.mxu0 %v4069_v63  ;;  %4609 = vmatpush3.bf16.msra.mxu1 %v4069_v63  ;;  %v13396_v32 = vld [vmem:[#allocation25_spill] sm:$0xff]  ;;  %v13398_v4 = vld [vmem:[#allocation103_spill] sm:$0xff]  ;;  %v13408_v17 = vld [vmem:[#allocation60_spill] sm:$0xff] }
 0x2fb   : > { %v6392_v8 = vpack.i.bf16 %v3781_v13, %v3779_v34  ;;  %v6387_v37 = vpack.i.bf16 %v3741_v33, %v3739_v42  ;;  %v5656_v27 = vunpack.i.h.bf16 %v13389_v15  ;;  %v5655_v25 = vunpack.i.l.bf16 %v13389_v15  ;;  %v13401_v63 = vld [vmem:[#allocation83_spill] sm:$0xff]  ;;  %v13407_v51 = vld [vmem:[#allocation65_spill] sm:$0xff]  ;;  %vm13421_vm1 = vmmov %vm13318_vm13 }
 0x2fc   : > { %v5700_v20 = vunpack.i.l.bf16 %v13390_v39  ;;  %v6146_v14 = vunpack.i.h.bf16 %v10895_v35  ;;  %v5886_v1 = vunpack.i.h.bf16 %v13391_v5  ;;  %v5885_v50 = vunpack.i.l.bf16 %v13391_v5  ;;  %v10911_v45 = vpop.permute.xlu1 %6158  ;;  %v13406_v44 = vld [vmem:[#allocation163_spill] sm:$0xff]  ;;  %vm13427_vm2 = vmmov %vm13421_vm1 }
 0x2fd   : > { %v13393_v58 = vunpack.i.l.bf16 %v13392_v59  ;;  %v13394_v54 = vunpack.i.h.bf16 %v13392_v59  ;;  %6393 = vrot.lane.b32.xlu0 %v6392_v8, %s6484_s27  ;;  %6388 = vrot.lane.b32.xlu1 %v6387_v37, %s6484_s27  ;;  %v3373_v0 = vsel %vm2184_vm4, %v13395_v41, %v5866_v6  ;;  %v3372_v48 = vsel %vm2184_vm4, %v13396_v32, %v5865_v38  ;;  %v13409_v8 = vld [vmem:[#allocation223_spill] sm:$0xff]  ;;  %v10958_v32 = vpop.permute.xlu0 %6163  ;;  %vm13434_vm6 = vmmov %vm13421_vm1 }
 0x2fe   : > { %v3383_v7 = vsel %vm2184_vm4, %v13397_v28, %v5891_v55  ;;  %v5920_v60 = vunpack.i.l.bf16 %v13398_v4  ;;  %v3382_v29 = vsel %vm2184_vm4, %v13399_v2, %v5890_v57  ;;  %v5921_v56 = vunpack.i.h.bf16 %v13398_v4  ;;  %v13412_v59 = vld [vmem:[#allocation251_spill] sm:$0xff]  ;;  %vm13435_vm12 = vmmov %vm13421_vm1 }
 0x2ff   : > { %v3494_v19 = vsel %vm2316_vm8, %v3446_v21, %v13393_v58  ;;  %v3495_v3 = vsel %vm2316_vm8, %v3447_v23, %v13394_v54  ;;  %v3471_v24 = vsel %vm2283_vm7, %v13400_v53, %v6150_v36  ;;  %v3470_v62 = vsel %vm2283_vm7, %v13401_v63, %v6146_v14  ;;  %v13415_v53 = vld [vmem:[#allocation240_spill] sm:$0xff] }
 0x300   : > { %v5941_v13 = vunpack.i.h.bf16 %v13402_v52  ;;  %v5940_v33 = vunpack.i.l.bf16 %v13402_v52  ;;  %v13404_v43 = vunpack.i.l.bf16 %v13403_v10  ;;  %v13405_v6 = vunpack.i.h.bf16 %v13403_v10  ;;  %v10941_v42 = vpop.permute.xlu1 %6168 }
 0x301   : > { %v3381_v55 = vsel %vm2184_vm4, %v13406_v44, %v5886_v1  ;;  %v3380_v21 = vsel %vm2184_vm4, %v13407_v51, %v5885_v50  ;;  %v5946_v23 = vunpack.i.h.bf16 %v13408_v17  ;;  %v5945_v34 = vunpack.i.l.bf16 %v13408_v17 }
 0x302   : > { %v3542_v16 = vsel %vm2349_vm9, %v3494_v19, %v13404_v43  ;;  %v3543_v38 = vsel %vm2349_vm9, %v3495_v3, %v13405_v6  ;;  %v3394_v57 = vsel %vm2217_vm5, %v3372_v48, %v5920_v60  ;;  %v6130_v36 = vunpack.i.l.bf16 %v10826_v49 }
 0x303   : > { %v13410_v37 = vunpack.i.h.bf16 %v13409_v8  ;;  %v13411_v5 = vunpack.i.l.bf16 %v13409_v8  ;;  %v6131_v50 = vunpack.i.h.bf16 %v10826_v49  ;;  %v13413_v58 = vunpack.i.l.bf16 %v13412_v59  ;;  %v13426_v8 = vld [vmem:[#allocation160_spill] sm:$0xff] }
 0x304   : > { %v13414_v54 = vunpack.i.h.bf16 %v13412_v59  ;;  %v6155_v41 = vunpack.i.l.bf16 %v6154_v46  ;;  %v3395_v48 = vsel %vm2217_vm5, %v3373_v0, %v5921_v56  ;;  %v3402_v28 = vsel %vm2217_vm5, %v3380_v21, %v5940_v33  ;;  %v10971_v10 = vpop.permute.xlu1 %6178  ;;  %v13423_v21 = vld [vmem:[#allocation260_spill] sm:$0xff] }
 0x305   : > { %v3519_v14 = vsel %vm2316_vm8, %v3471_v24, %v13410_v37  ;;  %v3518_v1 = vsel %vm2316_vm8, %v3470_v62, %v13411_v5  ;;  %v3590_v19 = vsel %vm2382_vm10, %v3542_v16, %v13413_v58  ;;  %v3403_v4 = vsel %vm2217_vm5, %v3381_v55, %v5941_v13  ;;  %v13418_v13 = vld [vmem:[#allocation155_spill] sm:$0xff]  ;;  %v6174_v55 = vpop.permute.xlu0 %6173 }
 0x306   : > { %v3591_v3 = vsel %vm2382_vm10, %v3543_v38, %v13414_v54  ;;  %v6156_v60 = vunpack.i.h.bf16 %v6154_v46  ;;  %v3405_v49 = vsel %vm2217_vm5, %v3383_v7, %v5946_v23  ;;  %v3404_v2 = vsel %vm2217_vm5, %v3382_v29, %v5945_v34  ;;  %v13422_v38 = vld [vmem:[#allocation158_spill] sm:$0xff] }
 0x307   : > { %v13416_v24 = vunpack.i.h.bf16 %v13415_v53  ;;  %v13417_v62 = vunpack.i.l.bf16 %v13415_v53  ;;  %v3417_v0 = vsel %vm13318_vm13, %v3395_v48, %v6130_v36  ;;  %v6125_v56 = vunpack.i.l.bf16 %v10837_v47  ;;  %vm13436_vm13 = vmmov %vm13421_vm1 }
 0x308   : > { %v13419_v46 = vunpack.i.l.bf16 %v13418_v13  ;;  %v13420_v29 = vunpack.i.h.bf16 %v13418_v13  ;;  %v3425_v43 = vsel %vm13421_vm1, %v3403_v4, %v6131_v50  ;;  %v6126_v16 = vunpack.i.h.bf16 %v10837_v47  ;;  %v6189_v5 = vpop.permute.xlu1 %6188  ;;  %v13431_v4 = vld [vmem:[#allocation187_spill] sm:$0xff] }
 0x309   : > { %v3567_v63 = vsel %vm2349_vm9, %v3519_v14, %v13416_v24  ;;  %v3566_v52 = vsel %vm2349_vm9, %v3518_v1, %v13417_v62  ;;  %v6136_v6 = vunpack.i.h.bf16 %v10858_v18  ;;  %v3449_v44 = vsel %vm2283_vm7, %v13422_v38, %v6155_v41  ;;  %v6184_v48 = vpop.permute.xlu0 %6183 }
 0x30a   : > { %v3638_v7 = vsel %vm2415_vm11, %v3590_v19, %v13419_v46  ;;  %v10981_v33 = vsel %vm2415_vm11, %v3591_v3, %v13420_v29  ;;  %v6135_v51 = vunpack.i.l.bf16 %v10858_v18  ;;  %v13424_v17 = vunpack.i.h.bf16 %v13423_v21  ;;  %v13428_v19 = vld [vmem:[#allocation218_spill] sm:$0xff]  ;;  %v13437_v46 = vld [vmem:[#allocation235_spill] sm:$0xff] }
 0x30b   : > { %v13425_v34 = vunpack.i.l.bf16 %v13423_v21  ;;  %v3450_v37 = vsel %vm2283_vm7, %v13426_v8, %v6156_v60  ;;  %v6151_v47 = vunpack.i.h.bf16 %v10885_v26  ;;  %v6145_v14 = vunpack.i.l.bf16 %v10895_v35 }
 0x30c   : > { %v3615_v23 = vsel %vm2382_vm10, %v3567_v63, %v13424_v17  ;;  %v3742_v1 = vrot.slane %v3638_v7, 1  ;;  %v3743_v50 = vrot.slane %v10981_v33, 1  ;;  %v3416_v18 = vsel %vm13427_vm2, %v3394_v57, %v6125_v56  ;;  %v6199_v38 = vpop.permute.xlu1 %6198 }
 0x30d   : > { %v3614_v36 = vsel %vm2382_vm10, %v3566_v52, %v13425_v34  ;;  %v6161_v59 = vunpack.i.h.bf16 %v10911_v45  ;;  %v6160_v58 = vunpack.i.l.bf16 %v10911_v45  ;;  %v13429_v54 = vunpack.i.l.bf16 %v13428_v19  ;;  %v13440_v34 = vld [vmem:[#allocation254_spill] sm:$0xff] }
 0x30e   : > { %v13430_v41 = vunpack.i.h.bf16 %v13428_v19  ;;  %v6170_v35 = vunpack.i.l.bf16 %v10941_v42  ;;  %v13432_v60 = vunpack.i.l.bf16 %v13431_v4  ;;  %v13433_v57 = vunpack.i.h.bf16 %v13431_v4 }
 0x30f   : > { %v3497_v3 = vsel %vm2316_vm8, %v3449_v44, %v13429_v54  ;;  %v3424_v45 = vsel %vm13434_vm6, %v3402_v28, %v6126_v16  ;;  %v3426_v63 = vsel %vm13435_vm12, %v3404_v2, %v6135_v51  ;;  %v3427_v62 = vsel %vm13436_vm13, %v3405_v49, %v6136_v6 }
 0x310   : > { %v3498_v26 = vsel %vm2316_vm8, %v3450_v37, %v13430_v41  ;;  %v3662_v53 = vsel %vm2415_vm11, %v3614_v36, %v13432_v60  ;;  %v11016_v24 = vsel %vm2415_vm11, %v3615_v23, %v13433_v57  ;;  %v6171_v52 = vunpack.i.h.bf16 %v10941_v42  ;;  %v6194_v23 = vpop.permute.xlu0 %6193  ;;  %v13443_v60 = vld [vmem:[#allocation73_spill] sm:$0xff] }
 0x311   : > { %v3472_v56 = vsel %vm2283_vm7, %v3424_v45, %v6151_v47  ;;  %v3448_v13 = vsel %vm2283_vm7, %v3416_v18, %v6145_v14  ;;  %v13438_v7 = vunpack.i.l.bf16 %v13437_v46  ;;  %v11030_v44 = vsel %vm372_vm0, %v3742_v1, %v3743_v50 }
 0x312   : > { %v13439_v28 = vunpack.i.h.bf16 %v13437_v46  ;;  %v6165_v42 = vunpack.i.l.bf16 %v10958_v32  ;;  %v3782_v2 = vrot.slane %v3662_v53, 1  ;;  %v3783_v16 = vrot.slane %v11016_v24, 1 }
 0x313   : > { %v3545_v29 = vsel %vm2349_vm9, %v3497_v3, %v13438_v7  ;;  %v3451_v6 = vsel %vm2283_vm7, %v3417_v0, %v6160_v58  ;;  %v3473_v51 = vsel %vm2283_vm7, %v3425_v43, %v6161_v59  ;;  %v3496_v21 = vsel %vm2316_vm8, %v3448_v13, %v6170_v35  ;;  %v6209_v58 = vpop.permute.xlu1 %6208 }
 0x314   : > { %v3546_v49 = vsel %vm2349_vm9, %v3498_v26, %v13439_v28  ;;  %v6166_v17 = vunpack.i.h.bf16 %v10958_v32  ;;  %v13441_v36 = vunpack.i.l.bf16 %v13440_v34  ;;  %v3520_v37 = vsel %vm2316_vm8, %v3472_v56, %v6171_v52  ;;  %v6204_v4 = vpop.permute.xlu0 %6203 }
 0x315   : > { %v6180_v47 = vunpack.i.l.bf16 %v10971_v10  ;;  %v6175_v14 = vunpack.i.l.bf16 %v6174_v55  ;;  %v13442_v1 = vunpack.i.h.bf16 %v13440_v34  ;;  %v6181_v43 = vunpack.i.h.bf16 %v10971_v10 }
 0x316   : > { %v3593_v8 = vsel %vm2382_vm10, %v3545_v29, %v13441_v36  ;;  %v6176_v18 = vunpack.i.h.bf16 %v6174_v55  ;;  %v6190_v59 = vunpack.i.l.bf16 %v6189_v5  ;;  %v3474_v32 = vsel %vm2283_vm7, %v3426_v63, %v6165_v42 }
 0x317   : > { %v3594_v0 = vsel %vm2382_vm10, %v3546_v49, %v13442_v1  ;;  %v6191_v19 = vunpack.i.h.bf16 %v6189_v5  ;;  %v6185_v54 = vunpack.i.l.bf16 %v6184_v48  ;;  %v11054_v3 = vsel %vm372_vm0, %v3782_v2, %v3783_v16  ;;  %v6219_v13 = vpop.permute.xlu1 %6218 }
 0x318   : > { %v3475_v41 = vsel %vm2283_vm7, %v3427_v62, %v6166_v17  ;;  %v6186_v26 = vunpack.i.h.bf16 %v6184_v48  ;;  %v6200_v35 = vunpack.i.l.bf16 %v6199_v38  ;;  %v13444_v53 = vunpack.i.l.bf16 %v13443_v60  ;;  %v6214_v17 = vpop.permute.xlu0 %6213 }
 0x319   : > { %v3522_v55 = vsel %vm2316_vm8, %v3474_v32, %v6180_v47  ;;  %v3499_v5 = vsel %vm2316_vm8, %v3451_v6, %v6175_v14  ;;  %v6205_v57 = vunpack.i.l.bf16 %v6204_v4  ;;  %v13445_v45 = vunpack.i.h.bf16 %v13443_v60 }
 0x31a   : > { %v11060_v10 = vsel %vm2415_vm11, %v3593_v8, %v13444_v53  ;;  %v3523_v62 = vsel %vm2316_vm8, %v3475_v41, %v6181_v43  ;;  %v3521_v48 = vsel %vm2316_vm8, %v3473_v51, %v6176_v18  ;;  %v3547_v52 = vsel %vm2349_vm9, %v3499_v5, %v6190_v59 }
 0x31b   : > { %v11067_v63 = vsel %vm2415_vm11, %v3594_v0, %v13445_v45  ;;  %v6201_v56 = vunpack.i.h.bf16 %v6199_v38  ;;  %v3569_v46 = vsel %vm2349_vm9, %v3521_v48, %v6191_v19  ;;  %v3544_v7 = vsel %vm2349_vm9, %v3496_v21, %v6185_v54  ;;  %v11079_v1 = vpop.permute.xlu1 %6228 }
 0x31c   : > { %v6206_v29 = vunpack.i.h.bf16 %v6204_v4  ;;  %v6220_v28 = vunpack.i.l.bf16 %v6219_v13  ;;  %v3568_v49 = vsel %vm2349_vm9, %v3520_v37, %v6186_v26  ;;  %v3592_v42 = vsel %vm2382_vm10, %v3544_v7, %v6200_v35  ;;  %v6224_v54 = vpop.permute.xlu0 %6223 }
 0x31d   : > { %v6195_v2 = vunpack.i.l.bf16 %v6194_v23  ;;  %v6221_v6 = vunpack.i.h.bf16 %v6219_v13  ;;  %v6196_v34 = vunpack.i.h.bf16 %v6194_v23  ;;  %v3595_v51 = vsel %vm2382_vm10, %v3547_v52, %v6205_v57 }
 0x31e   : > { %v6216_v36 = vunpack.i.h.bf16 %v6214_v17  ;;  %v6215_v8 = vunpack.i.l.bf16 %v6214_v17  ;;  %v3616_v38 = vsel %vm2382_vm10, %v3568_v49, %v6201_v56  ;;  %v6211_v47 = vunpack.i.h.bf16 %v6209_v58 }
 0x31f   : > { %v6210_v14 = vunpack.i.l.bf16 %v6209_v58  ;;  %v3643_v21 = vsel %vm2415_vm11, %v3595_v51, %v6220_v28  ;;  %v3617_v37 = vsel %vm2382_vm10, %v3569_v46, %v6206_v29  ;;  %v3747_v23 = vrot.slane %v11060_v10, 1  ;;  %v11090_v53 = vpop.permute.xlu1 %6238 }
 0x320   : > { %v3640_v0 = vsel %vm2415_vm11, %v3592_v42, %v6215_v8  ;;  %v3664_v43 = vsel %vm2415_vm11, %v3616_v38, %v6216_v36  ;;  %v3570_v18 = vsel %vm2349_vm9, %v3522_v55, %v6195_v2  ;;  %v3665_v59 = vsel %vm2415_vm11, %v3617_v37, %v6221_v6  ;;  %v11101_v56 = vpop.permute.xlu0 %6233  ;;  %v13448_v42 = vld [vmem:[#allocation53_spill] sm:$0xff]  ;;  %v13450_v6 = vld [vmem:[#allocation207_spill] sm:$0xff]  ;;  %v13454_v38 = vld [vmem:[#allocation22_spill] sm:$0xff] }
 0x321   : > { %v3745_v32 = vrot.slane %v3640_v0, 1  ;;  %v3785_v19 = vrot.slane %v3664_v43, 1  ;;  %v3571_v58 = vsel %vm2349_vm9, %v3523_v62, %v6196_v34  ;;  %v3750_v41 = vrot.slane %v3643_v21, 1  ;;  %v13453_v36 = vld [vmem:[#allocation145_spill] sm:$0xff] }
 0x322   : > { %v6226_v26 = vunpack.i.h.bf16 %v6224_v54  ;;  %v6225_v35 = vunpack.i.l.bf16 %v6224_v54  ;;  %v3618_v4 = vsel %vm2382_vm10, %v3570_v18, %v6210_v14  ;;  %v3619_v60 = vsel %vm2382_vm10, %v3571_v58, %v6211_v47  ;;  %v13456_v21 = vld [vmem:[#allocation193_spill] sm:$0xff]  ;;  %v13461_v58 = vld [vmem:[#allocation248_spill] sm:$0xff] }
 0x323   : > { %v3786_v10 = vsel %vm372_vm0, %v3783_v16, %v3785_v19  ;;  %v3746_v55 = vsel %vm372_vm0, %v3743_v50, %v3745_v32  ;;  %v3787_v5 = vrot.slane %v3665_v59, 1  ;;  %v3748_v62 = vrot.slane %v11067_v63, 1  ;;  %v13446_v16 = vld [vmem:[#allocation166_spill] sm:$0xff]  ;;  %v6249_v49 = vpop.permute.xlu1 %6248 }
 0x324   : > { %v3666_v57 = vsel %vm2415_vm11, %v3618_v4, %v6225_v35  ;;  %v3667_v45 = vsel %vm2415_vm11, %v3619_v60, %v6226_v26  ;;  %v6402_v13 = vpack.i.bf16 %v3786_v10, %v11054_v3  ;;  %v6397_v24 = vpack.i.bf16 %v3746_v55, %v11030_v44  ;;  %v13447_v50 = vld [vmem:[#allocation6_spill] sm:$0xff]  ;;  %v11134_v14 = vpop.permute.xlu0 %6243  ;;  %v13463_v10 = vld [vmem:[#allocation16_spill] sm:$0xff] }
 0x325   : > { %v3788_v48 = vrot.slane %v3666_v57, 1  ;;  %v3790_v52 = vrot.slane %v3667_v45, 1  ;;  %v5661_v46 = vunpack.i.h.bf16 %v13446_v16  ;;  %v5701_v33 = vunpack.i.h.bf16 %v13390_v39  ;;  %v13464_v45 = vld [vmem:[#allocation34_spill] sm:$0xff] }
 0x326   : > { %v5695_v7 = vunpack.i.l.bf16 %v13447_v50  ;;  %v3751_v29 = vsel %vm372_vm0, %v3748_v62, %v3750_v41  ;;  %v5660_v28 = vunpack.i.l.bf16 %v13446_v16  ;;  %v5696_v63 = vunpack.i.h.bf16 %v13447_v50  ;;  %6403 = vrot.lane.b32.xlu0 %v6402_v13, %s6484_s27  ;;  %6398 = vrot.lane.b32.xlu1 %v6397_v24, %s6484_s27  ;;  %v13466_v50 = vld [vmem:[#allocation102_spill] sm:$0xff] }
 0x327   : > { %v3789_v3 = vsel %vm372_vm0, %v3787_v5, %v3788_v48  ;;  %v3791_v44 = vsel %vm372_vm0, %v3788_v48, %v3790_v52  ;;  %vm13449_vm1 = vcmask 531456   ;;  %vm13452_vm6 = vcmask 572416   ;;  %v11149_v59 = vpop.permute.xlu1 %6258  ;;  %v13465_v52 = vld [vmem:[#allocation15_spill] sm:$0xff] }
 0x328   : > { %v2597_v2 = vsel %vm13449_vm1, %v13448_v42, %v5655_v25  ;;  %vm13451_vm2 = vmmov %vm13449_vm1  ;;  %v11129_v34 = vsel %vm13452_vm6, %v10856_v12, %v5700_v20  ;;  %v3749_v51 = vsel %vm372_vm0, %v3747_v23, %v3748_v62  ;;  %v5735_v8 = vunpack.i.l.bf16 %v13453_v36  ;;  %v13458_v20 = vld [vmem:[#allocation11_spill] sm:$0xff]  ;;  %v11157_v35 = vpop.permute.xlu0 %6253 }
 0x329   : > { %v11123_v17 = vsel %vm13451_vm2, %v13450_v6, %v5656_v27  ;;  %v5775_v47 = vunpack.i.l.bf16 %v13454_v38  ;;  %v6412_v25 = vpack.i.bf16 %v3791_v44, %v3789_v3  ;;  %v6407_v15 = vpack.i.bf16 %v3751_v29, %v3749_v51  ;;  %vm13455_vm12 = vmmov %vm13452_vm6  ;;  %v13459_v23 = vld [vmem:[#allocation195_spill] sm:$0xff] }
 0x32a   : > { %v11138_v27 = vsel %vm13455_vm12, %v10864_v61, %v5701_v33  ;;  %v5776_v39 = vunpack.i.h.bf16 %v13454_v38  ;;  %v5871_v37 = vunpack.i.h.bf16 %v13456_v21  ;;  %vm13457_vm13 = vmmov %vm13452_vm6  ;;  %v5741_v0 = vunpack.i.h.bf16 %v13458_v20  ;;  %v13469_v44 = vld [vmem:[#allocation259_spill] sm:$0xff] }
 0x32b   : > { %v2614_v12 = vsel %vm13457_vm13, %v10870_v30, %v5695_v7  ;;  %v5870_v43 = vunpack.i.l.bf16 %v13456_v21  ;;  %v5901_v18 = vunpack.i.h.bf16 %v13459_v23  ;;  %6413 = vrot.lane.b32.xlu0 %v6412_v25, %s6484_s27  ;;  %6408 = vrot.lane.b32.xlu1 %v6407_v15, %s6484_s27  ;;  %vm13460_vm1 = vmmov %vm13452_vm6  ;;  %v5740_v32 = vunpack.i.l.bf16 %v13458_v20  ;;  %v11178_v33 = vpop.permute.xlu1 %6268  ;;  %v13471_v51 = vld [vmem:[#allocation211_spill] sm:$0xff]  ;;  %v13472_v25 = vld [vmem:[#allocation14_spill] sm:$0xff] }
 0x32c   : > { %v2615_v61 = vsel %vm13460_vm1, %v10878_v22, %v5696_v63  ;;  %v5736_v19 = vunpack.i.h.bf16 %v13453_v36  ;;  %v6251_v30 = vunpack.i.h.bf16 %v6249_v49  ;;  %v6250_v54 = vunpack.i.l.bf16 %v6249_v49  ;;  %vm13462_vm2 = vmmov %vm13460_vm1  ;;  %v13468_v49 = vld [vmem:[#allocation156_spill] sm:$0xff]  ;;  %v6264_v38 = vpop.permute.xlu0 %6263 }
 0x32d   : > { %v5780_v41 = vunpack.i.l.bf16 %v13461_v58  ;;  %v5900_v26 = vunpack.i.l.bf16 %v13459_v23  ;;  %v11160_v4 = vsel %vm2646_vm3, %v2614_v12, %v5775_v47  ;;  %v11163_v60 = vsel %vm13462_vm2, %v2597_v2, %v5735_v8  ;;  %v13473_v12 = vld [vmem:[#allocation54_spill] sm:$0xff]  ;;  %v13474_v23 = vld [vmem:[#allocation217_spill] sm:$0xff] }
 0x32e   : > { %v5816_v22 = vunpack.i.h.bf16 %v13463_v10  ;;  %v5815_v55 = vunpack.i.l.bf16 %v13463_v10  ;;  %v3375_v5 = vsel %vm2184_vm4, %v13233_v9, %v5871_v37  ;;  %v11170_v57 = vsel %vm2646_vm3, %v2615_v61, %v5776_v39  ;;  %v13467_v9 = vld [vmem:[#allocation154_spill] sm:$0xff] }
 0x32f   : > { %v3374_v62 = vsel %vm2184_vm4, %v13464_v45, %v5870_v43  ;;  %v3387_v48 = vsel %vm2184_vm4, %v13213_v31, %v5901_v18  ;;  %v5896_v13 = vunpack.i.h.bf16 %v13465_v52  ;;  %v5895_v24 = vunpack.i.l.bf16 %v13465_v52  ;;  %v13470_v31 = vld [vmem:[#allocation50_spill] sm:$0xff]  ;;  %v13477_v45 = vld [vmem:[#allocation245_spill] sm:$0xff] }
 0x330   : > { %v5906_v7 = vunpack.i.h.bf16 %v13466_v50  ;;  %v5905_v29 = vunpack.i.l.bf16 %v13466_v50  ;;  %v3452_v63 = vsel %vm2283_vm7, %v13467_v9, %v6250_v54  ;;  %v3453_v3 = vsel %vm2283_vm7, %v13468_v49, %v6251_v30  ;;  %v13478_v50 = vld [vmem:[#allocation244_spill] sm:$0xff] }
 0x331   : > { %v3386_v42 = vsel %vm2184_vm4, %v13469_v44, %v5900_v26  ;;  %v5926_v2 = vunpack.i.h.bf16 %v13470_v31  ;;  %v5925_v6 = vunpack.i.l.bf16 %v13470_v31  ;;  %v5951_v8 = vunpack.i.h.bf16 %v13471_v51  ;;  %v11201_v26 = vpop.permute.xlu1 %6278 }
 0x332   : > { %v5950_v47 = vunpack.i.l.bf16 %v13471_v51  ;;  %v5961_v15 = vunpack.i.h.bf16 %v13472_v25  ;;  %v6266_v39 = vunpack.i.h.bf16 %v6264_v38  ;;  %v6265_v21 = vunpack.i.l.bf16 %v6264_v38  ;;  %v13479_v51 = vld [vmem:[#allocation132_spill] sm:$0xff]  ;;  %v13480_v38 = vld [vmem:[#allocation135_spill] sm:$0xff] }
 0x333   : > { %v5960_v37 = vunpack.i.l.bf16 %v13472_v25  ;;  %v5956_v43 = vunpack.i.h.bf16 %v13473_v12  ;;  %v13475_v18 = vunpack.i.l.bf16 %v13474_v23  ;;  %v13476_v30 = vunpack.i.h.bf16 %v13474_v23 }
 0x334   : > { %v3385_v52 = vsel %vm2184_vm4, %v13477_v45, %v5896_v13  ;;  %v3384_v9 = vsel %vm2184_vm4, %v13478_v50, %v5895_v24  ;;  %v3389_v49 = vsel %vm2184_vm4, %v13223_v40, %v5906_v7  ;;  %v3388_v44 = vsel %vm2184_vm4, %v13214_v11, %v5905_v29  ;;  %v11217_v13 = vpop.permute.xlu0 %6273  ;;  %v13481_v40 = vld [vmem:[#allocation234_spill] sm:$0xff]  ;;  %v13487_v45 = vld [vmem:[#allocation253_spill] sm:$0xff] }
 0x335   : > { %v3500_v61 = vsel %vm2316_vm8, %v3452_v63, %v13475_v18  ;;  %v3501_v54 = vsel %vm2316_vm8, %v3453_v3, %v13476_v30  ;;  %v3397_v63 = vsel %vm2217_vm5, %v3375_v5, %v5926_v2  ;;  %v3396_v31 = vsel %vm2217_vm5, %v3374_v62, %v5925_v6  ;;  %v13484_v18 = vld [vmem:[#allocation220_spill] sm:$0xff] }
 0x336   : > { %v3455_v3 = vsel %vm2283_vm7, %v13479_v51, %v6265_v21  ;;  %v3456_v25 = vsel %vm2283_vm7, %v13480_v38, %v6266_v39  ;;  %v3406_v24 = vsel %vm2217_vm5, %v3384_v9, %v5950_v47  ;;  %v5955_v23 = vunpack.i.l.bf16 %v13473_v12  ;;  %v11231_v21 = vpop.permute.xlu1 %6288  ;;  %v13490_v38 = vld [vmem:[#allocation237_spill] sm:$0xff] }
 0x337   : > { %v13482_v7 = vunpack.i.l.bf16 %v13481_v40  ;;  %v13483_v5 = vunpack.i.h.bf16 %v13481_v40  ;;  %v3407_v29 = vsel %vm2217_vm5, %v3385_v52, %v5951_v8  ;;  %v3410_v2 = vsel %vm2217_vm5, %v3388_v44, %v5960_v37 }
 0x338   : > { %v3411_v6 = vsel %vm2217_vm5, %v3389_v49, %v5961_v15  ;;  %v3409_v39 = vsel %vm2217_vm5, %v3387_v48, %v5956_v43  ;;  %v6231_v47 = vunpack.i.h.bf16 %v11079_v1  ;;  %v6230_v12 = vunpack.i.l.bf16 %v11079_v1  ;;  %v11249_v50 = vpop.permute.xlu0 %6283 }
 0x339   : > { %v3548_v11 = vsel %vm2349_vm9, %v3500_v61, %v13482_v7  ;;  %v3549_v62 = vsel %vm2349_vm9, %v3501_v54, %v13483_v5  ;;  %v13485_v61 = vunpack.i.l.bf16 %v13484_v18  ;;  %v13486_v54 = vunpack.i.h.bf16 %v13484_v18 }
 0x33a   : > { %v6241_v37 = vunpack.i.h.bf16 %v11090_v53  ;;  %v6240_v15 = vunpack.i.l.bf16 %v11090_v53  ;;  %v13488_v48 = vunpack.i.l.bf16 %v13487_v45  ;;  %v13489_v52 = vunpack.i.h.bf16 %v13487_v45  ;;  %v6299_v5 = vpop.permute.xlu1 %6298 }
 0x33b   : > { %v3503_v30 = vsel %vm2316_vm8, %v3455_v3, %v13485_v61  ;;  %v3504_v8 = vsel %vm2316_vm8, %v3456_v25, %v13486_v54  ;;  %v3408_v9 = vsel %vm2217_vm5, %v3386_v42, %v5955_v23  ;;  %v6236_v49 = vunpack.i.h.bf16 %v11101_v56 }
 0x33c   : > { %v3596_v43 = vsel %vm2382_vm10, %v3548_v11, %v13488_v48  ;;  %v3597_v1 = vsel %vm2382_vm10, %v3549_v62, %v13489_v52  ;;  %v6235_v44 = vunpack.i.l.bf16 %v11101_v56  ;;  %v6246_v51 = vunpack.i.h.bf16 %v11134_v14  ;;  %v13493_v56 = vld [vmem:[#allocation169_spill] sm:$0xff] }
 0x33d   : > { %v6245_v53 = vunpack.i.l.bf16 %v11134_v14  ;;  %v6261_v3 = vunpack.i.h.bf16 %v11149_v59  ;;  %v13491_v25 = vunpack.i.l.bf16 %v13490_v38  ;;  %v13492_v7 = vunpack.i.h.bf16 %v13490_v38  ;;  %v13501_v38 = vld [vmem:[#allocation256_spill] sm:$0xff] }
 0x33e   : > { %v6260_v42 = vunpack.i.l.bf16 %v11149_v59  ;;  %v6255_v23 = vunpack.i.l.bf16 %v11157_v35  ;;  %v13494_v62 = vunpack.i.l.bf16 %v13493_v56  ;;  %v13495_v14 = vunpack.i.h.bf16 %v13493_v56  ;;  %v6294_v59 = vpop.permute.xlu0 %6293 }
 0x33f   : > { %v3551_v40 = vsel %vm2349_vm9, %v3503_v30, %v13491_v25  ;;  %v3552_v11 = vsel %vm2349_vm9, %v3504_v8, %v13492_v7  ;;  %vm13496_vm4 = vcmask 121856   ;;  %v6256_v52 = vunpack.i.h.bf16 %v11157_v35 }
 0x340   : > { %v3644_v18 = vsel %vm2415_vm11, %v3596_v43, %v13494_v62  ;;  %v11271_v61 = vsel %vm2415_vm11, %v3597_v1, %v13495_v14  ;;  %v3418_v30 = vsel %vm13496_vm4, %v3396_v31, %v6230_v12  ;;  %vm13497_vm5 = vmmov %vm13496_vm4  ;;  %v13502_v43 = vunpack.i.l.bf16 %v13501_v38 }
 0x341   : > { %v3428_v54 = vsel %vm13497_vm5, %v3406_v24, %v6231_v47  ;;  %vm13498_vm6 = vmmov %vm13496_vm4  ;;  %v13503_v1 = vunpack.i.h.bf16 %v13501_v38  ;;  %v3753_v47 = vrot.slane %v11271_v61, 1  ;;  %v6290_v56 = vunpack.i.l.bf16 %v11231_v21 }
 0x342   : > { %v3419_v8 = vsel %vm13498_vm6, %v3397_v63, %v6240_v15  ;;  %vm13499_vm12 = vmmov %vm13496_vm4  ;;  %v3599_v25 = vsel %vm2382_vm10, %v3551_v40, %v13502_v43  ;;  %v11287_v63 = vpop.permute.xlu1 %6308  ;;  %v6271_v15 = vunpack.i.h.bf16 %v11178_v33  ;;  %v6286_v14 = vunpack.i.h.bf16 %v11249_v50 }
 0x343   : > { %v3431_v45 = vsel %vm13499_vm12, %v3409_v39, %v6241_v37  ;;  %vm13500_vm13 = vmmov %vm13496_vm4  ;;  %v3600_v7 = vsel %vm2382_vm10, %v3552_v11, %v13503_v1  ;;  %v3752_v39 = vrot.slane %v3644_v18, 1  ;;  %v3454_v37 = vsel %vm2283_vm7, %v3418_v30, %v6255_v23 }
 0x344   : > { %v3429_v48 = vsel %vm13500_vm13, %v3407_v29, %v6235_v44  ;;  %vm13504_vm1 = vmmov %vm13496_vm4  ;;  %v6270_v44 = vunpack.i.l.bf16 %v11178_v33  ;;  %v6276_v33 = vunpack.i.h.bf16 %v11217_v13  ;;  %v6291_v23 = vunpack.i.h.bf16 %v11231_v21 }
 0x345   : > { %v3430_v31 = vsel %vm13504_vm1, %v3408_v9, %v6236_v49  ;;  %vm13505_vm2 = vmmov %vm13504_vm1  ;;  %v3477_v35 = vsel %vm2283_vm7, %v3429_v48, %v6260_v42  ;;  %v6304_v9 = vpop.permute.xlu0 %6303  ;;  %v13507_v49 = vld [vmem:[#allocation172_spill] sm:$0xff]  ;;  %v6275_v42 = vunpack.i.l.bf16 %v11217_v13  ;;  %v11314_v18 = vsel %vm372_vm0, %v3752_v39, %v3753_v47 }
 0x346   : > { %v3432_v24 = vsel %vm13505_vm2, %v3410_v2, %v6245_v53  ;;  %vm13506_vm4 = vmmov %vm13504_vm1  ;;  %v3478_v12 = vsel %vm2283_vm7, %v3430_v31, %v6261_v3  ;;  %v13508_v2 = vunpack.i.l.bf16 %v13507_v49  ;;  %v13509_v40 = vunpack.i.h.bf16 %v13507_v49  ;;  %v6319_v62 = vpop.permute.xlu1 %6318 }
 0x347   : > { %v3433_v29 = vsel %vm13506_vm4, %v3411_v6, %v6246_v51  ;;  %v3476_v6 = vsel %vm2283_vm7, %v3428_v54, %v6256_v52  ;;  %v6281_v51 = vunpack.i.h.bf16 %v11201_v26  ;;  %v6280_v3 = vunpack.i.l.bf16 %v11201_v26 }
 0x348   : > { %v3647_v53 = vsel %vm2415_vm11, %v3599_v25, %v13508_v2  ;;  %v11302_v11 = vsel %vm2415_vm11, %v3600_v7, %v13509_v40  ;;  %v6285_v30 = vunpack.i.l.bf16 %v11249_v50  ;;  %v3457_v48 = vsel %vm2283_vm7, %v3419_v8, %v6270_v44 }
 0x349   : > { %v3757_v54 = vrot.slane %v3647_v53, 1  ;;  %v3758_v26 = vrot.slane %v11302_v11, 1  ;;  %v3479_v13 = vsel %vm2283_vm7, %v3431_v45, %v6271_v15  ;;  %v6301_v52 = vunpack.i.h.bf16 %v6299_v5  ;;  %v6314_v21 = vpop.permute.xlu0 %6313 }
 0x34a   : > { %v6300_v38 = vunpack.i.l.bf16 %v6299_v5  ;;  %v3502_v43 = vsel %vm2316_vm8, %v3454_v37, %v6280_v3  ;;  %v3524_v25 = vsel %vm2316_vm8, %v3476_v6, %v6281_v51  ;;  %v3480_v1 = vsel %vm2283_vm7, %v3432_v24, %v6275_v42  ;;  %v6329_v8 = vpop.permute.xlu1 %6328 }
 0x34b   : > { %v6295_v7 = vunpack.i.l.bf16 %v6294_v59  ;;  %v3481_v31 = vsel %vm2283_vm7, %v3433_v29, %v6276_v33  ;;  %v3505_v50 = vsel %vm2316_vm8, %v3457_v48, %v6290_v56  ;;  %v6296_v39 = vunpack.i.h.bf16 %v6294_v59 }
 0x34c   : > { %v6310_v49 = vunpack.i.l.bf16 %v11287_v63  ;;  %v3527_v45 = vsel %vm2316_vm8, %v3479_v13, %v6291_v23  ;;  %v3525_v5 = vsel %vm2316_vm8, %v3477_v35, %v6285_v30  ;;  %v3526_v15 = vsel %vm2316_vm8, %v3478_v12, %v6286_v14 }
 0x34d   : > { %v11333_v37 = vsel %vm372_vm0, %v3757_v54, %v3758_v26  ;;  %v3550_v24 = vsel %vm2349_vm9, %v3502_v43, %v6300_v38  ;;  %v3572_v29 = vsel %vm2349_vm9, %v3524_v25, %v6301_v52  ;;  %v6311_v59 = vunpack.i.h.bf16 %v11287_v63  ;;  %v6324_v2 = vpop.permute.xlu0 %6323 }
 0x34e   : > { %v6320_v44 = vunpack.i.l.bf16 %v6319_v62  ;;  %v3528_v53 = vsel %vm2316_vm8, %v3480_v1, %v6295_v7  ;;  %v6306_v40 = vunpack.i.h.bf16 %v6304_v9  ;;  %v6305_v6 = vunpack.i.l.bf16 %v6304_v9  ;;  %v6339_v33 = vpop.permute.xlu1 %6338 }
 0x34f   : > { %v6321_v35 = vunpack.i.h.bf16 %v6319_v62  ;;  %v3529_v12 = vsel %vm2316_vm8, %v3481_v31, %v6296_v39  ;;  %v3553_v51 = vsel %vm2349_vm9, %v3505_v50, %v6310_v49  ;;  %v6316_v3 = vunpack.i.h.bf16 %v6314_v21 }
 0x350   : > { %v6315_v42 = vunpack.i.l.bf16 %v6314_v21  ;;  %vm3898_vm7 = vcmask 654336   ;;  %v6331_v23 = vunpack.i.h.bf16 %v6329_v8  ;;  %v6330_v56 = vunpack.i.l.bf16 %v6329_v8 }
 0x351   : > { %v6341_v14 = vunpack.i.h.bf16 %v6339_v33  ;;  %v6340_v30 = vunpack.i.l.bf16 %v6339_v33  ;;  %v3575_v63 = vsel %vm2349_vm9, %v3527_v45, %v6311_v59  ;;  %v3598_v54 = vsel %vm2382_vm10, %v3550_v24, %v6320_v44  ;;  %v6334_v9 = vpop.permute.xlu0 %6333 }
 0x352   : > { %v6326_v48 = vunpack.i.h.bf16 %v6324_v2  ;;  %v6325_v13 = vunpack.i.l.bf16 %v6324_v2  ;;  %v3573_v62 = vsel %vm2349_vm9, %v3525_v5, %v6305_v6  ;;  %v3574_v52 = vsel %vm2349_vm9, %v3526_v15, %v6306_v40  ;;  %v6349_v31 = vpop.permute.xlu1 %6348 }
 0x353   : > { %v3620_v38 = vsel %vm2382_vm10, %v3572_v29, %v6321_v35  ;;  %v3646_v21 = vsel %vm2415_vm11, %v3598_v54, %v6340_v30  ;;  %v3576_v43 = vsel %vm2349_vm9, %v3528_v53, %v6315_v42  ;;  %v3577_v25 = vsel %vm2349_vm9, %v3529_v12, %v6316_v3 }
 0x354   : > { %v3755_v1 = vrot.slane %v3646_v21, 1  ;;  %v6335_v7 = vunpack.i.l.bf16 %v6334_v9  ;;  %vm4017_vm8 = vcmask 1022976   ;;  %v3601_v50 = vsel %vm2382_vm10, %v3553_v51, %v6330_v56 }
 0x355   : > { %v3623_v39 = vsel %vm2382_vm10, %v3575_v63, %v6331_v23  ;;  %v3668_v49 = vsel %vm2415_vm11, %v3620_v38, %v6341_v14  ;;  %v6350_v8 = vunpack.i.l.bf16 %v6349_v31  ;;  %v3621_v45 = vsel %vm2382_vm10, %v3573_v62, %v6325_v13  ;;  %v6344_v24 = vpop.permute.xlu0 %6343 }
 0x356   : > { %v3622_v5 = vsel %vm2382_vm10, %v3574_v52, %v6326_v48  ;;  %v6351_v15 = vunpack.i.h.bf16 %v6349_v31  ;;  %v3756_v29 = vsel %vm372_vm0, %v3753_v47, %v3755_v1  ;;  %v6336_v59 = vunpack.i.h.bf16 %v6334_v9  ;;  %v6359_v12 = vpop.permute.xlu1 %6358 }
 0x357   : > { %v3649_v44 = vsel %vm2415_vm11, %v3601_v50, %v6350_v8  ;;  %v6346_v2 = vunpack.i.h.bf16 %v6344_v24  ;;  %v6345_v53 = vunpack.i.l.bf16 %v6344_v24  ;;  %v3792_v40 = vrot.slane %v3668_v49, 1 }
 0x358   : > { %v3624_v6 = vsel %vm2382_vm10, %v3576_v43, %v6335_v7  ;;  %v3760_v35 = vrot.slane %v3649_v44, 1  ;;  %v6417_v51 = vpack.i.bf16 %v3756_v29, %v11314_v18  ;;  %v6361_v33 = vunpack.i.h.bf16 %v6359_v12 }
 0x359   : > { %v3669_v3 = vsel %vm2415_vm11, %v3621_v45, %v6345_v53  ;;  %v3670_v42 = vsel %vm2415_vm11, %v3622_v5, %v6346_v2  ;;  %v6360_v61 = vunpack.i.l.bf16 %v6359_v12  ;;  %v3671_v47 = vsel %vm2415_vm11, %v3623_v39, %v6351_v15  ;;  %v6354_v14 = vpop.permute.xlu0 %6353  ;;  %v13515_v53 = vld [vmem:[#allocation123_spill] sm:$0xff] }
 0x35a   : > { %v3793_v23 = vrot.slane %v3669_v3, 1  ;;  %v3795_v56 = vrot.slane %v3670_v42, 1  ;;  %6418 = vrot.lane.b32.xlu1 %v6417_v51, %s6484_s27  ;;  %v3761_v30 = vsel %vm372_vm0, %v3758_v26, %v3760_v35  ;;  %v6356_v63 = vunpack.i.h.bf16 %v6354_v14  ;;  %v6369_v39 = vpop.permute.xlu1 %6368 }
 0x35b   : > { %v6355_v54 = vunpack.i.l.bf16 %v6354_v14  ;;  %v6427_v18 = vpack.i.bf16 %v3761_v30, %v11333_v37  ;;  %v3899_v48 = vsel %vm3898_vm7, %v11160_v4, %v6360_v61  ;;  %v3625_v13 = vsel %vm2382_vm10, %v3577_v25, %v6336_v59  ;;  %v13512_v59 = vld [vmem:[#allocation133_spill] sm:$0xff] }
 0x35c   : > { %v3794_v9 = vsel %vm372_vm0, %v3792_v40, %v3793_v23  ;;  %v3796_v62 = vsel %vm372_vm0, %v3793_v23, %v3795_v56  ;;  %v3900_v52 = vsel %vm3898_vm7, %v11170_v57, %v6361_v33  ;;  %v3673_v26 = vsel %vm2415_vm11, %v3625_v13, %v6356_v63  ;;  %v13516_v40 = vld [vmem:[#allocation206_spill] sm:$0xff]  ;;  %v13522_v56 = vld [vmem:[#allocation129_spill] sm:$0xff] }
 0x35d   : > { %v3672_v11 = vsel %vm2415_vm11, %v3624_v6, %v6355_v54  ;;  %v6422_v38 = vpack.i.bf16 %v3796_v62, %v3794_v9  ;;  %v3931_v21 = vpack.c.bf16 %v3900_v52, %v3899_v48  ;;  %v5781_v37 = vunpack.i.h.bf16 %v13461_v58  ;;  %v6364_v7 = vpop.permute.xlu0 %6363  ;;  %v13523_v30 = vld [vmem:[#allocation121_spill] sm:$0xff]  ;;  %v13525_v54 = vld [vmem:[#allocation194_spill] sm:$0xff] }
 0x35e   : > { %v3797_v43 = vrot.slane %v3671_v47, 1  ;;  %v3798_v1 = vrot.slane %v3672_v11, 1  ;;  %v3800_v4 = vrot.slane %v3673_v26, 1  ;;  %6428 = vrot.lane.b32.xlu1 %v6427_v18, %s6484_s27  ;;  %v2649_v25 = vsel %vm2646_vm3, %v11129_v34, %v5780_v41  ;;  %v13521_v47 = vld [vmem:[#allocation124_spill] sm:$0xff]  ;;  %v13526_v48 = vld [vmem:[#allocation130_spill] sm:$0xff] }
 0x35f   : > { %v6366_v57 = vunpack.i.h.bf16 %v6364_v7  ;;  %v6365_v31 = vunpack.i.l.bf16 %v6364_v7  ;;  %6423 = vrot.lane.b32.xlu0 %v6422_v38, %s6484_s27  ;;  %4562 = vmatprep.mubr.msk.bf16.mxu0 %vm4017_vm8, %v3931_v21  ;;  %vm13510_vm9 = vcmask 572416   ;;  %v2663_v34 = vsel %vm2646_vm3, %v11163_v60, %v5815_v55  ;;  %v13514_v55 = vld [vmem:[#allocation201_spill] sm:$0xff]  ;;  %v13528_v11 = vld [vmem:[#allocation192_spill] sm:$0xff] }
 0x360   : > { %v2631_v50 = vsel %vm13510_vm9, %v11123_v17, %v5736_v19  ;;  %v3799_v49 = vsel %vm372_vm0, %v3797_v43, %v3798_v1  ;;  %v3801_v8 = vsel %vm372_vm0, %v3798_v1, %v3800_v4  ;;  %v6371_v41 = vunpack.i.h.bf16 %v6369_v39  ;;  %v13511_v19 = vld [vmem:[#allocation176_spill] sm:$0xff]  ;;  %vm13519_vm11 = vmmov %vm13510_vm9  ;;  %v13530_v43 = vld [vmem:[#allocation139_spill] sm:$0xff] }
 0x361   : > { %v2664_v58 = vsel %vm2646_vm3, %v2631_v50, %v5816_v22  ;;  %v6370_v45 = vunpack.i.l.bf16 %v6369_v39  ;;  %v6432_v36 = vpack.i.bf16 %v3801_v8, %v3799_v49  ;;  %v3915_v5 = vsel %vm3898_vm7, %v2663_v34, %v6365_v31  ;;  %v6374_v51 = vpop.permute.xlu0 %6373  ;;  %vm13520_vm5 = vmmov %vm13510_vm9  ;;  %v13529_v38 = vld [vmem:[#allocation136_spill] sm:$0xff]  ;;  %v13531_v4 = vld [vmem:[#allocation18_spill] sm:$0xff] }
 0x362   : > { %v2650_v17 = vsel %vm2646_vm3, %v11138_v27, %v5781_v37  ;;  %v5821_v15 = vunpack.i.h.bf16 %v13511_v19  ;;  %v5820_v24 = vunpack.i.l.bf16 %v13511_v19  ;;  %v3916_v29 = vsel %vm3898_vm7, %v2664_v58, %v6366_v57  ;;  %v13533_v57 = vld [vmem:[#allocation196_spill] sm:$0xff]  ;;  %v13534_v39 = vld [vmem:[#allocation146_spill] sm:$0xff]  ;;  %vm13555_vm9 = vmmov %vm13520_vm5 }
 0x363   : > { %v13513_v60 = vunpack.i.h.bf16 %v13512_v59  ;;  %v3901_v22 = vsel %vm3898_vm7, %v2649_v25, %v6370_v45  ;;  %v3902_v44 = vsel %vm3898_vm7, %v2650_v17, %v6371_v41  ;;  %6433 = vrot.lane.b32.xlu0 %v6432_v36, %s6484_s27  ;;  %v3939_v2 = vpack.c.bf16 %v3916_v29, %v3915_v5  ;;  %v13535_v8 = vld [vmem:[#allocation98_spill] sm:$0xff]  ;;  %v13536_v58 = vld [vmem:[#allocation200_spill] sm:$0xff] }
 0x364   : > { %v5510_v27 = vunpack.i.l.bf16 %v13515_v53  ;;  %vm13517_vm0 = vcmask 531456   ;;  %v3932_v12 = vpack.c.bf16 %v3902_v44, %v3901_v22  ;;  %v6376_v33 = vunpack.i.h.bf16 %v6374_v51  ;;  %v13537_v45 = vld [vmem:[#allocation56_spill] sm:$0xff]  ;;  %v13538_v5 = vld [vmem:[#allocation58_spill] sm:$0xff] }
 0x365   : > { %v2567_v10 = vsel %vm2547_vm15, %v13514_v55, %v13513_v60  ;;  %v2599_v6 = vsel %vm13517_vm0, %v13516_v40, %v5660_v28  ;;  %vm13518_vm10 = vmmov %vm13517_vm0  ;;  %v6375_v61 = vunpack.i.l.bf16 %v6374_v51  ;;  %4578 = vmatprep.mubr.msk.bf16.mxu1 %vm4017_vm8, %v3939_v2  ;;  %v5506_v28 = vunpack.i.h.bf16 %v13521_v47  ;;  %v13539_v29 = vld [vmem:[#allocation150_spill] sm:$0xff] }
 0x366   : > { %v2600_v35 = vsel %vm13518_vm10, %v2567_v10, %v5661_v46  ;;  %v2632_v3 = vsel %vm13519_vm11, %v2599_v6, %v5740_v32  ;;  %v5505_v16 = vunpack.i.l.bf16 %v13521_v47  ;;  %4563 = vmatmul.mubr.msk.bf16.vlgmr.msra.gmra.mrb[0].mxu0 %vm4017_vm8, %v3932_v12  ;;  %v5551_v32 = vunpack.i.h.bf16 %v13522_v56  ;;  %v13542_v6 = vld [vmem:[#allocation5_spill] sm:$0xff]  ;;  %v13543_v51 = vld [vmem:[#allocation142_spill] sm:$0xff]  ;;  %vm13544_vm6 = vmmov %vm13517_vm0 }
 0x367   : > { %v2633_v42 = vsel %vm13520_vm5, %v2600_v35, %v5741_v0  ;;  %v2665_v46 = vsel %vm2646_vm3, %v2632_v3, %v5820_v24  ;;  %v5550_v20 = vunpack.i.l.bf16 %v13522_v56  ;;  %v13524_v63 = vunpack.i.l.bf16 %v13523_v30  ;;  %vm13545_vm12 = vmmov %vm13517_vm0  ;;  %v13546_v47 = vld [vmem:[#allocation170_spill] sm:$0xff] }
 0x368   : > { %v2666_v23 = vsel %vm2646_vm3, %v2633_v42, %v5821_v15  ;;  %v3917_v14 = vsel %vm3898_vm7, %v2665_v46, %v6375_v61  ;;  %v5546_v13 = vunpack.i.h.bf16 %v13526_v48  ;;  %v5545_v9 = vunpack.i.l.bf16 %v13526_v48  ;;  %vm13550_vm13 = vmmov %vm13517_vm0 }
 0x369   : > { %v3918_v0 = vsel %vm3898_vm7, %v2666_v23, %v6376_v33  ;;  %v2519_v18 = vsel %vm2514_vm14, %v13525_v54, %v13524_v63  ;;  %v13527_v52 = vunpack.i.h.bf16 %v13523_v30  ;;  %v5591_v21 = vunpack.i.h.bf16 %v13529_v38  ;;  %v13548_v23 = vld [vmem:[#allocation9_spill] sm:$0xff]  ;;  %vm13551_vm1 = vmmov %vm13517_vm0  ;;  %v13552_v63 = vld [vmem:[#allocation159_spill] sm:$0xff] }
 0x36a   : > { %v3940_v62 = vpack.c.bf16 %v3918_v0, %v3917_v14  ;;  %v5590_v37 = vunpack.i.l.bf16 %v13529_v38  ;;  %v5585_v1 = vunpack.i.l.bf16 %v13530_v43  ;;  %v2537_v7 = vsel %vm2514_vm14, %v13531_v4, %v5510_v27  ;;  %vm13553_vm2 = vmmov %vm13517_vm0 }
 0x36b   : > { %v2520_v26 = vsel %vm2514_vm14, %v13528_v11, %v13527_v52  ;;  %v13532_v25 = vunpack.i.h.bf16 %v13515_v53  ;;  %v5586_v50 = vunpack.i.h.bf16 %v13530_v43  ;;  %v5630_v49 = vunpack.i.l.bf16 %v13534_v39  ;;  %v13541_v53 = vld [vmem:[#allocation2_spill] sm:$0xff]  ;;  %vm13554_vm4 = vmmov %vm13517_vm0 }
 0x36c   : > { %4579 = vmatmul.mubr.msk.bf16.vlgmr.msra.gmra.mrb[0].mxu1 %vm4017_vm8, %v3940_v62  ;;  %v2535_v34 = vsel %vm2514_vm14, %v13535_v8, %v5505_v16  ;;  %v2536_v41 = vsel %vm2514_vm14, %v13536_v58, %v5506_v28  ;;  %v2554_v36 = vsel %vm2547_vm15, %v13537_v45, %v5550_v20  ;;  %v2555_v17 = vsel %vm2547_vm15, %v13538_v5, %v5551_v32  ;;  %v13549_v32 = vld [vmem:[#allocation147_spill] sm:$0xff] }
 0x36d   : > { %v2538_v31 = vsel %vm2514_vm14, %v13533_v57, %v13532_v25  ;;  %v2552_v19 = vsel %vm2547_vm15, %v2519_v18, %v5545_v9  ;;  %v2553_v15 = vsel %vm2547_vm15, %v2520_v26, %v5546_v13  ;;  %v5631_v24 = vunpack.i.h.bf16 %v13534_v39  ;;  %vm13540_vm14 = vmmov %vm13517_vm0  ;;  %v13559_v26 = vld [vmem:[#allocation43_spill] sm:$0xff]  ;;  %v6384_v39 = vpop.permute.xlu0 %6383 }
 0x36e   : > { %v5625_v59 = vunpack.i.l.bf16 %v13539_v29  ;;  %v2570_v60 = vsel %vm2547_vm15, %v2537_v7, %v5590_v37  ;;  %v2571_v55 = vsel %vm2547_vm15, %v2538_v31, %v5591_v21  ;;  %v2568_v10 = vsel %vm2547_vm15, %v2535_v34, %v5585_v1  ;;  %v13563_v7 = vld [vmem:[#allocation149_spill] sm:$0xff]  ;;  %v13564_v45 = vld [vmem:[#allocation151_spill] sm:$0xff] }
 0x36f   : > { %v5626_v22 = vunpack.i.h.bf16 %v13539_v29  ;;  %v2569_v44 = vsel %vm2547_vm15, %v2536_v41, %v5586_v50  ;;  %v2587_v2 = vsel %vm13540_vm14, %v2554_v36, %v5630_v49  ;;  %v5671_v27 = vunpack.i.h.bf16 %v13541_v53  ;;  %vm13547_vm15 = vmmov %vm13517_vm0  ;;  %v6379_v49 = vpop.permute.xlu1 %6378 }
 0x370   : > { %v5670_v40 = vunpack.i.l.bf16 %v13541_v53  ;;  %v5666_v35 = vunpack.i.h.bf16 %v13542_v6  ;;  %v5665_v12 = vunpack.i.l.bf16 %v13542_v6  ;;  %v5711_v3 = vunpack.i.h.bf16 %v13543_v51  ;;  %vm13556_vm0 = vmmov %vm13520_vm5 }
 0x371   : > { %v5710_v42 = vunpack.i.l.bf16 %v13543_v51  ;;  %v2588_v33 = vsel %vm13544_vm6, %v2555_v17, %v5631_v24  ;;  %v2585_v61 = vsel %vm13545_vm12, %v2552_v19, %v5625_v59  ;;  %v5706_v28 = vunpack.i.h.bf16 %v13546_v47  ;;  %vm13557_vm10 = vmmov %vm13556_vm0 }
 0x372   : > { %v5705_v16 = vunpack.i.l.bf16 %v13546_v47  ;;  %v2586_v46 = vsel %vm13547_vm15, %v2553_v15, %v5626_v22  ;;  %v5750_v56 = vunpack.i.l.bf16 %v13548_v23  ;;  %v5746_v20 = vunpack.i.h.bf16 %v13549_v32  ;;  %vm13558_vm11 = vmmov %vm13556_vm0 }
 0x373   : > { %v5745_v0 = vunpack.i.l.bf16 %v13549_v32  ;;  %v2603_v14 = vsel %vm13550_vm13, %v2570_v60, %v5670_v40  ;;  %v2604_v30 = vsel %vm13551_vm1, %v2571_v55, %v5671_v27  ;;  %v5786_v54 = vunpack.i.h.bf16 %v13552_v63  ;;  %vm13560_vm5 = vmmov %vm13556_vm0 }
 0x374   : > { %v5785_v18 = vunpack.i.l.bf16 %v13552_v63  ;;  %v2601_v48 = vsel %vm13553_vm2, %v2568_v10, %v5665_v12  ;;  %v2602_v13 = vsel %vm13554_vm4, %v2569_v44, %v5666_v35  ;;  %v2620_v9 = vsel %vm13555_vm9, %v2587_v2, %v5710_v42  ;;  %vm13561_vm14 = vmmov %vm13556_vm0  ;;  %v6394_v44 = vpop.permute.xlu0 %6393  ;;  %v6389_v2 = vpop.permute.xlu1 %6388 }
 0x375   : > { %v2621_v62 = vsel %vm13556_vm0, %v2588_v33, %v5711_v3  ;;  %v2618_v52 = vsel %vm13557_vm10, %v2585_v61, %v5705_v16  ;;  %v2619_v11 = vsel %vm13558_vm11, %v2586_v46, %v5706_v28  ;;  %v5826_v38 = vunpack.i.h.bf16 %v13559_v26  ;;  %vm13562_vm6 = vmmov %vm13556_vm0 }
 0x376   : > { %v5825_v21 = vunpack.i.l.bf16 %v13559_v26  ;;  %v5751_v37 = vunpack.i.h.bf16 %v13548_v23  ;;  %v2636_v43 = vsel %vm13560_vm5, %v2603_v14, %v5750_v56  ;;  %v2634_v1 = vsel %vm13561_vm14, %v2601_v48, %v5745_v0  ;;  %vm13565_vm12 = vmmov %vm13556_vm0  ;;  %v13566_v0 = vld [vmem:[#allocation74_spill] sm:$0xff]  ;;  %v13569_v48 = vld [vmem:[#allocation167_spill] sm:$0xff] }
 0x377   : > { %v2635_v4 = vsel %vm13562_vm6, %v2602_v13, %v5746_v20  ;;  %v5791_v25 = vunpack.i.h.bf16 %v13563_v7  ;;  %v5790_v57 = vunpack.i.l.bf16 %v13563_v7  ;;  %v2651_v31 = vsel %vm2646_vm3, %v2618_v52, %v5785_v18 }
 0x378   : > { %v2652_v50 = vsel %vm2646_vm3, %v2619_v11, %v5786_v54  ;;  %v6386_v8 = vunpack.i.h.bf16 %v6384_v39  ;;  %v6385_v34 = vunpack.i.l.bf16 %v6384_v39  ;;  %v6381_v58 = vunpack.i.h.bf16 %v6379_v49  ;;  %v13568_v54 = vld [vmem:[#allocation64_spill] sm:$0xff] }
 0x379   : > { %v6380_v41 = vunpack.i.l.bf16 %v6379_v49  ;;  %v5831_v36 = vunpack.i.h.bf16 %v13564_v45  ;;  %v5830_v5 = vunpack.i.l.bf16 %v13564_v45  ;;  %v2667_v17 = vsel %vm2646_vm3, %v2634_v1, %v5825_v21 }
 0x37a   : > { %v2668_v19 = vsel %vm2646_vm3, %v2635_v4, %v5826_v38  ;;  %v3919_v15 = vsel %vm3898_vm7, %v2667_v17, %v6385_v34  ;;  %v3904_v29 = vsel %vm3898_vm7, %v2652_v50, %v6381_v58  ;;  %v2637_v60 = vsel %vm13565_vm12, %v2604_v30, %v5751_v37  ;;  %v13567_v30 = vld [vmem:[#allocation178_spill] sm:$0xff]  ;;  %v13571_v4 = vld [vmem:[#allocation175_spill] sm:$0xff] }
 0x37b   : > { %v3920_v24 = vsel %vm3898_vm7, %v2668_v19, %v6386_v8  ;;  %v3903_v59 = vsel %vm3898_vm7, %v2651_v31, %v6380_v41  ;;  %v2653_v55 = vsel %vm2646_vm3, %v2620_v9, %v5790_v57  ;;  %v6396_v53 = vunpack.i.h.bf16 %v6394_v44  ;;  %v13573_v31 = vld [vmem:[#allocation161_spill] sm:$0xff]  ;;  %v13574_v41 = vld [vmem:[#allocation28_spill] sm:$0xff] }
 0x37c   : > { %v3941_v10 = vpack.c.bf16 %v3920_v24, %v3919_v15  ;;  %v3933_v22 = vpack.c.bf16 %v3904_v29, %v3903_v59  ;;  %v6395_v27 = vunpack.i.l.bf16 %v6394_v44  ;;  %v6391_v40 = vunpack.i.h.bf16 %v6389_v2 }
 0x37d   : > { %v6390_v6 = vunpack.i.l.bf16 %v6389_v2  ;;  %v2654_v35 = vsel %vm2646_vm3, %v2621_v62, %v5791_v25  ;;  %v2669_v12 = vsel %vm2646_vm3, %v2636_v43, %v5830_v5  ;;  %v2670_v51 = vsel %vm2646_vm3, %v2637_v60, %v5831_v36  ;;  %v13570_v43 = vld [vmem:[#allocation55_spill] sm:$0xff]  ;;  %v13572_v25 = vld [vmem:[#allocation165_spill] sm:$0xff]  ;;  %v13578_v2 = vld [vmem:[#allocation184_spill] sm:$0xff] }
 0x37e   : > { %4566 = vmatprep.mubr.msk.bf16.mxu0 %vm4017_vm8, %v3933_v22  ;;  %4582 = vmatprep.mubr.msk.bf16.mxu1 %vm4017_vm8, %v3941_v10  ;;  %v3922_v3 = vsel %vm3898_vm7, %v2670_v51, %v6396_v53  ;;  %v3921_v42 = vsel %vm3898_vm7, %v2669_v12, %v6395_v27  ;;  %v3906_v33 = vsel %vm3898_vm7, %v2654_v35, %v6391_v40  ;;  %v13575_v36 = vld [vmem:[#allocation21_spill] sm:$0xff]  ;;  %v13577_v22 = vld [vmem:[#allocation10_spill] sm:$0xff] }
 0x37f   : > { %v3905_v61 = vsel %vm3898_vm7, %v2653_v55, %v6390_v6  ;;  %v3942_v47 = vpack.c.bf16 %v3922_v3, %v3921_v42  ;;  %v13576_v55 = vld [vmem:[#allocation177_spill] sm:$0xff]  ;;  %v13580_v42 = vld [vmem:[#allocation75_spill] sm:$0xff] }
 0x380   : > { %v3934_v28 = vpack.c.bf16 %v3906_v33, %v3905_v61  ;;  %v13579_v27 = vld [vmem:[#allocation93_spill] sm:$0xff]  ;;  %v13581_v61 = vld [vmem:[#allocation183_spill] sm:$0xff] }
 0x381   : > { %4583 = vmatmul.mubr.msk.bf16.gmra.mrb[4].mxu1 %vm4017_vm8, %v3942_v47 }
 0x382   : > { %4567 = vmatmul.mubr.msk.bf16.gmra.mrb[4].mxu0 %vm4017_vm8, %v3934_v28 }
 0x398   : > { %v6404_v16 = vpop.permute.xlu0 %6403  ;;  %v6399_v46 = vpop.permute.xlu1 %6398 }
 0x399   : > { %v6406_v23 = vunpack.i.h.bf16 %v6404_v16  ;;  %v6405_v56 = vunpack.i.l.bf16 %v6404_v16  ;;  %v6401_v32 = vunpack.i.h.bf16 %v6399_v46  ;;  %v6400_v20 = vunpack.i.l.bf16 %v6399_v46  ;;  %v11574_v16 = vld [vmem:[%s11688_s2] ss:$0 sm:$0xff] }
 0x39b   : > { %v3924_v14 = vsel %vm3898_vm7, %v13566_v0, %v6406_v23  ;;  %v3923_v63 = vsel %vm3898_vm7, %v13567_v30, %v6405_v56  ;;  %v3908_v18 = vsel %vm3898_vm7, %v13568_v54, %v6401_v32  ;;  %v3907_v13 = vsel %vm3898_vm7, %v13569_v48, %v6400_v20 }
 0x39c   : > { %v3943_v9 = vpack.c.bf16 %v3924_v14, %v3923_v63  ;;  %v3935_v62 = vpack.c.bf16 %v3908_v18, %v3907_v13 }
 0x39d   : > { %v6414_v52 = vpop.permute.xlu0 %6413  ;;  %v6409_v11 = vpop.permute.xlu1 %6408 }
 0x39e   : > { %v6416_v26 = vunpack.i.h.bf16 %v6414_v52  ;;  %v6415_v38 = vunpack.i.l.bf16 %v6414_v52  ;;  %v6411_v21 = vunpack.i.h.bf16 %v6409_v11  ;;  %v6410_v37 = vunpack.i.l.bf16 %v6409_v11  ;;  %4570 = vmatprep.mubr.msk.bf16.mxu0 %vm4017_vm8, %v3935_v62  ;;  %4586 = vmatprep.mubr.msk.bf16.mxu1 %vm4017_vm8, %v3943_v9 }
 0x3a0   : > { %v3926_v1 = vsel %vm3898_vm7, %v13570_v43, %v6416_v26  ;;  %v3925_v7 = vsel %vm3898_vm7, %v13571_v4, %v6415_v38  ;;  %v3910_v57 = vsel %vm3898_vm7, %v13572_v25, %v6411_v21  ;;  %v3909_v50 = vsel %vm3898_vm7, %v13573_v31, %v6410_v37 }
 0x3a1   : > { %v3944_v39 = vpack.c.bf16 %v3926_v1, %v3925_v7  ;;  %v3936_v49 = vpack.c.bf16 %v3910_v57, %v3909_v50 }
 0x3a3   : > { %4571 = vmatmul.mubr.msk.bf16.gmra.mrb[8].mxu0 %vm4017_vm8, %v3936_v49  ;;  %4587 = vmatmul.mubr.msk.bf16.gmra.mrb[8].mxu1 %vm4017_vm8, %v3944_v39 }
 0x3cc   : > { %v6419_v8 = vpop.permute.xlu1 %6418 }
 0x3cd   : > { %v6421_v34 = vunpack.i.h.bf16 %v6419_v8  ;;  %v6420_v58 = vunpack.i.l.bf16 %v6419_v8 }
 0x3cf   : > { %v3912_v45 = vsel %vm3898_vm7, %v13574_v41, %v6421_v34  ;;  %v3911_v5 = vsel %vm3898_vm7, %v13575_v36, %v6420_v58 }
 0x3d0   : > { %v3937_v17 = vpack.c.bf16 %v3912_v45, %v3911_v5  ;;  %v6429_v19 = vpop.permute.xlu1 %6428 }
 0x3d1   : > { %v6424_v15 = vpop.permute.xlu0 %6423  ;;  %v6431_v24 = vunpack.i.h.bf16 %v6429_v19  ;;  %v6430_v29 = vunpack.i.l.bf16 %v6429_v19 }
 0x3d2   : > { %v6426_v59 = vunpack.i.h.bf16 %v6424_v15  ;;  %v6425_v60 = vunpack.i.l.bf16 %v6424_v15  ;;  %4574 = vmatprep.mubr.msk.bf16.mxu0 %vm4017_vm8, %v3937_v17 }
 0x3d3   : > { %v3914_v10 = vsel %vm3898_vm7, %v13576_v55, %v6431_v24  ;;  %v3913_v44 = vsel %vm3898_vm7, %v13577_v22, %v6430_v29 }
 0x3d4   : > { %v3928_v53 = vsel %vm3898_vm7, %v13578_v2, %v6426_v59  ;;  %v3927_v40 = vsel %vm3898_vm7, %v13579_v27, %v6425_v60  ;;  %v3938_v6 = vpack.c.bf16 %v3914_v10, %v3913_v44 }
 0x3d5   : > { %v3945_v35 = vpack.c.bf16 %v3928_v53, %v3927_v40  ;;  %v6434_v12 = vpop.permute.xlu0 %6433 }
 0x3d6   : > { %v6436_v51 = vunpack.i.h.bf16 %v6434_v12  ;;  %v6435_v3 = vunpack.i.l.bf16 %v6434_v12  ;;  %4575 = vmatmul.mubr.msk.bf16.gmra.mrb[12].mxu0 %vm4017_vm8, %v3938_v6 }
 0x3d7   : > { %4590 = vmatprep.mubr.msk.bf16.mxu1 %vm4017_vm8, %v3945_v35 }
 0x3d8   : > { %v3930_v33 = vsel %vm3898_vm7, %v13580_v42, %v6436_v51  ;;  %v3929_v47 = vsel %vm3898_vm7, %v13581_v61, %v6435_v3  ;;  %vm4328_vm7 = vcmask 261120  }
 0x3d9   : > { %v3946_v28 = vpack.c.bf16 %v3930_v33, %v3929_v47 }
 0x3db   : > { %4591 = vmatmul.mubr.msk.bf16.gmra.mrb[12].mxu1 %vm4017_vm8, %v3946_v28 }
 0x439   : > { %v4564_v46 = vpop.f32.mrb[0].mxu0 }
 0x43a   : > { %v4114_v23 = vadd.f32 %v4564_v46, %v11574_v16  ;;  %v4105_v56 = vpop.f32.mrb[1].mxu0 }
 0x43b   : > { %v4106_v32 = vadd.f32 %v11574_v16, %v4105_v56  ;;  %v4565_v20 = vpop.f32.mrb[2].mxu0 }
 0x43c   : > { %vm4234_vm3 = vcmp.gt.f32.partialorder %v4114_v23, 0.0  ;;  %v4266_v0 = vmul.f32 0.1, %v4114_v23  ;;  %v4117_v14 = vadd.f32 %v4565_v20, %v11574_v16  ;;  %v4108_v30 = vpop.f32.mrb[3].mxu0 }
 0x43d   : > { %vm4232_vm8 = vcmp.gt.f32.partialorder %v4106_v32, 0.0  ;;  %v4264_v63 = vmul.f32 0.1, %v4106_v32  ;;  %v4109_v54 = vadd.f32 %v11574_v16, %v4108_v30 }
 0x43e   : > { %v4298_v48 = vsel %vm4234_vm3, %v4114_v23, %v4266_v0  ;;  %vm4235_vm15 = vcmp.gt.f32.partialorder %v4117_v14, 0.0  ;;  %v4267_v13 = vmul.f32 0.1, %v4117_v14 }
 0x43f   : > { %v4580_v18 = vpop.f32.mrb[0].mxu1  ;;  %4331 = vst.msk [vmem:[%s11581_s9 + $0x10] sm:$0xff] %vm4328_vm7, %v4298_v48  ;;  %v4296_v52 = vsel %vm4232_vm8, %v4106_v32, %v4264_v63  ;;  %vm4233_vm13 = vcmp.gt.f32.partialorder %v4109_v54, 0.0  ;;  %v4265_v11 = vmul.f32 0.1, %v4109_v54 }
 0x440   : > { %v4178_v9 = vadd.f32 %v4580_v18, %v11574_v16  ;;  %v4169_v62 = vpop.f32.mrb[1].mxu1  ;;  %4329 = vst.msk [vmem:[%s11581_s9] sm:$0xff] %vm4328_vm7, %v4296_v52  ;;  %v4299_v21 = vsel %vm4235_vm15, %v4117_v14, %v4267_v13 }
 0x441   : > { %v4170_v26 = vadd.f32 %v11574_v16, %v4169_v62  ;;  %v4581_v38 = vpop.f32.mrb[2].mxu1  ;;  %4332 = vst.msk [vmem:[%s11581_s9 + $0x18] sm:$0xff] %vm4328_vm7, %v4299_v21  ;;  %v4297_v4 = vsel %vm4233_vm13, %v4109_v54, %v4265_v11 }
 0x442   : > { %vm4250_vm1 = vcmp.gt.f32.partialorder %v4178_v9, 0.0  ;;  %v4282_v37 = vmul.f32 0.1, %v4178_v9  ;;  %v4181_v43 = vadd.f32 %v4581_v38, %v11574_v16  ;;  %v4172_v1 = vpop.f32.mrb[3].mxu1  ;;  %4330 = vst.msk [vmem:[%s11581_s9 + $0x8] sm:$0xff] %vm4328_vm7, %v4297_v4 }
 0x443   : > { %vm4248_vm2 = vcmp.gt.f32.partialorder %v4170_v26, 0.0  ;;  %v4280_v7 = vmul.f32 0.1, %v4170_v26  ;;  %v4173_v25 = vadd.f32 %v11574_v16, %v4172_v1 }
 0x444   : > { %v4314_v57 = vsel %vm4250_vm1, %v4178_v9, %v4282_v37  ;;  %vm4251_vm4 = vcmp.gt.f32.partialorder %v4181_v43, 0.0  ;;  %v4283_v31 = vmul.f32 0.1, %v4181_v43 }
 0x445   : > { %4347 = vst.msk [vmem:[%s11581_s9 + $0x90] sm:$0xff] %vm4328_vm7, %v4314_v57  ;;  %v4312_v50 = vsel %vm4248_vm2, %v4170_v26, %v4280_v7  ;;  %vm4249_vm9 = vcmp.gt.f32.partialorder %v4173_v25, 0.0  ;;  %v4281_v39 = vmul.f32 0.1, %v4173_v25 }
 0x446   : > { %4345 = vst.msk [vmem:[%s11581_s9 + $0x80] sm:$0xff] %vm4328_vm7, %v4312_v50  ;;  %v4315_v49 = vsel %vm4251_vm4, %v4181_v43, %v4283_v31 }
 0x447   : > { %4348 = vst.msk [vmem:[%s11581_s9 + $0x98] sm:$0xff] %vm4328_vm7, %v4315_v49  ;;  %v4313_v8 = vsel %vm4249_vm9, %v4173_v25, %v4281_v39 }
 0x448   : > { %4346 = vst.msk [vmem:[%s11581_s9 + $0x88] sm:$0xff] %vm4328_vm7, %v4313_v8 }
 0x454   : > { %v4584_v58 = vpop.f32.mrb[4].mxu1 }
 0x455   : > { %v4568_v34 = vpop.f32.mrb[4].mxu0  ;;  %v4194_v45 = vadd.f32 %v4584_v58, %v11574_v16  ;;  %v4185_v5 = vpop.f32.mrb[5].mxu1 }
 0x456   : > { %v4130_v41 = vadd.f32 %v4568_v34, %v11574_v16  ;;  %v4121_v36 = vpop.f32.mrb[5].mxu0  ;;  %v4186_v19 = vadd.f32 %v11574_v16, %v4185_v5  ;;  %v4585_v24 = vpop.f32.mrb[6].mxu1 }
 0x457   : > { %v4122_v17 = vadd.f32 %v11574_v16, %v4121_v36  ;;  %v4569_v15 = vpop.f32.mrb[6].mxu0  ;;  %vm4254_vm10 = vcmp.gt.f32.partialorder %v4194_v45, 0.0  ;;  %v4286_v59 = vmul.f32 0.1, %v4194_v45  ;;  %v4197_v2 = vadd.f32 %v4585_v24, %v11574_v16  ;;  %v4188_v27 = vpop.f32.mrb[7].mxu1 }
 0x458   : > { %vm4238_vm0 = vcmp.gt.f32.partialorder %v4130_v41, 0.0  ;;  %v4270_v29 = vmul.f32 0.1, %v4130_v41  ;;  %vm4252_vm5 = vcmp.gt.f32.partialorder %v4186_v19, 0.0  ;;  %v4284_v55 = vmul.f32 0.1, %v4186_v19 }
 0x459   : > { %vm4236_vm11 = vcmp.gt.f32.partialorder %v4122_v17, 0.0  ;;  %v4268_v60 = vmul.f32 0.1, %v4122_v17  ;;  %v4318_v22 = vsel %vm4254_vm10, %v4194_v45, %v4286_v59  ;;  %v4133_v44 = vadd.f32 %v4569_v15, %v11574_v16  ;;  %v4124_v53 = vpop.f32.mrb[7].mxu0 }
 0x45a   : > { %v4302_v10 = vsel %vm4238_vm0, %v4130_v41, %v4270_v29  ;;  %4351 = vst.msk [vmem:[%s11581_s9 + $0xb0] sm:$0xff] %vm4328_vm7, %v4318_v22  ;;  %v4316_v6 = vsel %vm4252_vm5, %v4186_v19, %v4284_v55  ;;  %v4125_v35 = vadd.f32 %v11574_v16, %v4124_v53  ;;  %v4189_v12 = vadd.f32 %v11574_v16, %v4188_v27 }
 0x45b   : > { %4335 = vst.msk [vmem:[%s11581_s9 + $0x30] sm:$0xff] %vm4328_vm7, %v4302_v10  ;;  %v4300_v40 = vsel %vm4236_vm11, %v4122_v17, %v4268_v60  ;;  %4349 = vst.msk [vmem:[%s11581_s9 + $0xa0] sm:$0xff] %vm4328_vm7, %v4316_v6  ;;  %vm4239_vm14 = vcmp.gt.f32.partialorder %v4133_v44, 0.0  ;;  %v4271_v51 = vmul.f32 0.1, %v4133_v44  ;;  %vm4255_vm6 = vcmp.gt.f32.partialorder %v4197_v2, 0.0 }
 0x45c   : > { %4333 = vst.msk [vmem:[%s11581_s9 + $0x20] sm:$0xff] %vm4328_vm7, %v4300_v40  ;;  %v4287_v3 = vmul.f32 0.1, %v4197_v2  ;;  %vm4237_vm12 = vcmp.gt.f32.partialorder %v4125_v35, 0.0  ;;  %v4269_v42 = vmul.f32 0.1, %v4125_v35 }
 0x45d   : > { %vm4253_vm3 = vcmp.gt.f32.partialorder %v4189_v12, 0.0  ;;  %v4285_v33 = vmul.f32 0.1, %v4189_v12  ;;  %v4303_v61 = vsel %vm4239_vm14, %v4133_v44, %v4271_v51 }
 0x45e   : > { %v4319_v47 = vsel %vm4255_vm6, %v4197_v2, %v4287_v3  ;;  %4336 = vst.msk [vmem:[%s11581_s9 + $0x38] sm:$0xff] %vm4328_vm7, %v4303_v61  ;;  %v4301_v28 = vsel %vm4237_vm12, %v4125_v35, %v4269_v42 }
 0x45f   : > { %4352 = vst.msk [vmem:[%s11581_s9 + $0xb8] sm:$0xff] %vm4328_vm7, %v4319_v47  ;;  %v4317_v46 = vsel %vm4253_vm3, %v4189_v12, %v4285_v33  ;;  %4334 = vst.msk [vmem:[%s11581_s9 + $0x28] sm:$0xff] %vm4328_vm7, %v4301_v28 }
 0x460   : > { %4350 = vst.msk [vmem:[%s11581_s9 + $0xa8] sm:$0xff] %vm4328_vm7, %v4317_v46 }
 0x476   : > { %v4572_v23 = vpop.f32.mrb[8].mxu0  ;;  %v4588_v56 = vpop.f32.mrb[8].mxu1 }
 0x477   : > { %v4146_v32 = vadd.f32 %v4572_v23, %v11574_v16  ;;  %v4210_v20 = vadd.f32 %v4588_v56, %v11574_v16  ;;  %v4137_v0 = vpop.f32.mrb[9].mxu0  ;;  %v4201_v14 = vpop.f32.mrb[9].mxu1 }
 0x478   : > { %v4138_v30 = vadd.f32 %v11574_v16, %v4137_v0  ;;  %v4202_v63 = vadd.f32 %v11574_v16, %v4201_v14  ;;  %v4573_v54 = vpop.f32.mrb[10].mxu0  ;;  %v4589_v18 = vpop.f32.mrb[10].mxu1 }
 0x479   : > { %vm4242_vm8 = vcmp.gt.f32.partialorder %v4146_v32, 0.0  ;;  %v4274_v48 = vmul.f32 0.1, %v4146_v32  ;;  %vm4258_vm15 = vcmp.gt.f32.partialorder %v4210_v20, 0.0  ;;  %v4290_v13 = vmul.f32 0.1, %v4210_v20 }
 0x47a   : > { %vm4240_vm13 = vcmp.gt.f32.partialorder %v4138_v30, 0.0  ;;  %v4272_v9 = vmul.f32 0.1, %v4138_v30  ;;  %vm4256_vm1 = vcmp.gt.f32.partialorder %v4202_v63, 0.0  ;;  %v4288_v62 = vmul.f32 0.1, %v4202_v63 }
 0x47b   : > { %v4306_v52 = vsel %vm4242_vm8, %v4146_v32, %v4274_v48  ;;  %v4322_v11 = vsel %vm4258_vm15, %v4210_v20, %v4290_v13  ;;  %v4149_v26 = vadd.f32 %v4573_v54, %v11574_v16  ;;  %v4213_v38 = vadd.f32 %v4589_v18, %v11574_v16  ;;  %v4140_v21 = vpop.f32.mrb[11].mxu0  ;;  %v4204_v37 = vpop.f32.mrb[11].mxu1 }
 0x47c   : > { %4339 = vst.msk [vmem:[%s11581_s9 + $0x50] sm:$0xff] %vm4328_vm7, %v4306_v52  ;;  %4355 = vst.msk [vmem:[%s11581_s9 + $0xd0] sm:$0xff] %vm4328_vm7, %v4322_v11  ;;  %v4304_v43 = vsel %vm4240_vm13, %v4138_v30, %v4272_v9  ;;  %v4320_v1 = vsel %vm4256_vm1, %v4202_v63, %v4288_v62  ;;  %v4141_v4 = vadd.f32 %v11574_v16, %v4140_v21 }
 0x47d   : > { %v4205_v7 = vadd.f32 %v11574_v16, %v4204_v37  ;;  %4337 = vst.msk [vmem:[%s11581_s9 + $0x40] sm:$0xff] %vm4328_vm7, %v4304_v43  ;;  %4353 = vst.msk [vmem:[%s11581_s9 + $0xc0] sm:$0xff] %vm4328_vm7, %v4320_v1  ;;  %vm4243_vm2 = vcmp.gt.f32.partialorder %v4149_v26, 0.0  ;;  %v4275_v25 = vmul.f32 0.1, %v4149_v26  ;;  %vm4259_vm4 = vcmp.gt.f32.partialorder %v4213_v38, 0.0 }
 0x47e   : > { %v4291_v57 = vmul.f32 0.1, %v4213_v38  ;;  %vm4241_vm9 = vcmp.gt.f32.partialorder %v4141_v4, 0.0  ;;  %v4273_v31 = vmul.f32 0.1, %v4141_v4 }
 0x47f   : > { %vm4257_vm0 = vcmp.gt.f32.partialorder %v4205_v7, 0.0  ;;  %v4289_v50 = vmul.f32 0.1, %v4205_v7  ;;  %v4307_v39 = vsel %vm4243_vm2, %v4149_v26, %v4275_v25 }
 0x480   : > { %v4323_v49 = vsel %vm4259_vm4, %v4213_v38, %v4291_v57  ;;  %4340 = vst.msk [vmem:[%s11581_s9 + $0x58] sm:$0xff] %vm4328_vm7, %v4307_v39  ;;  %v4305_v8 = vsel %vm4241_vm9, %v4141_v4, %v4273_v31 }
 0x481   : > { %4356 = vst.msk [vmem:[%s11581_s9 + $0xd8] sm:$0xff] %vm4328_vm7, %v4323_v49  ;;  %v4321_v34 = vsel %vm4257_vm0, %v4205_v7, %v4289_v50  ;;  %4338 = vst.msk [vmem:[%s11581_s9 + $0x48] sm:$0xff] %vm4328_vm7, %v4305_v8 }
 0x482   : > { %4354 = vst.msk [vmem:[%s11581_s9 + $0xc8] sm:$0xff] %vm4328_vm7, %v4321_v34 }
 0x4a9   : > { %v4576_v58 = vpop.f32.mrb[12].mxu0 }
 0x4aa   : > { %v4162_v41 = vadd.f32 %v4576_v58, %v11574_v16  ;;  %v4153_v45 = vpop.f32.mrb[13].mxu0 }
 0x4ab   : > { %v4154_v36 = vadd.f32 %v11574_v16, %v4153_v45  ;;  %v4577_v5 = vpop.f32.mrb[14].mxu0 }
 0x4ac   : > { %vm4246_vm10 = vcmp.gt.f32.partialorder %v4162_v41, 0.0  ;;  %v4278_v17 = vmul.f32 0.1, %v4162_v41  ;;  %v4165_v19 = vadd.f32 %v4577_v5, %v11574_v16  ;;  %v4156_v15 = vpop.f32.mrb[15].mxu0 }
 0x4ad   : > { %vm4244_vm11 = vcmp.gt.f32.partialorder %v4154_v36, 0.0  ;;  %v4276_v24 = vmul.f32 0.1, %v4154_v36  ;;  %v4157_v29 = vadd.f32 %v11574_v16, %v4156_v15 }
 0x4ae   : > { %v4310_v59 = vsel %vm4246_vm10, %v4162_v41, %v4278_v17  ;;  %vm4247_vm5 = vcmp.gt.f32.partialorder %v4165_v19, 0.0  ;;  %v4279_v60 = vmul.f32 0.1, %v4165_v19  ;;  %v4592_v55 = vpop.f32.mrb[12].mxu1 }
 0x4af   : > { %4343 = vst.msk [vmem:[%s11581_s9 + $0x70] sm:$0xff] %vm4328_vm7, %v4310_v59  ;;  %v4308_v10 = vsel %vm4244_vm11, %v4154_v36, %v4276_v24  ;;  %vm4245_vm14 = vcmp.gt.f32.partialorder %v4157_v29, 0.0  ;;  %v4277_v22 = vmul.f32 0.1, %v4157_v29  ;;  %v4226_v44 = vadd.f32 %v4592_v55, %v11574_v16  ;;  %v4217_v2 = vpop.f32.mrb[13].mxu1 }
 0x4b0   : > { %4341 = vst.msk [vmem:[%s11581_s9 + $0x60] sm:$0xff] %vm4328_vm7, %v4308_v10  ;;  %v4311_v53 = vsel %vm4247_vm5, %v4165_v19, %v4279_v60  ;;  %v4218_v27 = vadd.f32 %v11574_v16, %v4217_v2  ;;  %v4593_v40 = vpop.f32.mrb[14].mxu1 }
 0x4b1   : > { %4344 = vst.msk [vmem:[%s11581_s9 + $0x78] sm:$0xff] %vm4328_vm7, %v4311_v53  ;;  %v4309_v6 = vsel %vm4245_vm14, %v4157_v29, %v4277_v22  ;;  %vm4262_vm6 = vcmp.gt.f32.partialorder %v4226_v44, 0.0  ;;  %v4294_v35 = vmul.f32 0.1, %v4226_v44  ;;  %v4229_v12 = vadd.f32 %v4593_v40, %v11574_v16  ;;  %v4220_v51 = vpop.f32.mrb[15].mxu1 }
 0x4b2   : > { %4342 = vst.msk [vmem:[%s11581_s9 + $0x68] sm:$0xff] %vm4328_vm7, %v4309_v6  ;;  %vm4260_vm12 = vcmp.gt.f32.partialorder %v4218_v27, 0.0  ;;  %v4292_v3 = vmul.f32 0.1, %v4218_v27  ;;  %v4221_v42 = vadd.f32 %v11574_v16, %v4220_v51 }
 0x4b3   : > { %v4326_v33 = vsel %vm4262_vm6, %v4226_v44, %v4294_v35  ;;  %vm4263_vm3 = vcmp.gt.f32.partialorder %v4229_v12, 0.0  ;;  %v4295_v61 = vmul.f32 0.1, %v4229_v12 }
 0x4b4   : > { %4359 = vst.msk [vmem:[%s11581_s9 + $0xf0] sm:$0xff] %vm4328_vm7, %v4326_v33  ;;  %v4324_v47 = vsel %vm4260_vm12, %v4218_v27, %v4292_v3  ;;  %vm4261_vm8 = vcmp.gt.f32.partialorder %v4221_v42, 0.0  ;;  %v4293_v28 = vmul.f32 0.1, %v4221_v42 }
 0x4b5   : > { %4357 = vst.msk [vmem:[%s11581_s9 + $0xe0] sm:$0xff] %vm4328_vm7, %v4324_v47  ;;  %v4327_v46 = vsel %vm4263_vm3, %v4229_v12, %v4295_v61 }
 0x4b6   : > { %4360 = vst.msk [vmem:[%s11581_s9 + $0xf8] sm:$0xff] %vm4328_vm7, %v4327_v46  ;;  %v4325_v23 = vsel %vm4261_vm8, %v4221_v42, %v4293_v28 }
 0x4b7   : > { %4358 = vst.msk [vmem:[%s11581_s9 + $0xe8] sm:$0xff] %vm4328_vm7, %v4325_v23 }
 0x4b8 PF: > { %s13_s14 = sadd.s32 1, %s6467_s14   ;;  %s13582_s12 = smov %s6463_s13 }
 0x4b9   : > { %p10_p6 = scmp.ge.s32.totalorder %s13_s14, 4   ;;  %s13583_s13 = smov %s13585_s15 }
 0x4bb   :  { %12 = sbr.rel (!%p10_p6) target bundleno = 2 (0x2), region = 62 }

</bundles_post_ra>
